<compile_context>
chip_gen: v6e
topology: v6e:2x2x1
jax: 0.10.0
libtpu: 0.0.40
codegen_flags: <defaults>
</compile_context>

<pallas_src>
import jax
import jax.numpy as jnp
import numpy as np
from jax.experimental import pallas as pl
from jax.experimental.pallas import tpu as pltpu

# Static shapes implied by the module: 28 -> conv(5) -> 24 -> pool(2,2) -> 12.
H_IN = 28
K = 5
H_POOL = 12
C_OUT = 32
HID = 32
N_CLS = 2
F_POOL = H_POOL * C_OUT          # 384 = pooled lanes per row (pw*32 + co)
N_BAND = 2 * F_POOL              # 768 = [even cols | odd cols]
TB_DEFAULT = 32                  # images per grid step (multiple of 8)


def _round_up(n, m):
    return ((n + m - 1) // m) * m


# ---------------------------------------------------------------------------
# Fused kernel. Per grid step (one batch tile of TB images):
#   xe_ref, xo_ref : [1, 14*TB, 28]  even / odd input rows; row index = d*TB + b
#   wb_ref         : [5, 28, 768]    banded conv weights (per conv kernel-row)
#   bc_ref         : [1, 384]        conv bias tiled as pw*32+co
#   w1_ref         : [12, 384, 32]   layer1 weight, [ph, pw*32+co, k]
#   b1_ref         : [1, 32]
#   w2_ref         : [32, 128]       output weight, zero-padded to 128 lanes
#   b2_ref         : [1, 128]
#   o_ref          : [TB, 128]       sigmoid(logits), lane-dense
# ---------------------------------------------------------------------------
def fused_kernel(xe_ref, xo_ref, wb_ref, bc_ref, w1_ref, b1_ref, w2_ref,
                 b2_ref, o_ref):
    tb = o_ref.shape[0]
    xe = xe_ref[0]                                  # [14*TB, 28]
    xo = xo_ref[0]                                  # [14*TB, 28]

    # Conv as banded matmuls over the 28-wide input rows.  For a given output
    # row parity, conv row r needs input rows r+kh; each term is an aligned
    # sublane slice of xe/xo (offset m*TB) -> one [12*TB,28] @ [28,768] matmul.
    def conv_rows(terms):
        acc = None
        for kh, (src, m) in enumerate(terms):
            lhs = src[m * tb:(m + 12) * tb]         # [12*TB, 28], rows = ph*TB+b
            part = jnp.dot(lhs, wb_ref[kh], preferred_element_type=jnp.float32)
            acc = part if acc is None else acc + part
        return acc                                  # [12*TB, 768]

    # even output rows r = 2*ph :  input rows 2ph, 2ph+1, 2ph+2, 2ph+3, 2ph+4
    acc_e = conv_rows([(xe, 0), (xo, 0), (xe, 1), (xo, 1), (xe, 2)])
    # odd  output rows r = 2*ph+1: input rows 2ph+1 ... 2ph+5
    acc_o = conv_rows([(xo, 0), (xe, 1), (xo, 1), (xe, 2), (xo, 2)])

    # 2x2 max-pool: row parity = acc_e vs acc_o, column parity = lane halves.
    pooled = jnp.maximum(
        jnp.maximum(acc_e[:, :F_POOL], acc_e[:, F_POOL:]),
        jnp.maximum(acc_o[:, :F_POOL], acc_o[:, F_POOL:]))   # [12*TB, 384]
    # conv bias + ReLU after the max (bias window-constant, ReLU monotone).
    pooled = jnp.maximum(pooled + bc_ref[...], 0.0)

    # layer1: contract (ph, pw, co) without any relayout -> 12 small matmuls.
    h = None
    for ph in range(H_POOL):
        part = jnp.dot(pooled[ph * tb:(ph + 1) * tb], w1_ref[ph],
                       preferred_element_type=jnp.float32)
        h = part if h is None else h + part
    h = jnp.maximum(h + b1_ref[...], 0.0)           # [TB, 32]

    z = jnp.dot(h, w2_ref[...], preferred_element_type=jnp.float32) + b2_ref[...]
    o_ref[...] = jax.nn.sigmoid(z).astype(o_ref.dtype)   # [TB, 128] lane-dense


# ---------------------------------------------------------------------------
# One-time parameter preparation (hoisted out of the forward pass).
# Torch layouts in, kernel layouts out.
# ---------------------------------------------------------------------------
def prepare_params(torch_params):
    conv_w, conv_b, fc1_w, fc1_b, fc2_w, fc2_b = [np.asarray(p) for p in torch_params]

    # Banded conv weights contracting the 28-wide input row:
    #   wband[kh, i,        pw*32+co] = conv_w[co,0,kh, i-2*pw  ]  (even out col)
    #   wband[kh, i, 384 +  pw*32+co] = conv_w[co,0,kh, i-2*pw-1]  (odd  out col)
    wband = np.zeros((K, H_IN, 2, H_POOL, C_OUT), np.float32)
    for pw in range(H_POOL):
        for kw in range(K):
            w_khco = conv_w[:, 0, :, kw].T                    # [kh, co]
            wband[:, 2 * pw + kw, 0, pw, :] = w_khco
            wband[:, 2 * pw + 1 + kw, 1, pw, :] = w_khco
    wband = wband.reshape(K, H_IN, N_BAND)

    bconv = np.tile(conv_b.astype(np.float32), H_POOL).reshape(1, F_POOL)

    # fc1: torch in-index = co*144 + ph*12 + pw  ->  [ph, pw*32+co, k]
    w1blk = fc1_w.reshape(HID, C_OUT, H_POOL, H_POOL)         # [k, c, ph, pw]
    w1blk = np.transpose(w1blk, (2, 3, 1, 0)).reshape(H_POOL, F_POOL, HID)
    b1 = fc1_b.reshape(1, HID).astype(np.float32)

    # output layer, zero-padded to 128 lanes for a lane-dense store.
    w2p = np.zeros((HID, 128), np.float32)
    w2p[:, :N_CLS] = fc2_w.T
    b2p = np.zeros((1, 128), np.float32)
    b2p[0, :N_CLS] = fc2_b
    return tuple(jnp.asarray(a) for a in (wband, bconv, w1blk, b1, w2p, b2p))


# ---------------------------------------------------------------------------
# Forward wrapper: parity-split + batch-group the raw input (cheap, ~3 KiB/img),
# one fused pallas_call, slice the 2 real classes off the lane-padded output.
# ---------------------------------------------------------------------------
def infix_classifier_forward(x_nchw, prepared, tb=TB_DEFAULT):
    wband, bconv, w1blk, b1, w2p, b2p = prepared
    B = x_nchw.shape[0]
    tb = _round_up(tb, 8)
    tb = max(8, min(tb, _round_up(B, 8)))      # small batches -> small tile
    padB = _round_up(B, tb)
    n_tiles = padB // tb                        # >= 2 for large B (v7x megacore)

    x = x_nchw[:, 0]                            # [B, 28, 28]
    if padB != B:
        x = jnp.pad(x, ((0, padB - B), (0, 0), (0, 0)))

    # Parity-split rows and regroup per batch tile so the kernel sees
    # row index d*TB + b (aligned sublane slices, no in-kernel relayout).
    def group(rows):                            # rows: [padB, 14, 28]
        g = rows.reshape(n_tiles, tb, 14, H_IN)
        return jnp.transpose(g, (0, 2, 1, 3)).reshape(n_tiles, 14 * tb, H_IN)

    xe_g = group(x[:, 0::2, :])
    xo_g = group(x[:, 1::2, :])

    out = pl.pallas_call(
        fused_kernel,
        out_shape=jax.ShapeDtypeStruct((padB, 128), jnp.float32),
        grid_spec=pltpu.PrefetchScalarGridSpec(
            num_scalar_prefetch=0,
            grid=(n_tiles,),
            in_specs=[
                pl.BlockSpec((1, 14 * tb, H_IN), lambda i: (i, 0, 0)),
                pl.BlockSpec((1, 14 * tb, H_IN), lambda i: (i, 0, 0)),
                pl.BlockSpec((K, H_IN, N_BAND), lambda i: (0, 0, 0)),   # resident
                pl.BlockSpec((1, F_POOL), lambda i: (0, 0)),            # resident
                pl.BlockSpec((H_POOL, F_POOL, HID), lambda i: (0, 0, 0)),
                pl.BlockSpec((1, HID), lambda i: (0, 0)),
                pl.BlockSpec((HID, 128), lambda i: (0, 0)),
                pl.BlockSpec((1, 128), lambda i: (0, 0)),
            ],
            out_specs=pl.BlockSpec((tb, 128), lambda i: (i, 0)),
        ),
        compiler_params=pltpu.CompilerParams(
            dimension_semantics=("parallel",),
            vmem_limit_bytes=32 * 1024 * 1024),
    )(xe_g, xo_g, wband, bconv, w1blk, b1, w2p, b2p)

    return out[:B, :N_CLS]


# ---------------------------------------------------------------------------
# Torch-layout init + pure-JAX reference (unit test per the review's request).
# ---------------------------------------------------------------------------
def init_torch_params(key):
    ks = jax.random.split(key, 6)
    conv_w = 0.05 * jax.random.normal(ks[0], (C_OUT, 1, K, K), jnp.float32)
    conv_b = 0.05 * jax.random.normal(ks[1], (C_OUT,), jnp.float32)
    fc1_w = 0.02 * jax.random.normal(ks[2], (HID, H_POOL * H_POOL * C_OUT), jnp.float32)
    fc1_b = 0.02 * jax.random.normal(ks[3], (HID,), jnp.float32)
    fc2_w = 0.1 * jax.random.normal(ks[4], (N_CLS, HID), jnp.float32)
    fc2_b = 0.1 * jax.random.normal(ks[5], (N_CLS,), jnp.float32)
    return conv_w, conv_b, fc1_w, fc1_b, fc2_w, fc2_b


def reference_forward(x_nchw, torch_params):
    conv_w, conv_b, fc1_w, fc1_b, fc2_w, fc2_b = torch_params
    hp = jax.lax.Precision.HIGHEST
    conv = jax.lax.conv_general_dilated(
        x_nchw, conv_w, window_strides=(1, 1), padding="VALID",
        dimension_numbers=("NCHW", "OIHW", "NCHW"), precision=hp)
    act = jnp.maximum(conv + conv_b.reshape(1, C_OUT, 1, 1), 0.0)
    pooled = jax.lax.reduce_window(act, -jnp.inf, jax.lax.max,
                                   (1, 1, 2, 2), (1, 1, 2, 2), "VALID")
    flat = pooled.reshape(x_nchw.shape[0], C_OUT * H_POOL * H_POOL)
    h = jnp.maximum(jnp.matmul(flat, fc1_w.T, precision=hp) + fc1_b, 0.0)
    z = jnp.matmul(h, fc2_w.T, precision=hp) + fc2_b
    return jax.nn.sigmoid(z)


if __name__ == "__main__":
    B = 2
    x = jax.random.normal(jax.random.PRNGKey(0), (B, 1, H_IN, H_IN), jnp.float32)
    torch_params = init_torch_params(jax.random.PRNGKey(42))
    prepared = prepare_params(torch_params)

    fwd = jax.jit(infix_classifier_forward)
    out = jax.block_until_ready(fwd(x, prepared))
    assert out.shape == (B, N_CLS)

    ref = jax.block_until_ready(reference_forward(x, torch_params))
    err = float(jnp.max(jnp.abs(out - ref)))
    assert err < 2e-3, f"mismatch vs reference: {err}"
    assert bool(jnp.all((out >= 0.0) & (out <= 1.0)))
    print("KERNEL_OK")
</pallas_src>

<mosaic_0001>
module attributes {stable_mosaic.version = 11 : i64} {
  func.func @fused_kernel(%arg0: i32, %arg1: memref<1x112x28xf32, #tpu.memory_space<vmem>>, %arg2: memref<1x112x28xf32, #tpu.memory_space<vmem>>, %arg3: memref<5x28x768xf32, #tpu.memory_space<vmem>>, %arg4: memref<1x384xf32, #tpu.memory_space<vmem>>, %arg5: memref<12x384x32xf32, #tpu.memory_space<vmem>>, %arg6: memref<1x32xf32, #tpu.memory_space<vmem>>, %arg7: memref<32x128xf32, #tpu.memory_space<vmem>>, %arg8: memref<1x128xf32, #tpu.memory_space<vmem>>, %arg9: memref<8x128xf32, #tpu.memory_space<vmem>>) attributes {dimension_semantics = [#tpu.dimension_semantics<parallel>], iteration_bounds = array<i64: 1>, scalar_prefetch = 0 : i64, scratch_operands = 0 : i64, tpu.core_type = #tpu.core_type<tc>, window_params = [{transform_indices = @transform_0, window_bounds = array<i64: 1, 112, 28>}, {transform_indices = @transform_1, window_bounds = array<i64: 1, 112, 28>}, {pipeline_mode = #tpu.pipeline_mode<synchronous>, transform_indices = @transform_2, window_bounds = array<i64: 5, 28, 768>}, {pipeline_mode = #tpu.pipeline_mode<synchronous>, transform_indices = @transform_3, window_bounds = array<i64: 1, 384>}, {pipeline_mode = #tpu.pipeline_mode<synchronous>, transform_indices = @transform_4, window_bounds = array<i64: 12, 384, 32>}, {pipeline_mode = #tpu.pipeline_mode<synchronous>, transform_indices = @transform_5, window_bounds = array<i64: 1, 32>}, {pipeline_mode = #tpu.pipeline_mode<synchronous>, transform_indices = @transform_6, window_bounds = array<i64: 32, 128>}, {pipeline_mode = #tpu.pipeline_mode<synchronous>, transform_indices = @transform_7, window_bounds = array<i64: 1, 128>}, {transform_indices = @transform_8, window_bounds = array<i64: 8, 128>}]} {
    %c0 = arith.constant 0 : index
    %c0_0 = arith.constant 0 : index
    %c0_1 = arith.constant 0 : index
    %0 = vector.load %arg1[%c0, %c0_0, %c0_1] : memref<1x112x28xf32, #tpu.memory_space<vmem>>, vector<1x112x28xf32>
    %1 = vector.shape_cast %0 : vector<1x112x28xf32> to vector<112x28xf32>
    %c0_2 = arith.constant 0 : index
    %c0_3 = arith.constant 0 : index
    %c0_4 = arith.constant 0 : index
    %2 = vector.load %arg2[%c0_2, %c0_3, %c0_4] : memref<1x112x28xf32, #tpu.memory_space<vmem>>, vector<1x112x28xf32>
    %3 = vector.shape_cast %2 : vector<1x112x28xf32> to vector<112x28xf32>
    %4 = vector.extract_strided_slice %1 {offsets = [0, 0], sizes = [96, 28], strides = [1, 1]} : vector<112x28xf32> to vector<96x28xf32>
    %c0_5 = arith.constant 0 : index
    %c0_6 = arith.constant 0 : index
    %c0_7 = arith.constant 0 : index
    %5 = vector.load %arg3[%c0_5, %c0_6, %c0_7] : memref<5x28x768xf32, #tpu.memory_space<vmem>>, vector<1x28x768xf32>
    %6 = vector.shape_cast %5 : vector<1x28x768xf32> to vector<28x768xf32>
    %cst = arith.constant dense<0.000000e+00> : vector<96x768xf32>
    %7 = tpu.matmul %4, %6, %cst {dimension_numbers = #tpu.dot_dimension_numbers<[1], [0], [0], [1], [0, 0, 1, 1], [], []>} : vector<96x28xf32>, vector<28x768xf32>, vector<96x768xf32> -> vector<96x768xf32>
    %8 = vector.extract_strided_slice %3 {offsets = [0, 0], sizes = [96, 28], strides = [1, 1]} : vector<112x28xf32> to vector<96x28xf32>
    %c1 = arith.constant 1 : index
    %c0_8 = arith.constant 0 : index
    %c0_9 = arith.constant 0 : index
    %9 = vector.load %arg3[%c1, %c0_8, %c0_9] : memref<5x28x768xf32, #tpu.memory_space<vmem>>, vector<1x28x768xf32>
    %10 = vector.shape_cast %9 : vector<1x28x768xf32> to vector<28x768xf32>
    %cst_10 = arith.constant dense<0.000000e+00> : vector<96x768xf32>
    %11 = tpu.matmul %8, %10, %cst_10 {dimension_numbers = #tpu.dot_dimension_numbers<[1], [0], [0], [1], [0, 0, 1, 1], [], []>} : vector<96x28xf32>, vector<28x768xf32>, vector<96x768xf32> -> vector<96x768xf32>
    %12 = arith.addf %7, %11 : vector<96x768xf32>
    %13 = vector.extract_strided_slice %1 {offsets = [8, 0], sizes = [96, 28], strides = [1, 1]} : vector<112x28xf32> to vector<96x28xf32>
    %c2 = arith.constant 2 : index
    %c0_11 = arith.constant 0 : index
    %c0_12 = arith.constant 0 : index
    %14 = vector.load %arg3[%c2, %c0_11, %c0_12] : memref<5x28x768xf32, #tpu.memory_space<vmem>>, vector<1x28x768xf32>
    %15 = vector.shape_cast %14 : vector<1x28x768xf32> to vector<28x768xf32>
    %cst_13 = arith.constant dense<0.000000e+00> : vector<96x768xf32>
    %16 = tpu.matmul %13, %15, %cst_13 {dimension_numbers = #tpu.dot_dimension_numbers<[1], [0], [0], [1], [0, 0, 1, 1], [], []>} : vector<96x28xf32>, vector<28x768xf32>, vector<96x768xf32> -> vector<96x768xf32>
    %17 = arith.addf %12, %16 : vector<96x768xf32>
    %18 = vector.extract_strided_slice %3 {offsets = [8, 0], sizes = [96, 28], strides = [1, 1]} : vector<112x28xf32> to vector<96x28xf32>
    %c3 = arith.constant 3 : index
    %c0_14 = arith.constant 0 : index
    %c0_15 = arith.constant 0 : index
    %19 = vector.load %arg3[%c3, %c0_14, %c0_15] : memref<5x28x768xf32, #tpu.memory_space<vmem>>, vector<1x28x768xf32>
    %20 = vector.shape_cast %19 : vector<1x28x768xf32> to vector<28x768xf32>
    %cst_16 = arith.constant dense<0.000000e+00> : vector<96x768xf32>
    %21 = tpu.matmul %18, %20, %cst_16 {dimension_numbers = #tpu.dot_dimension_numbers<[1], [0], [0], [1], [0, 0, 1, 1], [], []>} : vector<96x28xf32>, vector<28x768xf32>, vector<96x768xf32> -> vector<96x768xf32>
    %22 = arith.addf %17, %21 : vector<96x768xf32>
    %23 = vector.extract_strided_slice %1 {offsets = [16, 0], sizes = [96, 28], strides = [1, 1]} : vector<112x28xf32> to vector<96x28xf32>
    %c4 = arith.constant 4 : index
    %c0_17 = arith.constant 0 : index
    %c0_18 = arith.constant 0 : index
    %24 = vector.load %arg3[%c4, %c0_17, %c0_18] : memref<5x28x768xf32, #tpu.memory_space<vmem>>, vector<1x28x768xf32>
    %25 = vector.shape_cast %24 : vector<1x28x768xf32> to vector<28x768xf32>
    %cst_19 = arith.constant dense<0.000000e+00> : vector<96x768xf32>
    %26 = tpu.matmul %23, %25, %cst_19 {dimension_numbers = #tpu.dot_dimension_numbers<[1], [0], [0], [1], [0, 0, 1, 1], [], []>} : vector<96x28xf32>, vector<28x768xf32>, vector<96x768xf32> -> vector<96x768xf32>
    %27 = arith.addf %22, %26 : vector<96x768xf32>
    %28 = vector.extract_strided_slice %3 {offsets = [0, 0], sizes = [96, 28], strides = [1, 1]} : vector<112x28xf32> to vector<96x28xf32>
    %c0_20 = arith.constant 0 : index
    %c0_21 = arith.constant 0 : index
    %c0_22 = arith.constant 0 : index
    %29 = vector.load %arg3[%c0_20, %c0_21, %c0_22] : memref<5x28x768xf32, #tpu.memory_space<vmem>>, vector<1x28x768xf32>
    %30 = vector.shape_cast %29 : vector<1x28x768xf32> to vector<28x768xf32>
    %cst_23 = arith.constant dense<0.000000e+00> : vector<96x768xf32>
    %31 = tpu.matmul %28, %30, %cst_23 {dimension_numbers = #tpu.dot_dimension_numbers<[1], [0], [0], [1], [0, 0, 1, 1], [], []>} : vector<96x28xf32>, vector<28x768xf32>, vector<96x768xf32> -> vector<96x768xf32>
    %32 = vector.extract_strided_slice %1 {offsets = [8, 0], sizes = [96, 28], strides = [1, 1]} : vector<112x28xf32> to vector<96x28xf32>
    %c1_24 = arith.constant 1 : index
    %c0_25 = arith.constant 0 : index
    %c0_26 = arith.constant 0 : index
    %33 = vector.load %arg3[%c1_24, %c0_25, %c0_26] : memref<5x28x768xf32, #tpu.memory_space<vmem>>, vector<1x28x768xf32>
    %34 = vector.shape_cast %33 : vector<1x28x768xf32> to vector<28x768xf32>
    %cst_27 = arith.constant dense<0.000000e+00> : vector<96x768xf32>
    %35 = tpu.matmul %32, %34, %cst_27 {dimension_numbers = #tpu.dot_dimension_numbers<[1], [0], [0], [1], [0, 0, 1, 1], [], []>} : vector<96x28xf32>, vector<28x768xf32>, vector<96x768xf32> -> vector<96x768xf32>
    %36 = arith.addf %31, %35 : vector<96x768xf32>
    %37 = vector.extract_strided_slice %3 {offsets = [8, 0], sizes = [96, 28], strides = [1, 1]} : vector<112x28xf32> to vector<96x28xf32>
    %c2_28 = arith.constant 2 : index
    %c0_29 = arith.constant 0 : index
    %c0_30 = arith.constant 0 : index
    %38 = vector.load %arg3[%c2_28, %c0_29, %c0_30] : memref<5x28x768xf32, #tpu.memory_space<vmem>>, vector<1x28x768xf32>
    %39 = vector.shape_cast %38 : vector<1x28x768xf32> to vector<28x768xf32>
    %cst_31 = arith.constant dense<0.000000e+00> : vector<96x768xf32>
    %40 = tpu.matmul %37, %39, %cst_31 {dimension_numbers = #tpu.dot_dimension_numbers<[1], [0], [0], [1], [0, 0, 1, 1], [], []>} : vector<96x28xf32>, vector<28x768xf32>, vector<96x768xf32> -> vector<96x768xf32>
    %41 = arith.addf %36, %40 : vector<96x768xf32>
    %42 = vector.extract_strided_slice %1 {offsets = [16, 0], sizes = [96, 28], strides = [1, 1]} : vector<112x28xf32> to vector<96x28xf32>
    %c3_32 = arith.constant 3 : index
    %c0_33 = arith.constant 0 : index
    %c0_34 = arith.constant 0 : index
    %43 = vector.load %arg3[%c3_32, %c0_33, %c0_34] : memref<5x28x768xf32, #tpu.memory_space<vmem>>, vector<1x28x768xf32>
    %44 = vector.shape_cast %43 : vector<1x28x768xf32> to vector<28x768xf32>
    %cst_35 = arith.constant dense<0.000000e+00> : vector<96x768xf32>
    %45 = tpu.matmul %42, %44, %cst_35 {dimension_numbers = #tpu.dot_dimension_numbers<[1], [0], [0], [1], [0, 0, 1, 1], [], []>} : vector<96x28xf32>, vector<28x768xf32>, vector<96x768xf32> -> vector<96x768xf32>
    %46 = arith.addf %41, %45 : vector<96x768xf32>
    %47 = vector.extract_strided_slice %3 {offsets = [16, 0], sizes = [96, 28], strides = [1, 1]} : vector<112x28xf32> to vector<96x28xf32>
    %c4_36 = arith.constant 4 : index
    %c0_37 = arith.constant 0 : index
    %c0_38 = arith.constant 0 : index
    %48 = vector.load %arg3[%c4_36, %c0_37, %c0_38] : memref<5x28x768xf32, #tpu.memory_space<vmem>>, vector<1x28x768xf32>
    %49 = vector.shape_cast %48 : vector<1x28x768xf32> to vector<28x768xf32>
    %cst_39 = arith.constant dense<0.000000e+00> : vector<96x768xf32>
    %50 = tpu.matmul %47, %49, %cst_39 {dimension_numbers = #tpu.dot_dimension_numbers<[1], [0], [0], [1], [0, 0, 1, 1], [], []>} : vector<96x28xf32>, vector<28x768xf32>, vector<96x768xf32> -> vector<96x768xf32>
    %51 = arith.addf %46, %50 : vector<96x768xf32>
    %52 = vector.extract_strided_slice %27 {offsets = [0, 0], sizes = [96, 384], strides = [1, 1]} : vector<96x768xf32> to vector<96x384xf32>
    %53 = vector.extract_strided_slice %27 {offsets = [0, 384], sizes = [96, 384], strides = [1, 1]} : vector<96x768xf32> to vector<96x384xf32>
    %54 = arith.maximumf %52, %53 : vector<96x384xf32>
    %55 = vector.extract_strided_slice %51 {offsets = [0, 0], sizes = [96, 384], strides = [1, 1]} : vector<96x768xf32> to vector<96x384xf32>
    %56 = vector.extract_strided_slice %51 {offsets = [0, 384], sizes = [96, 384], strides = [1, 1]} : vector<96x768xf32> to vector<96x384xf32>
    %57 = arith.maximumf %55, %56 : vector<96x384xf32>
    %58 = arith.maximumf %54, %57 : vector<96x384xf32>
    %c0_40 = arith.constant 0 : index
    %c0_41 = arith.constant 0 : index
    %59 = vector.load %arg4[%c0_40, %c0_41] : memref<1x384xf32, #tpu.memory_space<vmem>>, vector<1x384xf32>
    %60 = vector.broadcast %59 : vector<1x384xf32> to vector<96x384xf32>
    %61 = arith.addf %58, %60 : vector<96x384xf32>
    %cst_42 = arith.constant 0.000000e+00 : f32
    %62 = vector.broadcast %cst_42 : f32 to vector<96x384xf32>
    %63 = arith.maximumf %61, %62 : vector<96x384xf32>
    %64 = vector.extract_strided_slice %63 {offsets = [0, 0], sizes = [8, 384], strides = [1, 1]} : vector<96x384xf32> to vector<8x384xf32>
    %c0_43 = arith.constant 0 : index
    %c0_44 = arith.constant 0 : index
    %c0_45 = arith.constant 0 : index
    %65 = vector.load %arg5[%c0_43, %c0_44, %c0_45] : memref<12x384x32xf32, #tpu.memory_space<vmem>>, vector<1x384x32xf32>
    %66 = vector.shape_cast %65 : vector<1x384x32xf32> to vector<384x32xf32>
    %cst_46 = arith.constant dense<0.000000e+00> : vector<8x32xf32>
    %67 = tpu.matmul %64, %66, %cst_46 {dimension_numbers = #tpu.dot_dimension_numbers<[1], [0], [0], [1], [0, 0, 1, 1], [], []>} : vector<8x384xf32>, vector<384x32xf32>, vector<8x32xf32> -> vector<8x32xf32>
    %68 = vector.extract_strided_slice %63 {offsets = [8, 0], sizes = [8, 384], strides = [1, 1]} : vector<96x384xf32> to vector<8x384xf32>
    %c1_47 = arith.constant 1 : index
    %c0_48 = arith.constant 0 : index
    %c0_49 = arith.constant 0 : index
    %69 = vector.load %arg5[%c1_47, %c0_48, %c0_49] : memref<12x384x32xf32, #tpu.memory_space<vmem>>, vector<1x384x32xf32>
    %70 = vector.shape_cast %69 : vector<1x384x32xf32> to vector<384x32xf32>
    %cst_50 = arith.constant dense<0.000000e+00> : vector<8x32xf32>
    %71 = tpu.matmul %68, %70, %cst_50 {dimension_numbers = #tpu.dot_dimension_numbers<[1], [0], [0], [1], [0, 0, 1, 1], [], []>} : vector<8x384xf32>, vector<384x32xf32>, vector<8x32xf32> -> vector<8x32xf32>
    %72 = arith.addf %67, %71 : vector<8x32xf32>
    %73 = vector.extract_strided_slice %63 {offsets = [16, 0], sizes = [8, 384], strides = [1, 1]} : vector<96x384xf32> to vector<8x384xf32>
    %c2_51 = arith.constant 2 : index
    %c0_52 = arith.constant 0 : index
    %c0_53 = arith.constant 0 : index
    %74 = vector.load %arg5[%c2_51, %c0_52, %c0_53] : memref<12x384x32xf32, #tpu.memory_space<vmem>>, vector<1x384x32xf32>
    %75 = vector.shape_cast %74 : vector<1x384x32xf32> to vector<384x32xf32>
    %cst_54 = arith.constant dense<0.000000e+00> : vector<8x32xf32>
    %76 = tpu.matmul %73, %75, %cst_54 {dimension_numbers = #tpu.dot_dimension_numbers<[1], [0], [0], [1], [0, 0, 1, 1], [], []>} : vector<8x384xf32>, vector<384x32xf32>, vector<8x32xf32> -> vector<8x32xf32>
    %77 = arith.addf %72, %76 : vector<8x32xf32>
    %78 = vector.extract_strided_slice %63 {offsets = [24, 0], sizes = [8, 384], strides = [1, 1]} : vector<96x384xf32> to vector<8x384xf32>
    %c3_55 = arith.constant 3 : index
    %c0_56 = arith.constant 0 : index
    %c0_57 = arith.constant 0 : index
    %79 = vector.load %arg5[%c3_55, %c0_56, %c0_57] : memref<12x384x32xf32, #tpu.memory_space<vmem>>, vector<1x384x32xf32>
    %80 = vector.shape_cast %79 : vector<1x384x32xf32> to vector<384x32xf32>
    %cst_58 = arith.constant dense<0.000000e+00> : vector<8x32xf32>
    %81 = tpu.matmul %78, %80, %cst_58 {dimension_numbers = #tpu.dot_dimension_numbers<[1], [0], [0], [1], [0, 0, 1, 1], [], []>} : vector<8x384xf32>, vector<384x32xf32>, vector<8x32xf32> -> vector<8x32xf32>
    %82 = arith.addf %77, %81 : vector<8x32xf32>
    %83 = vector.extract_strided_slice %63 {offsets = [32, 0], sizes = [8, 384], strides = [1, 1]} : vector<96x384xf32> to vector<8x384xf32>
    %c4_59 = arith.constant 4 : index
    %c0_60 = arith.constant 0 : index
    %c0_61 = arith.constant 0 : index
    %84 = vector.load %arg5[%c4_59, %c0_60, %c0_61] : memref<12x384x32xf32, #tpu.memory_space<vmem>>, vector<1x384x32xf32>
    %85 = vector.shape_cast %84 : vector<1x384x32xf32> to vector<384x32xf32>
    %cst_62 = arith.constant dense<0.000000e+00> : vector<8x32xf32>
    %86 = tpu.matmul %83, %85, %cst_62 {dimension_numbers = #tpu.dot_dimension_numbers<[1], [0], [0], [1], [0, 0, 1, 1], [], []>} : vector<8x384xf32>, vector<384x32xf32>, vector<8x32xf32> -> vector<8x32xf32>
    %87 = arith.addf %82, %86 : vector<8x32xf32>
    %88 = vector.extract_strided_slice %63 {offsets = [40, 0], sizes = [8, 384], strides = [1, 1]} : vector<96x384xf32> to vector<8x384xf32>
    %c5 = arith.constant 5 : index
    %c0_63 = arith.constant 0 : index
    %c0_64 = arith.constant 0 : index
    %89 = vector.load %arg5[%c5, %c0_63, %c0_64] : memref<12x384x32xf32, #tpu.memory_space<vmem>>, vector<1x384x32xf32>
    %90 = vector.shape_cast %89 : vector<1x384x32xf32> to vector<384x32xf32>
    %cst_65 = arith.constant dense<0.000000e+00> : vector<8x32xf32>
    %91 = tpu.matmul %88, %90, %cst_65 {dimension_numbers = #tpu.dot_dimension_numbers<[1], [0], [0], [1], [0, 0, 1, 1], [], []>} : vector<8x384xf32>, vector<384x32xf32>, vector<8x32xf32> -> vector<8x32xf32>
    %92 = arith.addf %87, %91 : vector<8x32xf32>
    %93 = vector.extract_strided_slice %63 {offsets = [48, 0], sizes = [8, 384], strides = [1, 1]} : vector<96x384xf32> to vector<8x384xf32>
    %c6 = arith.constant 6 : index
    %c0_66 = arith.constant 0 : index
    %c0_67 = arith.constant 0 : index
    %94 = vector.load %arg5[%c6, %c0_66, %c0_67] : memref<12x384x32xf32, #tpu.memory_space<vmem>>, vector<1x384x32xf32>
    %95 = vector.shape_cast %94 : vector<1x384x32xf32> to vector<384x32xf32>
    %cst_68 = arith.constant dense<0.000000e+00> : vector<8x32xf32>
    %96 = tpu.matmul %93, %95, %cst_68 {dimension_numbers = #tpu.dot_dimension_numbers<[1], [0], [0], [1], [0, 0, 1, 1], [], []>} : vector<8x384xf32>, vector<384x32xf32>, vector<8x32xf32> -> vector<8x32xf32>
    %97 = arith.addf %92, %96 : vector<8x32xf32>
    %98 = vector.extract_strided_slice %63 {offsets = [56, 0], sizes = [8, 384], strides = [1, 1]} : vector<96x384xf32> to vector<8x384xf32>
    %c7 = arith.constant 7 : index
    %c0_69 = arith.constant 0 : index
    %c0_70 = arith.constant 0 : index
    %99 = vector.load %arg5[%c7, %c0_69, %c0_70] : memref<12x384x32xf32, #tpu.memory_space<vmem>>, vector<1x384x32xf32>
    %100 = vector.shape_cast %99 : vector<1x384x32xf32> to vector<384x32xf32>
    %cst_71 = arith.constant dense<0.000000e+00> : vector<8x32xf32>
    %101 = tpu.matmul %98, %100, %cst_71 {dimension_numbers = #tpu.dot_dimension_numbers<[1], [0], [0], [1], [0, 0, 1, 1], [], []>} : vector<8x384xf32>, vector<384x32xf32>, vector<8x32xf32> -> vector<8x32xf32>
    %102 = arith.addf %97, %101 : vector<8x32xf32>
    %103 = vector.extract_strided_slice %63 {offsets = [64, 0], sizes = [8, 384], strides = [1, 1]} : vector<96x384xf32> to vector<8x384xf32>
    %c8 = arith.constant 8 : index
    %c0_72 = arith.constant 0 : index
    %c0_73 = arith.constant 0 : index
    %104 = vector.load %arg5[%c8, %c0_72, %c0_73] : memref<12x384x32xf32, #tpu.memory_space<vmem>>, vector<1x384x32xf32>
    %105 = vector.shape_cast %104 : vector<1x384x32xf32> to vector<384x32xf32>
    %cst_74 = arith.constant dense<0.000000e+00> : vector<8x32xf32>
    %106 = tpu.matmul %103, %105, %cst_74 {dimension_numbers = #tpu.dot_dimension_numbers<[1], [0], [0], [1], [0, 0, 1, 1], [], []>} : vector<8x384xf32>, vector<384x32xf32>, vector<8x32xf32> -> vector<8x32xf32>
    %107 = arith.addf %102, %106 : vector<8x32xf32>
    %108 = vector.extract_strided_slice %63 {offsets = [72, 0], sizes = [8, 384], strides = [1, 1]} : vector<96x384xf32> to vector<8x384xf32>
    %c9 = arith.constant 9 : index
    %c0_75 = arith.constant 0 : index
    %c0_76 = arith.constant 0 : index
    %109 = vector.load %arg5[%c9, %c0_75, %c0_76] : memref<12x384x32xf32, #tpu.memory_space<vmem>>, vector<1x384x32xf32>
    %110 = vector.shape_cast %109 : vector<1x384x32xf32> to vector<384x32xf32>
    %cst_77 = arith.constant dense<0.000000e+00> : vector<8x32xf32>
    %111 = tpu.matmul %108, %110, %cst_77 {dimension_numbers = #tpu.dot_dimension_numbers<[1], [0], [0], [1], [0, 0, 1, 1], [], []>} : vector<8x384xf32>, vector<384x32xf32>, vector<8x32xf32> -> vector<8x32xf32>
    %112 = arith.addf %107, %111 : vector<8x32xf32>
    %113 = vector.extract_strided_slice %63 {offsets = [80, 0], sizes = [8, 384], strides = [1, 1]} : vector<96x384xf32> to vector<8x384xf32>
    %c10 = arith.constant 10 : index
    %c0_78 = arith.constant 0 : index
    %c0_79 = arith.constant 0 : index
    %114 = vector.load %arg5[%c10, %c0_78, %c0_79] : memref<12x384x32xf32, #tpu.memory_space<vmem>>, vector<1x384x32xf32>
    %115 = vector.shape_cast %114 : vector<1x384x32xf32> to vector<384x32xf32>
    %cst_80 = arith.constant dense<0.000000e+00> : vector<8x32xf32>
    %116 = tpu.matmul %113, %115, %cst_80 {dimension_numbers = #tpu.dot_dimension_numbers<[1], [0], [0], [1], [0, 0, 1, 1], [], []>} : vector<8x384xf32>, vector<384x32xf32>, vector<8x32xf32> -> vector<8x32xf32>
    %117 = arith.addf %112, %116 : vector<8x32xf32>
    %118 = vector.extract_strided_slice %63 {offsets = [88, 0], sizes = [8, 384], strides = [1, 1]} : vector<96x384xf32> to vector<8x384xf32>
    %c11 = arith.constant 11 : index
    %c0_81 = arith.constant 0 : index
    %c0_82 = arith.constant 0 : index
    %119 = vector.load %arg5[%c11, %c0_81, %c0_82] : memref<12x384x32xf32, #tpu.memory_space<vmem>>, vector<1x384x32xf32>
    %120 = vector.shape_cast %119 : vector<1x384x32xf32> to vector<384x32xf32>
    %cst_83 = arith.constant dense<0.000000e+00> : vector<8x32xf32>
    %121 = tpu.matmul %118, %120, %cst_83 {dimension_numbers = #tpu.dot_dimension_numbers<[1], [0], [0], [1], [0, 0, 1, 1], [], []>} : vector<8x384xf32>, vector<384x32xf32>, vector<8x32xf32> -> vector<8x32xf32>
    %122 = arith.addf %117, %121 : vector<8x32xf32>
    %c0_84 = arith.constant 0 : index
    %c0_85 = arith.constant 0 : index
    %123 = vector.load %arg6[%c0_84, %c0_85] : memref<1x32xf32, #tpu.memory_space<vmem>>, vector<1x32xf32>
    %124 = vector.broadcast %123 : vector<1x32xf32> to vector<8x32xf32>
    %125 = arith.addf %122, %124 : vector<8x32xf32>
    %cst_86 = arith.constant 0.000000e+00 : f32
    %126 = vector.broadcast %cst_86 : f32 to vector<8x32xf32>
    %127 = arith.maximumf %125, %126 : vector<8x32xf32>
    %c0_87 = arith.constant 0 : index
    %c0_88 = arith.constant 0 : index
    %128 = vector.load %arg7[%c0_87, %c0_88] : memref<32x128xf32, #tpu.memory_space<vmem>>, vector<32x128xf32>
    %cst_89 = arith.constant dense<0.000000e+00> : vector<8x128xf32>
    %129 = tpu.matmul %127, %128, %cst_89 {dimension_numbers = #tpu.dot_dimension_numbers<[1], [0], [0], [1], [0, 0, 1, 1], [], []>} : vector<8x32xf32>, vector<32x128xf32>, vector<8x128xf32> -> vector<8x128xf32>
    %c0_90 = arith.constant 0 : index
    %c0_91 = arith.constant 0 : index
    %130 = vector.load %arg8[%c0_90, %c0_91] : memref<1x128xf32, #tpu.memory_space<vmem>>, vector<1x128xf32>
    %131 = vector.broadcast %130 : vector<1x128xf32> to vector<8x128xf32>
    %132 = arith.addf %129, %131 : vector<8x128xf32>
    %133 = arith.negf %132 : vector<8x128xf32>
    %134 = math.exp %133 : vector<8x128xf32>
    %cst_92 = arith.constant 1.000000e+00 : f32
    %135 = vector.broadcast %cst_92 : f32 to vector<8x128xf32>
    %136 = arith.addf %135, %134 : vector<8x128xf32>
    %137 = arith.divf %135, %136 : vector<8x128xf32>
    %c0_93 = arith.constant 0 : index
    %c0_94 = arith.constant 0 : index
    %138 = vector.load %arg9[%c0_93, %c0_94] : memref<8x128xf32, #tpu.memory_space<vmem>>, vector<8x128xf32>
    tpu.vector_store %arg9[%c0_93, %c0_94], %137 {strides = array<i32>} : memref<8x128xf32, #tpu.memory_space<vmem>>, vector<8x128xf32>,
    return
  }
  func.func @transform_0(%arg0: i32) -> (i32, i32, i32) {
    %c0_i32 = arith.constant 0 : i32
    %c0_i32_0 = arith.constant 0 : i32
    %c0_i32_1 = arith.constant 0 : i32
    return %arg0, %c0_i32, %c0_i32_0 : i32, i32, i32
  }
  func.func @transform_1(%arg0: i32) -> (i32, i32, i32) {
    %c0_i32 = arith.constant 0 : i32
    %c0_i32_0 = arith.constant 0 : i32
    %c0_i32_1 = arith.constant 0 : i32
    return %arg0, %c0_i32, %c0_i32_0 : i32, i32, i32
  }
  func.func @transform_2(%arg0: i32) -> (i32, i32, i32) {
    %c0_i32 = arith.constant 0 : i32
    %c0_i32_0 = arith.constant 0 : i32
    %c0_i32_1 = arith.constant 0 : i32
    %c0_i32_2 = arith.constant 0 : i32
    return %c0_i32, %c0_i32_0, %c0_i32_1 : i32, i32, i32
  }
  func.func @transform_3(%arg0: i32) -> (i32, i32) {
    %c0_i32 = arith.constant 0 : i32
    %c0_i32_0 = arith.constant 0 : i32
    %c0_i32_1 = arith.constant 0 : i32
    return %c0_i32, %c0_i32_0 : i32, i32
  }
  func.func @transform_4(%arg0: i32) -> (i32, i32, i32) {
    %c0_i32 = arith.constant 0 : i32
    %c0_i32_0 = arith.constant 0 : i32
    %c0_i32_1 = arith.constant 0 : i32
    %c0_i32_2 = arith.constant 0 : i32
    return %c0_i32, %c0_i32_0, %c0_i32_1 : i32, i32, i32
  }
  func.func @transform_5(%arg0: i32) -> (i32, i32) {
    %c0_i32 = arith.constant 0 : i32
    %c0_i32_0 = arith.constant 0 : i32
    %c0_i32_1 = arith.constant 0 : i32
    return %c0_i32, %c0_i32_0 : i32, i32
  }
  func.func @transform_6(%arg0: i32) -> (i32, i32) {
    %c0_i32 = arith.constant 0 : i32
    %c0_i32_0 = arith.constant 0 : i32
    %c0_i32_1 = arith.constant 0 : i32
    return %c0_i32, %c0_i32_0 : i32, i32
  }
  func.func @transform_7(%arg0: i32) -> (i32, i32) {
    %c0_i32 = arith.constant 0 : i32
    %c0_i32_0 = arith.constant 0 : i32
    %c0_i32_1 = arith.constant 0 : i32
    return %c0_i32, %c0_i32_0 : i32, i32
  }
  func.func @transform_8(%arg0: i32) -> (i32, i32) {
    %c0_i32 = arith.constant 0 : i32
    %c0_i32_0 = arith.constant 0 : i32
    return %arg0, %c0_i32 : i32, i32
  }
}

</mosaic_0001>

<bundles_post_ra>
// kernel: infix_classifier_forward.1
= control target key start
LH: loop header
LB: loop body
LE: loop exit
PB: predicated region body
PF: predicated region fallthrough
CT: control target
= control target key end

     0   :  { %vm143_vm0 = vcmask 1043456   ;;  %v16334_v3 = vmov 0.0   ;;  %vm106_vm1 = vcmask 228352   ;;  %vm9764_vm2 = vmmov 0   ;;  %s16325_s2 = inlined_call_operand.vmem [shape: f32[5,28,768], index: 2, kind: input, shape index: {}]   ;;  %s16326_s1 = inlined_call_operand.vmem [shape: f32[1,112,28], index: 1, kind: input, shape index: {}]   ;;  %s16327_s0 = inlined_call_operand.vmem [shape: f32[1,112,28], index: 0, kind: input, shape index: {}]   ;;  %s16328_s4 = inlined_call_operand.vmem [shape: f32[12,384,32], index: 4, kind: input, shape index: {}]   ;;  %s16329_s3 = inlined_call_operand.vmem [shape: f32[1,384], index: 3, kind: input, shape index: {}]   ;;  %s16330_s6 = inlined_call_operand.vmem [shape: f32[32,128], index: 6, kind: input, shape index: {}]   ;;  %s16331_s5 = inlined_call_operand.vmem [shape: f32[1,32], index: 5, kind: input, shape index: {}]   ;;  %s16332_s7 = inlined_call_operand.vmem [shape: f32[1,128], index: 7, kind: input, shape index: {}]   ;;  %s16333_s8 = inlined_call_operand.vmem [shape: f32[8,128], index: 8, kind: output, shape index: {}]  }
   0x1   :  { %v7497_v0 = vld [vmem:[%s16325_s2 + $0x158] sm:$0xf]  ;;  %v7499_v1 = vld [vmem:[%s16325_s2 + $0x168] sm:$0xf]  ;;  %v7496_v2 = vld [vmem:[%s16325_s2 + $0x150] sm:$0xf]  ;;  %226 = vmatprep.mubr.f32.mxu0 %v16334_v3  ;;  %363 = vmatprep.mubr.f32.mxu1 %v16334_v3 }
   0x2   :  { %7502 = vmatprep.subr.msk.mxu0 %vm143_vm0, %v7497_v0  ;;  %7516 = vmatprep.subr.msk.mxu1 %vm143_vm0, %v7499_v1  ;;  %v7498_v4 = vld [vmem:[%s16325_s2 + $0x160] sm:$0xf]  ;;  %v7491_v5 = vld [vmem:[%s16325_s2 + $0x128] sm:$0xff]  ;;  %v7493_v6 = vld [vmem:[%s16325_s2 + $0x138] sm:$0xff]  ;;  %vm7393_vm3 = vcmask 261120  }
   0x3   :  { %7503 = vmatpush1.msk.msra.mxu0 %vm143_vm0, %v7496_v2  ;;  %7517 = vmatpush1.msk.msra.mxu1 %vm143_vm0, %v7498_v4  ;;  %v7490_v7 = vld [vmem:[%s16325_s2 + $0x120] sm:$0xff]  ;;  %v7492_v8 = vld [vmem:[%s16325_s2 + $0x130] sm:$0xff]  ;;  %v7485_v9 = vld [vmem:[%s16325_s2 + $0xf8] sm:$0xff] }
   0x4   :  { %188 = vmatprep.subr.mxu0 %v7491_v5  ;;  %325 = vmatprep.subr.mxu1 %v7493_v6  ;;  %v7487_v10 = vld [vmem:[%s16325_s2 + $0x108] sm:$0xff]  ;;  %v7484_v11 = vld [vmem:[%s16325_s2 + $0xf0] sm:$0xff]  ;;  %v7486_v12 = vld [vmem:[%s16325_s2 + $0x100] sm:$0xff] }
   0x5   :  { %189 = vmatpush1.msra.mxu0 %v7490_v7  ;;  %326 = vmatpush1.msra.mxu1 %v7492_v8  ;;  %v7479_v13 = vld [vmem:[%s16325_s2 + $0xc8] sm:$0xff]  ;;  %v7481_v14 = vld [vmem:[%s16325_s2 + $0xd8] sm:$0xff]  ;;  %v7478_v15 = vld [vmem:[%s16325_s2 + $0xc0] sm:$0xff] }
   0x6   :  { %190 = vmatprep.subr.mxu0 %v7485_v9  ;;  %327 = vmatprep.subr.mxu1 %v7487_v10  ;;  %v7480_v16 = vld [vmem:[%s16325_s2 + $0xd0] sm:$0xff]  ;;  %v9867_v17 = vld [vmem:[%s16326_s1] sm:$0xff]  ;;  %v7501_v18 = vld [vmem:[%s16325_s2 + $0x178] sm:$0xf] }
   0x7   :  { %191 = vmatpush1.msra.mxu0 %v7484_v11  ;;  %328 = vmatpush1.msra.mxu1 %v7486_v12  ;;  %v76_v19 = vld [vmem:[%s16325_s2 + $0x98] sm:$0xf]  ;;  %v7500_v20 = vld [vmem:[%s16325_s2 + $0x170] sm:$0xf]  ;;  %v9890_v22 = vld [vmem:[%s16326_s1 + $0x8] sm:$0xff] }
   0x8   :  { %192 = vmatprep.subr.mxu0 %v7479_v13  ;;  %329 = vmatprep.subr.mxu1 %v7481_v14  ;;  %v75_v21 = vld [vmem:[%s16325_s2 + $0x90] sm:$0xf]  ;;  %v7495_v23 = vld [vmem:[%s16325_s2 + $0x148] sm:$0xff]  ;;  %v7494_v25 = vld [vmem:[%s16325_s2 + $0x140] sm:$0xff] }
   0x9   :  { %193 = vmatpush1.msra.mxu0 %v7478_v15  ;;  %330 = vmatpush1.msra.mxu1 %v7480_v16  ;;  %v70_v24 = vld [vmem:[%s16325_s2 + $0x68] sm:$0xff]  ;;  %v69_v26 = vld [vmem:[%s16325_s2 + $0x60] sm:$0xff]  ;;  %v9917_v27 = vld [vmem:[%s16326_s1 + $0x10] sm:$0xff] }
   0xa   :  { %7504 = vmatmul.mubr.msk.f32.vlgmr.msra.gmra.mxu0 %vm106_vm1, %v9867_v17  ;;  %7518 = vmatmul.mubr.msk.f32.vlgmr.msra.gmra.mxu1 %vm106_vm1, %v9867_v17  ;;  %v7489_v28 = vld [vmem:[%s16325_s2 + $0x118] sm:$0xff]  ;;  %v7488_v30 = vld [vmem:[%s16325_s2 + $0x110] sm:$0xff]  ;;  %v7483_v33 = vld [vmem:[%s16325_s2 + $0xe8] sm:$0xff] }
   0xb   :  { %7530 = vmatprep.subr.msk.mxu0 %vm143_vm0, %v7501_v18  ;;  %7544 = vmatprep.subr.msk.mxu1 %vm143_vm0, %v76_v19  ;;  %v64_v29 = vld [vmem:[%s16325_s2 + $0x38] sm:$0xff]  ;;  %v63_v31 = vld [vmem:[%s16325_s2 + $0x30] sm:$0xff]  ;;  %v58_v34 = vld [vmem:[%s16325_s2 + $0x8] sm:$0xff] }
   0xc   :  { %7531 = vmatpush1.msk.msra.mxu0 %vm143_vm0, %v7500_v20  ;;  %7545 = vmatpush1.msk.msra.mxu1 %vm143_vm0, %v75_v21  ;;  %v9940_v32 = vld [vmem:[%s16326_s1 + $0x18] sm:$0xff]  ;;  %v7482_v35 = vld [vmem:[%s16325_s2 + $0xe0] sm:$0xff]  ;;  %v78_v38 = vld [vmem:[%s16325_s2 + $0xa8] sm:$0xf] }
   0xd   :  { %232 = vmatprep.mubr.f32.mxu0 %v16334_v3  ;;  %369 = vmatprep.mubr.f32.mxu1 %v16334_v3  ;;  %v57_v36 = vld [vmem:[%s16325_s2] sm:$0xff]  ;;  %v80_v39 = vld [vmem:[%s16325_s2 + $0xb8] sm:$0xf]  ;;  %v9980_v40 = vld [vmem:[%s16326_s1 + $0x28] sm:$0xff] }
   0xe   :  { %7505 = vmatmul.mubr.msk.f32.gmra.mxu0 %vm106_vm1, %v9890_v22  ;;  %7519 = vmatmul.mubr.msk.f32.gmra.mxu1 %vm106_vm1, %v9890_v22  ;;  %v9963_v37 = vld [vmem:[%s16326_s1 + $0x20] sm:$0xff]  ;;  %v9993_v41 = vld [vmem:[%s16326_s1 + $0x30] sm:$0xff]  ;;  %v10004_v42 = vld [vmem:[%s16326_s1 + $0x38] sm:$0xff] }
   0xf   :  { %238 = vmatprep.mubr.f32.mxu0 %v16334_v3  ;;  %375 = vmatprep.mubr.f32.mxu1 %v16334_v3  ;;  %v10015_v43 = vld [vmem:[%s16326_s1 + $0x40] sm:$0xff]  ;;  %v10026_v44 = vld [vmem:[%s16326_s1 + $0x48] sm:$0xff]  ;;  %v10037_v45 = vld [vmem:[%s16326_s1 + $0x50] sm:$0xff] }
  0x10   :  { %462 = vmatprep.subr.mxu0 %v7495_v23  ;;  %653 = vmatprep.subr.mxu1 %v70_v24  ;;  %v10048_v46 = vld [vmem:[%s16326_s1 + $0x58] sm:$0xff]  ;;  %v10059_v47 = vld [vmem:[%s16327_s0] sm:$0xff]  ;;  %v79_v49 = vld [vmem:[%s16325_s2 + $0xb0] sm:$0xf] }
  0x11   :  { %463 = vmatpush1.msra.mxu0 %v7494_v25  ;;  %654 = vmatpush1.msra.mxu1 %v69_v26  ;;  %v77_v48 = vld [vmem:[%s16325_s2 + $0xa0] sm:$0xf]  ;;  %v72_v50 = vld [vmem:[%s16325_s2 + $0x78] sm:$0xff]  ;;  %v74_v51 = vld [vmem:[%s16325_s2 + $0x88] sm:$0xff] }
  0x12   :  { %7506 = vmatmul.mubr.msk.f32.gmra.mxu0 %vm106_vm1, %v9917_v27  ;;  %7520 = vmatmul.mubr.msk.f32.gmra.mxu1 %vm106_vm1, %v9917_v27  ;;  %v10082_v52 = vld [vmem:[%s16327_s0 + $0x8] sm:$0xff]  ;;  %v71_v53 = vld [vmem:[%s16325_s2 + $0x70] sm:$0xff]  ;;  %v73_v54 = vld [vmem:[%s16325_s2 + $0x80] sm:$0xff] }
  0x13   :  { %244 = vmatprep.mubr.f32.mxu0 %v16334_v3  ;;  %381 = vmatprep.mubr.f32.mxu1 %v16334_v3  ;;  %v66_v55 = vld [vmem:[%s16325_s2 + $0x48] sm:$0xff]  ;;  %v68_v56 = vld [vmem:[%s16325_s2 + $0x58] sm:$0xff]  ;;  %v10107_v57 = vld [vmem:[%s16327_s0 + $0x10] sm:$0xff] }
  0x14   :  { %464 = vmatprep.subr.mxu0 %v7489_v28  ;;  %655 = vmatprep.subr.mxu1 %v64_v29  ;;  %v65_v58 = vld [vmem:[%s16325_s2 + $0x40] sm:$0xff]  ;;  %v67_v59 = vld [vmem:[%s16325_s2 + $0x50] sm:$0xff]  ;;  %v60_v60 = vld [vmem:[%s16325_s2 + $0x18] sm:$0xff] }
  0x15   :  { %465 = vmatpush1.msra.mxu0 %v7488_v30  ;;  %656 = vmatpush1.msra.mxu1 %v63_v31  ;;  %v62_v61 = vld [vmem:[%s16325_s2 + $0x28] sm:$0xff]  ;;  %v10130_v62 = vld [vmem:[%s16327_s0 + $0x18] sm:$0xff]  ;;  %v59_v63 = vld [vmem:[%s16325_s2 + $0x10] sm:$0xff] }
  0x16   :  { %7507 = vmatmul.mubr.msk.f32.gmra.mxu0 %vm106_vm1, %v9940_v32  ;;  %7521 = vmatmul.mubr.msk.f32.gmra.mxu1 %vm106_vm1, %v9940_v32  ;;  %v61_v0 = vld [vmem:[%s16325_s2 + $0x20] sm:$0xff]  ;;  %v7605_v1 = vld [vmem:[%s16325_s2 + $0x218] sm:$0xf]  ;;  %v7607_v2 = vld [vmem:[%s16325_s2 + $0x228] sm:$0xf] }
  0x17   :  { %250 = vmatprep.mubr.f32.mxu0 %v16334_v3  ;;  %387 = vmatprep.mubr.f32.mxu1 %v16334_v3  ;;  %v10153_v4 = vld [vmem:[%s16327_s0 + $0x20] sm:$0xff]  ;;  %v10166_v5 = vld [vmem:[%s16327_s0 + $0x28] sm:$0xff]  ;;  %v10177_v6 = vld [vmem:[%s16327_s0 + $0x30] sm:$0xff] }
  0x18   :  { %466 = vmatprep.subr.mxu0 %v7483_v33  ;;  %657 = vmatprep.subr.mxu1 %v58_v34  ;;  %v10188_v7 = vld [vmem:[%s16327_s0 + $0x38] sm:$0xff]  ;;  %v10199_v8 = vld [vmem:[%s16327_s0 + $0x40] sm:$0xff]  ;;  %v10210_v9 = vld [vmem:[%s16327_s0 + $0x48] sm:$0xff] }
  0x19   :  { %467 = vmatpush1.msra.mxu0 %v7482_v35  ;;  %658 = vmatpush1.msra.mxu1 %v57_v36  ;;  %v10221_v10 = vld [vmem:[%s16327_s0 + $0x50] sm:$0xff]  ;;  %v10232_v11 = vld [vmem:[%s16327_s0 + $0x58] sm:$0xff]  ;;  %v7606_v13 = vld [vmem:[%s16325_s2 + $0x220] sm:$0xf] }
  0x1a   :  { %7508 = vmatmul.mubr.msk.f32.gmra.mxu0 %vm106_vm1, %v9963_v37  ;;  %7522 = vmatmul.mubr.msk.f32.gmra.mxu1 %vm106_vm1, %v9963_v37  ;;  %v7604_v12 = vld [vmem:[%s16325_s2 + $0x210] sm:$0xf]  ;;  %v7599_v14 = vld [vmem:[%s16325_s2 + $0x1e8] sm:$0xff]  ;;  %v7601_v15 = vld [vmem:[%s16325_s2 + $0x1f8] sm:$0xff] }
  0x1b   :  { %256 = vmatprep.mubr.f32.mxu0 %v16334_v3  ;;  %393 = vmatprep.mubr.f32.mxu1 %v16334_v3  ;;  %v7598_v16 = vld [vmem:[%s16325_s2 + $0x1e0] sm:$0xff]  ;;  %v7593_v18 = vld [vmem:[%s16325_s2 + $0x1b8] sm:$0xff]  ;;  %v7595_v19 = vld [vmem:[%s16325_s2 + $0x1c8] sm:$0xff] }
  0x1c   :  { %7558 = vmatprep.subr.msk.mxu0 %vm143_vm0, %v78_v38  ;;  %7572 = vmatprep.subr.msk.mxu1 %vm143_vm0, %v80_v39  ;;  %v7592_v20 = vld [vmem:[%s16325_s2 + $0x1b0] sm:$0xff]  ;;  %v7594_v21 = vld [vmem:[%s16325_s2 + $0x1c0] sm:$0xff]  ;;  %v7587_v23 = vld [vmem:[%s16325_s2 + $0x188] sm:$0xff] }
  0x1d   :  { %v7589_v24 = vld [vmem:[%s16325_s2 + $0x198] sm:$0xff]  ;;  %v7586_v25 = vld [vmem:[%s16325_s2 + $0x180] sm:$0xff]  ;;  %v7588_v26 = vld [vmem:[%s16325_s2 + $0x190] sm:$0xff] }
  0x1e   :  { %7509 = vmatmul.mubr.msk.f32.gmra.mxu0 %vm106_vm1, %v9980_v40  ;;  %7523 = vmatmul.mubr.msk.f32.gmra.mxu1 %vm106_vm1, %v9980_v40  ;;  %v7609_v28 = vld [vmem:[%s16325_s2 + $0x238] sm:$0xf]  ;;  %v7608_v30 = vld [vmem:[%s16325_s2 + $0x230] sm:$0xf]  ;;  %v7603_v33 = vld [vmem:[%s16325_s2 + $0x208] sm:$0xff] }
  0x1f   :  { %262 = vmatprep.mubr.f32.mxu0 %v16334_v3  ;;  %399 = vmatprep.mubr.f32.mxu1 %v16334_v3  ;;  %v7671_v29 = vld [vmem:[%s16325_s2 + $0x2d8] sm:$0xf]  ;;  %v7670_v31 = vld [vmem:[%s16325_s2 + $0x2d0] sm:$0xf]  ;;  %v7665_v34 = vld [vmem:[%s16325_s2 + $0x2a8] sm:$0xff] }
  0x20   :  { %v7602_v35 = vld [vmem:[%s16325_s2 + $0x200] sm:$0xff]  ;;  %v7597_v38 = vld [vmem:[%s16325_s2 + $0x1d8] sm:$0xff] }
  0x21   :  { %v7664_v36 = vld [vmem:[%s16325_s2 + $0x2a0] sm:$0xff]  ;;  %v7659_v39 = vld [vmem:[%s16325_s2 + $0x278] sm:$0xff] }
  0x22   :  { %7510 = vmatmul.mubr.msk.f32.gmra.mxu0 %vm106_vm1, %v9993_v41  ;;  %7524 = vmatmul.mubr.msk.f32.gmra.mxu1 %vm106_vm1, %v9993_v41 }
  0x23   :  { %268 = vmatprep.mubr.f32.mxu0 %v16334_v3  ;;  %405 = vmatprep.mubr.f32.mxu1 %v16334_v3 }
  0x26   :  { %7511 = vmatmul.mubr.msk.f32.gmra.mxu0 %vm106_vm1, %v10004_v42  ;;  %7525 = vmatmul.mubr.msk.f32.gmra.mxu1 %vm106_vm1, %v10004_v42 }
  0x27   :  { %274 = vmatprep.mubr.f32.mxu0 %v16334_v3  ;;  %411 = vmatprep.mubr.f32.mxu1 %v16334_v3 }
  0x2a   :  { %7512 = vmatmul.mubr.msk.f32.gmra.mxu0 %vm106_vm1, %v10015_v43  ;;  %7526 = vmatmul.mubr.msk.f32.gmra.mxu1 %vm106_vm1, %v10015_v43 }
  0x2b   :  { %280 = vmatprep.mubr.f32.mxu0 %v16334_v3  ;;  %417 = vmatprep.mubr.f32.mxu1 %v16334_v3 }
  0x2e   :  { %7513 = vmatmul.mubr.msk.f32.gmra.mxu0 %vm106_vm1, %v10026_v44  ;;  %7527 = vmatmul.mubr.msk.f32.gmra.mxu1 %vm106_vm1, %v10026_v44 }
  0x2f   :  { %286 = vmatprep.mubr.f32.mxu0 %v16334_v3  ;;  %423 = vmatprep.mubr.f32.mxu1 %v16334_v3 }
  0x32   :  { %7514 = vmatmul.mubr.msk.f32.gmra.mxu0 %vm106_vm1, %v10037_v45  ;;  %7528 = vmatmul.mubr.msk.f32.gmra.mxu1 %vm106_vm1, %v10037_v45 }
  0x33   :  { %292 = vmatprep.mubr.f32.mxu0 %v16334_v3  ;;  %429 = vmatprep.mubr.f32.mxu1 %v16334_v3 }
  0x36   :  { %7515 = vmatmul.mubr.msk.f32.gmra.mxu0 %vm106_vm1, %v10048_v46  ;;  %7529 = vmatmul.mubr.msk.f32.gmra.mxu1 %vm106_vm1, %v10048_v46 }
  0x37   :  { %500 = vmatprep.mubr.f32.mxu0 %v16334_v3  ;;  %691 = vmatprep.mubr.f32.mxu1 %v16334_v3 }
  0x3a   :  { %7532 = vmatmul.mubr.msk.f32.vlgmr.msra.gmra.mxu0 %vm106_vm1, %v9867_v17  ;;  %7546 = vmatmul.mubr.msk.f32.vlgmr.msra.gmra.mxu1 %vm106_vm1, %v10059_v47  ;;  %v7600_v17 = vld [vmem:[%s16325_s2 + $0x1f0] sm:$0xff] }
  0x3b   :  { %7559 = vmatpush1.msk.msra.mxu0 %vm143_vm0, %v77_v48  ;;  %7573 = vmatpush1.msk.msra.mxu1 %vm143_vm0, %v79_v49  ;;  %v7658_v48 = vld [vmem:[%s16325_s2 + $0x270] sm:$0xff]  ;;  %v7591_v49 = vld [vmem:[%s16325_s2 + $0x1a8] sm:$0xff] }
  0x3c   :  { %506 = vmatprep.mubr.f32.mxu0 %v16334_v3  ;;  %697 = vmatprep.mubr.f32.mxu1 %v16334_v3 }
  0x3d   :  { %790 = vmatprep.subr.mxu0 %v72_v50  ;;  %927 = vmatprep.subr.mxu1 %v74_v51  ;;  %v7653_v50 = vld [vmem:[%s16325_s2 + $0x248] sm:$0xff]  ;;  %v7590_v51 = vld [vmem:[%s16325_s2 + $0x1a0] sm:$0xff] }
  0x3e   :  { %7533 = vmatmul.mubr.msk.f32.gmra.mxu0 %vm106_vm1, %v9890_v22  ;;  %7547 = vmatmul.mubr.msk.f32.gmra.mxu1 %vm106_vm1, %v10082_v52 }
  0x3f   :  { %512 = vmatprep.mubr.f32.mxu0 %v16334_v3  ;;  %703 = vmatprep.mubr.f32.mxu1 %v16334_v3 }
  0x40   :  { %791 = vmatpush1.msra.mxu0 %v71_v53  ;;  %928 = vmatpush1.msra.mxu1 %v73_v54  ;;  %v7652_v53 = vld [vmem:[%s16325_s2 + $0x240] sm:$0xff]  ;;  %v7673_v54 = vld [vmem:[%s16325_s2 + $0x2e8] sm:$0xf] }
  0x41   :  { %792 = vmatprep.subr.mxu0 %v66_v55  ;;  %929 = vmatprep.subr.mxu1 %v68_v56  ;;  %v7675_v55 = vld [vmem:[%s16325_s2 + $0x2f8] sm:$0xf]  ;;  %v10485_v56 = vld [vmem:[%s16327_s0 + $0x60] sm:$0xff] }
  0x42   :  { %7534 = vmatmul.mubr.msk.f32.gmra.mxu0 %vm106_vm1, %v9917_v27  ;;  %7548 = vmatmul.mubr.msk.f32.gmra.mxu1 %vm106_vm1, %v10107_v57 }
  0x43   :  { %518 = vmatprep.mubr.f32.mxu0 %v16334_v3  ;;  %709 = vmatprep.mubr.f32.mxu1 %v16334_v3 }
  0x44   :  { %793 = vmatpush1.msra.mxu0 %v65_v58  ;;  %930 = vmatpush1.msra.mxu1 %v67_v59  ;;  %v7672_v58 = vld [vmem:[%s16325_s2 + $0x2e0] sm:$0xf]  ;;  %v7674_v59 = vld [vmem:[%s16325_s2 + $0x2f0] sm:$0xf] }
  0x45   :  { %794 = vmatprep.subr.mxu0 %v60_v60  ;;  %931 = vmatprep.subr.mxu1 %v62_v61 }
  0x46   :  { %7535 = vmatmul.mubr.msk.f32.gmra.mxu0 %vm106_vm1, %v9940_v32  ;;  %7549 = vmatmul.mubr.msk.f32.gmra.mxu1 %vm106_vm1, %v10130_v62 }
  0x47   :  { %524 = vmatprep.mubr.f32.mxu0 %v16334_v3  ;;  %715 = vmatprep.mubr.f32.mxu1 %v16334_v3 }
  0x48   :  { %795 = vmatpush1.msra.mxu0 %v59_v63  ;;  %932 = vmatpush1.msra.mxu1 %v61_v0  ;;  %v7667_v63 = vld [vmem:[%s16325_s2 + $0x2b8] sm:$0xff]  ;;  %v7669_v0 = vld [vmem:[%s16325_s2 + $0x2c8] sm:$0xff] }
  0x49   :  { %7610 = vmatprep.subr.msk.mxu0 %vm143_vm0, %v7605_v1  ;;  %7624 = vmatprep.subr.msk.mxu1 %vm143_vm0, %v7607_v2 }
  0x4a   :  { %7536 = vmatmul.mubr.msk.f32.gmra.mxu0 %vm106_vm1, %v9963_v37  ;;  %7550 = vmatmul.mubr.msk.f32.gmra.mxu1 %vm106_vm1, %v10153_v4 }
  0x4b   :  { %530 = vmatprep.mubr.f32.mxu0 %v16334_v3  ;;  %721 = vmatprep.mubr.f32.mxu1 %v16334_v3 }
  0x4e   :  { %7537 = vmatmul.mubr.msk.f32.gmra.mxu0 %vm106_vm1, %v9980_v40  ;;  %7551 = vmatmul.mubr.msk.f32.gmra.mxu1 %vm106_vm1, %v10166_v5 }
  0x4f   :  { %536 = vmatprep.mubr.f32.mxu0 %v16334_v3  ;;  %727 = vmatprep.mubr.f32.mxu1 %v16334_v3 }
  0x52   :  { %7538 = vmatmul.mubr.msk.f32.gmra.mxu0 %vm106_vm1, %v9993_v41  ;;  %7552 = vmatmul.mubr.msk.f32.gmra.mxu1 %vm106_vm1, %v10177_v6 }
  0x53   :  { %542 = vmatprep.mubr.f32.mxu0 %v16334_v3  ;;  %733 = vmatprep.mubr.f32.mxu1 %v16334_v3 }
  0x56   :  { %7539 = vmatmul.mubr.msk.f32.gmra.mxu0 %vm106_vm1, %v10004_v42  ;;  %7553 = vmatmul.mubr.msk.f32.gmra.mxu1 %vm106_vm1, %v10188_v7 }
  0x57   :  { %548 = vmatprep.mubr.f32.mxu0 %v16334_v3  ;;  %739 = vmatprep.mubr.f32.mxu1 %v16334_v3 }
  0x5a   :  { %7540 = vmatmul.mubr.msk.f32.gmra.mxu0 %vm106_vm1, %v10015_v43  ;;  %7554 = vmatmul.mubr.msk.f32.gmra.mxu1 %vm106_vm1, %v10199_v8 }
  0x5b   :  { %554 = vmatprep.mubr.f32.mxu0 %v16334_v3  ;;  %745 = vmatprep.mubr.f32.mxu1 %v16334_v3 }
  0x5e   :  { %7541 = vmatmul.mubr.msk.f32.gmra.mxu0 %vm106_vm1, %v10026_v44  ;;  %7555 = vmatmul.mubr.msk.f32.gmra.mxu1 %vm106_vm1, %v10210_v9 }
  0x5f   :  { %560 = vmatprep.mubr.f32.mxu0 %v16334_v3  ;;  %751 = vmatprep.mubr.f32.mxu1 %v16334_v3 }
  0x62   :  { %7542 = vmatmul.mubr.msk.f32.gmra.mxu0 %vm106_vm1, %v10037_v45  ;;  %7556 = vmatmul.mubr.msk.f32.gmra.mxu1 %vm106_vm1, %v10221_v10 }
  0x63   :  { %566 = vmatprep.mubr.f32.mxu0 %v16334_v3  ;;  %757 = vmatprep.mubr.f32.mxu1 %v16334_v3 }
  0x66   :  { %7543 = vmatmul.mubr.msk.f32.gmra.mxu0 %vm106_vm1, %v10048_v46  ;;  %7557 = vmatmul.mubr.msk.f32.gmra.mxu1 %vm106_vm1, %v10232_v11 }
  0x67   :  { %828 = vmatprep.mubr.f32.mxu0 %v16334_v3  ;;  %965 = vmatprep.mubr.f32.mxu1 %v16334_v3 }
  0x6a   :  { %7560 = vmatmul.mubr.msk.f32.vlgmr.msra.gmra.mxu0 %vm106_vm1, %v10059_v47  ;;  %7574 = vmatmul.mubr.msk.f32.vlgmr.msra.gmra.mxu1 %vm106_vm1, %v10059_v47  ;;  %v7596_v47 = vld [vmem:[%s16325_s2 + $0x1d0] sm:$0xff] }
  0x6b   :  { %7611 = vmatpush1.msk.msra.mxu0 %vm143_vm0, %v7604_v12  ;;  %7625 = vmatpush1.msk.msra.mxu1 %vm143_vm0, %v7606_v13  ;;  %v7668_v12 = vld [vmem:[%s16325_s2 + $0x2c0] sm:$0xff] }
  0x6c   :  { %834 = vmatprep.mubr.f32.mxu0 %v16334_v3  ;;  %971 = vmatprep.mubr.f32.mxu1 %v16334_v3 }
  0x6d   :  { %1110 = vmatprep.subr.mxu0 %v7599_v14  ;;  %1247 = vmatprep.subr.mxu1 %v7601_v15  ;;  %v7661_v15 = vld [vmem:[%s16325_s2 + $0x288] sm:$0xff] }
  0x6e   :  { %7561 = vmatmul.mubr.msk.f32.gmra.mxu0 %vm106_vm1, %v10082_v52  ;;  %7575 = vmatmul.mubr.msk.f32.gmra.mxu1 %vm106_vm1, %v10082_v52 }
  0x6f   :  { %840 = vmatprep.mubr.f32.mxu0 %v16334_v3  ;;  %977 = vmatprep.mubr.f32.mxu1 %v16334_v3 }
  0x70   :  { %1111 = vmatpush1.msra.mxu0 %v7598_v16  ;;  %1248 = vmatpush1.msra.mxu1 %v7600_v17  ;;  %v7663_v16 = vld [vmem:[%s16325_s2 + $0x298] sm:$0xff] }
  0x71   :  { %1112 = vmatprep.subr.mxu0 %v7593_v18  ;;  %1249 = vmatprep.subr.mxu1 %v7595_v19  ;;  %v7662_v19 = vld [vmem:[%s16325_s2 + $0x290] sm:$0xff] }
  0x72   :  { %7562 = vmatmul.mubr.msk.f32.gmra.mxu0 %vm106_vm1, %v10107_v57  ;;  %7576 = vmatmul.mubr.msk.f32.gmra.mxu1 %vm106_vm1, %v10107_v57 }
  0x73   :  { %846 = vmatprep.mubr.f32.mxu0 %v16334_v3  ;;  %983 = vmatprep.mubr.f32.mxu1 %v16334_v3 }
  0x74   :  { %1113 = vmatpush1.msra.mxu0 %v7592_v20  ;;  %1250 = vmatpush1.msra.mxu1 %v7594_v21 }
  0x75   :  { %1114 = vmatprep.subr.mxu0 %v7587_v23  ;;  %1251 = vmatprep.subr.mxu1 %v7589_v24  ;;  %v7655_v23 = vld [vmem:[%s16325_s2 + $0x258] sm:$0xff]  ;;  %v7657_v24 = vld [vmem:[%s16325_s2 + $0x268] sm:$0xff] }
  0x76   :  { %7563 = vmatmul.mubr.msk.f32.gmra.mxu0 %vm106_vm1, %v10130_v62  ;;  %7577 = vmatmul.mubr.msk.f32.gmra.mxu1 %vm106_vm1, %v10130_v62 }
  0x77   :  { %852 = vmatprep.mubr.f32.mxu0 %v16334_v3  ;;  %989 = vmatprep.mubr.f32.mxu1 %v16334_v3 }
  0x78   :  { %1115 = vmatpush1.msra.mxu0 %v7586_v25  ;;  %1252 = vmatpush1.msra.mxu1 %v7588_v26 }
  0x79   :  { %7638 = vmatprep.subr.msk.mxu0 %vm143_vm0, %v7609_v28  ;;  %7676 = vmatprep.subr.msk.mxu1 %vm143_vm0, %v7671_v29  ;;  %v7656_v28 = vld [vmem:[%s16325_s2 + $0x260] sm:$0xff] }
  0x7a   :  { %7564 = vmatmul.mubr.msk.f32.gmra.mxu0 %vm106_vm1, %v10153_v4  ;;  %7578 = vmatmul.mubr.msk.f32.gmra.mxu1 %vm106_vm1, %v10153_v4 }
  0x7b   :  { %858 = vmatprep.mubr.f32.mxu0 %v16334_v3  ;;  %995 = vmatprep.mubr.f32.mxu1 %v16334_v3 }
  0x7e   :  { %7565 = vmatmul.mubr.msk.f32.gmra.mxu0 %vm106_vm1, %v10166_v5  ;;  %7579 = vmatmul.mubr.msk.f32.gmra.mxu1 %vm106_vm1, %v10166_v5 }
  0x7f   :  { %864 = vmatprep.mubr.f32.mxu0 %v16334_v3  ;;  %1001 = vmatprep.mubr.f32.mxu1 %v16334_v3 }
  0x82   :  { %7566 = vmatmul.mubr.msk.f32.gmra.mxu0 %vm106_vm1, %v10177_v6  ;;  %7580 = vmatmul.mubr.msk.f32.gmra.mxu1 %vm106_vm1, %v10177_v6 }
  0x83   :  { %870 = vmatprep.mubr.f32.mxu0 %v16334_v3  ;;  %1007 = vmatprep.mubr.f32.mxu1 %v16334_v3 }
  0x86   :  { %7567 = vmatmul.mubr.msk.f32.gmra.mxu0 %vm106_vm1, %v10188_v7  ;;  %7581 = vmatmul.mubr.msk.f32.gmra.mxu1 %vm106_vm1, %v10188_v7 }
  0x87   :  { %876 = vmatprep.mubr.f32.mxu0 %v16334_v3  ;;  %1013 = vmatprep.mubr.f32.mxu1 %v16334_v3 }
  0x8a   :  { %7568 = vmatmul.mubr.msk.f32.gmra.mxu0 %vm106_vm1, %v10199_v8  ;;  %7582 = vmatmul.mubr.msk.f32.gmra.mxu1 %vm106_vm1, %v10199_v8 }
  0x8b   :  { %882 = vmatprep.mubr.f32.mxu0 %v16334_v3  ;;  %1019 = vmatprep.mubr.f32.mxu1 %v16334_v3 }
  0x8e   :  { %7569 = vmatmul.mubr.msk.f32.gmra.mxu0 %vm106_vm1, %v10210_v9  ;;  %7583 = vmatmul.mubr.msk.f32.gmra.mxu1 %vm106_vm1, %v10210_v9 }
  0x8f   :  { %888 = vmatprep.mubr.f32.mxu0 %v16334_v3  ;;  %1025 = vmatprep.mubr.f32.mxu1 %v16334_v3 }
  0x92   :  { %7570 = vmatmul.mubr.msk.f32.gmra.mxu0 %vm106_vm1, %v10221_v10  ;;  %7584 = vmatmul.mubr.msk.f32.gmra.mxu1 %vm106_vm1, %v10221_v10 }
  0x93   :  { %894 = vmatprep.mubr.f32.mxu0 %v16334_v3  ;;  %1031 = vmatprep.mubr.f32.mxu1 %v16334_v3 }
  0x96   :  { %7571 = vmatmul.mubr.msk.f32.gmra.mxu0 %vm106_vm1, %v10232_v11  ;;  %7585 = vmatmul.mubr.msk.f32.gmra.mxu1 %vm106_vm1, %v10232_v11 }
  0x97   :  { %1148 = vmatprep.mubr.f32.mxu0 %v16334_v3  ;;  %1285 = vmatprep.mubr.f32.mxu1 %v16334_v3 }
  0x9a   :  { %7612 = vmatmul.mubr.msk.f32.vlgmr.msra.gmra.mxu0 %vm106_vm1, %v10082_v52  ;;  %7626 = vmatmul.mubr.msk.f32.vlgmr.msra.gmra.mxu1 %vm106_vm1, %v10082_v52 }
  0x9b   :  { %7639 = vmatpush1.msk.msra.mxu0 %vm143_vm0, %v7608_v30  ;;  %7677 = vmatpush1.msk.msra.mxu1 %vm143_vm0, %v7670_v31  ;;  %v7737_v31 = vld [vmem:[%s16325_s2 + $0x398] sm:$0xf] }
  0x9c   :  { %1154 = vmatprep.mubr.f32.mxu0 %v16334_v3  ;;  %1291 = vmatprep.mubr.f32.mxu1 %v16334_v3 }
  0x9d   :  { %1384 = vmatprep.subr.mxu0 %v7603_v33  ;;  %1639 = vmatprep.subr.mxu1 %v7665_v34  ;;  %v7739_v33 = vld [vmem:[%s16325_s2 + $0x3a8] sm:$0xf] }
  0x9e   :  { %7613 = vmatmul.mubr.msk.f32.gmra.mxu0 %vm106_vm1, %v10107_v57  ;;  %7627 = vmatmul.mubr.msk.f32.gmra.mxu1 %vm106_vm1, %v10107_v57 }
  0x9f   :  { %1160 = vmatprep.mubr.f32.mxu0 %v16334_v3  ;;  %1297 = vmatprep.mubr.f32.mxu1 %v16334_v3 }
  0xa0   :  { %1385 = vmatpush1.msra.mxu0 %v7602_v35  ;;  %1640 = vmatpush1.msra.mxu1 %v7664_v36 }
  0xa1   :  { %1386 = vmatprep.subr.mxu0 %v7597_v38  ;;  %1641 = vmatprep.subr.mxu1 %v7659_v39 }
  0xa2   :  { %7614 = vmatmul.mubr.msk.f32.gmra.mxu0 %vm106_vm1, %v10130_v62  ;;  %7628 = vmatmul.mubr.msk.f32.gmra.mxu1 %vm106_vm1, %v10130_v62 }
  0xa3   :  { %1166 = vmatprep.mubr.f32.mxu0 %v16334_v3  ;;  %1303 = vmatprep.mubr.f32.mxu1 %v16334_v3 }
  0xa4   :  { %1387 = vmatpush1.msra.mxu0 %v7596_v47  ;;  %1642 = vmatpush1.msra.mxu1 %v7658_v48 }
  0xa5   :  { %1388 = vmatprep.subr.mxu0 %v7591_v49  ;;  %1643 = vmatprep.subr.mxu1 %v7653_v50 }
  0xa6   :  { %7615 = vmatmul.mubr.msk.f32.gmra.mxu0 %vm106_vm1, %v10153_v4  ;;  %7629 = vmatmul.mubr.msk.f32.gmra.mxu1 %vm106_vm1, %v10153_v4 }
  0xa7   :  { %1172 = vmatprep.mubr.f32.mxu0 %v16334_v3  ;;  %1309 = vmatprep.mubr.f32.mxu1 %v16334_v3 }
  0xa8   :  { %1389 = vmatpush1.msra.mxu0 %v7590_v51  ;;  %1644 = vmatpush1.msra.mxu1 %v7652_v53 }
  0xa9   :  { %7690 = vmatprep.subr.msk.mxu0 %vm143_vm0, %v7673_v54  ;;  %7704 = vmatprep.subr.msk.mxu1 %vm143_vm0, %v7675_v55 }
  0xaa   :  { %7616 = vmatmul.mubr.msk.f32.gmra.mxu0 %vm106_vm1, %v10166_v5  ;;  %7630 = vmatmul.mubr.msk.f32.gmra.mxu1 %vm106_vm1, %v10166_v5 }
  0xab   :  { %1178 = vmatprep.mubr.f32.mxu0 %v16334_v3  ;;  %1315 = vmatprep.mubr.f32.mxu1 %v16334_v3 }
  0xae   :  { %7617 = vmatmul.mubr.msk.f32.gmra.mxu0 %vm106_vm1, %v10177_v6  ;;  %7631 = vmatmul.mubr.msk.f32.gmra.mxu1 %vm106_vm1, %v10177_v6 }
  0xaf   :  { %1184 = vmatprep.mubr.f32.mxu0 %v16334_v3  ;;  %1321 = vmatprep.mubr.f32.mxu1 %v16334_v3 }
  0xb2   :  { %7618 = vmatmul.mubr.msk.f32.gmra.mxu0 %vm106_vm1, %v10188_v7  ;;  %7632 = vmatmul.mubr.msk.f32.gmra.mxu1 %vm106_vm1, %v10188_v7 }
  0xb3   :  { %1190 = vmatprep.mubr.f32.mxu0 %v16334_v3  ;;  %1327 = vmatprep.mubr.f32.mxu1 %v16334_v3 }
  0xb6   :  { %7619 = vmatmul.mubr.msk.f32.gmra.mxu0 %vm106_vm1, %v10199_v8  ;;  %7633 = vmatmul.mubr.msk.f32.gmra.mxu1 %vm106_vm1, %v10199_v8 }
  0xb7   :  { %1196 = vmatprep.mubr.f32.mxu0 %v16334_v3  ;;  %1333 = vmatprep.mubr.f32.mxu1 %v16334_v3 }
  0xba   :  { %7620 = vmatmul.mubr.msk.f32.gmra.mxu0 %vm106_vm1, %v10210_v9  ;;  %7634 = vmatmul.mubr.msk.f32.gmra.mxu1 %vm106_vm1, %v10210_v9 }
  0xbb   :  { %1202 = vmatprep.mubr.f32.mxu0 %v16334_v3  ;;  %1339 = vmatprep.mubr.f32.mxu1 %v16334_v3 }
  0xbe   :  { %7621 = vmatmul.mubr.msk.f32.gmra.mxu0 %vm106_vm1, %v10221_v10  ;;  %7635 = vmatmul.mubr.msk.f32.gmra.mxu1 %vm106_vm1, %v10221_v10 }
  0xbf   :  { %1208 = vmatprep.mubr.f32.mxu0 %v16334_v3  ;;  %1345 = vmatprep.mubr.f32.mxu1 %v16334_v3 }
  0xc2   :  { %7622 = vmatmul.mubr.msk.f32.gmra.mxu0 %vm106_vm1, %v10232_v11  ;;  %7636 = vmatmul.mubr.msk.f32.gmra.mxu1 %vm106_vm1, %v10232_v11 }
  0xc3   :  { %1214 = vmatprep.mubr.f32.mxu0 %v16334_v3  ;;  %1351 = vmatprep.mubr.f32.mxu1 %v16334_v3 }
  0xc6   :  { %7623 = vmatmul.mubr.msk.f32.gmra.mxu0 %vm106_vm1, %v10485_v56  ;;  %7637 = vmatmul.mubr.msk.f32.gmra.mxu1 %vm106_vm1, %v10485_v56 }
  0xc7   :  { %1422 = vmatprep.mubr.f32.mxu0 %v16334_v3  ;;  %1677 = vmatprep.mubr.f32.mxu1 %v16334_v3 }
  0xca   :  { %v10499_v60 = vpop.f32.mrf.mxu0  ;;  %v10501_v61 = vpop.f32.mrf.mxu1  ;;  %7640 = vmatmul.mubr.msk.f32.vlgmr.msra.gmra.mxu0 %vm106_vm1, %v10082_v52  ;;  %7678 = vmatmul.mubr.msk.f32.vlgmr.msra.gmra.mxu1 %vm106_vm1, %v9890_v22  ;;  %v7666_v52 = vld [vmem:[%s16325_s2 + $0x2b0] sm:$0xff] }
  0xcb   :  { %7691 = vmatpush1.msk.msra.mxu0 %vm143_vm0, %v7672_v58  ;;  %7705 = vmatpush1.msk.msra.mxu1 %vm143_vm0, %v7674_v59 }
  0xcc   :  { %v10515_v1 = vpop.f32.mrf.mxu0  ;;  %v10517_v2 = vpop.f32.mrf.mxu1  ;;  %1428 = vmatprep.mubr.f32.mxu0 %v16334_v3  ;;  %1683 = vmatprep.mubr.f32.mxu1 %v16334_v3 }
  0xcd   :  { %1776 = vmatprep.subr.mxu0 %v7667_v63  ;;  %1913 = vmatprep.subr.mxu1 %v7669_v0 }
  0xce   :  { %v10527_v13 = vpop.f32.mrf.mxu0  ;;  %v10529_v14 = vpop.f32.mrf.mxu1  ;;  %7641 = vmatmul.mubr.msk.f32.gmra.mxu0 %vm106_vm1, %v10107_v57  ;;  %7679 = vmatmul.mubr.msk.f32.gmra.mxu1 %vm106_vm1, %v9917_v27  ;;  %v7660_v57 = vld [vmem:[%s16325_s2 + $0x280] sm:$0xff] }
  0xcf   :  { %1434 = vmatprep.mubr.f32.mxu0 %v16334_v3  ;;  %1689 = vmatprep.mubr.f32.mxu1 %v16334_v3 }
  0xd0   :  { %v10543_v17 = vpop.f32.mrf.mxu0  ;;  %v10545_v18 = vpop.f32.mrf.mxu1  ;;  %1777 = vmatpush1.msra.mxu0 %v7666_v52  ;;  %1914 = vmatpush1.msra.mxu1 %v7668_v12 }
  0xd1   :  { %1778 = vmatprep.subr.mxu0 %v7661_v15  ;;  %1915 = vmatprep.subr.mxu1 %v7663_v16 }
  0xd2   :  { %v10553_v20 = vpop.f32.mrf.mxu0  ;;  %v10555_v21 = vpop.f32.mrf.mxu1  ;;  %7642 = vmatmul.mubr.msk.f32.gmra.mxu0 %vm106_vm1, %v10130_v62  ;;  %7680 = vmatmul.mubr.msk.f32.gmra.mxu1 %vm106_vm1, %v9940_v32  ;;  %v7654_v62 = vld [vmem:[%s16325_s2 + $0x250] sm:$0xff] }
  0xd3   :  { %1440 = vmatprep.mubr.f32.mxu0 %v16334_v3  ;;  %1695 = vmatprep.mubr.f32.mxu1 %v16334_v3 }
  0xd4   :  { %v10569_v25 = vpop.f32.mrf.mxu0  ;;  %v10571_v26 = vpop.f32.mrf.mxu1  ;;  %1779 = vmatpush1.msra.mxu0 %v7660_v57  ;;  %1916 = vmatpush1.msra.mxu1 %v7662_v19 }
  0xd5   :  { %1780 = vmatprep.subr.mxu0 %v7655_v23  ;;  %1917 = vmatprep.subr.mxu1 %v7657_v24 }
  0xd6   :  { %v10579_v29 = vpop.f32.mrf.mxu0  ;;  %v10581_v30 = vpop.f32.mrf.mxu1  ;;  %7643 = vmatmul.mubr.msk.f32.gmra.mxu0 %vm106_vm1, %v10153_v4  ;;  %7681 = vmatmul.mubr.msk.f32.gmra.mxu1 %vm106_vm1, %v9963_v37 }
  0xd7   :  { %1446 = vmatprep.mubr.f32.mxu0 %v16334_v3  ;;  %1701 = vmatprep.mubr.f32.mxu1 %v16334_v3 }
  0xd8   :  { %v10595_v34 = vpop.f32.mrf.mxu0  ;;  %v10597_v35 = vpop.f32.mrf.mxu1  ;;  %1781 = vmatpush1.msra.mxu0 %v7654_v62  ;;  %1918 = vmatpush1.msra.mxu1 %v7656_v28  ;;  %v7736_v62 = vld [vmem:[%s16325_s2 + $0x390] sm:$0xf]  ;;  %v7738_v28 = vld [vmem:[%s16325_s2 + $0x3a0] sm:$0xf] }
  0xd9   :  { %7742 = vmatprep.subr.msk.mxu0 %vm143_vm0, %v7737_v31  ;;  %7756 = vmatprep.subr.msk.mxu1 %vm143_vm0, %v7739_v33 }
  0xda   :  { %v10601_v4 = vpop.f32.mrf.mxu0  ;;  %v10603_v36 = vpop.f32.mrf.mxu1  ;;  %7644 = vmatmul.mubr.msk.f32.gmra.mxu0 %vm106_vm1, %v10166_v5  ;;  %7682 = vmatmul.mubr.msk.f32.gmra.mxu1 %vm106_vm1, %v9980_v40 }
  0xdb   :  { %1452 = vmatprep.mubr.f32.mxu0 %v16334_v3  ;;  %1707 = vmatprep.mubr.f32.mxu1 %v16334_v3 }
  0xdc   :  { %v10611_v38 = vpop.f32.mrf.mxu0  ;;  %v10613_v39 = vpop.f32.mrf.mxu1 }
  0xde   :  { %v10615_v47 = vpop.f32.mrf.mxu0  ;;  %v10617_v48 = vpop.f32.mrf.mxu1  ;;  %7645 = vmatmul.mubr.msk.f32.gmra.mxu0 %vm106_vm1, %v10177_v6  ;;  %7683 = vmatmul.mubr.msk.f32.gmra.mxu1 %vm106_vm1, %v9993_v41 }
  0xdf   :  { %1458 = vmatprep.mubr.f32.mxu0 %v16334_v3  ;;  %1713 = vmatprep.mubr.f32.mxu1 %v16334_v3 }
  0xe0   :  { %v10625_v5 = vpop.f32.mrf.mxu0  ;;  %v10627_v49 = vpop.f32.mrf.mxu1 }
  0xe2   :  { %v10629_v50 = vpop.f32.mrf.mxu0  ;;  %v10631_v51 = vpop.f32.mrf.mxu1  ;;  %7646 = vmatmul.mubr.msk.f32.gmra.mxu0 %vm106_vm1, %v10188_v7  ;;  %7684 = vmatmul.mubr.msk.f32.gmra.mxu1 %vm106_vm1, %v10004_v42 }
  0xe3   :  { %16415 = vst [vmem:[#allocation2_spill] sm:$0xff] %v10631_v51  ;;  %1464 = vmatprep.mubr.f32.mxu0 %v16334_v3  ;;  %1719 = vmatprep.mubr.f32.mxu1 %v16334_v3  ;;  %v11149_v51 = vld [vmem:[%s16327_s0 + $0x40] sm:$0xff] }
  0xe4   :  { %v10639_v6 = vpop.f32.mrf.mxu0  ;;  %v10641_v53 = vpop.f32.mrf.mxu1  ;;  %16453 = vst [vmem:[#allocation39_spill] sm:$0xff] %v11149_v51 }
  0xe5   :  { %16416 = vst [vmem:[#allocation3_spill] sm:$0xff] %v10641_v53 }
  0xe6   :  { %v10643_v54 = vpop.f32.mrf.mxu0  ;;  %v10645_v55 = vpop.f32.mrf.mxu1  ;;  %7647 = vmatmul.mubr.msk.f32.gmra.mxu0 %vm106_vm1, %v10199_v8  ;;  %7685 = vmatmul.mubr.msk.f32.gmra.mxu1 %vm106_vm1, %v10015_v43 }
  0xe7   :  { %16417 = vst [vmem:[#allocation4_spill] sm:$0xff] %v10645_v55  ;;  %1470 = vmatprep.mubr.f32.mxu0 %v16334_v3  ;;  %1725 = vmatprep.mubr.f32.mxu1 %v16334_v3 }
  0xe8   :  { %v10653_v7 = vpop.f32.mrf.mxu0  ;;  %v10655_v58 = vpop.f32.mrf.mxu1 }
  0xe9   :  { %16418 = vst [vmem:[#allocation5_spill] sm:$0xff] %v10655_v58 }
  0xea   :  { %v10657_v59 = vpop.f32.mrf.mxu0  ;;  %v10659_v63 = vpop.f32.mrf.mxu1  ;;  %7648 = vmatmul.mubr.msk.f32.gmra.mxu0 %vm106_vm1, %v10210_v9  ;;  %7686 = vmatmul.mubr.msk.f32.gmra.mxu1 %vm106_vm1, %v10026_v44 }
  0xeb   :  { %16419 = vst [vmem:[#allocation6_spill] sm:$0xff] %v10659_v63  ;;  %1476 = vmatprep.mubr.f32.mxu0 %v16334_v3  ;;  %1731 = vmatprep.mubr.f32.mxu1 %v16334_v3 }
  0xec   :  { %v10667_v8 = vpop.f32.mrf.mxu0  ;;  %v10669_v0 = vpop.f32.mrf.mxu1 }
  0xed   :  { %16420 = vst [vmem:[#allocation7_spill] sm:$0xff] %v10669_v0  ;;  %v7724_v0 = vld [vmem:[%s16325_s2 + $0x330] sm:$0xff] }
  0xee   :  { %v10671_v52 = vpop.f32.mrf.mxu0  ;;  %v10673_v12 = vpop.f32.mrf.mxu1  ;;  %7649 = vmatmul.mubr.msk.f32.gmra.mxu0 %vm106_vm1, %v10221_v10  ;;  %7687 = vmatmul.mubr.msk.f32.gmra.mxu1 %vm106_vm1, %v10037_v45  ;;  %v10698_v45 = vld [vmem:[%s16326_s1 + $0x60] sm:$0xff] }
  0xef   :  { %16421 = vst [vmem:[#allocation8_spill] sm:$0xff] %v10673_v12  ;;  %1482 = vmatprep.mubr.f32.mxu0 %v16334_v3  ;;  %1737 = vmatprep.mubr.f32.mxu1 %v16334_v3 }
  0xf0   :  { %v10681_v9 = vpop.f32.mrf.mxu0  ;;  %v10683_v15 = vpop.f32.mrf.mxu1 }
  0xf1   :  { %16422 = vst [vmem:[#allocation9_spill] sm:$0xff] %v10683_v15  ;;  %v16427_v15 = vmov 0.0  }
  0xf2   :  { %v10685_v16 = vpop.f32.mrf.mxu0  ;;  %v10687_v57 = vpop.f32.mrf.mxu1  ;;  %7650 = vmatmul.mubr.msk.f32.gmra.mxu0 %vm106_vm1, %v10232_v11  ;;  %7688 = vmatmul.mubr.msk.f32.gmra.mxu1 %vm106_vm1, %v10048_v46 }
  0xf3   :  { %16423 = vst [vmem:[#allocation10_spill] sm:$0xff] %v10687_v57  ;;  %1488 = vmatprep.mubr.f32.mxu0 %v16334_v3  ;;  %1743 = vmatprep.mubr.f32.mxu1 %v16334_v3 }
  0xf4   :  { %v10700_v10 = vpop.f32.mrf.mxu0  ;;  %v10702_v19 = vpop.f32.mrf.mxu1 }
  0xf5   :  { %16424 = vst [vmem:[#allocation11_spill] sm:$0xff] %v10702_v19 }
  0xf6   :  { %v10704_v23 = vpop.f32.mrf.mxu0  ;;  %v10706_v24 = vpop.f32.mrf.mxu1  ;;  %7651 = vmatmul.mubr.msk.f32.gmra.mxu0 %vm106_vm1, %v10485_v56  ;;  %7689 = vmatmul.mubr.msk.f32.gmra.mxu1 %vm106_vm1, %v10698_v45 }
  0xf7   :  { %16425 = vst [vmem:[#allocation12_spill] sm:$0xff] %v10706_v24  ;;  %1814 = vmatprep.mubr.f32.mxu0 %v16334_v3  ;;  %1951 = vmatprep.mubr.f32.mxu1 %v16334_v3  ;;  %v7731_v3 = vld [vmem:[%s16325_s2 + $0x368] sm:$0xff] }
  0xf8   :  { %v10714_v46 = vpop.f32.mrf.mxu0  ;;  %v10716_v11 = vpop.f32.mrf.mxu1 }
  0xf9   :  { %16426 = vst [vmem:[#allocation13_spill] sm:$0xff] %v10716_v11  ;;  %v7733_v11 = vld [vmem:[%s16325_s2 + $0x378] sm:$0xff] }
  0xfa   :  { %v10724_v31 = vpop.f32.mrf.mxu0  ;;  %v693_v33 = vpop.f32.mrf.mxu1  ;;  %7692 = vmatmul.mubr.msk.f32.vlgmr.msra.gmra.mxu0 %vm106_vm1, %v9890_v22  ;;  %7706 = vmatmul.mubr.msk.f32.vlgmr.msra.gmra.mxu1 %vm106_vm1, %v9890_v22 }
  0xfb   :  { %v10737_v24 = vadd.f32 %v693_v33, %v10499_v60  ;;  %7743 = vmatpush1.msk.msra.mxu0 %vm143_vm0, %v7736_v62  ;;  %7757 = vmatpush1.msk.msra.mxu1 %vm143_vm0, %v7738_v28  ;;  %v7730_v60 = vld [vmem:[%s16325_s2 + $0x360] sm:$0xff]  ;;  %v7732_v62 = vld [vmem:[%s16325_s2 + $0x370] sm:$0xff] }
  0xfc   :  { %v10741_v19 = vpop.f32.mrf.mxu0  ;;  %v695_v57 = vpop.f32.mrf.mxu1  ;;  %1820 = vmatprep.mubr.f32.mxu0 %v16427_v15  ;;  %1957 = vmatprep.mubr.f32.mxu1 %v16427_v15 }
  0xfd   :  { %v10746_v22 = vadd.f32 %v695_v57, %v10515_v1  ;;  %2168 = vmatprep.subr.mxu0 %v7731_v3  ;;  %2305 = vmatprep.subr.mxu1 %v7733_v11  ;;  %v7725_v3 = vld [vmem:[%s16325_s2 + $0x338] sm:$0xff]  ;;  %v7727_v1 = vld [vmem:[%s16325_s2 + $0x348] sm:$0xff] }
  0xfe   :  { %v10754_v28 = vpop.f32.mrf.mxu0  ;;  %v699_v33 = vpop.f32.mrf.mxu1  ;;  %7693 = vmatmul.mubr.msk.f32.gmra.mxu0 %vm106_vm1, %v9917_v27  ;;  %7707 = vmatmul.mubr.msk.f32.gmra.mxu1 %vm106_vm1, %v9917_v27 }
  0xff   :  { %v10767_v57 = vadd.f32 %v699_v33, %v10527_v13  ;;  %1826 = vmatprep.mubr.f32.mxu0 %v16427_v15  ;;  %1963 = vmatprep.mubr.f32.mxu1 %v16427_v15  ;;  %v7726_v13 = vld [vmem:[%s16325_s2 + $0x340] sm:$0xff] }
 0x100   :  { %v10771_v11 = vpop.f32.mrf.mxu0  ;;  %v701_v12 = vpop.f32.mrf.mxu1  ;;  %2169 = vmatpush1.msra.mxu0 %v7730_v60  ;;  %2306 = vmatpush1.msra.mxu1 %v7732_v62 }
 0x101   :  { %v10774_v27 = vadd.f32 %v701_v12, %v10543_v17  ;;  %2170 = vmatprep.subr.mxu0 %v7725_v3  ;;  %2307 = vmatprep.subr.mxu1 %v7727_v1  ;;  %v7719_v17 = vld [vmem:[%s16325_s2 + $0x308] sm:$0xff]  ;;  %v7721_v12 = vld [vmem:[%s16325_s2 + $0x318] sm:$0xff]  ;;  %v7718_v1 = vld [vmem:[%s16325_s2 + $0x300] sm:$0xff] }
 0x102   :  { %v10782_v33 = vpop.f32.mrf.mxu0  ;;  %v705_v63 = vpop.f32.mrf.mxu1  ;;  %7694 = vmatmul.mubr.msk.f32.gmra.mxu0 %vm106_vm1, %v9940_v32  ;;  %7708 = vmatmul.mubr.msk.f32.gmra.mxu1 %vm106_vm1, %v9940_v32 }
 0x103   :  { %v10795_v60 = vadd.f32 %v705_v63, %v10553_v20  ;;  %1832 = vmatprep.mubr.f32.mxu0 %v16427_v15  ;;  %1969 = vmatprep.mubr.f32.mxu1 %v16427_v15  ;;  %v7720_v20 = vld [vmem:[%s16325_s2 + $0x310] sm:$0xff] }
 0x104   :  { %v10799_v62 = vpop.f32.mrf.mxu0  ;;  %v707_v3 = vpop.f32.mrf.mxu1  ;;  %2171 = vmatpush1.msra.mxu0 %v7724_v0  ;;  %2308 = vmatpush1.msra.mxu1 %v7726_v13 }
 0x105   :  { %v10802_v32 = vadd.f32 %v707_v3, %v10569_v25  ;;  %2172 = vmatprep.subr.mxu0 %v7719_v17  ;;  %2309 = vmatprep.subr.mxu1 %v7721_v12  ;;  %v7741_v25 = vld [vmem:[%s16325_s2 + $0x3b8] sm:$0xf] }
 0x106   :  { %v10810_v63 = vpop.f32.mrf.mxu0  ;;  %v711_v58 = vpop.f32.mrf.mxu1  ;;  %7695 = vmatmul.mubr.msk.f32.gmra.mxu0 %vm106_vm1, %v9963_v37  ;;  %7709 = vmatmul.mubr.msk.f32.gmra.mxu1 %vm106_vm1, %v9963_v37  ;;  %v9592_v37 = vld [vmem:[%s16325_s2 + $0x158] sm:$0xf] }
 0x107   :  { %v10820_v0 = vadd.f32 %v711_v58, %v10579_v29  ;;  %1838 = vmatprep.mubr.f32.mxu0 %v16427_v15  ;;  %1975 = vmatprep.mubr.f32.mxu1 %v16427_v15 }
 0x108   :  { %v10824_v13 = vpop.f32.mrf.mxu0  ;;  %v713_v17 = vpop.f32.mrf.mxu1  ;;  %2173 = vmatpush1.msra.mxu0 %v7718_v1  ;;  %2310 = vmatpush1.msra.mxu1 %v7720_v20 }
 0x109   :  { %v10827_v12 = vadd.f32 %v713_v17, %v10595_v34  ;;  %7770 = vmatprep.subr.msk.mxu0 %vm143_vm0, %v7741_v25  ;;  %7784 = vmatprep.subr.msk.mxu1 %vm143_vm0, %v9592_v37 }
 0x10a   :  { %v10834_v29 = vpop.f32.mrf.mxu0  ;;  %v717_v58 = vpop.f32.mrf.mxu1  ;;  %7696 = vmatmul.mubr.msk.f32.gmra.mxu0 %vm106_vm1, %v9980_v40  ;;  %7710 = vmatmul.mubr.msk.f32.gmra.mxu1 %vm106_vm1, %v9980_v40 }
 0x10b   :  { %v10841_v34 = vadd.f32 %v717_v58, %v10601_v4  ;;  %1844 = vmatprep.mubr.f32.mxu0 %v16427_v15  ;;  %1981 = vmatprep.mubr.f32.mxu1 %v16427_v15 }
 0x10c   :  { %v10845_v3 = vpop.f32.mrf.mxu0  ;;  %v719_v1 = vpop.f32.mrf.mxu1 }
 0x10d   :  { %v10848_v20 = vadd.f32 %v719_v1, %v10611_v38 }
 0x10e   :  { %v10850_v25 = vpop.f32.mrf.mxu0  ;;  %v723_v17 = vpop.f32.mrf.mxu1  ;;  %7697 = vmatmul.mubr.msk.f32.gmra.mxu0 %vm106_vm1, %v9993_v41  ;;  %7711 = vmatmul.mubr.msk.f32.gmra.mxu1 %vm106_vm1, %v9993_v41 }
 0x10f   :  { %v10857_v40 = vadd.f32 %v723_v17, %v10615_v47  ;;  %1850 = vmatprep.mubr.f32.mxu0 %v16427_v15  ;;  %1987 = vmatprep.mubr.f32.mxu1 %v16427_v15 }
 0x110   :  { %v10861_v4 = vpop.f32.mrf.mxu0  ;;  %v725_v38 = vpop.f32.mrf.mxu1 }
 0x111   :  { %v10864_v37 = vadd.f32 %v725_v38, %v10625_v5 }
 0x112   :  { %v10866_v58 = vpop.f32.mrf.mxu0  ;;  %v729_v1 = vpop.f32.mrf.mxu1  ;;  %7698 = vmatmul.mubr.msk.f32.gmra.mxu0 %vm106_vm1, %v10004_v42  ;;  %7712 = vmatmul.mubr.msk.f32.gmra.mxu1 %vm106_vm1, %v10004_v42 }
 0x113   :  { %16428 = vst [vmem:[#allocation14_spill] sm:$0xff] %v10864_v37  ;;  %v10873_v41 = vadd.f32 %v729_v1, %v10629_v50  ;;  %1856 = vmatprep.mubr.f32.mxu0 %v16427_v15  ;;  %1993 = vmatprep.mubr.f32.mxu1 %v16427_v15  ;;  %v11128_v37 = vld [vmem:[%s16327_s0 + $0x38] sm:$0xff] }
 0x114   :  { %v10877_v47 = vpop.f32.mrf.mxu0  ;;  %v731_v5 = vpop.f32.mrf.mxu1 }
 0x115   :  { %16429 = vst [vmem:[#allocation15_spill] sm:$0xff] %v10873_v41  ;;  %v10880_v17 = vadd.f32 %v731_v5, %v10639_v6 }
 0x116   :  { %v10882_v38 = vpop.f32.mrf.mxu0  ;;  %v735_v55 = vpop.f32.mrf.mxu1  ;;  %7699 = vmatmul.mubr.msk.f32.gmra.mxu0 %vm106_vm1, %v10015_v43  ;;  %7713 = vmatmul.mubr.msk.f32.gmra.mxu1 %vm106_vm1, %v10015_v43  ;;  %v9593_v43 = vld [vmem:[%s16326_s1 + $0x48] sm:$0xff] }
 0x117   :  { %16430 = vst [vmem:[#allocation16_spill] sm:$0xff] %v10880_v17  ;;  %v10889_v42 = vadd.f32 %v735_v55, %v10643_v54  ;;  %1862 = vmatprep.mubr.f32.mxu0 %v16427_v15  ;;  %1999 = vmatprep.mubr.f32.mxu1 %v16427_v15 }
 0x118   :  { %v10893_v50 = vpop.f32.mrf.mxu0  ;;  %v737_v6 = vpop.f32.mrf.mxu1 }
 0x119   :  { %16431 = vst [vmem:[#allocation17_spill] sm:$0xff] %v10889_v42  ;;  %v10896_v1 = vadd.f32 %v737_v6, %v10653_v7 }
 0x11a   :  { %v10898_v5 = vpop.f32.mrf.mxu0  ;;  %v741_v17 = vpop.f32.mrf.mxu1  ;;  %7700 = vmatmul.mubr.msk.f32.gmra.mxu0 %vm106_vm1, %v10026_v44  ;;  %7714 = vmatmul.mubr.msk.f32.gmra.mxu1 %vm106_vm1, %v9593_v43  ;;  %v9594_v43 = vld [vmem:[%s16326_s1 + $0x50] sm:$0xff] }
 0x11b   :  { %16432 = vst [vmem:[#allocation18_spill] sm:$0xff] %v10896_v1  ;;  %v10907_v54 = vadd.f32 %v741_v17, %v10657_v59  ;;  %1868 = vmatprep.mubr.f32.mxu0 %v16427_v15  ;;  %2005 = vmatprep.mubr.f32.mxu1 %v16427_v15 }
 0x11c   :  { %v10911_v55 = vpop.f32.mrf.mxu0  ;;  %v743_v7 = vpop.f32.mrf.mxu1 }
 0x11d   :  { %16433 = vst [vmem:[#allocation19_spill] sm:$0xff] %v10907_v54  ;;  %v10914_v6 = vadd.f32 %v743_v7, %v10667_v8 }
 0x11e   :  { %v10916_v44 = vpop.f32.mrf.mxu0  ;;  %v747_v1 = vpop.f32.mrf.mxu1  ;;  %7701 = vmatmul.mubr.msk.f32.gmra.mxu0 %vm106_vm1, %v9594_v43  ;;  %7715 = vmatmul.mubr.msk.f32.gmra.mxu1 %vm106_vm1, %v9594_v43  ;;  %v9595_v43 = vld [vmem:[%s16326_s1 + $0x58] sm:$0xff] }
 0x11f   :  { %16434 = vst [vmem:[#allocation20_spill] sm:$0xff] %v10914_v6  ;;  %v10924_v59 = vadd.f32 %v747_v1, %v10671_v52  ;;  %1874 = vmatprep.mubr.f32.mxu0 %v16427_v15  ;;  %2011 = vmatprep.mubr.f32.mxu1 %v16427_v15 }
 0x120   :  { %v10928_v8 = vpop.f32.mrf.mxu0  ;;  %v749_v17 = vpop.f32.mrf.mxu1 }
 0x121   :  { %16435 = vst [vmem:[#allocation21_spill] sm:$0xff] %v10924_v59  ;;  %v10931_v7 = vadd.f32 %v749_v17, %v10681_v9 }
 0x122   :  { %v10933_v6 = vpop.f32.mrf.mxu0  ;;  %v753_v54 = vpop.f32.mrf.mxu1  ;;  %7702 = vmatmul.mubr.msk.f32.gmra.mxu0 %vm106_vm1, %v9595_v43  ;;  %7716 = vmatmul.mubr.msk.f32.gmra.mxu1 %vm106_vm1, %v9595_v43  ;;  %v7740_v43 = vld [vmem:[%s16325_s2 + $0x3b0] sm:$0xf] }
 0x123   :  { %16436 = vst [vmem:[#allocation22_spill] sm:$0xff] %v10931_v7  ;;  %v10941_v52 = vadd.f32 %v753_v54, %v10685_v16  ;;  %1880 = vmatprep.mubr.f32.mxu0 %v16427_v15  ;;  %2017 = vmatprep.mubr.f32.mxu1 %v16427_v15 }
 0x124   :  { %v10945_v9 = vpop.f32.mrf.mxu0  ;;  %v755_v1 = vpop.f32.mrf.mxu1 }
 0x125   :  { %16437 = vst [vmem:[#allocation23_spill] sm:$0xff] %v10941_v52  ;;  %v10948_v17 = vadd.f32 %v755_v1, %v10700_v10 }
 0x126   :  { %v10950_v7 = vpop.f32.mrf.mxu0  ;;  %v759_v59 = vpop.f32.mrf.mxu1  ;;  %7703 = vmatmul.mubr.msk.f32.gmra.mxu0 %vm106_vm1, %v10698_v45  ;;  %7717 = vmatmul.mubr.msk.f32.gmra.mxu1 %vm106_vm1, %v10698_v45 }
 0x127   :  { %16438 = vst [vmem:[#allocation24_spill] sm:$0xff] %v10948_v17  ;;  %v10957_v16 = vadd.f32 %v759_v59, %v10704_v23  ;;  %2206 = vmatprep.mubr.f32.mxu0 %v16427_v15  ;;  %2343 = vmatprep.mubr.f32.mxu1 %v16427_v15  ;;  %v10974_v23 = vld [vmem:[%s16327_s0 + $0x10] sm:$0xff]  ;;  %v7735_v59 = vld [vmem:[%s16325_s2 + $0x388] sm:$0xff] }
 0x128   :  { %v10961_v54 = vpop.f32.mrf.mxu0  ;;  %v761_v10 = vpop.f32.mrf.mxu1 }
 0x129   :  { %16439 = vst [vmem:[#allocation25_spill] sm:$0xff] %v10957_v16  ;;  %v10967_v1 = vadd.f32 %v761_v10, %v10714_v46  ;;  %v9597_v10 = vld [vmem:[%s16325_s2 + $0x150] sm:$0xf] }
 0x12a   :  { %v10969_v17 = vpop.f32.mrf.mxu0  ;;  %v967_v45 = vpop.f32.mrf.mxu1  ;;  %7744 = vmatmul.mubr.msk.f32.vlgmr.msra.gmra.mxu0 %vm106_vm1, %v10974_v23  ;;  %7758 = vmatmul.mubr.msk.f32.vlgmr.msra.gmra.mxu1 %vm106_vm1, %v10974_v23 }
 0x12b   :  { %16440 = vst [vmem:[#allocation26_spill] sm:$0xff] %v10967_v1  ;;  %v10984_v46 = vadd.f32 %v967_v45, %v10724_v31  ;;  %7771 = vmatpush1.msk.msra.mxu0 %vm143_vm0, %v7740_v43  ;;  %7785 = vmatpush1.msk.msra.mxu1 %vm143_vm0, %v9597_v10  ;;  %v7734_v31 = vld [vmem:[%s16325_s2 + $0x380] sm:$0xff]  ;;  %v9598_v43 = vld [vmem:[%s16325_s2 + $0x128] sm:$0xff] }
 0x12c   :  { %v10991_v1 = vpop.f32.mrf.mxu0  ;;  %v969_v16 = vpop.f32.mrf.mxu1  ;;  %2212 = vmatprep.mubr.f32.mxu0 %v16427_v15  ;;  %2349 = vmatprep.mubr.f32.mxu1 %v16427_v15 }
 0x12d   :  { %16441 = vst [vmem:[#allocation27_spill] sm:$0xff] %v10984_v46  ;;  %v10996_v52 = vadd.f32 %v969_v16, %v10741_v19  ;;  %2442 = vmatprep.subr.mxu0 %v7735_v59  ;;  %2651 = vmatprep.subr.mxu1 %v9598_v43  ;;  %v11009_v46 = vld [vmem:[%s16327_s0 + $0x18] sm:$0xff] }
 0x12e   :  { %v11004_v45 = vpop.f32.mrf.mxu0  ;;  %v973_v10 = vpop.f32.mrf.mxu1  ;;  %7745 = vmatmul.mubr.msk.f32.gmra.mxu0 %vm106_vm1, %v11009_v46  ;;  %7759 = vmatmul.mubr.msk.f32.gmra.mxu1 %vm106_vm1, %v11009_v46  ;;  %v7729_v19 = vld [vmem:[%s16325_s2 + $0x358] sm:$0xff] }
 0x12f   :  { %16442 = vst [vmem:[#allocation28_spill] sm:$0xff] %v10996_v52  ;;  %v11019_v16 = vadd.f32 %v973_v10, %v10754_v28  ;;  %2218 = vmatprep.mubr.f32.mxu0 %v16427_v15  ;;  %2355 = vmatprep.mubr.f32.mxu1 %v16427_v15  ;;  %v9600_v52 = vld [vmem:[%s16325_s2 + $0x120] sm:$0xff]  ;;  %v7728_v28 = vld [vmem:[%s16325_s2 + $0x350] sm:$0xff]  ;;  %v9601_v10 = vld [vmem:[%s16325_s2 + $0xf8] sm:$0xff] }
 0x130   :  { %v11023_v59 = vpop.f32.mrf.mxu0  ;;  %v975_v43 = vpop.f32.mrf.mxu1  ;;  %2443 = vmatpush1.msra.mxu0 %v7734_v31  ;;  %2652 = vmatpush1.msra.mxu1 %v9600_v52  ;;  %v11042_v52 = vld [vmem:[%s16327_s0 + $0x20] sm:$0xff] }
 0x131   :  { %16443 = vst [vmem:[#allocation29_spill] sm:$0xff] %v11019_v16  ;;  %v11029_v42 = vadd.f32 %v975_v43, %v10771_v11  ;;  %2444 = vmatprep.subr.mxu0 %v7729_v19  ;;  %2653 = vmatprep.subr.mxu1 %v9601_v10  ;;  %v7723_v11 = vld [vmem:[%s16325_s2 + $0x328] sm:$0xff] }
 0x132   :  { %v11037_v16 = vpop.f32.mrf.mxu0  ;;  %v979_v31 = vpop.f32.mrf.mxu1  ;;  %7746 = vmatmul.mubr.msk.f32.gmra.mxu0 %vm106_vm1, %v11042_v52  ;;  %7760 = vmatmul.mubr.msk.f32.gmra.mxu1 %vm106_vm1, %v11042_v52 }
 0x133   :  { %16444 = vst [vmem:[#allocation30_spill] sm:$0xff] %v11029_v42  ;;  %v11052_v19 = vadd.f32 %v979_v31, %v10782_v33  ;;  %2224 = vmatprep.mubr.f32.mxu0 %v16427_v15  ;;  %2361 = vmatprep.mubr.f32.mxu1 %v16427_v15  ;;  %v9603_v42 = vld [vmem:[%s16325_s2 + $0xf0] sm:$0xff]  ;;  %v7722_v33 = vld [vmem:[%s16325_s2 + $0x320] sm:$0xff]  ;;  %v9604_v31 = vld [vmem:[%s16325_s2 + $0xc8] sm:$0xff] }
 0x134   :  { %v11056_v43 = vpop.f32.mrf.mxu0  ;;  %v981_v10 = vpop.f32.mrf.mxu1  ;;  %2445 = vmatpush1.msra.mxu0 %v7728_v28  ;;  %2654 = vmatpush1.msra.mxu1 %v9603_v42  ;;  %v11075_v42 = vld [vmem:[%s16327_s0 + $0x28] sm:$0xff] }
 0x135   :  { %16445 = vst [vmem:[#allocation31_spill] sm:$0xff] %v11052_v19  ;;  %v11062_v41 = vadd.f32 %v981_v10, %v10799_v62  ;;  %2446 = vmatprep.subr.mxu0 %v7723_v11  ;;  %2655 = vmatprep.subr.mxu1 %v9604_v31  ;;  %v9606_v31 = vld [vmem:[%s16325_s2 + $0xc0] sm:$0xff] }
 0x136   :  { %v11070_v19 = vpop.f32.mrf.mxu0  ;;  %v985_v28 = vpop.f32.mrf.mxu1  ;;  %7747 = vmatmul.mubr.msk.f32.gmra.mxu0 %vm106_vm1, %v11075_v42  ;;  %7761 = vmatmul.mubr.msk.f32.gmra.mxu1 %vm106_vm1, %v11075_v42 }
 0x137   :  { %16446 = vst [vmem:[#allocation32_spill] sm:$0xff] %v11062_v41  ;;  %v11082_v62 = vadd.f32 %v985_v28, %v10810_v63  ;;  %2230 = vmatprep.mubr.f32.mxu0 %v16427_v15  ;;  %2367 = vmatprep.mubr.f32.mxu1 %v16427_v15  ;;  %v9607_v63 = vld [vmem:[%s16325_s2 + $0x168] sm:$0xf]  ;;  %v9608_v28 = vld [vmem:[%s16325_s2 + $0x178] sm:$0xf] }
 0x138   :  { %v11086_v11 = vpop.f32.mrf.mxu0  ;;  %v987_v10 = vpop.f32.mrf.mxu1  ;;  %2447 = vmatpush1.msra.mxu0 %v7722_v33  ;;  %2656 = vmatpush1.msra.mxu1 %v9606_v31 }
 0x139   :  { %16447 = vst [vmem:[#allocation33_spill] sm:$0xff] %v11082_v62  ;;  %v11092_v41 = vadd.f32 %v987_v10, %v10824_v13  ;;  %7798 = vmatprep.subr.msk.mxu0 %vm143_vm0, %v9607_v63  ;;  %7812 = vmatprep.subr.msk.mxu1 %vm143_vm0, %v9608_v28  ;;  %v11107_v13 = vld [vmem:[%s16327_s0 + $0x30] sm:$0xff] }
 0x13a   :  { %v11102_v33 = vpop.f32.mrf.mxu0  ;;  %v991_v62 = vpop.f32.mrf.mxu1  ;;  %7748 = vmatmul.mubr.msk.f32.gmra.mxu0 %vm106_vm1, %v11107_v13  ;;  %7762 = vmatmul.mubr.msk.f32.gmra.mxu1 %vm106_vm1, %v11107_v13 }
 0x13b   :  { %16448 = vst [vmem:[#allocation34_spill] sm:$0xff] %v11092_v41  ;;  %v11114_v10 = vadd.f32 %v991_v62, %v10834_v29  ;;  %2236 = vmatprep.mubr.f32.mxu0 %v16427_v15  ;;  %2373 = vmatprep.mubr.f32.mxu1 %v16427_v15 }
 0x13c   :  { %v11118_v31 = vpop.f32.mrf.mxu0  ;;  %v993_v63 = vpop.f32.mrf.mxu1 }
 0x13d   :  { %16449 = vst [vmem:[#allocation35_spill] sm:$0xff] %v11114_v10  ;;  %v11121_v28 = vadd.f32 %v993_v63, %v10845_v3 }
 0x13e   :  { %v11123_v41 = vpop.f32.mrf.mxu0  ;;  %v997_v53 = vpop.f32.mrf.mxu1  ;;  %7749 = vmatmul.mubr.msk.f32.gmra.mxu0 %vm106_vm1, %v11128_v37  ;;  %7763 = vmatmul.mubr.msk.f32.gmra.mxu1 %vm106_vm1, %v11128_v37 }
 0x13f   :  { %16450 = vst [vmem:[#allocation36_spill] sm:$0xff] %v11121_v28  ;;  %v11135_v29 = vadd.f32 %v997_v53, %v10850_v25  ;;  %2242 = vmatprep.mubr.f32.mxu0 %v16427_v15  ;;  %2379 = vmatprep.mubr.f32.mxu1 %v16427_v15 }
 0x140   :  { %v11139_v3 = vpop.f32.mrf.mxu0  ;;  %v999_v62 = vpop.f32.mrf.mxu1 }
 0x141   :  { %16451 = vst [vmem:[#allocation37_spill] sm:$0xff] %v11135_v29  ;;  %v11142_v63 = vadd.f32 %v999_v62, %v10861_v4 }
 0x142   :  { %v11144_v28 = vpop.f32.mrf.mxu0  ;;  %v1003_v10 = vpop.f32.mrf.mxu1  ;;  %7750 = vmatmul.mubr.msk.f32.gmra.mxu0 %vm106_vm1, %v11149_v51  ;;  %7764 = vmatmul.mubr.msk.f32.gmra.mxu1 %vm106_vm1, %v11149_v51  ;;  %v11170_v51 = vld [vmem:[%s16327_s0 + $0x48] sm:$0xff] }
 0x143   :  { %16452 = vst [vmem:[#allocation38_spill] sm:$0xff] %v11142_v63  ;;  %v11156_v53 = vadd.f32 %v1003_v10, %v10866_v58  ;;  %2248 = vmatprep.mubr.f32.mxu0 %v16427_v15  ;;  %2385 = vmatprep.mubr.f32.mxu1 %v16427_v15  ;;  %16456 = vst [vmem:[#allocation42_spill] sm:$0xff] %v11170_v51 }
 0x144   :  { %v11160_v25 = vpop.f32.mrf.mxu0  ;;  %v1005_v4 = vpop.f32.mrf.mxu1 }
 0x145   :  { %16454 = vst [vmem:[#allocation40_spill] sm:$0xff] %v11156_v53  ;;  %v11163_v62 = vadd.f32 %v1005_v4, %v10877_v47 }
 0x146   :  { %v11165_v63 = vpop.f32.mrf.mxu0  ;;  %v1009_v29 = vpop.f32.mrf.mxu1  ;;  %7751 = vmatmul.mubr.msk.f32.gmra.mxu0 %vm106_vm1, %v11170_v51  ;;  %7765 = vmatmul.mubr.msk.f32.gmra.mxu1 %vm106_vm1, %v11170_v51  ;;  %v11191_v51 = vld [vmem:[%s16327_s0 + $0x50] sm:$0xff] }
 0x147   :  { %16455 = vst [vmem:[#allocation41_spill] sm:$0xff] %v11163_v62  ;;  %v11177_v58 = vadd.f32 %v1009_v29, %v10882_v38  ;;  %2254 = vmatprep.mubr.f32.mxu0 %v16427_v15  ;;  %2391 = vmatprep.mubr.f32.mxu1 %v16427_v15  ;;  %16459 = vst [vmem:[#allocation45_spill] sm:$0xff] %v11191_v51 }
 0x148   :  { %v11181_v47 = vpop.f32.mrf.mxu0  ;;  %v1011_v10 = vpop.f32.mrf.mxu1 }
 0x149   :  { %16457 = vst [vmem:[#allocation43_spill] sm:$0xff] %v11177_v58  ;;  %v11184_v4 = vadd.f32 %v1011_v10, %v10893_v50 }
 0x14a   :  { %v11186_v62 = vpop.f32.mrf.mxu0  ;;  %v1015_v53 = vpop.f32.mrf.mxu1  ;;  %7752 = vmatmul.mubr.msk.f32.gmra.mxu0 %vm106_vm1, %v11191_v51  ;;  %7766 = vmatmul.mubr.msk.f32.gmra.mxu1 %vm106_vm1, %v11191_v51  ;;  %v11212_v51 = vld [vmem:[%s16327_s0 + $0x58] sm:$0xff] }
 0x14b   :  { %16458 = vst [vmem:[#allocation44_spill] sm:$0xff] %v11184_v4  ;;  %v11198_v38 = vadd.f32 %v1015_v53, %v10898_v5  ;;  %2260 = vmatprep.mubr.f32.mxu0 %v16427_v15  ;;  %2397 = vmatprep.mubr.f32.mxu1 %v16427_v15 }
 0x14c   :  { %v11202_v50 = vpop.f32.mrf.mxu0  ;;  %v1017_v29 = vpop.f32.mrf.mxu1 }
 0x14d   :  { %16460 = vst [vmem:[#allocation46_spill] sm:$0xff] %v11198_v38  ;;  %v11205_v10 = vadd.f32 %v1017_v29, %v10911_v55 }
 0x14e   :  { %v11207_v4 = vpop.f32.mrf.mxu0  ;;  %v1021_v58 = vpop.f32.mrf.mxu1  ;;  %7753 = vmatmul.mubr.msk.f32.gmra.mxu0 %vm106_vm1, %v11212_v51  ;;  %7767 = vmatmul.mubr.msk.f32.gmra.mxu1 %vm106_vm1, %v11212_v51 }
 0x14f   :  { %16461 = vst [vmem:[#allocation47_spill] sm:$0xff] %v11205_v10  ;;  %v11219_v5 = vadd.f32 %v1021_v58, %v10916_v44  ;;  %2266 = vmatprep.mubr.f32.mxu0 %v16427_v15  ;;  %2403 = vmatprep.mubr.f32.mxu1 %v16427_v15 }
 0x150   :  { %v11223_v55 = vpop.f32.mrf.mxu0  ;;  %v1023_v53 = vpop.f32.mrf.mxu1 }
 0x151   :  { %16462 = vst [vmem:[#allocation48_spill] sm:$0xff] %v11219_v5  ;;  %v11226_v29 = vadd.f32 %v1023_v53, %v10928_v8  ;;  %v11242_v8 = vld [vmem:[%s16327_s0 + $0x68] sm:$0xff] }
 0x152   :  { %v11228_v10 = vpop.f32.mrf.mxu0  ;;  %v1027_v38 = vpop.f32.mrf.mxu1  ;;  %7754 = vmatmul.mubr.msk.f32.gmra.mxu0 %vm106_vm1, %v10485_v56  ;;  %7768 = vmatmul.mubr.msk.f32.gmra.mxu1 %vm106_vm1, %v10485_v56 }
 0x153   :  { %16463 = vst [vmem:[#allocation49_spill] sm:$0xff] %v11226_v29  ;;  %v11235_v44 = vadd.f32 %v1027_v38, %v10933_v6  ;;  %2272 = vmatprep.mubr.f32.mxu0 %v16427_v15  ;;  %2409 = vmatprep.mubr.f32.mxu1 %v16427_v15 }
 0x154   :  { %v11244_v58 = vpop.f32.mrf.mxu0  ;;  %v1029_v53 = vpop.f32.mrf.mxu1 }
 0x155   :  { %16464 = vst [vmem:[#allocation50_spill] sm:$0xff] %v11235_v44  ;;  %v11247_v29 = vadd.f32 %v1029_v53, %v10945_v9  ;;  %v831_v53 = vadd.f32 %v10969_v17, %v10501_v61 }
 0x156   :  { %v11249_v5 = vpop.f32.mrf.mxu0  ;;  %v1033_v56 = vpop.f32.mrf.mxu1  ;;  %7755 = vmatmul.mubr.msk.f32.gmra.mxu0 %vm106_vm1, %v11242_v8  ;;  %7769 = vmatmul.mubr.msk.f32.gmra.mxu1 %vm106_vm1, %v11242_v8 }
 0x157   :  { %16465 = vst [vmem:[#allocation51_spill] sm:$0xff] %v11247_v29  ;;  %16466 = vst [vmem:[#allocation52_spill] sm:$0xff] %v11249_v5  ;;  %v11256_v6 = vadd.f32 %v1033_v56, %v10950_v7  ;;  %2480 = vmatprep.mubr.f32.mxu0 %v16427_v15  ;;  %2689 = vmatprep.mubr.f32.mxu1 %v16427_v15  ;;  %v11272_v7 = vld [vmem:[%s16327_s0 + $0x8] sm:$0xff]  ;;  %v833_v56 = vadd.f32 %v10991_v1, %v10517_v2 }
 0x158   :  { %v11260_v38 = vpop.f32.mrf.mxu0  ;;  %v1035_v9 = vpop.f32.mrf.mxu1  ;;  %v837_v2 = vadd.f32 %v11004_v45, %v10529_v14  ;;  %v839_v14 = vadd.f32 %v11023_v59, %v10545_v18  ;;  %v9621_v18 = vld [vmem:[%s16325_s2 + $0x140] sm:$0xff] }
 0x159   :  { %16467 = vst [vmem:[#allocation53_spill] sm:$0xff] %v11256_v6  ;;  %v11265_v29 = vadd.f32 %v1035_v9, %v10961_v54  ;;  %v9616_v54 = vld [vmem:[%s16325_s2 + $0x160] sm:$0xf]  ;;  %v9617_v9 = vld [vmem:[%s16325_s2 + $0x170] sm:$0xf] }
 0x15a   :  { %v1150_v44 = vpop.f32.mrf.mxu0  ;;  %v1287_v5 = vpop.f32.mrf.mxu1  ;;  %7772 = vmatmul.mubr.msk.f32.vlgmr.msra.gmra.mxu0 %vm106_vm1, %v10974_v23  ;;  %7786 = vmatmul.mubr.msk.f32.vlgmr.msra.gmra.mxu1 %vm106_vm1, %v11272_v7 }
 0x15b   :  { %16468 = vst [vmem:[#allocation54_spill] sm:$0xff] %v11265_v29  ;;  %v11279_v61 = vadd.f32 %v1150_v44, %v10737_v24  ;;  %v11281_v17 = vadd.f32 %v1287_v5, %v831_v53  ;;  %7799 = vmatpush1.msk.msra.mxu0 %vm143_vm0, %v9616_v54  ;;  %7813 = vmatpush1.msk.msra.mxu1 %vm143_vm0, %v9617_v9  ;;  %v9618_v5 = vld [vmem:[%s16325_s2 + $0x138] sm:$0xff]  ;;  %v9619_v44 = vld [vmem:[%s16325_s2 + $0x148] sm:$0xff] }
 0x15c   :  { %v1152_v29 = vpop.f32.mrf.mxu0  ;;  %v1289_v6 = vpop.f32.mrf.mxu1  ;;  %2486 = vmatprep.mubr.f32.mxu0 %v16427_v15  ;;  %2695 = vmatprep.mubr.f32.mxu1 %v16427_v15 }
 0x15d   :  { %v11296_v24 = vadd.f32 %v1152_v29, %v10746_v22  ;;  %v11298_v1 = vadd.f32 %v1289_v6, %v833_v56  ;;  %2788 = vmatprep.subr.mxu0 %v9618_v5  ;;  %2925 = vmatprep.subr.mxu1 %v9619_v44  ;;  %v9620_v56 = vld [vmem:[%s16325_s2 + $0x130] sm:$0xff]  ;;  %v9623_v5 = vld [vmem:[%s16325_s2 + $0x118] sm:$0xff] }
 0x15e   :  { %v1156_v53 = vpop.f32.mrf.mxu0  ;;  %v1293_v54 = vpop.f32.mrf.mxu1  ;;  %7773 = vmatmul.mubr.msk.f32.gmra.mxu0 %vm106_vm1, %v11009_v46  ;;  %7787 = vmatmul.mubr.msk.f32.gmra.mxu1 %vm106_vm1, %v10974_v23 }
 0x15f   :  { %v11313_v22 = vadd.f32 %v1156_v53, %v10767_v57  ;;  %v11315_v45 = vadd.f32 %v1293_v54, %v837_v2  ;;  %2492 = vmatprep.mubr.f32.mxu0 %v16427_v15  ;;  %2701 = vmatprep.mubr.f32.mxu1 %v16427_v15  ;;  %v843_v57 = vadd.f32 %v11037_v16, %v10555_v21  ;;  %v9622_v2 = vld [vmem:[%s16325_s2 + $0x108] sm:$0xff] }
 0x160   :  { %v1158_v29 = vpop.f32.mrf.mxu0  ;;  %v1295_v6 = vpop.f32.mrf.mxu1  ;;  %2789 = vmatpush1.msra.mxu0 %v9620_v56  ;;  %2926 = vmatpush1.msra.mxu1 %v9621_v18  ;;  %v845_v21 = vadd.f32 %v11056_v43, %v10571_v26  ;;  %v9625_v26 = vld [vmem:[%s16325_s2 + $0x110] sm:$0xff]  ;;  %v9626_v56 = vld [vmem:[%s16325_s2 + $0xd8] sm:$0xff]  ;;  %v9627_v18 = vld [vmem:[%s16325_s2 + $0xe8] sm:$0xff] }
 0x161   :  { %v11328_v59 = vadd.f32 %v1158_v29, %v10774_v27  ;;  %v11330_v9 = vadd.f32 %v1295_v6, %v839_v14  ;;  %2790 = vmatprep.subr.mxu0 %v9622_v2  ;;  %2927 = vmatprep.subr.mxu1 %v9623_v5  ;;  %v9624_v29 = vld [vmem:[%s16325_s2 + $0x100] sm:$0xff] }
 0x162   :  { %v1162_v44 = vpop.f32.mrf.mxu0  ;;  %v1299_v53 = vpop.f32.mrf.mxu1  ;;  %7774 = vmatmul.mubr.msk.f32.gmra.mxu0 %vm106_vm1, %v11042_v52  ;;  %7788 = vmatmul.mubr.msk.f32.gmra.mxu1 %vm106_vm1, %v11009_v46 }
 0x163   :  { %v11345_v27 = vadd.f32 %v1162_v44, %v10795_v60  ;;  %v11347_v16 = vadd.f32 %v1299_v53, %v843_v57  ;;  %2498 = vmatprep.mubr.f32.mxu0 %v16427_v15  ;;  %2707 = vmatprep.mubr.f32.mxu1 %v16427_v15  ;;  %v849_v60 = vadd.f32 %v11070_v19, %v10581_v30  ;;  %v9628_v53 = vld [vmem:[%s16325_s2 + $0xd0] sm:$0xff] }
 0x164   :  { %v1164_v54 = vpop.f32.mrf.mxu0  ;;  %v1301_v14 = vpop.f32.mrf.mxu1  ;;  %2791 = vmatpush1.msra.mxu0 %v9624_v29  ;;  %2928 = vmatpush1.msra.mxu1 %v9625_v26  ;;  %v851_v30 = vadd.f32 %v11086_v11, %v10597_v35  ;;  %v9629_v35 = vld [vmem:[%s16325_s2 + $0xe0] sm:$0xff] }
 0x165   :  { %v11360_v43 = vadd.f32 %v1164_v54, %v10802_v32  ;;  %v11362_v6 = vadd.f32 %v1301_v14, %v845_v21  ;;  %2792 = vmatprep.subr.mxu0 %v9626_v56  ;;  %2929 = vmatprep.subr.mxu1 %v9627_v18  ;;  %v9630_v54 = vld [vmem:[%s16325_s2 + $0x98] sm:$0xf]  ;;  %v9631_v14 = vld [vmem:[%s16325_s2 + $0xa8] sm:$0xf]  ;;  %v861_v18 = vadd.f32 %v11123_v41, %v10617_v48 }
 0x166   :  { %v1168_v57 = vpop.f32.mrf.mxu0  ;;  %v1305_v2 = vpop.f32.mrf.mxu1  ;;  %7775 = vmatmul.mubr.msk.f32.gmra.mxu0 %vm106_vm1, %v11075_v42  ;;  %7789 = vmatmul.mubr.msk.f32.gmra.mxu1 %vm106_vm1, %v11042_v52 }
 0x167   :  { %v11377_v32 = vadd.f32 %v1168_v57, %v10820_v0  ;;  %v11379_v19 = vadd.f32 %v1305_v2, %v849_v60  ;;  %2504 = vmatprep.mubr.f32.mxu0 %v16427_v15  ;;  %2713 = vmatprep.mubr.f32.mxu1 %v16427_v15  ;;  %v855_v0 = vadd.f32 %v11102_v33, %v10603_v36 }
 0x168   :  { %v1170_v5 = vpop.f32.mrf.mxu0  ;;  %v1307_v44 = vpop.f32.mrf.mxu1  ;;  %2793 = vmatpush1.msra.mxu0 %v9628_v53  ;;  %2930 = vmatpush1.msra.mxu1 %v9629_v35  ;;  %v857_v36 = vadd.f32 %v11118_v31, %v10613_v39  ;;  %v16470_v53 = vld [vmem:[#allocation14_spill] sm:$0xff] }
 0x169   :  { %v11392_v11 = vadd.f32 %v1170_v5, %v10827_v12  ;;  %v11394_v21 = vadd.f32 %v1307_v44, %v851_v30  ;;  %7826 = vmatprep.subr.msk.mxu0 %vm143_vm0, %v9630_v54  ;;  %7840 = vmatprep.subr.msk.mxu1 %vm143_vm0, %v9631_v14  ;;  %v16469_v5 = vld [vmem:[#allocation2_spill] sm:$0xff]  ;;  %v16472_v54 = vld [vmem:[#allocation3_spill] sm:$0xff] }
 0x16a   :  { %v1174_v29 = vpop.f32.mrf.mxu0  ;;  %v1311_v26 = vpop.f32.mrf.mxu1  ;;  %7776 = vmatmul.mubr.msk.f32.gmra.mxu0 %vm106_vm1, %v11107_v13  ;;  %7790 = vmatmul.mubr.msk.f32.gmra.mxu1 %vm106_vm1, %v11075_v42  ;;  %v867_v44 = vadd.f32 %v11144_v28, %v16469_v5  ;;  %v869_v14 = vadd.f32 %v11160_v25, %v16472_v54  ;;  %v16479_v5 = vld [vmem:[#allocation5_spill] sm:$0xff] }
 0x16b   :  { %v11411_v12 = vadd.f32 %v1174_v29, %v10841_v34  ;;  %v11413_v33 = vadd.f32 %v1311_v26, %v855_v0  ;;  %2510 = vmatprep.mubr.f32.mxu0 %v16427_v15  ;;  %2719 = vmatprep.mubr.f32.mxu1 %v16427_v15  ;;  %v863_v34 = vadd.f32 %v11139_v3, %v10627_v49  ;;  %v16473_v29 = vld [vmem:[#allocation15_spill] sm:$0xff] }
 0x16c   :  { %v1176_v60 = vpop.f32.mrf.mxu0  ;;  %v1313_v56 = vpop.f32.mrf.mxu1 }
 0x16d   :  { %v11420_v57 = vadd.f32 %v1176_v60, %v10848_v20  ;;  %v11422_v2 = vadd.f32 %v1313_v56, %v857_v36  ;;  %v16475_v56 = vld [vmem:[#allocation4_spill] sm:$0xff] }
 0x16e   :  { %v1180_v39 = vpop.f32.mrf.mxu0  ;;  %v1317_v31 = vpop.f32.mrf.mxu1  ;;  %7777 = vmatmul.mubr.msk.f32.gmra.mxu0 %vm106_vm1, %v11128_v37  ;;  %7791 = vmatmul.mubr.msk.f32.gmra.mxu1 %vm106_vm1, %v11107_v13 }
 0x16f   :  { %v11431_v30 = vadd.f32 %v1180_v39, %v10857_v40  ;;  %v11433_v48 = vadd.f32 %v1317_v31, %v861_v18  ;;  %2516 = vmatprep.mubr.f32.mxu0 %v16427_v15  ;;  %2725 = vmatprep.mubr.f32.mxu1 %v16427_v15  ;;  %v16471_v40 = vld [vmem:[#allocation39_spill] sm:$0xff]  ;;  %v873_v18 = vadd.f32 %v11165_v63, %v16475_v56  ;;  %v16476_v39 = vld [vmem:[#allocation16_spill] sm:$0xff] }
 0x170   :  { %v1182_v20 = vpop.f32.mrf.mxu0  ;;  %v1319_v41 = vpop.f32.mrf.mxu1 }
 0x171   :  { %v11440_v35 = vadd.f32 %v1182_v20, %v16470_v53  ;;  %v11442_v0 = vadd.f32 %v1319_v41, %v863_v34  ;;  %v16478_v41 = vld [vmem:[#allocation42_spill] sm:$0xff]  ;;  %v16480_v53 = vld [vmem:[#allocation17_spill] sm:$0xff] }
 0x172   :  { %v1186_v49 = vpop.f32.mrf.mxu0  ;;  %v1323_v3 = vpop.f32.mrf.mxu1  ;;  %7778 = vmatmul.mubr.msk.f32.gmra.mxu0 %vm106_vm1, %v16471_v40  ;;  %7792 = vmatmul.mubr.msk.f32.gmra.mxu1 %vm106_vm1, %v11128_v37 }
 0x173   :  { %v11451_v26 = vadd.f32 %v1186_v49, %v16473_v29  ;;  %v11453_v28 = vadd.f32 %v1323_v3, %v867_v44  ;;  %2522 = vmatprep.mubr.f32.mxu0 %v16427_v15  ;;  %2731 = vmatprep.mubr.f32.mxu1 %v16427_v15  ;;  %v875_v44 = vadd.f32 %v11181_v47, %v16479_v5  ;;  %v16487_v5 = vld [vmem:[#allocation19_spill] sm:$0xff] }
 0x174   :  { %v1188_v36 = vpop.f32.mrf.mxu0  ;;  %v1325_v60 = vpop.f32.mrf.mxu1 }
 0x175   :  { %16474 = vst [vmem:[#allocation2_spill] sm:$0xff] %v11453_v28  ;;  %v11460_v31 = vadd.f32 %v1188_v36, %v16476_v39  ;;  %v11462_v34 = vadd.f32 %v1325_v60, %v869_v14  ;;  %v16482_v14 = vld [vmem:[#allocation6_spill] sm:$0xff] }
 0x176   :  { %v1192_v25 = vpop.f32.mrf.mxu0  ;;  %v1329_v20 = vpop.f32.mrf.mxu1  ;;  %7779 = vmatmul.mubr.msk.f32.gmra.mxu0 %vm106_vm1, %v16478_v41  ;;  %7793 = vmatmul.mubr.msk.f32.gmra.mxu1 %vm106_vm1, %v16471_v40  ;;  %v879_v29 = vadd.f32 %v11186_v62, %v16482_v14  ;;  %v16483_v36 = vld [vmem:[#allocation18_spill] sm:$0xff] }
 0x177   :  { %16477 = vst [vmem:[#allocation14_spill] sm:$0xff] %v11462_v34  ;;  %v11471_v49 = vadd.f32 %v1192_v25, %v16480_v53  ;;  %v11473_v63 = vadd.f32 %v1329_v20, %v873_v18  ;;  %2528 = vmatprep.mubr.f32.mxu0 %v16427_v15  ;;  %2737 = vmatprep.mubr.f32.mxu1 %v16427_v15  ;;  %v16485_v25 = vld [vmem:[#allocation45_spill] sm:$0xff]  ;;  %v16486_v18 = vld [vmem:[#allocation7_spill] sm:$0xff] }
 0x178   :  { %v1194_v3 = vpop.f32.mrf.mxu0  ;;  %v1331_v54 = vpop.f32.mrf.mxu1  ;;  %v881_v20 = vadd.f32 %v11202_v50, %v16486_v18 }
 0x179   :  { %16481 = vst [vmem:[#allocation39_spill] sm:$0xff] %v11473_v63  ;;  %v11480_v60 = vadd.f32 %v1194_v3, %v16483_v36  ;;  %v11482_v56 = vadd.f32 %v1331_v54, %v875_v44  ;;  %v16489_v54 = vld [vmem:[#allocation8_spill] sm:$0xff] }
 0x17a   :  { %v1198_v47 = vpop.f32.mrf.mxu0  ;;  %v1335_v39 = vpop.f32.mrf.mxu1  ;;  %7780 = vmatmul.mubr.msk.f32.gmra.mxu0 %vm106_vm1, %v16485_v25  ;;  %7794 = vmatmul.mubr.msk.f32.gmra.mxu1 %vm106_vm1, %v16478_v41  ;;  %v885_v14 = vadd.f32 %v11207_v4, %v16489_v54  ;;  %v16490_v36 = vld [vmem:[#allocation20_spill] sm:$0xff] }
 0x17b   :  { %16484 = vst [vmem:[#allocation3_spill] sm:$0xff] %v11482_v56  ;;  %v11491_v53 = vadd.f32 %v1198_v47, %v16487_v5  ;;  %v11493_v62 = vadd.f32 %v1335_v39, %v879_v29  ;;  %2534 = vmatprep.mubr.f32.mxu0 %v16427_v15  ;;  %2743 = vmatprep.mubr.f32.mxu1 %v16427_v15  ;;  %v16492_v29 = vld [vmem:[#allocation9_spill] sm:$0xff] }
 0x17c   :  { %v1200_v44 = vpop.f32.mrf.mxu0  ;;  %v1337_v3 = vpop.f32.mrf.mxu1  ;;  %v887_v47 = vadd.f32 %v11223_v55, %v16492_v29  ;;  %v16493_v39 = vld [vmem:[#allocation21_spill] sm:$0xff] }
 0x17d   :  { %16488 = vst [vmem:[#allocation15_spill] sm:$0xff] %v11493_v62  ;;  %v11500_v56 = vadd.f32 %v1200_v44, %v16490_v36  ;;  %v11502_v63 = vadd.f32 %v1337_v3, %v881_v20  ;;  %v16495_v3 = vld [vmem:[#allocation10_spill] sm:$0xff] }
 0x17e   :  { %v1204_v50 = vpop.f32.mrf.mxu0  ;;  %v1341_v18 = vpop.f32.mrf.mxu1  ;;  %7781 = vmatmul.mubr.msk.f32.gmra.mxu0 %vm106_vm1, %v11212_v51  ;;  %7795 = vmatmul.mubr.msk.f32.gmra.mxu1 %vm106_vm1, %v16485_v25  ;;  %v891_v54 = vadd.f32 %v11228_v10, %v16495_v3  ;;  %v16496_v36 = vld [vmem:[#allocation22_spill] sm:$0xff]  ;;  %v16500_v3 = vld [vmem:[#allocation12_spill] sm:$0xff] }
 0x17f   :  { %16491 = vst [vmem:[#allocation4_spill] sm:$0xff] %v11502_v63  ;;  %v11511_v5 = vadd.f32 %v1204_v50, %v16493_v39  ;;  %v11513_v4 = vadd.f32 %v1341_v18, %v885_v14  ;;  %2540 = vmatprep.mubr.f32.mxu0 %v16427_v15  ;;  %2749 = vmatprep.mubr.f32.mxu1 %v16427_v15  ;;  %v11527_v14 = vld [vmem:[%s16327_s0 + $0x60] sm:$0xff]  ;;  %v16498_v50 = vld [vmem:[#allocation11_spill] sm:$0xff] }
 0x180   :  { %v1206_v20 = vpop.f32.mrf.mxu0  ;;  %v1343_v44 = vpop.f32.mrf.mxu1  ;;  %v893_v10 = vadd.f32 %v11244_v58, %v16498_v50  ;;  %v16499_v18 = vld [vmem:[#allocation23_spill] sm:$0xff] }
 0x181   :  { %16494 = vst [vmem:[#allocation16_spill] sm:$0xff] %v11513_v4  ;;  %v11520_v63 = vadd.f32 %v1206_v20, %v16496_v36  ;;  %v11522_v62 = vadd.f32 %v1343_v44, %v887_v47  ;;  %v16501_v36 = vld [vmem:[#allocation52_spill] sm:$0xff] }
 0x182   :  { %v1210_v55 = vpop.f32.mrf.mxu0  ;;  %v1347_v29 = vpop.f32.mrf.mxu1  ;;  %7782 = vmatmul.mubr.msk.f32.gmra.mxu0 %vm106_vm1, %v11527_v14  ;;  %7796 = vmatmul.mubr.msk.f32.gmra.mxu1 %vm106_vm1, %v11212_v51  ;;  %v16502_v4 = vld [vmem:[#allocation24_spill] sm:$0xff] }
 0x183   :  { %16497 = vst [vmem:[#allocation42_spill] sm:$0xff] %v11522_v62  ;;  %v11536_v39 = vadd.f32 %v1210_v55, %v16499_v18  ;;  %v11538_v47 = vadd.f32 %v1347_v29, %v891_v54  ;;  %2546 = vmatprep.mubr.f32.mxu0 %v16427_v15  ;;  %2755 = vmatprep.mubr.f32.mxu1 %v16427_v15  ;;  %v16504_v54 = vld [vmem:[#allocation13_spill] sm:$0xff] }
 0x184   :  { %v1212_v20 = vpop.f32.mrf.mxu0  ;;  %v1349_v44 = vpop.f32.mrf.mxu1  ;;  %v897_v62 = vadd.f32 %v16501_v36, %v16500_v3  ;;  %v899_v55 = vadd.f32 %v11260_v38, %v16504_v54  ;;  %v16505_v29 = vld [vmem:[#allocation25_spill] sm:$0xff]  ;;  %v16507_v38 = vld [vmem:[#allocation27_spill] sm:$0xff]  ;;  %v9634_v54 = vld [vmem:[%s16325_s2 + $0xa0] sm:$0xf] }
 0x185   :  { %v11545_v34 = vadd.f32 %v1212_v20, %v16502_v4  ;;  %v11547_v28 = vadd.f32 %v1349_v44, %v893_v10  ;;  %v16506_v20 = vld [vmem:[#allocation26_spill] sm:$0xff] }
 0x186   :  { %v1216_v58 = vpop.f32.mrf.mxu0  ;;  %v1353_v50 = vpop.f32.mrf.mxu1  ;;  %7783 = vmatmul.mubr.msk.f32.gmra.mxu0 %vm106_vm1, %v11242_v8  ;;  %7797 = vmatmul.mubr.msk.f32.gmra.mxu1 %vm106_vm1, %v11527_v14 }
 0x187   :  { %16503 = vst [vmem:[#allocation5_spill] sm:$0xff] %v11547_v28  ;;  %v11556_v18 = vadd.f32 %v1216_v58, %v16505_v29  ;;  %v11558_v3 = vadd.f32 %v1353_v50, %v897_v62  ;;  %2826 = vmatprep.mubr.f32.mxu0 %v16427_v15  ;;  %2963 = vmatprep.mubr.f32.mxu1 %v16427_v15  ;;  %v9633_v50 = vld [vmem:[%s16325_s2 + $0x90] sm:$0xf] }
 0x188   :  { %v1218_v4 = vpop.f32.mrf.mxu0  ;;  %v1355_v10 = vpop.f32.mrf.mxu1 }
 0x189   :  { %v11563_v44 = vadd.f32 %v1218_v4, %v16506_v20  ;;  %v11565_v8 = vadd.f32 %v1355_v10, %v899_v55  ;;  %v9635_v4 = vld [vmem:[%s16325_s2 + $0x68] sm:$0xff]  ;;  %v9636_v10 = vld [vmem:[%s16325_s2 + $0x78] sm:$0xff] }
 0x18a   :  { %v1424_v36 = vpop.f32.mrf.mxu0  ;;  %v1679_v28 = vpop.f32.mrf.mxu1  ;;  %7800 = vmatmul.mubr.msk.f32.vlgmr.msra.gmra.mxu0 %vm106_vm1, %v11272_v7  ;;  %7814 = vmatmul.mubr.msk.f32.vlgmr.msra.gmra.mxu1 %vm106_vm1, %v11272_v7 }
 0x18b   :  { %v11572_v62 = vadd.f32 %v1424_v36, %v16507_v38  ;;  %v11575_v58 = vadd.f32 %v1679_v28, %v11279_v61  ;;  %7827 = vmatpush1.msk.msra.mxu0 %vm143_vm0, %v9633_v50  ;;  %7841 = vmatpush1.msk.msra.mxu1 %vm143_vm0, %v9634_v54  ;;  %v16508_v61 = vld [vmem:[#allocation28_spill] sm:$0xff] }
 0x18c   :  { %v1426_v55 = vpop.f32.mrf.mxu0  ;;  %v1681_v7 = vpop.f32.mrf.mxu1  ;;  %2832 = vmatprep.mubr.f32.mxu0 %v16427_v15  ;;  %2969 = vmatprep.mubr.f32.mxu1 %v16427_v15 }
 0x18d   :  { %v11588_v28 = vadd.f32 %v1426_v55, %v16508_v61  ;;  %v11591_v29 = vadd.f32 %v1681_v7, %v11296_v24  ;;  %3062 = vmatprep.subr.mxu0 %v9635_v4  ;;  %3199 = vmatprep.subr.mxu1 %v9636_v10  ;;  %v16509_v24 = vld [vmem:[#allocation29_spill] sm:$0xff]  ;;  %v9637_v7 = vld [vmem:[%s16325_s2 + $0x60] sm:$0xff] }
 0x18e   :  { %v1430_v20 = vpop.f32.mrf.mxu0  ;;  %v1685_v36 = vpop.f32.mrf.mxu1  ;;  %7801 = vmatmul.mubr.msk.f32.gmra.mxu0 %vm106_vm1, %v10974_v23  ;;  %7815 = vmatmul.mubr.msk.f32.gmra.mxu1 %vm106_vm1, %v10974_v23  ;;  %v9638_v23 = vld [vmem:[%s16325_s2 + $0x70] sm:$0xff]  ;;  %v16510_v61 = vld [vmem:[#allocation30_spill] sm:$0xff]  ;;  %v9639_v10 = vld [vmem:[%s16325_s2 + $0x38] sm:$0xff] }
 0x18f   :  { %v11604_v38 = vadd.f32 %v1430_v20, %v16509_v24  ;;  %v11607_v50 = vadd.f32 %v1685_v36, %v11313_v22  ;;  %2838 = vmatprep.mubr.f32.mxu0 %v16427_v15  ;;  %2975 = vmatprep.mubr.f32.mxu1 %v16427_v15  ;;  %v9640_v20 = vld [vmem:[%s16325_s2 + $0x48] sm:$0xff] }
 0x190   :  { %v1432_v54 = vpop.f32.mrf.mxu0  ;;  %v1687_v55 = vpop.f32.mrf.mxu1  ;;  %3063 = vmatpush1.msra.mxu0 %v9637_v7  ;;  %3200 = vmatpush1.msra.mxu1 %v9638_v23 }
 0x191   :  { %v11618_v4 = vadd.f32 %v1432_v54, %v16510_v61  ;;  %v11621_v22 = vadd.f32 %v1687_v55, %v11328_v59  ;;  %3064 = vmatprep.subr.mxu0 %v9639_v10  ;;  %3201 = vmatprep.subr.mxu1 %v9640_v20  ;;  %v16511_v59 = vld [vmem:[#allocation31_spill] sm:$0xff]  ;;  %v9641_v61 = vld [vmem:[%s16325_s2 + $0x30] sm:$0xff] }
 0x192   :  { %v1436_v36 = vpop.f32.mrf.mxu0  ;;  %v1691_v24 = vpop.f32.mrf.mxu1  ;;  %7802 = vmatmul.mubr.msk.f32.gmra.mxu0 %vm106_vm1, %v11009_v46  ;;  %7816 = vmatmul.mubr.msk.f32.gmra.mxu1 %vm106_vm1, %v11009_v46  ;;  %v9642_v46 = vld [vmem:[%s16325_s2 + $0x40] sm:$0xff]  ;;  %v16512_v10 = vld [vmem:[#allocation32_spill] sm:$0xff] }
 0x193   :  { %v11634_v54 = vadd.f32 %v1436_v36, %v16511_v59  ;;  %v11637_v55 = vadd.f32 %v1691_v24, %v11345_v27  ;;  %2844 = vmatprep.mubr.f32.mxu0 %v16427_v15  ;;  %2981 = vmatprep.mubr.f32.mxu1 %v16427_v15  ;;  %v9643_v36 = vld [vmem:[%s16325_s2 + $0x8] sm:$0xff]  ;;  %v9644_v24 = vld [vmem:[%s16325_s2 + $0x18] sm:$0xff] }
 0x194   :  { %v1438_v7 = vpop.f32.mrf.mxu0  ;;  %v1693_v23 = vpop.f32.mrf.mxu1  ;;  %3065 = vmatpush1.msra.mxu0 %v9641_v61  ;;  %3202 = vmatpush1.msra.mxu1 %v9642_v46 }
 0x195   :  { %v11648_v20 = vadd.f32 %v1438_v7, %v16512_v10  ;;  %v11651_v27 = vadd.f32 %v1693_v23, %v11360_v43  ;;  %3066 = vmatprep.subr.mxu0 %v9643_v36  ;;  %3203 = vmatprep.subr.mxu1 %v9644_v24  ;;  %v16514_v43 = vld [vmem:[#allocation33_spill] sm:$0xff]  ;;  %v9645_v36 = vld [vmem:[%s16325_s2] sm:$0xff] }
 0x196   :  { %v1442_v59 = vpop.f32.mrf.mxu0  ;;  %v1697_v61 = vpop.f32.mrf.mxu1  ;;  %7803 = vmatmul.mubr.msk.f32.gmra.mxu0 %vm106_vm1, %v11042_v52  ;;  %7817 = vmatmul.mubr.msk.f32.gmra.mxu1 %vm106_vm1, %v11042_v52  ;;  %v9646_v52 = vld [vmem:[%s16325_s2 + $0x10] sm:$0xff]  ;;  %v16516_v24 = vld [vmem:[#allocation34_spill] sm:$0xff] }
 0x197   :  { %16513 = vst [vmem:[#allocation17_spill] sm:$0xff] %v11651_v27  ;;  %v11664_v7 = vadd.f32 %v1442_v59, %v16514_v43  ;;  %v11667_v23 = vadd.f32 %v1697_v61, %v11377_v32  ;;  %2850 = vmatprep.mubr.f32.mxu0 %v16427_v15  ;;  %2987 = vmatprep.mubr.f32.mxu1 %v16427_v15  ;;  %v9647_v61 = vld [vmem:[%s16325_s2 + $0xb8] sm:$0xf] }
 0x198   :  { %v1444_v46 = vpop.f32.mrf.mxu0  ;;  %v1699_v10 = vpop.f32.mrf.mxu1  ;;  %3067 = vmatpush1.msra.mxu0 %v9645_v36  ;;  %3204 = vmatpush1.msra.mxu1 %v9646_v52  ;;  %v9648_v43 = vld [vmem:[%s16325_s2 + $0x218] sm:$0xf] }
 0x199   :  { %16515 = vst [vmem:[#allocation6_spill] sm:$0xff] %v11667_v23  ;;  %v11678_v59 = vadd.f32 %v1444_v46, %v16516_v24  ;;  %v11681_v32 = vadd.f32 %v1699_v10, %v11392_v11  ;;  %7854 = vmatprep.subr.msk.mxu0 %vm143_vm0, %v9647_v61  ;;  %7868 = vmatprep.subr.msk.mxu1 %vm143_vm0, %v9648_v43  ;;  %v16518_v11 = vld [vmem:[#allocation35_spill] sm:$0xff]  ;;  %v16519_v43 = vld [vmem:[#allocation36_spill] sm:$0xff] }
 0x19a   :  { %v1448_v36 = vpop.f32.mrf.mxu0  ;;  %v1703_v52 = vpop.f32.mrf.mxu1  ;;  %7804 = vmatmul.mubr.msk.f32.gmra.mxu0 %vm106_vm1, %v11075_v42  ;;  %7818 = vmatmul.mubr.msk.f32.gmra.mxu1 %vm106_vm1, %v11075_v42 }
 0x19b   :  { %16517 = vst [vmem:[#allocation18_spill] sm:$0xff] %v11681_v32  ;;  %v11696_v46 = vadd.f32 %v1448_v36, %v16518_v11  ;;  %v11699_v10 = vadd.f32 %v1703_v52, %v11411_v12  ;;  %2856 = vmatprep.mubr.f32.mxu0 %v16427_v15  ;;  %2993 = vmatprep.mubr.f32.mxu1 %v16427_v15  ;;  %v16521_v12 = vld [vmem:[#allocation37_spill] sm:$0xff] }
 0x19c   :  { %v1450_v24 = vpop.f32.mrf.mxu0  ;;  %v1705_v61 = vpop.f32.mrf.mxu1 }
 0x19d   :  { %v11704_v32 = vadd.f32 %v1450_v24, %v16519_v43  ;;  %v11707_v23 = vadd.f32 %v1705_v61, %v11420_v57  ;;  %v16522_v24 = vld [vmem:[#allocation38_spill] sm:$0xff] }
 0x19e   :  { %v1454_v27 = vpop.f32.mrf.mxu0  ;;  %v1709_v42 = vpop.f32.mrf.mxu1  ;;  %7805 = vmatmul.mubr.msk.f32.gmra.mxu0 %vm106_vm1, %v11107_v13  ;;  %7819 = vmatmul.mubr.msk.f32.gmra.mxu1 %vm106_vm1, %v11107_v13 }
 0x19f   :  { %16520 = vst [vmem:[#allocation45_spill] sm:$0xff] %v11707_v23  ;;  %v11714_v36 = vadd.f32 %v1454_v27, %v16521_v12  ;;  %v11717_v52 = vadd.f32 %v1709_v42, %v11431_v30  ;;  %2862 = vmatprep.mubr.f32.mxu0 %v16427_v15  ;;  %2999 = vmatprep.mubr.f32.mxu1 %v16427_v15  ;;  %v16524_v30 = vld [vmem:[#allocation40_spill] sm:$0xff] }
 0x1a0   :  { %v1456_v57 = vpop.f32.mrf.mxu0  ;;  %v1711_v11 = vpop.f32.mrf.mxu1 }
 0x1a1   :  { %v11722_v61 = vadd.f32 %v1456_v57, %v16522_v24  ;;  %v11725_v43 = vadd.f32 %v1711_v11, %v11440_v35  ;;  %v16525_v57 = vld [vmem:[#allocation41_spill] sm:$0xff] }
 0x1a2   :  { %v1460_v23 = vpop.f32.mrf.mxu0  ;;  %v1715_v13 = vpop.f32.mrf.mxu1  ;;  %7806 = vmatmul.mubr.msk.f32.gmra.mxu0 %vm106_vm1, %v11128_v37  ;;  %7820 = vmatmul.mubr.msk.f32.gmra.mxu1 %vm106_vm1, %v11128_v37 }
 0x1a3   :  { %16523 = vst [vmem:[#allocation7_spill] sm:$0xff] %v11725_v43  ;;  %v11732_v27 = vadd.f32 %v1460_v23, %v16524_v30  ;;  %v11735_v42 = vadd.f32 %v1715_v13, %v11451_v26  ;;  %2868 = vmatprep.mubr.f32.mxu0 %v16427_v15  ;;  %3005 = vmatprep.mubr.f32.mxu1 %v16427_v15  ;;  %v16527_v26 = vld [vmem:[#allocation43_spill] sm:$0xff] }
 0x1a4   :  { %v1462_v35 = vpop.f32.mrf.mxu0  ;;  %v1717_v12 = vpop.f32.mrf.mxu1 }
 0x1a5   :  { %v11740_v11 = vadd.f32 %v1462_v35, %v16525_v57  ;;  %v11743_v24 = vadd.f32 %v1717_v12, %v11460_v31  ;;  %v16528_v35 = vld [vmem:[#allocation44_spill] sm:$0xff] }
 0x1a6   :  { %v1466_v43 = vpop.f32.mrf.mxu0  ;;  %v1721_v37 = vpop.f32.mrf.mxu1  ;;  %7807 = vmatmul.mubr.msk.f32.gmra.mxu0 %vm106_vm1, %v16471_v40  ;;  %7821 = vmatmul.mubr.msk.f32.gmra.mxu1 %vm106_vm1, %v16471_v40 }
 0x1a7   :  { %16526 = vst [vmem:[#allocation19_spill] sm:$0xff] %v11743_v24  ;;  %v11750_v23 = vadd.f32 %v1466_v43, %v16527_v26  ;;  %v11753_v13 = vadd.f32 %v1721_v37, %v11471_v49  ;;  %2874 = vmatprep.mubr.f32.mxu0 %v16427_v15  ;;  %3011 = vmatprep.mubr.f32.mxu1 %v16427_v15  ;;  %v16530_v49 = vld [vmem:[#allocation46_spill] sm:$0xff] }
 0x1a8   :  { %v1468_v31 = vpop.f32.mrf.mxu0  ;;  %v1723_v30 = vpop.f32.mrf.mxu1 }
 0x1a9   :  { %v11758_v12 = vadd.f32 %v1468_v31, %v16528_v35  ;;  %v11761_v57 = vadd.f32 %v1723_v30, %v11480_v60  ;;  %v16531_v31 = vld [vmem:[#allocation47_spill] sm:$0xff] }
 0x1aa   :  { %v1472_v24 = vpop.f32.mrf.mxu0  ;;  %v1727_v40 = vpop.f32.mrf.mxu1  ;;  %7808 = vmatmul.mubr.msk.f32.gmra.mxu0 %vm106_vm1, %v16478_v41  ;;  %7822 = vmatmul.mubr.msk.f32.gmra.mxu1 %vm106_vm1, %v16478_v41 }
 0x1ab   :  { %16529 = vst [vmem:[#allocation8_spill] sm:$0xff] %v11761_v57  ;;  %v11768_v43 = vadd.f32 %v1472_v24, %v16530_v49  ;;  %v11771_v37 = vadd.f32 %v1727_v40, %v11491_v53  ;;  %2880 = vmatprep.mubr.f32.mxu0 %v16427_v15  ;;  %3017 = vmatprep.mubr.f32.mxu1 %v16427_v15  ;;  %v16533_v53 = vld [vmem:[#allocation48_spill] sm:$0xff] }
 0x1ac   :  { %v1474_v60 = vpop.f32.mrf.mxu0  ;;  %v1729_v26 = vpop.f32.mrf.mxu1 }
 0x1ad   :  { %v11776_v30 = vadd.f32 %v1474_v60, %v16531_v31  ;;  %v11779_v35 = vadd.f32 %v1729_v26, %v11500_v56  ;;  %v16534_v60 = vld [vmem:[#allocation49_spill] sm:$0xff] }
 0x1ae   :  { %v1478_v57 = vpop.f32.mrf.mxu0  ;;  %v1733_v41 = vpop.f32.mrf.mxu1  ;;  %7809 = vmatmul.mubr.msk.f32.gmra.mxu0 %vm106_vm1, %v16485_v25  ;;  %7823 = vmatmul.mubr.msk.f32.gmra.mxu1 %vm106_vm1, %v16485_v25 }
 0x1af   :  { %16532 = vst [vmem:[#allocation20_spill] sm:$0xff] %v11779_v35  ;;  %v11786_v24 = vadd.f32 %v1478_v57, %v16533_v53  ;;  %v11789_v40 = vadd.f32 %v1733_v41, %v11511_v5  ;;  %2886 = vmatprep.mubr.f32.mxu0 %v16427_v15  ;;  %3023 = vmatprep.mubr.f32.mxu1 %v16427_v15  ;;  %v16536_v5 = vld [vmem:[#allocation50_spill] sm:$0xff] }
 0x1b0   :  { %v1480_v56 = vpop.f32.mrf.mxu0  ;;  %v1735_v49 = vpop.f32.mrf.mxu1 }
 0x1b1   :  { %v11794_v26 = vadd.f32 %v1480_v56, %v16534_v60  ;;  %v11797_v31 = vadd.f32 %v1735_v49, %v11520_v63  ;;  %v16537_v56 = vld [vmem:[#allocation51_spill] sm:$0xff] }
 0x1b2   :  { %v1484_v35 = vpop.f32.mrf.mxu0  ;;  %v1739_v25 = vpop.f32.mrf.mxu1  ;;  %7810 = vmatmul.mubr.msk.f32.gmra.mxu0 %vm106_vm1, %v11212_v51  ;;  %7824 = vmatmul.mubr.msk.f32.gmra.mxu1 %vm106_vm1, %v11212_v51 }
 0x1b3   :  { %16535 = vst [vmem:[#allocation9_spill] sm:$0xff] %v11797_v31  ;;  %v11804_v57 = vadd.f32 %v1484_v35, %v16536_v5  ;;  %v11807_v41 = vadd.f32 %v1739_v25, %v11536_v39  ;;  %2892 = vmatprep.mubr.f32.mxu0 %v16427_v15  ;;  %3029 = vmatprep.mubr.f32.mxu1 %v16427_v15  ;;  %v16539_v39 = vld [vmem:[#allocation53_spill] sm:$0xff] }
 0x1b4   :  { %v1486_v63 = vpop.f32.mrf.mxu0  ;;  %v1741_v53 = vpop.f32.mrf.mxu1 }
 0x1b5   :  { %v11812_v49 = vadd.f32 %v1486_v63, %v16537_v56  ;;  %v11815_v60 = vadd.f32 %v1741_v53, %v11545_v34  ;;  %v16540_v63 = vld [vmem:[#allocation54_spill] sm:$0xff] }
 0x1b6   :  { %v1490_v31 = vpop.f32.mrf.mxu0  ;;  %v1745_v51 = vpop.f32.mrf.mxu1  ;;  %7811 = vmatmul.mubr.msk.f32.gmra.mxu0 %vm106_vm1, %v11527_v14  ;;  %7825 = vmatmul.mubr.msk.f32.gmra.mxu1 %vm106_vm1, %v11527_v14 }
 0x1b7   :  { %16538 = vst [vmem:[#allocation21_spill] sm:$0xff] %v11815_v60  ;;  %v11822_v35 = vadd.f32 %v1490_v31, %v16539_v39  ;;  %v11825_v25 = vadd.f32 %v1745_v51, %v11556_v18  ;;  %3100 = vmatprep.mubr.f32.mxu0 %v16427_v15  ;;  %3237 = vmatprep.mubr.f32.mxu1 %v16427_v15  ;;  %v11838_v31 = vld [vmem:[%s16326_s1] sm:$0xff]  ;;  %v9651_v39 = vld [vmem:[%s16325_s2 + $0x210] sm:$0xf] }
 0x1b8   :  { %v1492_v34 = vpop.f32.mrf.mxu0  ;;  %v1747_v5 = vpop.f32.mrf.mxu1 }
 0x1b9   :  { %v11830_v53 = vadd.f32 %v1492_v34, %v16540_v63  ;;  %v11833_v56 = vadd.f32 %v1747_v5, %v11563_v44  ;;  %v9650_v44 = vld [vmem:[%s16325_s2 + $0xb0] sm:$0xf]  ;;  %v9653_v63 = vld [vmem:[%s16325_s2 + $0x1e8] sm:$0xff] }
 0x1ba   :  { %v1816_v60 = vpop.f32.mrf.mxu0  ;;  %v1953_v14 = vpop.f32.mrf.mxu1  ;;  %7828 = vmatmul.mubr.msk.f32.vlgmr.msra.gmra.mxu0 %vm106_vm1, %v11838_v31  ;;  %7842 = vmatmul.mubr.msk.f32.vlgmr.msra.gmra.mxu1 %vm106_vm1, %v11838_v31 }
 0x1bb   :  { %v11845_v18 = vadd.f32 %v1816_v60, %v11281_v17  ;;  %v11848_v51 = vadd.f32 %v1953_v14, %v11572_v62  ;;  %7855 = vmatpush1.msk.msra.mxu0 %vm143_vm0, %v9650_v44  ;;  %7869 = vmatpush1.msk.msra.mxu1 %vm143_vm0, %v9651_v39  ;;  %v9652_v60 = vld [vmem:[%s16325_s2 + $0x88] sm:$0xff] }
 0x1bc   :  { %v1818_v34 = vpop.f32.mrf.mxu0  ;;  %v1955_v5 = vpop.f32.mrf.mxu1  ;;  %3106 = vmatprep.mubr.f32.mxu0 %v16427_v15  ;;  %3243 = vmatprep.mubr.f32.mxu1 %v16427_v15 }
 0x1bd   :  { %16541 = vst [vmem:[#allocation10_spill] sm:$0xff] %v11848_v51  ;;  %v11861_v17 = vadd.f32 %v1818_v34, %v11298_v1  ;;  %v11864_v62 = vadd.f32 %v1955_v5, %v11588_v28  ;;  %3336 = vmatprep.subr.mxu0 %v9652_v60  ;;  %3473 = vmatprep.subr.mxu1 %v9653_v63  ;;  %v11875_v1 = vld [vmem:[%s16326_s1 + $0x8] sm:$0xff]  ;;  %v9655_v60 = vld [vmem:[%s16325_s2 + $0x80] sm:$0xff] }
 0x1be   :  { %v1822_v14 = vpop.f32.mrf.mxu0  ;;  %v1959_v44 = vpop.f32.mrf.mxu1  ;;  %7829 = vmatmul.mubr.msk.f32.gmra.mxu0 %vm106_vm1, %v11875_v1  ;;  %7843 = vmatmul.mubr.msk.f32.gmra.mxu1 %vm106_vm1, %v11875_v1  ;;  %v9656_v63 = vld [vmem:[%s16325_s2 + $0x1e0] sm:$0xff] }
 0x1bf   :  { %16542 = vst [vmem:[#allocation22_spill] sm:$0xff] %v11864_v62  ;;  %v11882_v28 = vadd.f32 %v1822_v14, %v11315_v45  ;;  %v11885_v39 = vadd.f32 %v1959_v44, %v11604_v38  ;;  %3112 = vmatprep.mubr.f32.mxu0 %v16427_v15  ;;  %3249 = vmatprep.mubr.f32.mxu1 %v16427_v15  ;;  %v9657_v14 = vld [vmem:[%s16325_s2 + $0x58] sm:$0xff] }
 0x1c0   :  { %v1824_v34 = vpop.f32.mrf.mxu0  ;;  %v1961_v5 = vpop.f32.mrf.mxu1  ;;  %3337 = vmatpush1.msra.mxu0 %v9655_v60  ;;  %3474 = vmatpush1.msra.mxu1 %v9656_v63  ;;  %v9658_v44 = vld [vmem:[%s16325_s2 + $0x1b8] sm:$0xff] }
 0x1c1   :  { %16543 = vst [vmem:[#allocation11_spill] sm:$0xff] %v11885_v39  ;;  %v11896_v45 = vadd.f32 %v1824_v34, %v11330_v9  ;;  %v11899_v38 = vadd.f32 %v1961_v5, %v11618_v4  ;;  %3338 = vmatprep.subr.mxu0 %v9657_v14  ;;  %3475 = vmatprep.subr.mxu1 %v9658_v44  ;;  %v11910_v9 = vld [vmem:[%s16326_s1 + $0x10] sm:$0xff] }
 0x1c2   :  { %v1828_v60 = vpop.f32.mrf.mxu0  ;;  %v1965_v39 = vpop.f32.mrf.mxu1  ;;  %7830 = vmatmul.mubr.msk.f32.gmra.mxu0 %vm106_vm1, %v11910_v9  ;;  %7844 = vmatmul.mubr.msk.f32.gmra.mxu1 %vm106_vm1, %v11910_v9  ;;  %v9660_v14 = vld [vmem:[%s16325_s2 + $0x50] sm:$0xff] }
 0x1c3   :  { %16544 = vst [vmem:[#allocation23_spill] sm:$0xff] %v11899_v38  ;;  %v11917_v4 = vadd.f32 %v1828_v60, %v11347_v16  ;;  %v11920_v34 = vadd.f32 %v1965_v39, %v11634_v54  ;;  %3118 = vmatprep.mubr.f32.mxu0 %v16427_v15  ;;  %3255 = vmatprep.mubr.f32.mxu1 %v16427_v15  ;;  %v9661_v44 = vld [vmem:[%s16325_s2 + $0x1b0] sm:$0xff]  ;;  %v9662_v39 = vld [vmem:[%s16325_s2 + $0x28] sm:$0xff] }
 0x1c4   :  { %v1830_v5 = vpop.f32.mrf.mxu0  ;;  %v1967_v63 = vpop.f32.mrf.mxu1  ;;  %3339 = vmatpush1.msra.mxu0 %v9660_v14  ;;  %3476 = vmatpush1.msra.mxu1 %v9661_v44  ;;  %v9663_v60 = vld [vmem:[%s16325_s2 + $0x188] sm:$0xff] }
 0x1c5   :  { %16545 = vst [vmem:[#allocation12_spill] sm:$0xff] %v11920_v34  ;;  %v11931_v16 = vadd.f32 %v1830_v5, %v11362_v6  ;;  %v11934_v54 = vadd.f32 %v1967_v63, %v11648_v20  ;;  %3340 = vmatprep.subr.mxu0 %v9662_v39  ;;  %3477 = vmatprep.subr.mxu1 %v9663_v60  ;;  %v11945_v6 = vld [vmem:[%s16326_s1 + $0x18] sm:$0xff]  ;;  %v9665_v39 = vld [vmem:[%s16325_s2 + $0x20] sm:$0xff] }
 0x1c6   :  { %v1834_v14 = vpop.f32.mrf.mxu0  ;;  %v1971_v34 = vpop.f32.mrf.mxu1  ;;  %7831 = vmatmul.mubr.msk.f32.gmra.mxu0 %vm106_vm1, %v11945_v6  ;;  %7845 = vmatmul.mubr.msk.f32.gmra.mxu1 %vm106_vm1, %v11945_v6  ;;  %v9666_v60 = vld [vmem:[%s16325_s2 + $0x180] sm:$0xff] }
 0x1c7   :  { %16546 = vst [vmem:[#allocation52_spill] sm:$0xff] %v11934_v54  ;;  %v11952_v20 = vadd.f32 %v1834_v14, %v11379_v19  ;;  %v11955_v5 = vadd.f32 %v1971_v34, %v11664_v7  ;;  %3124 = vmatprep.mubr.f32.mxu0 %v16427_v15  ;;  %3261 = vmatprep.mubr.f32.mxu1 %v16427_v15  ;;  %v9667_v34 = vld [vmem:[%s16325_s2 + $0x228] sm:$0xf]  ;;  %v9668_v14 = vld [vmem:[%s16325_s2 + $0x238] sm:$0xf] }
 0x1c8   :  { %v1836_v63 = vpop.f32.mrf.mxu0  ;;  %v1973_v44 = vpop.f32.mrf.mxu1  ;;  %3341 = vmatpush1.msra.mxu0 %v9665_v39  ;;  %3478 = vmatpush1.msra.mxu1 %v9666_v60 }
 0x1c9   :  { %16547 = vst [vmem:[#allocation24_spill] sm:$0xff] %v11955_v5  ;;  %v11966_v19 = vadd.f32 %v1836_v63, %v11394_v21  ;;  %v11969_v7 = vadd.f32 %v1973_v44, %v11678_v59  ;;  %7882 = vmatprep.subr.msk.mxu0 %vm143_vm0, %v9667_v34  ;;  %7896 = vmatprep.subr.msk.mxu1 %vm143_vm0, %v9668_v14  ;;  %v11982_v21 = vld [vmem:[%s16326_s1 + $0x20] sm:$0xff] }
 0x1ca   :  { %v1840_v39 = vpop.f32.mrf.mxu0  ;;  %v1977_v60 = vpop.f32.mrf.mxu1  ;;  %7832 = vmatmul.mubr.msk.f32.gmra.mxu0 %vm106_vm1, %v11982_v21  ;;  %7846 = vmatmul.mubr.msk.f32.gmra.mxu1 %vm106_vm1, %v11982_v21 }
 0x1cb   :  { %16548 = vst [vmem:[#allocation13_spill] sm:$0xff] %v11969_v7  ;;  %v11989_v59 = vadd.f32 %v1840_v39, %v11413_v33  ;;  %v11992_v63 = vadd.f32 %v1977_v60, %v11696_v46  ;;  %3130 = vmatprep.mubr.f32.mxu0 %v16427_v15  ;;  %3267 = vmatprep.mubr.f32.mxu1 %v16427_v15  ;;  %v12005_v33 = vld [vmem:[%s16326_s1 + $0x28] sm:$0xff] }
 0x1cc   :  { %v1842_v44 = vpop.f32.mrf.mxu0  ;;  %v1979_v34 = vpop.f32.mrf.mxu1 }
 0x1cd   :  { %16549 = vst [vmem:[#allocation25_spill] sm:$0xff] %v11992_v63  ;;  %v11997_v14 = vadd.f32 %v1842_v44, %v11422_v2  ;;  %v12000_v7 = vadd.f32 %v1979_v34, %v11704_v32 }
 0x1ce   :  { %v1846_v5 = vpop.f32.mrf.mxu0  ;;  %v1983_v54 = vpop.f32.mrf.mxu1  ;;  %7833 = vmatmul.mubr.msk.f32.gmra.mxu0 %vm106_vm1, %v12005_v33  ;;  %7847 = vmatmul.mubr.msk.f32.gmra.mxu1 %vm106_vm1, %v12005_v33 }
 0x1cf   :  { %16550 = vst [vmem:[#allocation26_spill] sm:$0xff] %v12000_v7  ;;  %v12012_v46 = vadd.f32 %v1846_v5, %v11433_v48  ;;  %v12015_v2 = vadd.f32 %v1983_v54, %v11714_v36  ;;  %3136 = vmatprep.mubr.f32.mxu0 %v16427_v15  ;;  %3273 = vmatprep.mubr.f32.mxu1 %v16427_v15  ;;  %v12028_v48 = vld [vmem:[%s16326_s1 + $0x30] sm:$0xff]  ;;  %v16553_v36 = vld [vmem:[#allocation2_spill] sm:$0xff] }
 0x1d0   :  { %v1848_v32 = vpop.f32.mrf.mxu0  ;;  %v1985_v39 = vpop.f32.mrf.mxu1 }
 0x1d1   :  { %16551 = vst [vmem:[#allocation27_spill] sm:$0xff] %v12015_v2  ;;  %v12020_v60 = vadd.f32 %v1848_v32, %v11442_v0  ;;  %v12023_v44 = vadd.f32 %v1985_v39, %v11722_v61  ;;  %v16555_v32 = vld [vmem:[#allocation14_spill] sm:$0xff] }
 0x1d2   :  { %v1852_v34 = vpop.f32.mrf.mxu0  ;;  %v1989_v7 = vpop.f32.mrf.mxu1  ;;  %7834 = vmatmul.mubr.msk.f32.gmra.mxu0 %vm106_vm1, %v12028_v48  ;;  %7848 = vmatmul.mubr.msk.f32.gmra.mxu1 %vm106_vm1, %v12028_v48 }
 0x1d3   :  { %16552 = vst [vmem:[#allocation28_spill] sm:$0xff] %v12023_v44  ;;  %v12035_v54 = vadd.f32 %v1852_v34, %v16553_v36  ;;  %v12038_v0 = vadd.f32 %v1989_v7, %v11732_v27  ;;  %3142 = vmatprep.mubr.f32.mxu0 %v16427_v15  ;;  %3279 = vmatprep.mubr.f32.mxu1 %v16427_v15  ;;  %v12051_v34 = vld [vmem:[%s16326_s1 + $0x38] sm:$0xff]  ;;  %v16557_v27 = vld [vmem:[#allocation39_spill] sm:$0xff] }
 0x1d4   :  { %v1854_v61 = vpop.f32.mrf.mxu0  ;;  %v1991_v5 = vpop.f32.mrf.mxu1 }
 0x1d5   :  { %16554 = vst [vmem:[#allocation29_spill] sm:$0xff] %v12038_v0  ;;  %v12043_v39 = vadd.f32 %v1854_v61, %v16555_v32  ;;  %v12046_v44 = vadd.f32 %v1991_v5, %v11740_v11  ;;  %v16559_v5 = vld [vmem:[#allocation3_spill] sm:$0xff] }
 0x1d6   :  { %v1858_v2 = vpop.f32.mrf.mxu0  ;;  %v1995_v63 = vpop.f32.mrf.mxu1  ;;  %7835 = vmatmul.mubr.msk.f32.gmra.mxu0 %vm106_vm1, %v12051_v34  ;;  %7849 = vmatmul.mubr.msk.f32.gmra.mxu1 %vm106_vm1, %v12051_v34 }
 0x1d7   :  { %16556 = vst [vmem:[#allocation30_spill] sm:$0xff] %v12046_v44  ;;  %v12058_v7 = vadd.f32 %v1858_v2, %v16557_v27  ;;  %v12061_v36 = vadd.f32 %v1995_v63, %v11750_v23  ;;  %3148 = vmatprep.mubr.f32.mxu0 %v16427_v15  ;;  %3285 = vmatprep.mubr.f32.mxu1 %v16427_v15  ;;  %v12074_v2 = vld [vmem:[%s16326_s1 + $0x40] sm:$0xff]  ;;  %v16561_v23 = vld [vmem:[#allocation15_spill] sm:$0xff] }
 0x1d8   :  { %v1860_v11 = vpop.f32.mrf.mxu0  ;;  %v1997_v61 = vpop.f32.mrf.mxu1 }
 0x1d9   :  { %16558 = vst [vmem:[#allocation31_spill] sm:$0xff] %v12061_v36  ;;  %v12066_v32 = vadd.f32 %v1860_v11, %v16559_v5  ;;  %v12069_v44 = vadd.f32 %v1997_v61, %v11758_v12  ;;  %v16563_v61 = vld [vmem:[#allocation4_spill] sm:$0xff] }
 0x1da   :  { %v1864_v0 = vpop.f32.mrf.mxu0  ;;  %v2001_v38 = vpop.f32.mrf.mxu1  ;;  %7836 = vmatmul.mubr.msk.f32.gmra.mxu0 %vm106_vm1, %v12074_v2  ;;  %7850 = vmatmul.mubr.msk.f32.gmra.mxu1 %vm106_vm1, %v12074_v2 }
 0x1db   :  { %16560 = vst [vmem:[#allocation32_spill] sm:$0xff] %v12069_v44  ;;  %v12081_v63 = vadd.f32 %v1864_v0, %v16561_v23  ;;  %v12084_v27 = vadd.f32 %v2001_v38, %v11768_v43  ;;  %3154 = vmatprep.mubr.f32.mxu0 %v16427_v15  ;;  %3291 = vmatprep.mubr.f32.mxu1 %v16427_v15  ;;  %v12097_v0 = vld [vmem:[%s16326_s1 + $0x48] sm:$0xff]  ;;  %v16565_v43 = vld [vmem:[#allocation16_spill] sm:$0xff] }
 0x1dc   :  { %v1866_v12 = vpop.f32.mrf.mxu0  ;;  %v2003_v11 = vpop.f32.mrf.mxu1 }
 0x1dd   :  { %16562 = vst [vmem:[#allocation33_spill] sm:$0xff] %v12084_v27  ;;  %v12089_v5 = vadd.f32 %v1866_v12, %v16563_v61  ;;  %v12092_v44 = vadd.f32 %v2003_v11, %v11776_v30  ;;  %v16567_v11 = vld [vmem:[#allocation42_spill] sm:$0xff] }
 0x1de   :  { %v1870_v36 = vpop.f32.mrf.mxu0  ;;  %v2007_v62 = vpop.f32.mrf.mxu1  ;;  %7837 = vmatmul.mubr.msk.f32.gmra.mxu0 %vm106_vm1, %v12097_v0  ;;  %7851 = vmatmul.mubr.msk.f32.gmra.mxu1 %vm106_vm1, %v12097_v0 }
 0x1df   :  { %16564 = vst [vmem:[#allocation34_spill] sm:$0xff] %v12092_v44  ;;  %v12104_v38 = vadd.f32 %v1870_v36, %v16565_v43  ;;  %v12107_v23 = vadd.f32 %v2007_v62, %v11786_v24  ;;  %3160 = vmatprep.mubr.f32.mxu0 %v16427_v15  ;;  %3297 = vmatprep.mubr.f32.mxu1 %v16427_v15  ;;  %v12120_v36 = vld [vmem:[%s16326_s1 + $0x50] sm:$0xff] }
 0x1e0   :  { %v1872_v30 = vpop.f32.mrf.mxu0  ;;  %v2009_v12 = vpop.f32.mrf.mxu1 }
 0x1e1   :  { %16566 = vst [vmem:[#allocation35_spill] sm:$0xff] %v12107_v23  ;;  %v12112_v61 = vadd.f32 %v1872_v30, %v16567_v11  ;;  %v12115_v44 = vadd.f32 %v2009_v12, %v11794_v26  ;;  %v16569_v30 = vld [vmem:[#allocation5_spill] sm:$0xff] }
 0x1e2   :  { %v1876_v27 = vpop.f32.mrf.mxu0  ;;  %v2013_v51 = vpop.f32.mrf.mxu1  ;;  %7838 = vmatmul.mubr.msk.f32.gmra.mxu0 %vm106_vm1, %v12120_v36  ;;  %7852 = vmatmul.mubr.msk.f32.gmra.mxu1 %vm106_vm1, %v12120_v36 }
 0x1e3   :  { %16568 = vst [vmem:[#allocation36_spill] sm:$0xff] %v12115_v44  ;;  %v12127_v24 = vadd.f32 %v1876_v27, %v11538_v47  ;;  %v12130_v62 = vadd.f32 %v2013_v51, %v11804_v57  ;;  %3166 = vmatprep.mubr.f32.mxu0 %v16427_v15  ;;  %3303 = vmatprep.mubr.f32.mxu1 %v16427_v15  ;;  %v12143_v47 = vld [vmem:[%s16326_s1 + $0x58] sm:$0xff] }
 0x1e4   :  { %v1878_v26 = vpop.f32.mrf.mxu0  ;;  %v2015_v43 = vpop.f32.mrf.mxu1 }
 0x1e5   :  { %v12135_v12 = vadd.f32 %v1878_v26, %v16569_v30  ;;  %v12138_v11 = vadd.f32 %v2015_v43, %v11812_v49 }
 0x1e6   :  { %v1882_v44 = vpop.f32.mrf.mxu0  ;;  %v2019_v23 = vpop.f32.mrf.mxu1  ;;  %7839 = vmatmul.mubr.msk.f32.gmra.mxu0 %vm106_vm1, %v12143_v47  ;;  %7853 = vmatmul.mubr.msk.f32.gmra.mxu1 %vm106_vm1, %v12143_v47 }
 0x1e7   :  { %16570 = vst [vmem:[#allocation37_spill] sm:$0xff] %v12138_v11  ;;  %v12150_v57 = vadd.f32 %v1882_v44, %v11558_v3  ;;  %v12153_v51 = vadd.f32 %v2019_v23, %v11822_v35  ;;  %3374 = vmatprep.mubr.f32.mxu0 %v16427_v15  ;;  %3511 = vmatprep.mubr.f32.mxu1 %v16427_v15  ;;  %v9679_v23 = vld [vmem:[%s16325_s2 + $0x1f8] sm:$0xff] }
 0x1e8   :  { %v1884_v49 = vpop.f32.mrf.mxu0  ;;  %v2021_v27 = vpop.f32.mrf.mxu1 }
 0x1e9   :  { %v12158_v26 = vadd.f32 %v1884_v49, %v11565_v8  ;;  %v12161_v43 = vadd.f32 %v2021_v27, %v11830_v53  ;;  %v9677_v8 = vld [vmem:[%s16325_s2 + $0x220] sm:$0xf]  ;;  %v9678_v53 = vld [vmem:[%s16325_s2 + $0x230] sm:$0xf] }
 0x1ea   :  { %v2208_v30 = vpop.f32.mrf.mxu0  ;;  %v2345_v11 = vpop.f32.mrf.mxu1  ;;  %7856 = vmatmul.mubr.msk.f32.vlgmr.msra.gmra.mxu0 %vm106_vm1, %v11838_v31  ;;  %7870 = vmatmul.mubr.msk.f32.vlgmr.msra.gmra.mxu1 %vm106_vm1, %v11875_v1 }
 0x1eb   :  { %v12168_v3 = vadd.f32 %v2208_v30, %v11575_v58  ;;  %v12171_v35 = vadd.f32 %v2345_v11, %v11845_v18  ;;  %7883 = vmatpush1.msk.msra.mxu0 %vm143_vm0, %v9677_v8  ;;  %7897 = vmatpush1.msk.msra.mxu1 %vm143_vm0, %v9678_v53  ;;  %v9680_v11 = vld [vmem:[%s16325_s2 + $0x208] sm:$0xff] }
 0x1ec   :  { %v2210_v31 = vpop.f32.mrf.mxu0  ;;  %v2347_v44 = vpop.f32.mrf.mxu1  ;;  %3380 = vmatprep.mubr.f32.mxu0 %v16427_v15  ;;  %3517 = vmatprep.mubr.f32.mxu1 %v16427_v15 }
 0x1ed   :  { %16571 = vst [vmem:[#allocation38_spill] sm:$0xff] %v12168_v3  ;;  %16572 = vst [vmem:[#allocation40_spill] sm:$0xff] %v12171_v35  ;;  %v12184_v58 = vadd.f32 %v2210_v31, %v11591_v29  ;;  %v12187_v18 = vadd.f32 %v2347_v44, %v11861_v17  ;;  %3610 = vmatprep.subr.mxu0 %v9679_v23  ;;  %3747 = vmatprep.subr.mxu1 %v9680_v11  ;;  %v9681_v31 = vld [vmem:[%s16325_s2 + $0x1f0] sm:$0xff]  ;;  %v9682_v44 = vld [vmem:[%s16325_s2 + $0x200] sm:$0xff] }
 0x1ee   :  { %v2214_v49 = vpop.f32.mrf.mxu0  ;;  %v2351_v27 = vpop.f32.mrf.mxu1  ;;  %7857 = vmatmul.mubr.msk.f32.gmra.mxu0 %vm106_vm1, %v11875_v1  ;;  %7871 = vmatmul.mubr.msk.f32.gmra.mxu1 %vm106_vm1, %v11910_v9  ;;  %v9683_v23 = vld [vmem:[%s16325_s2 + $0x1c8] sm:$0xff]  ;;  %v9684_v11 = vld [vmem:[%s16325_s2 + $0x1d8] sm:$0xff] }
 0x1ef   :  { %16573 = vst [vmem:[#allocation41_spill] sm:$0xff] %v12184_v58  ;;  %16574 = vst [vmem:[#allocation43_spill] sm:$0xff] %v12187_v18  ;;  %v12202_v17 = vadd.f32 %v2214_v49, %v11607_v50  ;;  %v12205_v30 = vadd.f32 %v2351_v27, %v11882_v28  ;;  %3386 = vmatprep.mubr.f32.mxu0 %v16427_v15  ;;  %3523 = vmatprep.mubr.f32.mxu1 %v16427_v15  ;;  %v12944_v58 = vld [vmem:[%s16327_s0 + $0x48] sm:$0xff] }
 0x1f0   :  { %v2216_v8 = vpop.f32.mrf.mxu0  ;;  %v2353_v53 = vpop.f32.mrf.mxu1  ;;  %3611 = vmatpush1.msra.mxu0 %v9681_v31  ;;  %3748 = vmatpush1.msra.mxu1 %v9682_v44  ;;  %v9685_v44 = vld [vmem:[%s16325_s2 + $0x1c0] sm:$0xff] }
 0x1f1   :  { %16575 = vst [vmem:[#allocation44_spill] sm:$0xff] %v12202_v17  ;;  %16576 = vst [vmem:[#allocation46_spill] sm:$0xff] %v12205_v30  ;;  %v12216_v50 = vadd.f32 %v2216_v8, %v11621_v22  ;;  %v12219_v28 = vadd.f32 %v2353_v53, %v11896_v45  ;;  %3612 = vmatprep.subr.mxu0 %v9683_v23  ;;  %3749 = vmatprep.subr.mxu1 %v9684_v11  ;;  %v9686_v23 = vld [vmem:[%s16325_s2 + $0x1d0] sm:$0xff] }
 0x1f2   :  { %v2220_v49 = vpop.f32.mrf.mxu0  ;;  %v2357_v27 = vpop.f32.mrf.mxu1  ;;  %7858 = vmatmul.mubr.msk.f32.gmra.mxu0 %vm106_vm1, %v11910_v9  ;;  %7872 = vmatmul.mubr.msk.f32.gmra.mxu1 %vm106_vm1, %v11945_v6 }
 0x1f3   :  { %16577 = vst [vmem:[#allocation47_spill] sm:$0xff] %v12216_v50  ;;  %16578 = vst [vmem:[#allocation48_spill] sm:$0xff] %v12219_v28  ;;  %v12234_v45 = vadd.f32 %v2220_v49, %v11637_v55  ;;  %v12237_v8 = vadd.f32 %v2357_v27, %v11917_v4  ;;  %3392 = vmatprep.mubr.f32.mxu0 %v16427_v15  ;;  %3529 = vmatprep.mubr.f32.mxu1 %v16427_v15  ;;  %v16581_v55 = vld [vmem:[#allocation17_spill] sm:$0xff]  ;;  %v9688_v27 = vld [vmem:[%s16325_s2 + $0x1a8] sm:$0xff] }
 0x1f4   :  { %v2222_v53 = vpop.f32.mrf.mxu0  ;;  %v2359_v31 = vpop.f32.mrf.mxu1  ;;  %3613 = vmatpush1.msra.mxu0 %v9685_v44  ;;  %3750 = vmatpush1.msra.mxu1 %v9686_v23  ;;  %v9687_v49 = vld [vmem:[%s16325_s2 + $0x198] sm:$0xff] }
 0x1f5   :  { %16579 = vst [vmem:[#allocation49_spill] sm:$0xff] %v12234_v45  ;;  %16580 = vst [vmem:[#allocation50_spill] sm:$0xff] %v12237_v8  ;;  %v12248_v11 = vadd.f32 %v2222_v53, %v16581_v55  ;;  %v12251_v4 = vadd.f32 %v2359_v31, %v11931_v16  ;;  %3614 = vmatprep.subr.mxu0 %v9687_v49  ;;  %3751 = vmatprep.subr.mxu1 %v9688_v27  ;;  %v16584_v53 = vld [vmem:[#allocation6_spill] sm:$0xff]  ;;  %v9689_v27 = vld [vmem:[%s16325_s2 + $0x190] sm:$0xff] }
 0x1f6   :  { %v2226_v44 = vpop.f32.mrf.mxu0  ;;  %v2363_v22 = vpop.f32.mrf.mxu1  ;;  %7859 = vmatmul.mubr.msk.f32.gmra.mxu0 %vm106_vm1, %v11945_v6  ;;  %7873 = vmatmul.mubr.msk.f32.gmra.mxu1 %vm106_vm1, %v11982_v21  ;;  %v9690_v16 = vld [vmem:[%s16325_s2 + $0x1a0] sm:$0xff] }
 0x1f7   :  { %16582 = vst [vmem:[#allocation51_spill] sm:$0xff] %v12248_v11  ;;  %16583 = vst [vmem:[#allocation53_spill] sm:$0xff] %v12251_v4  ;;  %v12266_v31 = vadd.f32 %v2226_v44, %v16584_v53  ;;  %v12269_v23 = vadd.f32 %v2363_v22, %v11952_v20  ;;  %3398 = vmatprep.mubr.f32.mxu0 %v16427_v15  ;;  %3535 = vmatprep.mubr.f32.mxu1 %v16427_v15  ;;  %v16587_v44 = vld [vmem:[#allocation18_spill] sm:$0xff]  ;;  %v9691_v22 = vld [vmem:[%s16325_s2 + $0x2d8] sm:$0xf] }
 0x1f8   :  { %v2228_v55 = vpop.f32.mrf.mxu0  ;;  %v2365_v49 = vpop.f32.mrf.mxu1  ;;  %3615 = vmatpush1.msra.mxu0 %v9689_v27  ;;  %3752 = vmatpush1.msra.mxu1 %v9690_v16  ;;  %v9692_v27 = vld [vmem:[%s16325_s2 + $0x2e8] sm:$0xf] }
 0x1f9   :  { %16585 = vst [vmem:[#allocation54_spill] sm:$0xff] %v12266_v31  ;;  %16586 = vst [vmem:[#allocation2_spill] sm:$0xff] %v12269_v23  ;;  %v12280_v53 = vadd.f32 %v2228_v55, %v16587_v44  ;;  %v12283_v20 = vadd.f32 %v2365_v49, %v11966_v19  ;;  %7910 = vmatprep.subr.msk.mxu0 %vm143_vm0, %v9691_v22  ;;  %7924 = vmatprep.subr.msk.mxu1 %vm143_vm0, %v9692_v27  ;;  %v16592_v27 = vld [vmem:[#allocation45_spill] sm:$0xff]  ;;  %v16648_v31 = vld [vmem:[#allocation26_spill] sm:$0xff] }
 0x1fa   :  { %v2232_v29 = vpop.f32.mrf.mxu0  ;;  %v2369_v16 = vpop.f32.mrf.mxu1  ;;  %7860 = vmatmul.mubr.msk.f32.gmra.mxu0 %vm106_vm1, %v11982_v21  ;;  %7874 = vmatmul.mubr.msk.f32.gmra.mxu1 %vm106_vm1, %v12005_v33  ;;  %v9728_v23 = vld [vmem:[%s16325_s2 + $0x3a8] sm:$0xf] }
 0x1fb   :  { %16588 = vst [vmem:[#allocation14_spill] sm:$0xff] %v12280_v53  ;;  %16589 = vst [vmem:[#allocation39_spill] sm:$0xff] %v12283_v20  ;;  %v12300_v55 = vadd.f32 %v2232_v29, %v11699_v10  ;;  %v12303_v49 = vadd.f32 %v2369_v16, %v11989_v59  ;;  %3404 = vmatprep.mubr.f32.mxu0 %v16427_v15  ;;  %3541 = vmatprep.mubr.f32.mxu1 %v16427_v15 }
 0x1fc   :  { %v2234_v44 = vpop.f32.mrf.mxu0  ;;  %v2371_v22 = vpop.f32.mrf.mxu1 }
 0x1fd   :  { %16590 = vst [vmem:[#allocation3_spill] sm:$0xff] %v12300_v55  ;;  %16591 = vst [vmem:[#allocation15_spill] sm:$0xff] %v12303_v49  ;;  %v12308_v4 = vadd.f32 %v2234_v44, %v16592_v27  ;;  %v12311_v45 = vadd.f32 %v2371_v22, %v11997_v14  ;;  %v16597_v44 = vld [vmem:[#allocation7_spill] sm:$0xff]  ;;  %v9727_v49 = vld [vmem:[%s16325_s2 + $0x300] sm:$0xff] }
 0x1fe   :  { %v2238_v28 = vpop.f32.mrf.mxu0  ;;  %v2375_v19 = vpop.f32.mrf.mxu1  ;;  %7861 = vmatmul.mubr.msk.f32.gmra.mxu0 %vm106_vm1, %v12005_v33  ;;  %7875 = vmatmul.mubr.msk.f32.gmra.mxu1 %vm106_vm1, %v12028_v48 }
 0x1ff   :  { %16593 = vst [vmem:[#allocation4_spill] sm:$0xff] %v12308_v4  ;;  %16594 = vst [vmem:[#allocation16_spill] sm:$0xff] %v12311_v45  ;;  %v12320_v59 = vadd.f32 %v2238_v28, %v11717_v52  ;;  %v12323_v29 = vadd.f32 %v2375_v19, %v12012_v46  ;;  %3410 = vmatprep.mubr.f32.mxu0 %v16427_v15  ;;  %3547 = vmatprep.mubr.f32.mxu1 %v16427_v15 }
 0x200   :  { %v2240_v14 = vpop.f32.mrf.mxu0  ;;  %v2377_v16 = vpop.f32.mrf.mxu1 }
 0x201   :  { %16595 = vst [vmem:[#allocation42_spill] sm:$0xff] %v12320_v59  ;;  %16596 = vst [vmem:[#allocation5_spill] sm:$0xff] %v12323_v29  ;;  %v12328_v22 = vadd.f32 %v2240_v14, %v16597_v44  ;;  %v12331_v27 = vadd.f32 %v2377_v16, %v12020_v60  ;;  %v16602_v14 = vld [vmem:[#allocation19_spill] sm:$0xff] }
 0x202   :  { %v2244_v20 = vpop.f32.mrf.mxu0  ;;  %v2381_v10 = vpop.f32.mrf.mxu1  ;;  %7862 = vmatmul.mubr.msk.f32.gmra.mxu0 %vm106_vm1, %v12028_v48  ;;  %7876 = vmatmul.mubr.msk.f32.gmra.mxu1 %vm106_vm1, %v12051_v34 }
 0x203   :  { %16598 = vst [vmem:[#allocation17_spill] sm:$0xff] %v12328_v22  ;;  %16599 = vst [vmem:[#allocation6_spill] sm:$0xff] %v12331_v27  ;;  %v12340_v46 = vadd.f32 %v2244_v20, %v11735_v42  ;;  %v12343_v28 = vadd.f32 %v2381_v10, %v12035_v54  ;;  %3416 = vmatprep.mubr.f32.mxu0 %v16427_v15  ;;  %3553 = vmatprep.mubr.f32.mxu1 %v16427_v15 }
 0x204   :  { %v2246_v60 = vpop.f32.mrf.mxu0  ;;  %v2383_v19 = vpop.f32.mrf.mxu1 }
 0x205   :  { %16600 = vst [vmem:[#allocation18_spill] sm:$0xff] %v12340_v46  ;;  %16601 = vst [vmem:[#allocation45_spill] sm:$0xff] %v12343_v28  ;;  %v12348_v16 = vadd.f32 %v2246_v60, %v16602_v14  ;;  %v12351_v44 = vadd.f32 %v2383_v19, %v12043_v39  ;;  %v16607_v60 = vld [vmem:[#allocation8_spill] sm:$0xff]  ;;  %v9708_v46 = vld [vmem:[%s16325_s2 + $0x2f8] sm:$0xf] }
 0x206   :  { %v2250_v45 = vpop.f32.mrf.mxu0  ;;  %v2387_v52 = vpop.f32.mrf.mxu1  ;;  %7863 = vmatmul.mubr.msk.f32.gmra.mxu0 %vm106_vm1, %v12051_v34  ;;  %7877 = vmatmul.mubr.msk.f32.gmra.mxu1 %vm106_vm1, %v12074_v2 }
 0x207   :  { %16603 = vst [vmem:[#allocation7_spill] sm:$0xff] %v12348_v16  ;;  %16604 = vst [vmem:[#allocation19_spill] sm:$0xff] %v12351_v44  ;;  %v12360_v54 = vadd.f32 %v2250_v45, %v11753_v13  ;;  %v12363_v20 = vadd.f32 %v2387_v52, %v12058_v7  ;;  %3422 = vmatprep.mubr.f32.mxu0 %v16427_v15  ;;  %3559 = vmatprep.mubr.f32.mxu1 %v16427_v15 }
 0x208   :  { %v2252_v39 = vpop.f32.mrf.mxu0  ;;  %v2389_v10 = vpop.f32.mrf.mxu1 }
 0x209   :  { %16605 = vst [vmem:[#allocation55_spill] sm:$0xff] %v12360_v54  ;;  %16606 = vst [vmem:[#allocation56_spill] sm:$0xff] %v12363_v20  ;;  %v12368_v19 = vadd.f32 %v2252_v39, %v16607_v60  ;;  %v12371_v14 = vadd.f32 %v2389_v10, %v12066_v32  ;;  %v16612_v39 = vld [vmem:[#allocation20_spill] sm:$0xff]  ;;  %v9724_v20 = vld [vmem:[%s16325_s2 + $0x308] sm:$0xff] }
 0x20a   :  { %v2256_v27 = vpop.f32.mrf.mxu0  ;;  %v2393_v42 = vpop.f32.mrf.mxu1  ;;  %7864 = vmatmul.mubr.msk.f32.gmra.mxu0 %vm106_vm1, %v12074_v2  ;;  %7878 = vmatmul.mubr.msk.f32.gmra.mxu1 %vm106_vm1, %v12097_v0 }
 0x20b   :  { %16608 = vst [vmem:[#allocation8_spill] sm:$0xff] %v12368_v19  ;;  %16609 = vst [vmem:[#allocation57_spill] sm:$0xff] %v12371_v14  ;;  %v12380_v7 = vadd.f32 %v2256_v27, %v11771_v37  ;;  %v12383_v45 = vadd.f32 %v2393_v42, %v12081_v63  ;;  %3428 = vmatprep.mubr.f32.mxu0 %v16427_v15  ;;  %3565 = vmatprep.mubr.f32.mxu1 %v16427_v15 }
 0x20c   :  { %v2258_v32 = vpop.f32.mrf.mxu0  ;;  %v2395_v52 = vpop.f32.mrf.mxu1 }
 0x20d   :  { %16610 = vst [vmem:[#allocation58_spill] sm:$0xff] %v12380_v7  ;;  %16611 = vst [vmem:[#allocation59_spill] sm:$0xff] %v12383_v45  ;;  %v12388_v10 = vadd.f32 %v2258_v32, %v16612_v39  ;;  %v12391_v60 = vadd.f32 %v2395_v52, %v12089_v5  ;;  %v16617_v32 = vld [vmem:[#allocation9_spill] sm:$0xff]  ;;  %v9723_v45 = vld [vmem:[%s16325_s2 + $0x268] sm:$0xff] }
 0x20e   :  { %v2262_v44 = vpop.f32.mrf.mxu0  ;;  %v2399_v13 = vpop.f32.mrf.mxu1  ;;  %7865 = vmatmul.mubr.msk.f32.gmra.mxu0 %vm106_vm1, %v12097_v0  ;;  %7879 = vmatmul.mubr.msk.f32.gmra.mxu1 %vm106_vm1, %v12120_v36 }
 0x20f   :  { %16613 = vst [vmem:[#allocation20_spill] sm:$0xff] %v12388_v10  ;;  %16614 = vst [vmem:[#allocation60_spill] sm:$0xff] %v12391_v60  ;;  %v12400_v63 = vadd.f32 %v2262_v44, %v11789_v40  ;;  %v12403_v27 = vadd.f32 %v2399_v13, %v12104_v38  ;;  %3434 = vmatprep.mubr.f32.mxu0 %v16427_v15  ;;  %3571 = vmatprep.mubr.f32.mxu1 %v16427_v15 }
 0x210   :  { %v2264_v5 = vpop.f32.mrf.mxu0  ;;  %v2401_v42 = vpop.f32.mrf.mxu1 }
 0x211   :  { %16615 = vst [vmem:[#allocation61_spill] sm:$0xff] %v12400_v63  ;;  %16616 = vst [vmem:[#allocation62_spill] sm:$0xff] %v12403_v27  ;;  %v12408_v52 = vadd.f32 %v2264_v5, %v16617_v32  ;;  %v12411_v39 = vadd.f32 %v2401_v42, %v12112_v61  ;;  %v16622_v5 = vld [vmem:[#allocation21_spill] sm:$0xff]  ;;  %v9704_v63 = vld [vmem:[%s16325_s2 + $0x248] sm:$0xff] }
 0x212   :  { %v2268_v14 = vpop.f32.mrf.mxu0  ;;  %v2405_v37 = vpop.f32.mrf.mxu1  ;;  %7866 = vmatmul.mubr.msk.f32.gmra.mxu0 %vm106_vm1, %v12120_v36  ;;  %7880 = vmatmul.mubr.msk.f32.gmra.mxu1 %vm106_vm1, %v12143_v47 }
 0x213   :  { %16618 = vst [vmem:[#allocation9_spill] sm:$0xff] %v12408_v52  ;;  %16619 = vst [vmem:[#allocation63_spill] sm:$0xff] %v12411_v39  ;;  %v12420_v38 = vadd.f32 %v2268_v14, %v11807_v41  ;;  %v12423_v44 = vadd.f32 %v2405_v37, %v12127_v24  ;;  %3440 = vmatprep.mubr.f32.mxu0 %v16427_v15  ;;  %3577 = vmatprep.mubr.f32.mxu1 %v16427_v15  ;;  %v12438_v41 = vld [vmem:[%s16326_s1 + $0x60] sm:$0xff] }
 0x214   :  { %v2270_v61 = vpop.f32.mrf.mxu0  ;;  %v2407_v13 = vpop.f32.mrf.mxu1 }
 0x215   :  { %16620 = vst [vmem:[#allocation64_spill] sm:$0xff] %v12420_v38  ;;  %16621 = vst [vmem:[#allocation65_spill] sm:$0xff] %v12423_v44  ;;  %v12428_v42 = vadd.f32 %v2270_v61, %v16622_v5  ;;  %v12431_v32 = vadd.f32 %v2407_v13, %v12135_v12  ;;  %v9719_v44 = vld [vmem:[%s16325_s2 + $0x338] sm:$0xff] }
 0x216   :  { %v2274_v60 = vpop.f32.mrf.mxu0  ;;  %v2411_v40 = vpop.f32.mrf.mxu1  ;;  %7867 = vmatmul.mubr.msk.f32.gmra.mxu0 %vm106_vm1, %v12143_v47  ;;  %7881 = vmatmul.mubr.msk.f32.gmra.mxu1 %vm106_vm1, %v12438_v41 }
 0x217   :  { %16623 = vst [vmem:[#allocation21_spill] sm:$0xff] %v12428_v42  ;;  %16624 = vst [vmem:[#allocation66_spill] sm:$0xff] %v12431_v32  ;;  %v12445_v14 = vadd.f32 %v2274_v60, %v11825_v25  ;;  %v12448_v12 = vadd.f32 %v2411_v40, %v12150_v57  ;;  %3648 = vmatprep.mubr.f32.mxu0 %v16427_v15  ;;  %3785 = vmatprep.mubr.f32.mxu1 %v16427_v15  ;;  %v16629_v57 = vld [vmem:[#allocation10_spill] sm:$0xff] }
 0x218   :  { %v2276_v37 = vpop.f32.mrf.mxu0  ;;  %v2413_v61 = vpop.f32.mrf.mxu1 }
 0x219   :  { %16625 = vst [vmem:[#allocation67_spill] sm:$0xff] %v12445_v14  ;;  %16626 = vst [vmem:[#allocation68_spill] sm:$0xff] %v12448_v12  ;;  %v12453_v13 = vadd.f32 %v2276_v37, %v11833_v56  ;;  %v12456_v5 = vadd.f32 %v2413_v61, %v12158_v26  ;;  %v9694_v56 = vld [vmem:[%s16325_s2 + $0x2d0] sm:$0xf]  ;;  %v9695_v26 = vld [vmem:[%s16325_s2 + $0x2e0] sm:$0xf] }
 0x21a   :  { %v2482_v39 = vpop.f32.mrf.mxu0  ;;  %v12458_v24 = vpop.f32.mrf.mxu1  ;;  %7884 = vmatmul.mubr.msk.f32.vlgmr.msra.gmra.mxu0 %vm106_vm1, %v11875_v1  ;;  %7898 = vmatmul.mubr.msk.f32.vlgmr.msra.gmra.mxu1 %vm106_vm1, %v11875_v1  ;;  %v16631_v37 = vld [vmem:[#allocation22_spill] sm:$0xff]  ;;  %v9700_v14 = vld [vmem:[%s16325_s2 + $0x278] sm:$0xff] }
 0x21b   :  { %16627 = vst [vmem:[#allocation69_spill] sm:$0xff] %v12453_v13  ;;  %16628 = vst [vmem:[#allocation70_spill] sm:$0xff] %v12456_v5  ;;  %v12467_v60 = vadd.f32 %v2482_v39, %v16629_v57  ;;  %7911 = vmatpush1.msk.msra.mxu0 %vm143_vm0, %v9694_v56  ;;  %7925 = vmatpush1.msk.msra.mxu1 %vm143_vm0, %v9695_v26  ;;  %v9696_v57 = vld [vmem:[%s16325_s2 + $0x2a8] sm:$0xff]  ;;  %v9697_v56 = vld [vmem:[%s16325_s2 + $0x2b8] sm:$0xff] }
 0x21c   :  { %v2484_v40 = vpop.f32.mrf.mxu0  ;;  %v12477_v1 = vpop.f32.mrf.mxu1  ;;  %3654 = vmatprep.mubr.f32.mxu0 %v16427_v15  ;;  %3791 = vmatprep.mubr.f32.mxu1 %v16427_v15  ;;  %v9698_v5 = vld [vmem:[%s16325_s2 + $0x2a0] sm:$0xff]  ;;  %v12792_v12 = vld [vmem:[%s16327_s0 + $0x18] sm:$0xff] }
 0x21d   :  { %16630 = vst [vmem:[#allocation10_spill] sm:$0xff] %v12467_v60  ;;  %v12484_v61 = vadd.f32 %v2484_v40, %v16631_v37  ;;  %3956 = vmatprep.subr.mxu0 %v9696_v57  ;;  %4093 = vmatprep.subr.mxu1 %v9697_v56  ;;  %v16633_v37 = vld [vmem:[#allocation11_spill] sm:$0xff]  ;;  %v9717_v13 = vld [vmem:[%s16325_s2 + $0x360] sm:$0xff] }
 0x21e   :  { %v2488_v26 = vpop.f32.mrf.mxu0  ;;  %v12492_v25 = vpop.f32.mrf.mxu1  ;;  %7885 = vmatmul.mubr.msk.f32.gmra.mxu0 %vm106_vm1, %v11910_v9  ;;  %7899 = vmatmul.mubr.msk.f32.gmra.mxu1 %vm106_vm1, %v11910_v9  ;;  %v9699_v9 = vld [vmem:[%s16325_s2 + $0x2b0] sm:$0xff] }
 0x21f   :  { %16632 = vst [vmem:[#allocation22_spill] sm:$0xff] %v12484_v61  ;;  %v12501_v39 = vadd.f32 %v2488_v26, %v16633_v37  ;;  %3660 = vmatprep.mubr.f32.mxu0 %v16427_v15  ;;  %3797 = vmatprep.mubr.f32.mxu1 %v16427_v15  ;;  %v16635_v37 = vld [vmem:[#allocation23_spill] sm:$0xff]  ;;  %v9702_v26 = vld [vmem:[%s16325_s2 + $0x270] sm:$0xff]  ;;  %v12925_v61 = vld [vmem:[%s16327_s0 + $0x40] sm:$0xff] }
 0x220   :  { %v2490_v57 = vpop.f32.mrf.mxu0  ;;  %v12505_v56 = vpop.f32.mrf.mxu1  ;;  %3957 = vmatpush1.msra.mxu0 %v9698_v5  ;;  %4094 = vmatpush1.msra.mxu1 %v9699_v9  ;;  %v9701_v5 = vld [vmem:[%s16325_s2 + $0x288] sm:$0xff]  ;;  %v16637_v9 = vld [vmem:[#allocation12_spill] sm:$0xff] }
 0x221   :  { %16634 = vst [vmem:[#allocation11_spill] sm:$0xff] %v12501_v39  ;;  %v12516_v40 = vadd.f32 %v2490_v57, %v16635_v37  ;;  %3958 = vmatprep.subr.mxu0 %v9700_v14  ;;  %4095 = vmatprep.subr.mxu1 %v9701_v5 }
 0x222   :  { %v2494_v32 = vpop.f32.mrf.mxu0  ;;  %v12524_v38 = vpop.f32.mrf.mxu1  ;;  %7886 = vmatmul.mubr.msk.f32.gmra.mxu0 %vm106_vm1, %v11945_v6  ;;  %7900 = vmatmul.mubr.msk.f32.gmra.mxu1 %vm106_vm1, %v11945_v6  ;;  %v9703_v6 = vld [vmem:[%s16325_s2 + $0x280] sm:$0xff] }
 0x223   :  { %16636 = vst [vmem:[#allocation23_spill] sm:$0xff] %v12516_v40  ;;  %v12533_v37 = vadd.f32 %v2494_v32, %v16637_v9  ;;  %3666 = vmatprep.mubr.f32.mxu0 %v16427_v15  ;;  %3803 = vmatprep.mubr.f32.mxu1 %v16427_v15  ;;  %v16639_v9 = vld [vmem:[#allocation52_spill] sm:$0xff]  ;;  %v9706_v32 = vld [vmem:[%s16325_s2 + $0x240] sm:$0xff]  ;;  %v12906_v40 = vld [vmem:[%s16327_s0 + $0x38] sm:$0xff] }
 0x224   :  { %v2496_v14 = vpop.f32.mrf.mxu0  ;;  %v12537_v5 = vpop.f32.mrf.mxu1  ;;  %3959 = vmatpush1.msra.mxu0 %v9702_v26  ;;  %4096 = vmatpush1.msra.mxu1 %v9703_v6  ;;  %v9705_v26 = vld [vmem:[%s16325_s2 + $0x258] sm:$0xff]  ;;  %v16641_v6 = vld [vmem:[#allocation24_spill] sm:$0xff] }
 0x225   :  { %16638 = vst [vmem:[#allocation12_spill] sm:$0xff] %v12533_v37  ;;  %v12548_v57 = vadd.f32 %v2496_v14, %v16639_v9  ;;  %3960 = vmatprep.subr.mxu0 %v9704_v63  ;;  %4097 = vmatprep.subr.mxu1 %v9705_v26 }
 0x226   :  { %v2500_v7 = vpop.f32.mrf.mxu0  ;;  %v12556_v54 = vpop.f32.mrf.mxu1  ;;  %7887 = vmatmul.mubr.msk.f32.gmra.mxu0 %vm106_vm1, %v11982_v21  ;;  %7901 = vmatmul.mubr.msk.f32.gmra.mxu1 %vm106_vm1, %v11982_v21  ;;  %v9707_v21 = vld [vmem:[%s16325_s2 + $0x250] sm:$0xff] }
 0x227   :  { %16640 = vst [vmem:[#allocation52_spill] sm:$0xff] %v12548_v57  ;;  %v12565_v9 = vadd.f32 %v2500_v7, %v16641_v6  ;;  %3672 = vmatprep.mubr.f32.mxu0 %v16427_v15  ;;  %3809 = vmatprep.mubr.f32.mxu1 %v16427_v15  ;;  %v16643_v6 = vld [vmem:[#allocation13_spill] sm:$0xff] }
 0x228   :  { %v2502_v63 = vpop.f32.mrf.mxu0  ;;  %v12569_v26 = vpop.f32.mrf.mxu1  ;;  %3961 = vmatpush1.msra.mxu0 %v9706_v32  ;;  %4098 = vmatpush1.msra.mxu1 %v9707_v21  ;;  %v9709_v32 = vld [vmem:[%s16325_s2 + $0x398] sm:$0xf] }
 0x229   :  { %16642 = vst [vmem:[#allocation24_spill] sm:$0xff] %v12565_v9  ;;  %v12580_v14 = vadd.f32 %v2502_v63, %v16643_v6  ;;  %7938 = vmatprep.subr.msk.mxu0 %vm143_vm0, %v9708_v46  ;;  %7952 = vmatprep.subr.msk.mxu1 %vm143_vm0, %v9709_v32  ;;  %v16645_v6 = vld [vmem:[#allocation25_spill] sm:$0xff] }
 0x22a   :  { %v2506_v59 = vpop.f32.mrf.mxu0  ;;  %v12590_v21 = vpop.f32.mrf.mxu1  ;;  %7888 = vmatmul.mubr.msk.f32.gmra.mxu0 %vm106_vm1, %v12005_v33  ;;  %7902 = vmatmul.mubr.msk.f32.gmra.mxu1 %vm106_vm1, %v12005_v33  ;;  %v9729_v57 = vld [vmem:[%s16325_s2 + $0x3b8] sm:$0xf] }
 0x22b   :  { %16644 = vst [vmem:[#allocation13_spill] sm:$0xff] %v12580_v14  ;;  %v12599_v46 = vadd.f32 %v2506_v59, %v16645_v6  ;;  %3678 = vmatprep.mubr.f32.mxu0 %v16427_v15  ;;  %3815 = vmatprep.mubr.f32.mxu1 %v16427_v15  ;;  %v16650_v6 = vld [vmem:[#allocation27_spill] sm:$0xff] }
 0x22c   :  { %v2508_v32 = vpop.f32.mrf.mxu0  ;;  %v12603_v7 = vpop.f32.mrf.mxu1 }
 0x22d   :  { %16646 = vst [vmem:[#allocation25_spill] sm:$0xff] %v12599_v46  ;;  %16647 = vst [vmem:[#allocation71_spill] sm:$0xff] %v12603_v7  ;;  %v12608_v9 = vadd.f32 %v2508_v32, %v16648_v31  ;;  %v16653_v46 = vld [vmem:[#allocation28_spill] sm:$0xff] }
 0x22e   :  { %v2512_v33 = vpop.f32.mrf.mxu0  ;;  %v12610_v53 = vpop.f32.mrf.mxu1  ;;  %7889 = vmatmul.mubr.msk.f32.gmra.mxu0 %vm106_vm1, %v12028_v48  ;;  %7903 = vmatmul.mubr.msk.f32.gmra.mxu1 %vm106_vm1, %v12028_v48 }
 0x22f   :  { %16649 = vst [vmem:[#allocation26_spill] sm:$0xff] %v12608_v9  ;;  %v12619_v63 = vadd.f32 %v2512_v33, %v16650_v6  ;;  %3684 = vmatprep.mubr.f32.mxu0 %v16427_v15  ;;  %3821 = vmatprep.mubr.f32.mxu1 %v16427_v15  ;;  %v16655_v6 = vld [vmem:[#allocation29_spill] sm:$0xff] }
 0x230   :  { %v2514_v31 = vpop.f32.mrf.mxu0  ;;  %v12623_v32 = vpop.f32.mrf.mxu1 }
 0x231   :  { %16651 = vst [vmem:[#allocation27_spill] sm:$0xff] %v12619_v63  ;;  %16652 = vst [vmem:[#allocation72_spill] sm:$0xff] %v12623_v32  ;;  %v12628_v4 = vadd.f32 %v2514_v31, %v16653_v46  ;;  %v16658_v63 = vld [vmem:[#allocation30_spill] sm:$0xff] }
 0x232   :  { %v2518_v48 = vpop.f32.mrf.mxu0  ;;  %v12630_v14 = vpop.f32.mrf.mxu1  ;;  %7890 = vmatmul.mubr.msk.f32.gmra.mxu0 %vm106_vm1, %v12051_v34  ;;  %7904 = vmatmul.mubr.msk.f32.gmra.mxu1 %vm106_vm1, %v12051_v34 }
 0x233   :  { %16654 = vst [vmem:[#allocation28_spill] sm:$0xff] %v12628_v4  ;;  %v12639_v59 = vadd.f32 %v2518_v48, %v16655_v6  ;;  %3690 = vmatprep.mubr.f32.mxu0 %v16427_v15  ;;  %3827 = vmatprep.mubr.f32.mxu1 %v16427_v15  ;;  %v16660_v6 = vld [vmem:[#allocation31_spill] sm:$0xff] }
 0x234   :  { %v2520_v46 = vpop.f32.mrf.mxu0  ;;  %v12643_v31 = vpop.f32.mrf.mxu1 }
 0x235   :  { %16656 = vst [vmem:[#allocation29_spill] sm:$0xff] %v12639_v59  ;;  %16657 = vst [vmem:[#allocation73_spill] sm:$0xff] %v12643_v31  ;;  %v12648_v22 = vadd.f32 %v2520_v46, %v16658_v63  ;;  %v16663_v59 = vld [vmem:[#allocation32_spill] sm:$0xff]  ;;  %v13001_v31 = vld [vmem:[%s16327_s0 + $0x60] sm:$0xff] }
 0x236   :  { %v2524_v34 = vpop.f32.mrf.mxu0  ;;  %v12650_v9 = vpop.f32.mrf.mxu1  ;;  %7891 = vmatmul.mubr.msk.f32.gmra.mxu0 %vm106_vm1, %v12074_v2  ;;  %7905 = vmatmul.mubr.msk.f32.gmra.mxu1 %vm106_vm1, %v12074_v2 }
 0x237   :  { %16659 = vst [vmem:[#allocation30_spill] sm:$0xff] %v12648_v22  ;;  %v12659_v33 = vadd.f32 %v2524_v34, %v16660_v6  ;;  %3696 = vmatprep.mubr.f32.mxu0 %v16427_v15  ;;  %3833 = vmatprep.mubr.f32.mxu1 %v16427_v15  ;;  %v16665_v6 = vld [vmem:[#allocation33_spill] sm:$0xff] }
 0x238   :  { %v2526_v63 = vpop.f32.mrf.mxu0  ;;  %v12663_v46 = vpop.f32.mrf.mxu1 }
 0x239   :  { %16661 = vst [vmem:[#allocation31_spill] sm:$0xff] %v12659_v33  ;;  %16662 = vst [vmem:[#allocation74_spill] sm:$0xff] %v12663_v46  ;;  %v12668_v16 = vadd.f32 %v2526_v63, %v16663_v59  ;;  %v16668_v33 = vld [vmem:[#allocation34_spill] sm:$0xff] }
 0x23a   :  { %v2530_v2 = vpop.f32.mrf.mxu0  ;;  %v12670_v4 = vpop.f32.mrf.mxu1  ;;  %7892 = vmatmul.mubr.msk.f32.gmra.mxu0 %vm106_vm1, %v12097_v0  ;;  %7906 = vmatmul.mubr.msk.f32.gmra.mxu1 %vm106_vm1, %v12097_v0 }
 0x23b   :  { %16664 = vst [vmem:[#allocation32_spill] sm:$0xff] %v12668_v16  ;;  %v12679_v48 = vadd.f32 %v2530_v2, %v16665_v6  ;;  %3702 = vmatprep.mubr.f32.mxu0 %v16427_v15  ;;  %3839 = vmatprep.mubr.f32.mxu1 %v16427_v15  ;;  %v16670_v6 = vld [vmem:[#allocation35_spill] sm:$0xff]  ;;  %v16677_v2 = vld [vmem:[#allocation37_spill] sm:$0xff] }
 0x23c   :  { %v2532_v59 = vpop.f32.mrf.mxu0  ;;  %v12683_v63 = vpop.f32.mrf.mxu1 }
 0x23d   :  { %16666 = vst [vmem:[#allocation33_spill] sm:$0xff] %v12679_v48  ;;  %16667 = vst [vmem:[#allocation75_spill] sm:$0xff] %v12683_v63  ;;  %v12688_v19 = vadd.f32 %v2532_v59, %v16668_v33  ;;  %v16673_v48 = vld [vmem:[#allocation36_spill] sm:$0xff] }
 0x23e   :  { %v2536_v0 = vpop.f32.mrf.mxu0  ;;  %v12690_v22 = vpop.f32.mrf.mxu1  ;;  %7893 = vmatmul.mubr.msk.f32.gmra.mxu0 %vm106_vm1, %v12120_v36  ;;  %7907 = vmatmul.mubr.msk.f32.gmra.mxu1 %vm106_vm1, %v12120_v36 }
 0x23f   :  { %16669 = vst [vmem:[#allocation34_spill] sm:$0xff] %v12688_v19  ;;  %v12699_v34 = vadd.f32 %v2536_v0, %v16670_v6  ;;  %3708 = vmatprep.mubr.f32.mxu0 %v16427_v15  ;;  %3845 = vmatprep.mubr.f32.mxu1 %v16427_v15  ;;  %v9722_v19 = vld [vmem:[%s16325_s2 + $0x330] sm:$0xff] }
 0x240   :  { %v2538_v33 = vpop.f32.mrf.mxu0  ;;  %v12703_v59 = vpop.f32.mrf.mxu1 }
 0x241   :  { %16671 = vst [vmem:[#allocation35_spill] sm:$0xff] %v12699_v34  ;;  %16672 = vst [vmem:[#allocation76_spill] sm:$0xff] %v12703_v59  ;;  %v12708_v10 = vadd.f32 %v2538_v33, %v16673_v48 }
 0x242   :  { %v2542_v36 = vpop.f32.mrf.mxu0  ;;  %v12710_v16 = vpop.f32.mrf.mxu1  ;;  %7894 = vmatmul.mubr.msk.f32.gmra.mxu0 %vm106_vm1, %v12143_v47  ;;  %7908 = vmatmul.mubr.msk.f32.gmra.mxu1 %vm106_vm1, %v12143_v47 }
 0x243   :  { %16674 = vst [vmem:[#allocation36_spill] sm:$0xff] %v12708_v10  ;;  %v12719_v6 = vadd.f32 %v2542_v36, %v12130_v62  ;;  %3714 = vmatprep.mubr.f32.mxu0 %v16427_v15  ;;  %3851 = vmatprep.mubr.f32.mxu1 %v16427_v15 }
 0x244   :  { %v2544_v48 = vpop.f32.mrf.mxu0  ;;  %v12723_v33 = vpop.f32.mrf.mxu1 }
 0x245   :  { %16675 = vst [vmem:[#allocation77_spill] sm:$0xff] %v12719_v6  ;;  %16676 = vst [vmem:[#allocation78_spill] sm:$0xff] %v12723_v33  ;;  %v12728_v34 = vadd.f32 %v2544_v48, %v16677_v2  ;;  %v12982_v33 = vld [vmem:[%s16327_s0 + $0x58] sm:$0xff] }
 0x246   :  { %v2548_v47 = vpop.f32.mrf.mxu0  ;;  %v12730_v52 = vpop.f32.mrf.mxu1  ;;  %7895 = vmatmul.mubr.msk.f32.gmra.mxu0 %vm106_vm1, %v12438_v41  ;;  %7909 = vmatmul.mubr.msk.f32.gmra.mxu1 %vm106_vm1, %v12438_v41 }
 0x247   :  { %16678 = vst [vmem:[#allocation37_spill] sm:$0xff] %v12728_v34  ;;  %v12739_v36 = vadd.f32 %v2548_v47, %v12153_v51  ;;  %3994 = vmatprep.mubr.f32.mxu0 %v16427_v15  ;;  %4131 = vmatprep.mubr.f32.mxu1 %v16427_v15  ;;  %v12757_v51 = vld [vmem:[%s16327_s0 + $0x10] sm:$0xff]  ;;  %v9713_v47 = vld [vmem:[%s16325_s2 + $0x2c8] sm:$0xff]  ;;  %v9718_v34 = vld [vmem:[%s16325_s2 + $0x298] sm:$0xff] }
 0x248   :  { %v2550_v2 = vpop.f32.mrf.mxu0  ;;  %v12743_v48 = vpop.f32.mrf.mxu1 }
 0x249   :  { %16679 = vst [vmem:[#allocation79_spill] sm:$0xff] %v12739_v36  ;;  %16680 = vst [vmem:[#allocation80_spill] sm:$0xff] %v12743_v48  ;;  %v12748_v0 = vadd.f32 %v2550_v2, %v12161_v43  ;;  %v9711_v43 = vld [vmem:[%s16325_s2 + $0x2f0] sm:$0xf]  ;;  %v9716_v36 = vld [vmem:[%s16325_s2 + $0x2c0] sm:$0xff] }
 0x24a   :  { %v12750_v6 = vpop.f32.mrf.mxu0  ;;  %v12752_v42 = vpop.f32.mrf.mxu1  ;;  %7912 = vmatmul.mubr.msk.f32.vlgmr.msra.gmra.mxu0 %vm106_vm1, %v12757_v51  ;;  %7926 = vmatmul.mubr.msk.f32.vlgmr.msra.gmra.mxu1 %vm106_vm1, %v12757_v51  ;;  %v9712_v2 = vld [vmem:[%s16325_s2 + $0x390] sm:$0xf] }
 0x24b   :  { %16681 = vst [vmem:[#allocation81_spill] sm:$0xff] %v12748_v0  ;;  %7939 = vmatpush1.msk.msra.mxu0 %vm143_vm0, %v9711_v43  ;;  %7953 = vmatpush1.msk.msra.mxu1 %vm143_vm0, %v9712_v2  ;;  %v9714_v43 = vld [vmem:[%s16325_s2 + $0x368] sm:$0xff] }
 0x24c   :  { %v12773_v55 = vpop.f32.mrf.mxu0  ;;  %v12775_v62 = vpop.f32.mrf.mxu1  ;;  %4000 = vmatprep.mubr.f32.mxu0 %v16427_v15  ;;  %4137 = vmatprep.mubr.f32.mxu1 %v16427_v15 }
 0x24d   :  { %16682 = vst [vmem:[#allocation82_spill] sm:$0xff] %v12775_v62  ;;  %4230 = vmatprep.subr.mxu0 %v9713_v47  ;;  %4442 = vmatprep.subr.mxu1 %v9714_v43 }
 0x24e   :  { %v12785_v0 = vpop.f32.mrf.mxu0  ;;  %v12787_v2 = vpop.f32.mrf.mxu1  ;;  %7913 = vmatmul.mubr.msk.f32.gmra.mxu0 %vm106_vm1, %v12792_v12  ;;  %7927 = vmatmul.mubr.msk.f32.gmra.mxu1 %vm106_vm1, %v12792_v12 }
 0x24f   :  { %16683 = vst [vmem:[#allocation83_spill] sm:$0xff] %v12787_v2  ;;  %4006 = vmatprep.mubr.f32.mxu0 %v16427_v15  ;;  %4143 = vmatprep.mubr.f32.mxu1 %v16427_v15 }
 0x250   :  { %v12800_v47 = vpop.f32.mrf.mxu0  ;;  %v12802_v43 = vpop.f32.mrf.mxu1  ;;  %4231 = vmatpush1.msra.mxu0 %v9716_v36  ;;  %4443 = vmatpush1.msra.mxu1 %v9717_v13  ;;  %v12823_v36 = vld [vmem:[%s16327_s0 + $0x20] sm:$0xff] }
 0x251   :  { %16684 = vst [vmem:[#allocation84_spill] sm:$0xff] %v12802_v43  ;;  %4232 = vmatprep.subr.mxu0 %v9718_v34  ;;  %4444 = vmatprep.subr.mxu1 %v9719_v44  ;;  %v9721_v34 = vld [vmem:[%s16325_s2 + $0x290] sm:$0xff] }
 0x252   :  { %v12816_v10 = vpop.f32.mrf.mxu0  ;;  %v12818_v27 = vpop.f32.mrf.mxu1  ;;  %7914 = vmatmul.mubr.msk.f32.gmra.mxu0 %vm106_vm1, %v12823_v36  ;;  %7928 = vmatmul.mubr.msk.f32.gmra.mxu1 %vm106_vm1, %v12823_v36 }
 0x253   :  { %16685 = vst [vmem:[#allocation85_spill] sm:$0xff] %v12818_v27  ;;  %4012 = vmatprep.mubr.f32.mxu0 %v16427_v15  ;;  %4149 = vmatprep.mubr.f32.mxu1 %v16427_v15 }
 0x254   :  { %v12831_v44 = vpop.f32.mrf.mxu0  ;;  %v12833_v13 = vpop.f32.mrf.mxu1  ;;  %4233 = vmatpush1.msra.mxu0 %v9721_v34  ;;  %4445 = vmatpush1.msra.mxu1 %v9722_v19  ;;  %v12854_v34 = vld [vmem:[%s16327_s0 + $0x28] sm:$0xff] }
 0x255   :  { %16686 = vst [vmem:[#allocation86_spill] sm:$0xff] %v12833_v13  ;;  %4234 = vmatprep.subr.mxu0 %v9723_v45  ;;  %4446 = vmatprep.subr.mxu1 %v9724_v20  ;;  %v9726_v45 = vld [vmem:[%s16325_s2 + $0x260] sm:$0xff] }
 0x256   :  { %v12847_v28 = vpop.f32.mrf.mxu0  ;;  %v12849_v29 = vpop.f32.mrf.mxu1  ;;  %7915 = vmatmul.mubr.msk.f32.gmra.mxu0 %vm106_vm1, %v12854_v34  ;;  %7929 = vmatmul.mubr.msk.f32.gmra.mxu1 %vm106_vm1, %v12854_v34 }
 0x257   :  { %16687 = vst [vmem:[#allocation87_spill] sm:$0xff] %v12849_v29  ;;  %4018 = vmatprep.mubr.f32.mxu0 %v16427_v15  ;;  %4155 = vmatprep.mubr.f32.mxu1 %v16427_v15 }
 0x258   :  { %v12862_v20 = vpop.f32.mrf.mxu0  ;;  %v12864_v19 = vpop.f32.mrf.mxu1  ;;  %4235 = vmatpush1.msra.mxu0 %v9726_v45  ;;  %4447 = vmatpush1.msra.mxu1 %v9727_v49  ;;  %v12887_v49 = vld [vmem:[%s16327_s0 + $0x30] sm:$0xff] }
 0x259   :  { %16688 = vst [vmem:[#allocation88_spill] sm:$0xff] %v12864_v19  ;;  %7966 = vmatprep.subr.msk.mxu0 %vm143_vm0, %v9728_v23  ;;  %7980 = vmatprep.subr.msk.mxu1 %vm143_vm0, %v9729_v57  ;;  %v12963_v19 = vld [vmem:[%s16327_s0 + $0x50] sm:$0xff] }
 0x25a   :  { %v12880_v8 = vpop.f32.mrf.mxu0  ;;  %v12882_v45 = vpop.f32.mrf.mxu1  ;;  %7916 = vmatmul.mubr.msk.f32.gmra.mxu0 %vm106_vm1, %v12887_v49  ;;  %7930 = vmatmul.mubr.msk.f32.gmra.mxu1 %vm106_vm1, %v12887_v49 }
 0x25b   :  { %16689 = vst [vmem:[#allocation89_spill] sm:$0xff] %v12882_v45  ;;  %4024 = vmatprep.mubr.f32.mxu0 %v16427_v15  ;;  %4161 = vmatprep.mubr.f32.mxu1 %v16427_v15 }
 0x25c   :  { %v12895_v23 = vpop.f32.mrf.mxu0  ;;  %v12897_v57 = vpop.f32.mrf.mxu1 }
 0x25d   :  { %16690 = vst [vmem:[#allocation90_spill] sm:$0xff] %v12897_v57 }
 0x25e   :  { %v12899_v37 = vpop.f32.mrf.mxu0  ;;  %v12901_v11 = vpop.f32.mrf.mxu1  ;;  %7917 = vmatmul.mubr.msk.f32.gmra.mxu0 %vm106_vm1, %v12906_v40  ;;  %7931 = vmatmul.mubr.msk.f32.gmra.mxu1 %vm106_vm1, %v12906_v40 }
 0x25f   :  { %16691 = vst [vmem:[#allocation91_spill] sm:$0xff] %v12901_v11  ;;  %4030 = vmatprep.mubr.f32.mxu0 %v16427_v15  ;;  %4167 = vmatprep.mubr.f32.mxu1 %v16427_v15 }
 0x260   :  { %v12914_v30 = vpop.f32.mrf.mxu0  ;;  %v12916_v17 = vpop.f32.mrf.mxu1 }
 0x261   :  { %16692 = vst [vmem:[#allocation92_spill] sm:$0xff] %v12916_v17 }
 0x262   :  { %v12918_v39 = vpop.f32.mrf.mxu0  ;;  %v12920_v50 = vpop.f32.mrf.mxu1  ;;  %7918 = vmatmul.mubr.msk.f32.gmra.mxu0 %vm106_vm1, %v12925_v61  ;;  %7932 = vmatmul.mubr.msk.f32.gmra.mxu1 %vm106_vm1, %v12925_v61 }
 0x263   :  { %16693 = vst [vmem:[#allocation93_spill] sm:$0xff] %v12920_v50  ;;  %4036 = vmatprep.mubr.f32.mxu0 %v16427_v15  ;;  %4173 = vmatprep.mubr.f32.mxu1 %v16427_v15  ;;  %v13039_v50 = vld [vmem:[%s16326_s1 + $0x10] sm:$0xff] }
 0x264   :  { %v12933_v35 = vpop.f32.mrf.mxu0  ;;  %v12935_v18 = vpop.f32.mrf.mxu1 }
 0x265   :  { %16694 = vst [vmem:[#allocation94_spill] sm:$0xff] %v12935_v18 }
 0x266   :  { %v12937_v3 = vpop.f32.mrf.mxu0  ;;  %v12939_v60 = vpop.f32.mrf.mxu1  ;;  %7919 = vmatmul.mubr.msk.f32.gmra.mxu0 %vm106_vm1, %v12944_v58  ;;  %7933 = vmatmul.mubr.msk.f32.gmra.mxu1 %vm106_vm1, %v12944_v58 }
 0x267   :  { %16695 = vst [vmem:[#allocation95_spill] sm:$0xff] %v12939_v60  ;;  %4042 = vmatprep.mubr.f32.mxu0 %v16427_v15  ;;  %4179 = vmatprep.mubr.f32.mxu1 %v16427_v15 }
 0x268   :  { %v12952_v43 = vpop.f32.mrf.mxu0  ;;  %v12954_v18 = vpop.f32.mrf.mxu1 }
 0x269   :  { %16696 = vst [vmem:[#allocation96_spill] sm:$0xff] %v12954_v18 }
 0x26a   :  { %v12956_v17 = vpop.f32.mrf.mxu0  ;;  %v12958_v57 = vpop.f32.mrf.mxu1  ;;  %7920 = vmatmul.mubr.msk.f32.gmra.mxu0 %vm106_vm1, %v12963_v19  ;;  %7934 = vmatmul.mubr.msk.f32.gmra.mxu1 %vm106_vm1, %v12963_v19 }
 0x26b   :  { %16697 = vst [vmem:[#allocation97_spill] sm:$0xff] %v12958_v57  ;;  %4048 = vmatprep.mubr.f32.mxu0 %v16427_v15  ;;  %4185 = vmatprep.mubr.f32.mxu1 %v16427_v15 }
 0x26c   :  { %v12971_v18 = vpop.f32.mrf.mxu0  ;;  %v12973_v13 = vpop.f32.mrf.mxu1 }
 0x26d   :  { %16698 = vst [vmem:[#allocation98_spill] sm:$0xff] %v12973_v13 }
 0x26e   :  { %v12975_v62 = vpop.f32.mrf.mxu0  ;;  %v12977_v48 = vpop.f32.mrf.mxu1  ;;  %7921 = vmatmul.mubr.msk.f32.gmra.mxu0 %vm106_vm1, %v12982_v33  ;;  %7935 = vmatmul.mubr.msk.f32.gmra.mxu1 %vm106_vm1, %v12982_v33 }
 0x26f   :  { %16699 = vst [vmem:[#allocation99_spill] sm:$0xff] %v12977_v48  ;;  %4054 = vmatprep.mubr.f32.mxu0 %v16427_v15  ;;  %4191 = vmatprep.mubr.f32.mxu1 %v16427_v15  ;;  %v13020_v48 = vld [vmem:[%s16327_s0 + $0x68] sm:$0xff] }
 0x270   :  { %v12990_v13 = vpop.f32.mrf.mxu0  ;;  %v12992_v59 = vpop.f32.mrf.mxu1 }
 0x271   :  { %16700 = vst [vmem:[#allocation100_spill] sm:$0xff] %v12992_v59 }
 0x272   :  { %v12994_v63 = vpop.f32.mrf.mxu0  ;;  %v12996_v46 = vpop.f32.mrf.mxu1  ;;  %7922 = vmatmul.mubr.msk.f32.gmra.mxu0 %vm106_vm1, %v13001_v31  ;;  %7936 = vmatmul.mubr.msk.f32.gmra.mxu1 %vm106_vm1, %v13001_v31 }
 0x273   :  { %16701 = vst [vmem:[#allocation101_spill] sm:$0xff] %v12996_v46  ;;  %4060 = vmatprep.mubr.f32.mxu0 %v16427_v15  ;;  %4197 = vmatprep.mubr.f32.mxu1 %v16427_v15 }
 0x274   :  { %v13009_v59 = vpop.f32.mrf.mxu0  ;;  %v13011_v32 = vpop.f32.mrf.mxu1 }
 0x275   :  { %16702 = vst [vmem:[#allocation102_spill] sm:$0xff] %v13011_v32 }
 0x276   :  { %v13013_v7 = vpop.f32.mrf.mxu0  ;;  %v13015_v46 = vpop.f32.mrf.mxu1  ;;  %7923 = vmatmul.mubr.msk.f32.gmra.mxu0 %vm106_vm1, %v13020_v48  ;;  %7937 = vmatmul.mubr.msk.f32.gmra.mxu1 %vm106_vm1, %v13020_v48 }
 0x277   :  { %16703 = vst [vmem:[#allocation103_spill] sm:$0xff] %v13015_v46  ;;  %4268 = vmatprep.mubr.f32.mxu0 %v16427_v15  ;;  %4480 = vmatprep.mubr.f32.mxu1 %v16427_v15 }
 0x278   :  { %v13028_v32 = vpop.f32.mrf.mxu0  ;;  %v13030_v57 = vpop.f32.mrf.mxu1 }
 0x279   :  { %16704 = vst [vmem:[#allocation104_spill] sm:$0xff] %v13030_v57  ;;  %v9739_v57 = vld [vmem:[%s16325_s2 + $0x3a0] sm:$0xf] }
 0x27a   :  { %v13032_v46 = vpop.f32.mrf.mxu0  ;;  %v3239_v60 = vpop.f32.mrf.mxu1  ;;  %7940 = vmatmul.mubr.msk.f32.vlgmr.msra.gmra.mxu0 %vm106_vm1, %v12757_v51  ;;  %7954 = vmatmul.mubr.msk.f32.vlgmr.msra.gmra.mxu1 %vm106_vm1, %v13039_v50  ;;  %v9740_v51 = vld [vmem:[%s16325_s2 + $0x3b0] sm:$0xf] }
 0x27b   :  { %v13044_v11 = vadd.f32 %v3239_v60, %v12750_v6  ;;  %7967 = vmatpush1.msk.msra.mxu0 %vm143_vm0, %v9739_v57  ;;  %7981 = vmatpush1.msk.msra.mxu1 %vm143_vm0, %v9740_v51  ;;  %v9741_v6 = vld [vmem:[%s16325_s2 + $0x378] sm:$0xff]  ;;  %v9742_v57 = vld [vmem:[%s16325_s2 + $0x388] sm:$0xff] }
 0x27c   :  { %v13054_v45 = vpop.f32.mrf.mxu0  ;;  %v3241_v29 = vpop.f32.mrf.mxu1  ;;  %4274 = vmatprep.mubr.f32.mxu0 %v16427_v15  ;;  %4486 = vmatprep.mubr.f32.mxu1 %v16427_v15 }
 0x27d   :  { %v13059_v60 = vadd.f32 %v3241_v29, %v12773_v55  ;;  %4579 = vmatprep.subr.mxu0 %v9741_v6  ;;  %4716 = vmatprep.subr.mxu1 %v9742_v57  ;;  %v13074_v55 = vld [vmem:[%s16326_s1 + $0x18] sm:$0xff] }
 0x27e   :  { %v13067_v51 = vpop.f32.mrf.mxu0  ;;  %v3245_v27 = vpop.f32.mrf.mxu1  ;;  %7941 = vmatmul.mubr.msk.f32.gmra.mxu0 %vm106_vm1, %v12792_v12  ;;  %7955 = vmatmul.mubr.msk.f32.gmra.mxu1 %vm106_vm1, %v13074_v55  ;;  %v9744_v12 = vld [vmem:[%s16325_s2 + $0x370] sm:$0xff] }
 0x27f   :  { %16705 = vst [vmem:[#allocation105_spill] sm:$0xff] %v13059_v60  ;;  %v13079_v29 = vadd.f32 %v3245_v27, %v12785_v0  ;;  %4280 = vmatprep.mubr.f32.mxu0 %v16427_v15  ;;  %4492 = vmatprep.mubr.f32.mxu1 %v16427_v15  ;;  %v9745_v60 = vld [vmem:[%s16325_s2 + $0x380] sm:$0xff]  ;;  %v9746_v0 = vld [vmem:[%s16325_s2 + $0x348] sm:$0xff] }
 0x280   :  { %v13083_v6 = vpop.f32.mrf.mxu0  ;;  %v3247_v57 = vpop.f32.mrf.mxu1  ;;  %4580 = vmatpush1.msra.mxu0 %v9744_v12  ;;  %4717 = vmatpush1.msra.mxu1 %v9745_v60 }
 0x281   :  { %16706 = vst [vmem:[#allocation106_spill] sm:$0xff] %v13079_v29  ;;  %v13092_v27 = vadd.f32 %v3247_v57, %v12800_v47  ;;  %4581 = vmatprep.subr.mxu0 %v9746_v0  ;;  %v9747_v29 = vld [vmem:[%s16325_s2 + $0x358] sm:$0xff]  ;;  %v13107_v47 = vld [vmem:[%s16326_s1 + $0x20] sm:$0xff]  ;;  %v9750_v0 = vld [vmem:[%s16325_s2 + $0x350] sm:$0xff] }
 0x282   :  { %4718 = vmatprep.subr.mxu1 %v9747_v29  ;;  %v13100_v2 = vpop.f32.mrf.mxu0  ;;  %v3251_v12 = vpop.f32.mrf.mxu1  ;;  %7942 = vmatmul.mubr.msk.f32.gmra.mxu0 %vm106_vm1, %v12823_v36  ;;  %v9749_v36 = vld [vmem:[%s16325_s2 + $0x340] sm:$0xff] }
 0x283   :  { %16707 = vst [vmem:[#allocation107_spill] sm:$0xff] %v13092_v27  ;;  %7956 = vmatmul.mubr.msk.f32.gmra.mxu1 %vm106_vm1, %v13107_v47  ;;  %v13112_v60 = vadd.f32 %v3251_v12, %v12816_v10  ;;  %4286 = vmatprep.mubr.f32.mxu0 %v16427_v15  ;;  %v9751_v12 = vld [vmem:[%s16325_s2 + $0x318] sm:$0xff]  ;;  %v9752_v27 = vld [vmem:[%s16325_s2 + $0x328] sm:$0xff] }
 0x284   :  { %4498 = vmatprep.mubr.f32.mxu1 %v16427_v15  ;;  %v13116_v29 = vpop.f32.mrf.mxu0  ;;  %v3253_v57 = vpop.f32.mrf.mxu1  ;;  %4582 = vmatpush1.msra.mxu0 %v9749_v36 }
 0x285   :  { %16708 = vst [vmem:[#allocation108_spill] sm:$0xff] %v13112_v60  ;;  %4719 = vmatpush1.msra.mxu1 %v9750_v0  ;;  %v13125_v10 = vadd.f32 %v3253_v57, %v12831_v44  ;;  %4583 = vmatprep.subr.mxu0 %v9751_v12  ;;  %v13140_v44 = vld [vmem:[%s16326_s1 + $0x28] sm:$0xff]  ;;  %v9755_v12 = vld [vmem:[%s16325_s2 + $0x320] sm:$0xff] }
 0x286   :  { %4720 = vmatprep.subr.mxu1 %v9752_v27  ;;  %v13133_v60 = vpop.f32.mrf.mxu0  ;;  %v3257_v36 = vpop.f32.mrf.mxu1  ;;  %7943 = vmatmul.mubr.msk.f32.gmra.mxu0 %vm106_vm1, %v12854_v34  ;;  %v9754_v34 = vld [vmem:[%s16325_s2 + $0x310] sm:$0xff] }
 0x287   :  { %16709 = vst [vmem:[#allocation109_spill] sm:$0xff] %v13125_v10  ;;  %7957 = vmatmul.mubr.msk.f32.gmra.mxu1 %vm106_vm1, %v13140_v44  ;;  %v13145_v57 = vadd.f32 %v3257_v36, %v12847_v28  ;;  %4292 = vmatprep.mubr.f32.mxu0 %v16427_v15 }
 0x288   :  { %4504 = vmatprep.mubr.f32.mxu1 %v16427_v15  ;;  %v13149_v27 = vpop.f32.mrf.mxu0  ;;  %v3259_v0 = vpop.f32.mrf.mxu1  ;;  %4584 = vmatpush1.msra.mxu0 %v9754_v34  ;;  %v13168_v34 = vld [vmem:[%s16326_s1 + $0x30] sm:$0xff] }
 0x289   :  { %16710 = vst [vmem:[#allocation110_spill] sm:$0xff] %v13145_v57  ;;  %4721 = vmatpush1.msra.mxu1 %v9755_v12  ;;  %v13158_v28 = vadd.f32 %v3259_v0, %v12862_v20 }
 0x28a   :  { %9155 = vmatprep.subr.mxu1 %v16427_v15  ;;  %v13161_v36 = vpop.f32.mrf.mxu0  ;;  %v3263_v10 = vpop.f32.mrf.mxu1  ;;  %7944 = vmatmul.mubr.msk.f32.gmra.mxu0 %vm106_vm1, %v12887_v49 }
 0x28b   :  { %16711 = vst [vmem:[#allocation111_spill] sm:$0xff] %v13158_v28  ;;  %7958 = vmatmul.mubr.msk.f32.gmra.mxu1 %vm106_vm1, %v13168_v34  ;;  %v13173_v12 = vadd.f32 %v3263_v10, %v12880_v8  ;;  %4298 = vmatprep.mubr.f32.mxu0 %v16427_v15  ;;  %v13189_v8 = vld [vmem:[%s16326_s1 + $0x38] sm:$0xff] }
 0x28c   :  { %4510 = vmatprep.mubr.f32.mxu1 %v16427_v15  ;;  %v13177_v20 = vpop.f32.mrf.mxu0  ;;  %v3265_v0 = vpop.f32.mrf.mxu1 }
 0x28d   :  { %16712 = vst [vmem:[#allocation112_spill] sm:$0xff] %v13177_v20  ;;  %v13180_v49 = vadd.f32 %v3265_v0, %v12895_v23 }
 0x28e   :  { %v13182_v28 = vpop.f32.mrf.mxu0  ;;  %v3269_v57 = vpop.f32.mrf.mxu1  ;;  %7945 = vmatmul.mubr.msk.f32.gmra.mxu0 %vm106_vm1, %v12906_v40 }
 0x28f   :  { %16713 = vst [vmem:[#allocation113_spill] sm:$0xff] %v13180_v49  ;;  %7959 = vmatmul.mubr.msk.f32.gmra.mxu1 %vm106_vm1, %v13189_v8  ;;  %v13194_v10 = vadd.f32 %v3269_v57, %v12899_v37  ;;  %4304 = vmatprep.mubr.f32.mxu0 %v16427_v15  ;;  %v13210_v37 = vld [vmem:[%s16326_s1 + $0x40] sm:$0xff] }
 0x290   :  { %4516 = vmatprep.mubr.f32.mxu1 %v16427_v15  ;;  %v13198_v23 = vpop.f32.mrf.mxu0  ;;  %v3271_v0 = vpop.f32.mrf.mxu1 }
 0x291   :  { %16714 = vst [vmem:[#allocation114_spill] sm:$0xff] %v13198_v23  ;;  %v13201_v40 = vadd.f32 %v3271_v0, %v12914_v30 }
 0x292   :  { %v13203_v49 = vpop.f32.mrf.mxu0  ;;  %v3275_v20 = vpop.f32.mrf.mxu1  ;;  %7946 = vmatmul.mubr.msk.f32.gmra.mxu0 %vm106_vm1, %v12925_v61 }
 0x293   :  { %16715 = vst [vmem:[#allocation115_spill] sm:$0xff] %v13201_v40  ;;  %7960 = vmatmul.mubr.msk.f32.gmra.mxu1 %vm106_vm1, %v13210_v37  ;;  %v13215_v57 = vadd.f32 %v3275_v20, %v12918_v39  ;;  %4310 = vmatprep.mubr.f32.mxu0 %v16427_v15  ;;  %v13231_v39 = vld [vmem:[%s16326_s1 + $0x48] sm:$0xff] }
 0x294   :  { %4522 = vmatprep.mubr.f32.mxu1 %v16427_v15  ;;  %v13219_v30 = vpop.f32.mrf.mxu0  ;;  %v3277_v0 = vpop.f32.mrf.mxu1 }
 0x295   :  { %16716 = vst [vmem:[#allocation116_spill] sm:$0xff] %v13219_v30  ;;  %v13222_v61 = vadd.f32 %v3277_v0, %v12933_v35 }
 0x296   :  { %v13224_v23 = vpop.f32.mrf.mxu0  ;;  %v3281_v40 = vpop.f32.mrf.mxu1  ;;  %7947 = vmatmul.mubr.msk.f32.gmra.mxu0 %vm106_vm1, %v12944_v58 }
 0x297   :  { %16717 = vst [vmem:[#allocation117_spill] sm:$0xff] %v13222_v61  ;;  %7961 = vmatmul.mubr.msk.f32.gmra.mxu1 %vm106_vm1, %v13231_v39  ;;  %v13236_v20 = vadd.f32 %v3281_v40, %v12937_v3  ;;  %4316 = vmatprep.mubr.f32.mxu0 %v16427_v15  ;;  %v13252_v3 = vld [vmem:[%s16326_s1 + $0x50] sm:$0xff] }
 0x298   :  { %4528 = vmatprep.mubr.f32.mxu1 %v16427_v15  ;;  %v13240_v35 = vpop.f32.mrf.mxu0  ;;  %v3283_v0 = vpop.f32.mrf.mxu1 }
 0x299   :  { %16718 = vst [vmem:[#allocation118_spill] sm:$0xff] %v13240_v35  ;;  %v13243_v58 = vadd.f32 %v3283_v0, %v12952_v43 }
 0x29a   :  { %v13245_v30 = vpop.f32.mrf.mxu0  ;;  %v3287_v61 = vpop.f32.mrf.mxu1  ;;  %7948 = vmatmul.mubr.msk.f32.gmra.mxu0 %vm106_vm1, %v12963_v19 }
 0x29b   :  { %16719 = vst [vmem:[#allocation119_spill] sm:$0xff] %v13243_v58  ;;  %7962 = vmatmul.mubr.msk.f32.gmra.mxu1 %vm106_vm1, %v13252_v3  ;;  %v13257_v40 = vadd.f32 %v3287_v61, %v12956_v17  ;;  %4322 = vmatprep.mubr.f32.mxu0 %v16427_v15  ;;  %v13273_v17 = vld [vmem:[%s16326_s1 + $0x58] sm:$0xff] }
 0x29c   :  { %4534 = vmatprep.mubr.f32.mxu1 %v16427_v15  ;;  %v13261_v43 = vpop.f32.mrf.mxu0  ;;  %v3289_v0 = vpop.f32.mrf.mxu1 }
 0x29d   :  { %16720 = vst [vmem:[#allocation120_spill] sm:$0xff] %v13261_v43  ;;  %v13264_v19 = vadd.f32 %v3289_v0, %v12971_v18 }
 0x29e   :  { %v13266_v35 = vpop.f32.mrf.mxu0  ;;  %v3293_v58 = vpop.f32.mrf.mxu1  ;;  %7949 = vmatmul.mubr.msk.f32.gmra.mxu0 %vm106_vm1, %v12982_v33 }
 0x29f   :  { %16721 = vst [vmem:[#allocation121_spill] sm:$0xff] %v13264_v19  ;;  %7963 = vmatmul.mubr.msk.f32.gmra.mxu1 %vm106_vm1, %v13273_v17  ;;  %v13278_v61 = vadd.f32 %v3293_v58, %v12975_v62  ;;  %4328 = vmatprep.mubr.f32.mxu0 %v16427_v15 }
 0x2a0   :  { %4540 = vmatprep.mubr.f32.mxu1 %v16427_v15  ;;  %v13282_v18 = vpop.f32.mrf.mxu0  ;;  %v3295_v0 = vpop.f32.mrf.mxu1 }
 0x2a1   :  { %16722 = vst [vmem:[#allocation122_spill] sm:$0xff] %v13282_v18  ;;  %v13285_v33 = vadd.f32 %v3295_v0, %v12990_v13  ;;  %v13301_v13 = vld [vmem:[%s16326_s1 + $0x68] sm:$0xff] }
 0x2a2   :  { %v13287_v43 = vpop.f32.mrf.mxu0  ;;  %v3299_v19 = vpop.f32.mrf.mxu1  ;;  %7950 = vmatmul.mubr.msk.f32.gmra.mxu0 %vm106_vm1, %v13001_v31 }
 0x2a3   :  { %7964 = vmatmul.mubr.msk.f32.gmra.mxu1 %vm106_vm1, %v12438_v41  ;;  %v13294_v62 = vadd.f32 %v3299_v19, %v12994_v63  ;;  %4334 = vmatprep.mubr.f32.mxu0 %v16427_v15 }
 0x2a4   :  { %4546 = vmatprep.mubr.f32.mxu1 %v16427_v15  ;;  %v13303_v58 = vpop.f32.mrf.mxu0  ;;  %v3301_v0 = vpop.f32.mrf.mxu1 }
 0x2a5   :  { %16723 = vst [vmem:[#allocation123_spill] sm:$0xff] %v13303_v58  ;;  %v13306_v31 = vadd.f32 %v3301_v0, %v13009_v59  ;;  %v3103_v0 = vadd.f32 %v13032_v46, %v12458_v24  ;;  %v3109_v46 = vadd.f32 %v13067_v51, %v12492_v25 }
 0x2a6   :  { %v13308_v18 = vpop.f32.mrf.mxu0  ;;  %v3305_v41 = vpop.f32.mrf.mxu1  ;;  %7951 = vmatmul.mubr.msk.f32.gmra.mxu0 %vm106_vm1, %v13020_v48 }
 0x2a7   :  { %16724 = vst [vmem:[#allocation124_spill] sm:$0xff] %v13306_v31  ;;  %7965 = vmatmul.mubr.msk.f32.gmra.mxu1 %vm106_vm1, %v13301_v13  ;;  %v13315_v63 = vadd.f32 %v3305_v41, %v13013_v7  ;;  %4617 = vmatprep.mubr.f32.mxu0 %v16427_v15  ;;  %v3105_v7 = vadd.f32 %v13054_v45, %v12477_v1 }
 0x2a8   :  { %4754 = vmatprep.mubr.f32.mxu1 %v16427_v15  ;;  %v13319_v19 = vpop.f32.mrf.mxu0  ;;  %v3307_v59 = vpop.f32.mrf.mxu1  ;;  %v3111_v1 = vadd.f32 %v13083_v6, %v12505_v56  ;;  %v3117_v56 = vadd.f32 %v13116_v29, %v12537_v5  ;;  %v3123_v5 = vadd.f32 %v13149_v27, %v12569_v26 }
 0x2a9   :  { %16725 = vst [vmem:[#allocation125_spill] sm:$0xff] %v13319_v19  ;;  %v13324_v58 = vadd.f32 %v3307_v59, %v13028_v32 }
 0x2aa   :  { %v13326_v48 = vpop.f32.mrf.mxu0  ;;  %v3513_v31 = vpop.f32.mrf.mxu1  ;;  %7968 = vmatmul.mubr.msk.f32.vlgmr.msra.gmra.mxu0 %vm106_vm1, %v13039_v50 }
 0x2ab   :  { %7982 = vmatmul.mubr.msk.f32.vlgmr.msra.gmra.mxu1 %vm106_vm1, %v13039_v50  ;;  %v13334_v41 = vadd.f32 %v3513_v31, %v3103_v0  ;;  %4623 = vmatprep.mubr.f32.mxu0 %v16427_v15  ;;  %v3115_v31 = vadd.f32 %v13100_v2, %v12524_v38 }
 0x2ac   :  { %4760 = vmatprep.mubr.f32.mxu1 %v16427_v15  ;;  %v13338_v24 = vpop.f32.mrf.mxu0  ;;  %v3515_v32 = vpop.f32.mrf.mxu1 }
 0x2ad   :  { %v13342_v59 = vadd.f32 %v3515_v32, %v3105_v7  ;;  %v3121_v32 = vadd.f32 %v13133_v60, %v12556_v54 }
 0x2ae   :  { %v13344_v19 = vpop.f32.mrf.mxu0  ;;  %v3519_v50 = vpop.f32.mrf.mxu1  ;;  %7969 = vmatmul.mubr.msk.f32.gmra.mxu0 %vm106_vm1, %v13074_v55 }
 0x2af   :  { %7983 = vmatmul.mubr.msk.f32.gmra.mxu1 %vm106_vm1, %v13074_v55  ;;  %v13352_v45 = vadd.f32 %v3519_v50, %v3109_v46  ;;  %4629 = vmatprep.mubr.f32.mxu0 %v16427_v15 }
 0x2b0   :  { %4766 = vmatprep.mubr.f32.mxu1 %v16427_v15  ;;  %v13356_v25 = vpop.f32.mrf.mxu0  ;;  %v3521_v51 = vpop.f32.mrf.mxu1 }
 0x2b1   :  { %16726 = vst [vmem:[#allocation126_spill] sm:$0xff] %v13356_v25  ;;  %v13360_v0 = vadd.f32 %v3521_v51, %v3111_v1  ;;  %v3127_v1 = vadd.f32 %v13161_v36, %v12590_v21  ;;  %v3133_v36 = vadd.f32 %v13182_v28, %v12610_v53  ;;  %v3139_v53 = vadd.f32 %v13203_v49, %v12630_v14 }
 0x2b2   :  { %v13362_v7 = vpop.f32.mrf.mxu0  ;;  %v3525_v55 = vpop.f32.mrf.mxu1  ;;  %7970 = vmatmul.mubr.msk.f32.gmra.mxu0 %vm106_vm1, %v13107_v47  ;;  %v3145_v14 = vadd.f32 %v13224_v23, %v12650_v9  ;;  %v3151_v9 = vadd.f32 %v13245_v30, %v12670_v4  ;;  %v8025_v4 = vld [vmem:[%s16328_s4 + $0x278] sm:$0xff]  ;;  %v3157_v30 = vadd.f32 %v13266_v35, %v12690_v22  ;;  %v8024_v22 = vld [vmem:[%s16328_s4 + $0x270] sm:$0xff] }
 0x2b3   :  { %7984 = vmatmul.mubr.msk.f32.gmra.mxu1 %vm106_vm1, %v13107_v47  ;;  %v13370_v6 = vadd.f32 %v3525_v55, %v3115_v31  ;;  %4635 = vmatprep.mubr.f32.mxu0 %v16427_v15 }
 0x2b4   :  { %4772 = vmatprep.mubr.f32.mxu1 %v16427_v15  ;;  %v13374_v38 = vpop.f32.mrf.mxu0  ;;  %v3527_v2 = vpop.f32.mrf.mxu1  ;;  %8526 = vmatprep.subr.mxu0 %v8025_v4  ;;  %v3163_v4 = vadd.f32 %v13287_v43, %v12710_v16  ;;  %v8023_v16 = vld [vmem:[%s16328_s4 + $0x268] sm:$0xff] }
 0x2b5   :  { %16727 = vst [vmem:[#allocation127_spill] sm:$0xff] %v13374_v38  ;;  %v13378_v46 = vadd.f32 %v3527_v2, %v3117_v56 }
 0x2b6   :  { %v13380_v50 = vpop.f32.mrf.mxu0  ;;  %v3531_v47 = vpop.f32.mrf.mxu1  ;;  %7971 = vmatmul.mubr.msk.f32.gmra.mxu0 %vm106_vm1, %v13140_v44 }
 0x2b7   :  { %7985 = vmatmul.mubr.msk.f32.gmra.mxu1 %vm106_vm1, %v13140_v44  ;;  %v13388_v29 = vadd.f32 %v3531_v47, %v3121_v32  ;;  %4641 = vmatprep.mubr.f32.mxu0 %v16427_v15 }
 0x2b8   :  { %4778 = vmatprep.mubr.f32.mxu1 %v16427_v15  ;;  %v13392_v54 = vpop.f32.mrf.mxu0  ;;  %v3533_v60 = vpop.f32.mrf.mxu1 }
 0x2b9   :  { %16728 = vst [vmem:[#allocation128_spill] sm:$0xff] %v13392_v54  ;;  %v13396_v51 = vadd.f32 %v3533_v60, %v3123_v5  ;;  %v16748_v54 = vld [vmem:[#allocation110_spill] sm:$0xff] }
 0x2ba   :  { %v13398_v31 = vpop.f32.mrf.mxu0  ;;  %v3537_v44 = vpop.f32.mrf.mxu1  ;;  %7972 = vmatmul.mubr.msk.f32.gmra.mxu0 %vm106_vm1, %v13168_v34 }
 0x2bb   :  { %7986 = vmatmul.mubr.msk.f32.gmra.mxu1 %vm106_vm1, %v13168_v34  ;;  %v13404_v26 = vadd.f32 %v3537_v44, %v3127_v1  ;;  %4647 = vmatprep.mubr.f32.mxu0 %v16427_v15 }
 0x2bc   :  { %4784 = vmatprep.mubr.f32.mxu1 %v16427_v15  ;;  %v13408_v27 = vpop.f32.mrf.mxu0  ;;  %v13410_v21 = vpop.f32.mrf.mxu1 }
 0x2bd   :  { %16729 = vst [vmem:[#allocation129_spill] sm:$0xff] %v13408_v27 }
 0x2be   :  { %v13414_v55 = vpop.f32.mrf.mxu0  ;;  %v3543_v56 = vpop.f32.mrf.mxu1  ;;  %7973 = vmatmul.mubr.msk.f32.gmra.mxu0 %vm106_vm1, %v13189_v8 }
 0x2bf   :  { %7987 = vmatmul.mubr.msk.f32.gmra.mxu1 %vm106_vm1, %v13189_v8  ;;  %v13420_v34 = vadd.f32 %v3543_v56, %v3133_v36  ;;  %4653 = vmatprep.mubr.f32.mxu0 %v16427_v15 }
 0x2c0   :  { %4790 = vmatprep.mubr.f32.mxu1 %v16427_v15  ;;  %v13424_v2 = vpop.f32.mrf.mxu0  ;;  %v13426_v32 = vpop.f32.mrf.mxu1 }
 0x2c1   :  { %16730 = vst [vmem:[#allocation130_spill] sm:$0xff] %v13424_v2 }
 0x2c2   :  { %v13430_v28 = vpop.f32.mrf.mxu0  ;;  %v3549_v47 = vpop.f32.mrf.mxu1  ;;  %7974 = vmatmul.mubr.msk.f32.gmra.mxu0 %vm106_vm1, %v13210_v37 }
 0x2c3   :  { %7988 = vmatmul.mubr.msk.f32.gmra.mxu1 %vm106_vm1, %v13210_v37  ;;  %v13436_v8 = vadd.f32 %v3549_v47, %v3139_v53  ;;  %4659 = vmatprep.mubr.f32.mxu0 %v16427_v15 }
 0x2c4   :  { %4796 = vmatprep.mubr.f32.mxu1 %v16427_v15  ;;  %v13440_v5 = vpop.f32.mrf.mxu0  ;;  %v13442_v60 = vpop.f32.mrf.mxu1 }
 0x2c5   :  { %16731 = vst [vmem:[#allocation131_spill] sm:$0xff] %v13440_v5 }
 0x2c6   :  { %v13446_v49 = vpop.f32.mrf.mxu0  ;;  %v3555_v1 = vpop.f32.mrf.mxu1  ;;  %7975 = vmatmul.mubr.msk.f32.gmra.mxu0 %vm106_vm1, %v13231_v39 }
 0x2c7   :  { %7989 = vmatmul.mubr.msk.f32.gmra.mxu1 %vm106_vm1, %v13231_v39  ;;  %v13452_v37 = vadd.f32 %v3555_v1, %v3145_v14  ;;  %4665 = vmatprep.mubr.f32.mxu0 %v16427_v15 }
 0x2c8   :  { %4802 = vmatprep.mubr.f32.mxu1 %v16427_v15  ;;  %v13456_v44 = vpop.f32.mrf.mxu0  ;;  %v13458_v36 = vpop.f32.mrf.mxu1 }
 0x2c9   :  { %16732 = vst [vmem:[#allocation132_spill] sm:$0xff] %v13456_v44 }
 0x2ca   :  { %v13462_v23 = vpop.f32.mrf.mxu0  ;;  %v3561_v56 = vpop.f32.mrf.mxu1  ;;  %7976 = vmatmul.mubr.msk.f32.gmra.mxu0 %vm106_vm1, %v13252_v3 }
 0x2cb   :  { %7990 = vmatmul.mubr.msk.f32.gmra.mxu1 %vm106_vm1, %v13252_v3  ;;  %v13468_v39 = vadd.f32 %v3561_v56, %v3151_v9  ;;  %4671 = vmatprep.mubr.f32.mxu0 %v16427_v15  ;;  %v8009_v3 = vld [vmem:[%s16328_s4 + $0x1f8] sm:$0xff] }
 0x2cc   :  { %4808 = vmatprep.mubr.f32.mxu1 %v16427_v15  ;;  %v13472_v53 = vpop.f32.mrf.mxu0  ;;  %v13474_v47 = vpop.f32.mrf.mxu1  ;;  %8527 = vmatpush3.msra.mxu0 %v8009_v3 }
 0x2cd   :  { %16733 = vst [vmem:[#allocation133_spill] sm:$0xff] %v13472_v53  ;;  %8528 = vmatprep.subr.mxu0 %v8024_v22  ;;  %v8040_v53 = vld [vmem:[%s16328_s4 + $0x2f0] sm:$0xff] }
 0x2ce   :  { %v13484_v14 = vpop.f32.mrf.mxu0  ;;  %v3567_v1 = vpop.f32.mrf.mxu1  ;;  %7977 = vmatmul.mubr.msk.f32.gmra.mxu0 %vm106_vm1, %v13273_v17 }
 0x2cf   :  { %7991 = vmatmul.mubr.msk.f32.gmra.mxu1 %vm106_vm1, %v13273_v17  ;;  %v13490_v9 = vadd.f32 %v3567_v1, %v3157_v30  ;;  %4677 = vmatprep.mubr.f32.mxu0 %v16427_v15  ;;  %v8008_v17 = vld [vmem:[%s16328_s4 + $0x1f0] sm:$0xff]  ;;  %v8041_v30 = vld [vmem:[%s16328_s4 + $0x2f8] sm:$0xff] }
 0x2d0   :  { %4814 = vmatprep.mubr.f32.mxu1 %v16427_v15  ;;  %v13497_v35 = vpop.f32.mrf.mxu0  ;;  %v13499_v56 = vpop.f32.mrf.mxu1  ;;  %8529 = vmatpush3.msra.mxu0 %v8008_v17 }
 0x2d1   :  { %16734 = vst [vmem:[#allocation134_spill] sm:$0xff] %v13497_v35  ;;  %v9762_v35 = vld [vmem:[%s16326_s1 + $0x60] sm:$0xff]  ;;  %9156 = vmatpush3.msra.mxu1 %v8041_v30  ;;  %8530 = vmatprep.subr.mxu0 %v8023_v16  ;;  %v8039_v16 = vld [vmem:[%s16328_s4 + $0x2e8] sm:$0xff] }
 0x2d2   :  { %v13509_v1 = vpop.f32.mrf.mxu0  ;;  %v3573_v25 = vpop.f32.mrf.mxu1  ;;  %7978 = vmatmul.mubr.msk.f32.gmra.mxu0 %vm106_vm1, %v9762_v35  ;;  %9157 = vmatprep.subr.mxu1 %v16427_v15 }
 0x2d3   :  { %7992 = vmatmul.mubr.msk.f32.gmra.mxu1 %vm106_vm1, %v9762_v35  ;;  %v13519_v43 = vadd.f32 %v3573_v25, %v3163_v4  ;;  %4683 = vmatprep.mubr.f32.mxu0 %v16427_v15  ;;  %v8007_v35 = vld [vmem:[%s16328_s4 + $0x1e8] sm:$0xff]  ;;  %v3169_v25 = vadd.f32 %v13308_v18, %v12730_v52  ;;  %v8022_v4 = vld [vmem:[%s16328_s4 + $0x260] sm:$0xff] }
 0x2d4   :  { %4820 = vmatprep.mubr.f32.mxu1 %v16427_v15  ;;  %v13523_v3 = vpop.f32.mrf.mxu0  ;;  %v13525_v22 = vpop.f32.mrf.mxu1  ;;  %v8006_v52 = vld [vmem:[%s16328_s4 + $0x1e0] sm:$0xff]  ;;  %8531 = vmatpush3.msra.mxu0 %v8007_v35 }
 0x2d5   :  { %16735 = vst [vmem:[#allocation135_spill] sm:$0xff] %v13523_v3  ;;  %9158 = vmatpush3.msra.mxu1 %v8040_v53  ;;  %v8021_v3 = vld [vmem:[%s16328_s4 + $0x258] sm:$0xff]  ;;  %8532 = vmatprep.subr.mxu0 %v8022_v4  ;;  %v8038_v35 = vld [vmem:[%s16328_s4 + $0x2e0] sm:$0xff] }
 0x2d6   :  { %v13539_v17 = vpop.f32.mrf.mxu0  ;;  %v3579_v30 = vpop.f32.mrf.mxu1  ;;  %7979 = vmatmul.mubr.msk.f32.gmra.mxu0 %vm106_vm1, %v13301_v13  ;;  %9159 = vmatprep.subr.mxu1 %v16427_v15  ;;  %v8005_v53 = vld [vmem:[%s16328_s4 + $0x1d8] sm:$0xff] }
 0x2d7   :  { %7993 = vmatmul.mubr.msk.f32.gmra.mxu1 %vm106_vm1, %v13301_v13  ;;  %v13548_v18 = vadd.f32 %v3579_v30, %v3169_v25  ;;  %v3377_v13 = vadd.f32 %v13326_v48, %v12752_v42  ;;  %8533 = vmatpush3.msra.mxu0 %v8006_v52  ;;  %v8020_v42 = vld [vmem:[%s16328_s4 + $0x250] sm:$0xff] }
 0x2d8   :  { %v13556_v44 = vpop.f32.mrf.mxu0  ;;  %v13558_v5 = vpop.f32.mrf.mxu1  ;;  %9160 = vmatpush3.msra.mxu1 %v8039_v16  ;;  %8534 = vmatprep.subr.mxu0 %v8021_v3  ;;  %v8004_v48 = vld [vmem:[%s16328_s4 + $0x1d0] sm:$0xff] }
 0x2d9   :  { %16736 = vst [vmem:[#allocation136_spill] sm:$0xff] %v13556_v44  ;;  %9161 = vmatprep.subr.mxu1 %v16427_v15  ;;  %8535 = vmatpush3.msra.mxu0 %v8005_v53  ;;  %v8019_v53 = vld [vmem:[%s16328_s4 + $0x248] sm:$0xff] }
 0x2da   :  { %v3650_v25 = vpop.f32.mrf.mxu0  ;;  %v3787_v30 = vpop.f32.mrf.mxu1  ;;  %9162 = vmatpush3.msra.mxu1 %v8038_v35  ;;  %8536 = vmatprep.subr.mxu0 %v8020_v42 }
 0x2db   :  { %v13571_v4 = vadd.f32 %v3650_v25, %v13044_v11  ;;  %v13573_v44 = vadd.f32 %v3787_v30, %v3377_v13  ;;  %9163 = vmatprep.subr.mxu1 %v16427_v15  ;;  %v16739_v11 = vld [vmem:[#allocation83_spill] sm:$0xff]  ;;  %8537 = vmatpush3.msra.mxu0 %v8004_v48  ;;  %v8037_v13 = vld [vmem:[%s16328_s4 + $0x2d8] sm:$0xff]  ;;  %v16740_v30 = vld [vmem:[#allocation106_spill] sm:$0xff] }
 0x2dc   :  { %v13581_v52 = vpop.f32.mrf.mxu0  ;;  %v13583_v3 = vpop.f32.mrf.mxu1  ;;  %v3383_v16 = vadd.f32 %v13344_v19, %v16739_v11  ;;  %9164 = vmatpush3.msra.mxu1 %v8037_v13  ;;  %8538 = vmatprep.subr.mxu0 %v8019_v53  ;;  %v8003_v19 = vld [vmem:[%s16328_s4 + $0x1c8] sm:$0xff]  ;;  %v8036_v48 = vld [vmem:[%s16328_s4 + $0x2d0] sm:$0xff]  ;;  %v16743_v13 = vld [vmem:[#allocation85_spill] sm:$0xff] }
 0x2dd   :  { %16737 = vst [vmem:[#allocation137_spill] sm:$0xff] %v13573_v44  ;;  %16738 = vst [vmem:[#allocation138_spill] sm:$0xff] %v13583_v3  ;;  %9165 = vmatprep.subr.mxu1 %v16427_v15  ;;  %8539 = vmatpush3.msra.mxu0 %v8003_v19  ;;  %v8018_v53 = vld [vmem:[%s16328_s4 + $0x240] sm:$0xff] }
 0x2de   :  { %v3656_v35 = vpop.f32.mrf.mxu0  ;;  %v3793_v25 = vpop.f32.mrf.mxu1  ;;  %9166 = vmatpush3.msra.mxu1 %v8036_v48  ;;  %8540 = vmatprep.subr.mxu0 %v8018_v53  ;;  %v8017_v48 = vld [vmem:[%s16328_s4 + $0x238] sm:$0xff]  ;;  %v16747_v53 = vld [vmem:[#allocation87_spill] sm:$0xff] }
 0x2df   :  { %v13595_v42 = vadd.f32 %v3656_v35, %v16740_v30  ;;  %v13597_v44 = vadd.f32 %v3793_v25, %v3383_v16  ;;  %v3389_v16 = vadd.f32 %v13362_v7, %v16743_v13  ;;  %v8002_v35 = vld [vmem:[%s16328_s4 + $0x1c0] sm:$0xff]  ;;  %9167 = vmatprep.subr.mxu1 %v16427_v15  ;;  %v8035_v7 = vld [vmem:[%s16328_s4 + $0x2c8] sm:$0xff]  ;;  %9187 = vmatprep.mubr.msk.f32.mxu1 %vm9764_vm2, %v16427_v15 }
 0x2e0   :  { %v13606_v11 = vpop.f32.mrf.mxu0  ;;  %v13608_v2 = vpop.f32.mrf.mxu1  ;;  %8541 = vmatpush3.msra.mxu0 %v8002_v35  ;;  %9168 = vmatpush3.msra.mxu1 %v8035_v7  ;;  %v8034_v35 = vld [vmem:[%s16328_s4 + $0x2c0] sm:$0xff] }
 0x2e1   :  { %16741 = vst [vmem:[#allocation83_spill] sm:$0xff] %v13597_v44  ;;  %16742 = vst [vmem:[#allocation106_spill] sm:$0xff] %v13608_v2  ;;  %v16744_v44 = vld [vmem:[#allocation108_spill] sm:$0xff]  ;;  %8542 = vmatprep.subr.mxu0 %v8017_v48  ;;  %9169 = vmatprep.subr.mxu1 %v16427_v15 }
 0x2e2   :  { %v3662_v25 = vpop.f32.mrf.mxu0  ;;  %v3799_v30 = vpop.f32.mrf.mxu1  ;;  %9170 = vmatpush3.msra.mxu1 %v8034_v35  ;;  %v8015_v35 = vld [vmem:[%s16328_s4 + $0x228] sm:$0xff] }
 0x2e3   :  { %v13620_v2 = vadd.f32 %v3662_v25, %v16744_v44  ;;  %v13622_v19 = vadd.f32 %v3799_v30, %v3389_v16  ;;  %v3395_v44 = vadd.f32 %v13380_v50, %v16747_v53  ;;  %v8001_v16 = vld [vmem:[%s16328_s4 + $0x1b8] sm:$0xff]  ;;  %v8016_v50 = vld [vmem:[%s16328_s4 + $0x230] sm:$0xff]  ;;  %9171 = vmatprep.subr.mxu1 %v16427_v15 }
 0x2e4   :  { %v13630_v13 = vpop.f32.mrf.mxu0  ;;  %v13632_v27 = vpop.f32.mrf.mxu1  ;;  %8543 = vmatpush3.msra.mxu0 %v8001_v16  ;;  %v8000_v53 = vld [vmem:[%s16328_s4 + $0x1b0] sm:$0xff]  ;;  %v16751_v16 = vld [vmem:[#allocation89_spill] sm:$0xff] }
 0x2e5   :  { %16745 = vst [vmem:[#allocation85_spill] sm:$0xff] %v13622_v19  ;;  %16746 = vst [vmem:[#allocation108_spill] sm:$0xff] %v13632_v27  ;;  %8544 = vmatprep.subr.mxu0 %v8016_v50 }
 0x2e6   :  { %v3668_v25 = vpop.f32.mrf.mxu0  ;;  %v3805_v30 = vpop.f32.mrf.mxu1  ;;  %8545 = vmatpush3.msra.mxu0 %v8000_v53 }
 0x2e7   :  { %v13644_v7 = vadd.f32 %v3668_v25, %v16748_v54  ;;  %v13646_v48 = vadd.f32 %v3805_v30, %v3395_v44  ;;  %v3401_v54 = vadd.f32 %v13398_v31, %v16751_v16  ;;  %v8033_v44 = vld [vmem:[%s16328_s4 + $0x2b8] sm:$0xff]  ;;  %8546 = vmatprep.subr.mxu0 %v8015_v35  ;;  %v8032_v16 = vld [vmem:[%s16328_s4 + $0x2b0] sm:$0xff] }
 0x2e8   :  { %v13655_v19 = vpop.f32.mrf.mxu0  ;;  %v13657_v27 = vpop.f32.mrf.mxu1  ;;  %9172 = vmatpush3.msra.mxu1 %v8033_v44 }
 0x2e9   :  { %16749 = vst [vmem:[#allocation87_spill] sm:$0xff] %v13646_v48  ;;  %16750 = vst [vmem:[#allocation110_spill] sm:$0xff] %v13657_v27  ;;  %9173 = vmatprep.subr.mxu1 %v16427_v15  ;;  %v16754_v27 = vld [vmem:[#allocation91_spill] sm:$0xff] }
 0x2ea   :  { %v3674_v25 = vpop.f32.mrf.mxu0  ;;  %v3811_v30 = vpop.f32.mrf.mxu1  ;;  %v3407_v38 = vadd.f32 %v13414_v55, %v16754_v27  ;;  %9174 = vmatpush3.msra.mxu1 %v8032_v16  ;;  %v8031_v27 = vld [vmem:[%s16328_s4 + $0x2a8] sm:$0xff] }
 0x2eb   :  { %v13668_v48 = vadd.f32 %v3674_v25, %v13173_v12  ;;  %v13670_v50 = vadd.f32 %v3811_v30, %v3401_v54  ;;  %v7999_v12 = vld [vmem:[%s16328_s4 + $0x1a8] sm:$0xff]  ;;  %9175 = vmatprep.subr.mxu1 %v16427_v15  ;;  %v8014_v30 = vld [vmem:[%s16328_s4 + $0x220] sm:$0xff] }
 0x2ec   :  { %v13673_v31 = vpop.f32.mrf.mxu0  ;;  %v13675_v53 = vpop.f32.mrf.mxu1  ;;  %8547 = vmatpush3.msra.mxu0 %v7999_v12  ;;  %9176 = vmatpush3.msra.mxu1 %v8031_v27 }
 0x2ed   :  { %16752 = vst [vmem:[#allocation89_spill] sm:$0xff] %v13670_v50  ;;  %16753 = vst [vmem:[#allocation139_spill] sm:$0xff] %v13675_v53  ;;  %8548 = vmatprep.subr.mxu0 %v8014_v30  ;;  %v8013_v30 = vld [vmem:[%s16328_s4 + $0x218] sm:$0xff]  ;;  %9177 = vmatprep.subr.mxu1 %v16427_v15 }
 0x2ee   :  { %v3680_v44 = vpop.f32.mrf.mxu0  ;;  %v3817_v35 = vpop.f32.mrf.mxu1 }
 0x2ef   :  { %v13687_v54 = vadd.f32 %v3680_v44, %v13194_v10  ;;  %v13689_v25 = vadd.f32 %v3817_v35, %v3407_v38  ;;  %v7998_v10 = vld [vmem:[%s16328_s4 + $0x1a0] sm:$0xff]  ;;  %v16757_v38 = vld [vmem:[#allocation93_spill] sm:$0xff]  ;;  %v16758_v35 = vld [vmem:[#allocation115_spill] sm:$0xff] }
 0x2f0   :  { %v3682_v55 = vpop.f32.mrf.mxu0  ;;  %v13697_v16 = vpop.f32.mrf.mxu1  ;;  %v3413_v44 = vadd.f32 %v13430_v28, %v16757_v38  ;;  %8549 = vmatpush3.msra.mxu0 %v7998_v10  ;;  %v8029_v10 = vld [vmem:[%s16328_s4 + $0x298] sm:$0xff] }
 0x2f1   :  { %16755 = vst [vmem:[#allocation91_spill] sm:$0xff] %v13689_v25  ;;  %16756 = vst [vmem:[#allocation140_spill] sm:$0xff] %v13697_v16  ;;  %v13705_v12 = vadd.f32 %v3682_v55, %v16758_v35  ;;  %v8030_v25 = vld [vmem:[%s16328_s4 + $0x2a0] sm:$0xff]  ;;  %8550 = vmatprep.subr.mxu0 %v8013_v30  ;;  %v7997_v55 = vld [vmem:[%s16328_s4 + $0x198] sm:$0xff] }
 0x2f2   :  { %v3686_v50 = vpop.f32.mrf.mxu0  ;;  %v3823_v53 = vpop.f32.mrf.mxu1  ;;  %9178 = vmatpush3.msra.mxu1 %v8030_v25  ;;  %8551 = vmatpush3.msra.mxu0 %v7997_v55  ;;  %v7996_v25 = vld [vmem:[%s16328_s4 + $0x190] sm:$0xff]  ;;  %v16770_v16 = vld [vmem:[#allocation121_spill] sm:$0xff] }
 0x2f3   :  { %v13715_v27 = vadd.f32 %v3686_v50, %v13215_v57  ;;  %v13717_v28 = vadd.f32 %v3823_v53, %v3413_v44  ;;  %v8012_v57 = vld [vmem:[%s16328_s4 + $0x210] sm:$0xff]  ;;  %9179 = vmatprep.subr.mxu1 %v16427_v15  ;;  %v16761_v50 = vld [vmem:[#allocation95_spill] sm:$0xff]  ;;  %v16762_v44 = vld [vmem:[#allocation117_spill] sm:$0xff] }
 0x2f4   :  { %v3688_v38 = vpop.f32.mrf.mxu0  ;;  %v13725_v35 = vpop.f32.mrf.mxu1  ;;  %v3419_v53 = vadd.f32 %v13446_v49, %v16761_v50  ;;  %8552 = vmatprep.subr.mxu0 %v8012_v57  ;;  %9180 = vmatpush3.msra.mxu1 %v8029_v10  ;;  %v8028_v55 = vld [vmem:[%s16328_s4 + $0x290] sm:$0xff]  ;;  %v8011_v49 = vld [vmem:[%s16328_s4 + $0x208] sm:$0xff] }
 0x2f5   :  { %16759 = vst [vmem:[#allocation93_spill] sm:$0xff] %v13717_v28  ;;  %16760 = vst [vmem:[#allocation115_spill] sm:$0xff] %v13725_v35  ;;  %v13734_v30 = vadd.f32 %v3688_v38, %v16762_v44  ;;  %8553 = vmatpush3.msra.mxu0 %v7996_v25  ;;  %9181 = vmatprep.subr.mxu1 %v16427_v15  ;;  %v7995_v10 = vld [vmem:[%s16328_s4 + $0x188] sm:$0xff] }
 0x2f6   :  { %v3692_v28 = vpop.f32.mrf.mxu0  ;;  %v3829_v35 = vpop.f32.mrf.mxu1  ;;  %8554 = vmatprep.subr.mxu0 %v8011_v49  ;;  %9182 = vmatpush3.msra.mxu1 %v8028_v55  ;;  %v8027_v50 = vld [vmem:[%s16328_s4 + $0x288] sm:$0xff]  ;;  %v7994_v49 = vld [vmem:[%s16328_s4 + $0x180] sm:$0xff] }
 0x2f7   :  { %v13747_v38 = vadd.f32 %v3692_v28, %v13236_v20  ;;  %v13749_v57 = vadd.f32 %v3829_v35, %v3419_v53  ;;  %8555 = vmatpush3.msra.mxu0 %v7995_v10  ;;  %9183 = vmatprep.subr.mxu1 %v16427_v15  ;;  %v8010_v20 = vld [vmem:[%s16328_s4 + $0x200] sm:$0xff]  ;;  %v16765_v28 = vld [vmem:[#allocation97_spill] sm:$0xff]  ;;  %v16766_v53 = vld [vmem:[#allocation119_spill] sm:$0xff] }
 0x2f8   :  { %v3694_v44 = vpop.f32.mrf.mxu0  ;;  %v13757_v25 = vpop.f32.mrf.mxu1  ;;  %v3425_v35 = vadd.f32 %v13462_v23, %v16765_v28  ;;  %9184 = vmatpush3.msra.mxu1 %v8027_v50  ;;  %8556 = vmatprep.subr.mxu0 %v8010_v20  ;;  %v8026_v10 = vld [vmem:[%s16328_s4 + $0x280] sm:$0xff]  ;;  %v5127_v23 = vld [vmem:[%s16328_s4 + $0xf8] sm:$0xff] }
 0x2f9   :  { %16763 = vst [vmem:[#allocation95_spill] sm:$0xff] %v13749_v57  ;;  %16764 = vst [vmem:[#allocation117_spill] sm:$0xff] %v13757_v25  ;;  %v13766_v55 = vadd.f32 %v3694_v44, %v16766_v53  ;;  %9185 = vmatprep.subr.mxu1 %v16427_v15  ;;  %8557 = vmatpush3.msra.mxu0 %v7994_v49  ;;  %v16769_v53 = vld [vmem:[#allocation99_spill] sm:$0xff] }
 0x2fa   :  { %v3698_v57 = vpop.f32.mrf.mxu0  ;;  %v3835_v25 = vpop.f32.mrf.mxu1  ;;  %9186 = vmatpush3.msra.mxu1 %v8026_v10  ;;  %8578 = vmatprep.subr.mxu0 %v5127_v23  ;;  %v3431_v49 = vadd.f32 %v13484_v14, %v16769_v53 }
 0x2fb   :  { %v13779_v50 = vadd.f32 %v3698_v57, %v13257_v40  ;;  %v13781_v44 = vadd.f32 %v3835_v25, %v3425_v35  ;;  %9190 = vmatprep.subr.mxu1 %v16427_v15 }
 0x2fc   :  { %v3700_v20 = vpop.f32.mrf.mxu0  ;;  %v13785_v28 = vpop.f32.mrf.mxu1 }
 0x2fd   :  { %16767 = vst [vmem:[#allocation97_spill] sm:$0xff] %v13781_v44  ;;  %16768 = vst [vmem:[#allocation119_spill] sm:$0xff] %v13785_v28  ;;  %v13791_v3 = vadd.f32 %v3700_v20, %v16770_v16  ;;  %v16773_v28 = vld [vmem:[#allocation101_spill] sm:$0xff] }
 0x2fe   :  { %v3704_v40 = vpop.f32.mrf.mxu0  ;;  %v3841_v57 = vpop.f32.mrf.mxu1  ;;  %v3437_v23 = vadd.f32 %v13509_v1, %v16773_v28 }
 0x2ff   :  { %v13794_v25 = vadd.f32 %v3704_v40, %v13278_v61  ;;  %v13796_v35 = vadd.f32 %v3841_v57, %v3431_v49  ;;  %v16776_v49 = vld [vmem:[#allocation103_spill] sm:$0xff] }
 0x300   :  { %v3706_v10 = vpop.f32.mrf.mxu0  ;;  %v13798_v44 = vpop.f32.mrf.mxu1  ;;  %v3443_v57 = vadd.f32 %v13539_v17, %v16776_v49 }
 0x301   :  { %16771 = vst [vmem:[#allocation99_spill] sm:$0xff] %v13796_v35  ;;  %16772 = vst [vmem:[#allocation121_spill] sm:$0xff] %v13798_v44  ;;  %v13803_v15 = vadd.f32 %v3706_v10, %v13285_v33  ;;  %v16777_v35 = vld [vmem:[#allocation124_spill] sm:$0xff] }
 0x302   :  { %v3710_v14 = vpop.f32.mrf.mxu0  ;;  %v3847_v53 = vpop.f32.mrf.mxu1 }
 0x303   :  { %v13806_v16 = vadd.f32 %v3710_v14, %v13294_v62  ;;  %v13808_v20 = vadd.f32 %v3847_v53, %v3437_v23 }
 0x304   :  { %v3712_v61 = vpop.f32.mrf.mxu0  ;;  %v13810_v40 = vpop.f32.mrf.mxu1 }
 0x305   :  { %16774 = vst [vmem:[#allocation101_spill] sm:$0xff] %v13808_v20  ;;  %16775 = vst [vmem:[#allocation141_spill] sm:$0xff] %v13810_v40  ;;  %v13815_v44 = vadd.f32 %v3712_v61, %v16777_v35  ;;  %v16779_v40 = vld [vmem:[#allocation105_spill] sm:$0xff] }
 0x306   :  { %v3716_v1 = vpop.f32.mrf.mxu0  ;;  %v3853_v28 = vpop.f32.mrf.mxu1  ;;  %v3861_v17 = vadd.f32 %v13581_v52, %v16779_v40 }
 0x307   :  { %v13818_v33 = vadd.f32 %v3716_v1, %v13315_v63  ;;  %v13820_v10 = vadd.f32 %v3853_v28, %v3443_v57 }
 0x308   :  { %v3718_v62 = vpop.f32.mrf.mxu0  ;;  %v13822_v14 = vpop.f32.mrf.mxu1 }
 0x309   :  { %16778 = vst [vmem:[#allocation103_spill] sm:$0xff] %v13820_v10  ;;  %v13825_v23 = vadd.f32 %v3718_v62, %v13324_v58  ;;  %v16780_v62 = vld [vmem:[#allocation107_spill] sm:$0xff] }
 0x30a   :  { %v3996_v53 = vpop.f32.mrf.mxu0  ;;  %v4133_v20 = vpop.f32.mrf.mxu1  ;;  %v3867_v10 = vadd.f32 %v13606_v11, %v16780_v62 }
 0x30b   :  { %v13830_v35 = vadd.f32 %v3996_v53, %v13334_v41  ;;  %v13833_v61 = vadd.f32 %v4133_v20, %v13571_v4 }
 0x30c   :  { %v3998_v63 = vpop.f32.mrf.mxu0  ;;  %v4135_v49 = vpop.f32.mrf.mxu1 }
 0x30d   :  { %v13836_v57 = vadd.f32 %v3998_v63, %v13342_v59  ;;  %v13838_v1 = vadd.f32 %v4135_v49, %v3861_v17  ;;  %v16781_v63 = vld [vmem:[#allocation109_spill] sm:$0xff] }
 0x30e   :  { %v4002_v58 = vpop.f32.mrf.mxu0  ;;  %v4139_v28 = vpop.f32.mrf.mxu1  ;;  %v3873_v49 = vadd.f32 %v13630_v13, %v16781_v63  ;;  %v16786_v63 = vld [vmem:[#allocation112_spill] sm:$0xff] }
 0x30f   :  { %v13843_v52 = vadd.f32 %v4002_v58, %v13352_v45  ;;  %v13846_v41 = vadd.f32 %v4139_v28, %v13595_v42 }
 0x310   :  { %v4004_v4 = vpop.f32.mrf.mxu0  ;;  %v4141_v20 = vpop.f32.mrf.mxu1 }
 0x311   :  { %v13849_v40 = vadd.f32 %v4004_v4, %v13360_v0  ;;  %v13851_v59 = vadd.f32 %v4141_v20, %v3867_v10  ;;  %v16783_v4 = vld [vmem:[#allocation111_spill] sm:$0xff] }
 0x312   :  { %v4008_v53 = vpop.f32.mrf.mxu0  ;;  %v4145_v17 = vpop.f32.mrf.mxu1  ;;  %v3879_v20 = vadd.f32 %v13655_v19, %v16783_v4  ;;  %v16787_v4 = vld [vmem:[#allocation113_spill] sm:$0xff] }
 0x313   :  { %v13856_v11 = vadd.f32 %v4008_v53, %v13370_v6  ;;  %v13859_v45 = vadd.f32 %v4145_v17, %v13620_v2  ;;  %v16785_v17 = vld [vmem:[#allocation71_spill] sm:$0xff] }
 0x314   :  { %v4010_v42 = vpop.f32.mrf.mxu0  ;;  %v4147_v58 = vpop.f32.mrf.mxu1 }
 0x315   :  { %16782 = vst [vmem:[#allocation124_spill] sm:$0xff] %v13859_v45  ;;  %v13862_v28 = vadd.f32 %v4010_v42, %v13378_v46  ;;  %v13864_v0 = vadd.f32 %v4147_v58, %v3873_v49  ;;  %v3129_v45 = vadd.f32 %v16786_v63, %v16785_v17  ;;  %v16789_v63 = vld [vmem:[#allocation72_spill] sm:$0xff] }
 0x316   :  { %v4014_v10 = vpop.f32.mrf.mxu0  ;;  %v4151_v62 = vpop.f32.mrf.mxu1 }
 0x317   :  { %v13869_v13 = vadd.f32 %v4014_v10, %v13388_v29  ;;  %v13872_v6 = vadd.f32 %v4151_v62, %v13644_v7  ;;  %v3883_v19 = vadd.f32 %v13410_v21, %v3129_v45  ;;  %v3885_v29 = vadd.f32 %v13673_v31, %v16787_v4  ;;  %v16792_v4 = vld [vmem:[#allocation116_spill] sm:$0xff] }
 0x318   :  { %v4016_v2 = vpop.f32.mrf.mxu0  ;;  %v4153_v53 = vpop.f32.mrf.mxu1 }
 0x319   :  { %16784 = vst [vmem:[#allocation105_spill] sm:$0xff] %v13872_v6  ;;  %v13877_v46 = vadd.f32 %v4016_v2, %v13396_v51  ;;  %v13879_v49 = vadd.f32 %v4153_v53, %v3879_v20  ;;  %v16790_v51 = vld [vmem:[#allocation114_spill] sm:$0xff] }
 0x31a   :  { %v4020_v42 = vpop.f32.mrf.mxu0  ;;  %v4157_v58 = vpop.f32.mrf.mxu1  ;;  %v3135_v2 = vadd.f32 %v16790_v51, %v16789_v63  ;;  %v16795_v51 = vld [vmem:[#allocation74_spill] sm:$0xff] }
 0x31b   :  { %v13885_v7 = vadd.f32 %v4020_v42, %v13404_v26  ;;  %v13888_v10 = vadd.f32 %v4157_v58, %v13668_v48  ;;  %v16791_v58 = vld [vmem:[#allocation73_spill] sm:$0xff] }
 0x31c   :  { %v4022_v62 = vpop.f32.mrf.mxu0  ;;  %v4159_v17 = vpop.f32.mrf.mxu1  ;;  %v3889_v45 = vadd.f32 %v13426_v32, %v3135_v2  ;;  %v16796_v2 = vld [vmem:[#allocation118_spill] sm:$0xff] }
 0x31d   :  { %16788 = vst [vmem:[#allocation107_spill] sm:$0xff] %v13888_v10  ;;  %v13892_v20 = vadd.f32 %v4022_v62, %v3883_v19  ;;  %v13894_v53 = vadd.f32 %v4159_v17, %v3885_v29  ;;  %v3141_v10 = vadd.f32 %v16792_v4, %v16791_v58  ;;  %v16799_v4 = vld [vmem:[#allocation75_spill] sm:$0xff] }
 0x31e   :  { %v4026_v6 = vpop.f32.mrf.mxu0  ;;  %v4163_v21 = vpop.f32.mrf.mxu1 }
 0x31f   :  { %v13898_v31 = vadd.f32 %v4026_v6, %v13420_v34  ;;  %v13901_v26 = vadd.f32 %v4163_v21, %v13687_v54  ;;  %v3895_v32 = vadd.f32 %v13442_v60, %v3141_v10  ;;  %v3147_v21 = vadd.f32 %v16796_v2, %v16795_v51 }
 0x320   :  { %v4028_v48 = vpop.f32.mrf.mxu0  ;;  %v4165_v42 = vpop.f32.mrf.mxu1 }
 0x321   :  { %v13905_v63 = vadd.f32 %v4028_v48, %v3889_v45  ;;  %v13908_v19 = vadd.f32 %v4165_v42, %v13705_v12  ;;  %v3901_v60 = vadd.f32 %v13458_v36, %v3147_v21  ;;  %v16803_v21 = vld [vmem:[#allocation76_spill] sm:$0xff] }
 0x322   :  { %v4032_v29 = vpop.f32.mrf.mxu0  ;;  %v4169_v62 = vpop.f32.mrf.mxu1 }
 0x323   :  { %16793 = vst [vmem:[#allocation109_spill] sm:$0xff] %v13908_v19  ;;  %v13912_v34 = vadd.f32 %v4032_v29, %v13436_v8  ;;  %v13915_v54 = vadd.f32 %v4169_v62, %v13715_v27  ;;  %v16800_v29 = vld [vmem:[#allocation120_spill] sm:$0xff]  ;;  %v16837_v19 = vld [vmem:[#allocation131_spill] sm:$0xff] }
 0x324   :  { %v4034_v6 = vpop.f32.mrf.mxu0  ;;  %v4171_v17 = vpop.f32.mrf.mxu1  ;;  %v3153_v62 = vadd.f32 %v16800_v29, %v16799_v4 }
 0x325   :  { %16794 = vst [vmem:[#allocation111_spill] sm:$0xff] %v13915_v54  ;;  %v13919_v45 = vadd.f32 %v4034_v6, %v3895_v32  ;;  %v13922_v12 = vadd.f32 %v4171_v17, %v13734_v30  ;;  %v16836_v54 = vld [vmem:[#allocation94_spill] sm:$0xff] }
 0x326   :  { %v4038_v48 = vpop.f32.mrf.mxu0  ;;  %v4175_v42 = vpop.f32.mrf.mxu1  ;;  %v3907_v36 = vadd.f32 %v13474_v47, %v3153_v62  ;;  %v16807_v62 = vld [vmem:[#allocation78_spill] sm:$0xff] }
 0x327   :  { %16797 = vst [vmem:[#allocation71_spill] sm:$0xff] %v13922_v12  ;;  %v13926_v8 = vadd.f32 %v4038_v48, %v13452_v37  ;;  %v13929_v27 = vadd.f32 %v4175_v42, %v13747_v38  ;;  %v16804_v48 = vld [vmem:[#allocation122_spill] sm:$0xff] }
 0x328   :  { %v4040_v10 = vpop.f32.mrf.mxu0  ;;  %v4177_v58 = vpop.f32.mrf.mxu1  ;;  %v3159_v42 = vadd.f32 %v16804_v48, %v16803_v21  ;;  %v16831_v12 = vld [vmem:[#allocation130_spill] sm:$0xff] }
 0x329   :  { %16798 = vst [vmem:[#allocation112_spill] sm:$0xff] %v13929_v27  ;;  %v13933_v32 = vadd.f32 %v4040_v10, %v3901_v60  ;;  %v13936_v30 = vadd.f32 %v4177_v58, %v13766_v55  ;;  %v16830_v27 = vld [vmem:[#allocation92_spill] sm:$0xff] }
 0x32a   :  { %v4044_v6 = vpop.f32.mrf.mxu0  ;;  %v4181_v17 = vpop.f32.mrf.mxu1  ;;  %v3913_v47 = vadd.f32 %v13499_v56, %v3159_v42  ;;  %v16811_v42 = vld [vmem:[#allocation80_spill] sm:$0xff] }
 0x32b   :  { %16801 = vst [vmem:[#allocation113_spill] sm:$0xff] %v13936_v30  ;;  %v13940_v37 = vadd.f32 %v4044_v6, %v13468_v39  ;;  %v13943_v38 = vadd.f32 %v4181_v17, %v13779_v50  ;;  %v16808_v6 = vld [vmem:[#allocation123_spill] sm:$0xff]  ;;  %v16827_v30 = vld [vmem:[#allocation129_spill] sm:$0xff] }
 0x32c   :  { %v4046_v51 = vpop.f32.mrf.mxu0  ;;  %v4183_v2 = vpop.f32.mrf.mxu1  ;;  %v3165_v17 = vadd.f32 %v16808_v6, %v16807_v62 }
 0x32d   :  { %16802 = vst [vmem:[#allocation72_spill] sm:$0xff] %v13943_v38  ;;  %v13947_v60 = vadd.f32 %v4046_v51, %v3907_v36  ;;  %v13950_v55 = vadd.f32 %v4183_v2, %v13791_v3  ;;  %v16826_v38 = vld [vmem:[#allocation90_spill] sm:$0xff] }
 0x32e   :  { %v4050_v10 = vpop.f32.mrf.mxu0  ;;  %v4187_v58 = vpop.f32.mrf.mxu1  ;;  %v3919_v56 = vadd.f32 %v13525_v22, %v3165_v17  ;;  %v16815_v17 = vld [vmem:[#allocation82_spill] sm:$0xff] }
 0x32f   :  { %16805 = vst [vmem:[#allocation114_spill] sm:$0xff] %v13950_v55  ;;  %v13954_v39 = vadd.f32 %v4050_v10, %v13490_v9  ;;  %v13957_v50 = vadd.f32 %v4187_v58, %v13794_v25  ;;  %v16812_v10 = vld [vmem:[#allocation125_spill] sm:$0xff]  ;;  %v16824_v55 = vld [vmem:[#allocation110_spill] sm:$0xff] }
 0x330   :  { %v4052_v4 = vpop.f32.mrf.mxu0  ;;  %v4189_v29 = vpop.f32.mrf.mxu1  ;;  %v3171_v58 = vadd.f32 %v16812_v10, %v16811_v42 }
 0x331   :  { %16806 = vst [vmem:[#allocation73_spill] sm:$0xff] %v13957_v50  ;;  %v13961_v36 = vadd.f32 %v4052_v4, %v3913_v47  ;;  %v13964_v3 = vadd.f32 %v4189_v29, %v13803_v15 }
 0x332   :  { %v4056_v51 = vpop.f32.mrf.mxu0  ;;  %v4193_v2 = vpop.f32.mrf.mxu1  ;;  %v3925_v22 = vadd.f32 %v13558_v5, %v3171_v58  ;;  %v16817_v5 = vld [vmem:[#allocation138_spill] sm:$0xff] }
 0x333   :  { %16809 = vst [vmem:[#allocation116_spill] sm:$0xff] %v13964_v3  ;;  %v13968_v9 = vadd.f32 %v4056_v51, %v13519_v43  ;;  %v13971_v25 = vadd.f32 %v4193_v2, %v13806_v16  ;;  %v3379_v51 = vadd.f32 %v13338_v24, %v16815_v17 }
 0x334   :  { %v4058_v21 = vpop.f32.mrf.mxu0  ;;  %v4195_v48 = vpop.f32.mrf.mxu1 }
 0x335   :  { %16810 = vst [vmem:[#allocation74_spill] sm:$0xff] %v13971_v25  ;;  %v13975_v47 = vadd.f32 %v4058_v21, %v3919_v56  ;;  %v13978_v15 = vadd.f32 %v4195_v48, %v13815_v44  ;;  %v3863_v48 = vadd.f32 %v16817_v5, %v3379_v51  ;;  %v16823_v25 = vld [vmem:[#allocation128_spill] sm:$0xff] }
 0x336   :  { %v4062_v4 = vpop.f32.mrf.mxu0  ;;  %v4199_v29 = vpop.f32.mrf.mxu1 }
 0x337   :  { %16813 = vst [vmem:[#allocation118_spill] sm:$0xff] %v13978_v15  ;;  %v13982_v43 = vadd.f32 %v4062_v4, %v13548_v18  ;;  %v13985_v16 = vadd.f32 %v4199_v29, %v13818_v33  ;;  %v16818_v29 = vld [vmem:[#allocation86_spill] sm:$0xff] }
 0x338   :  { %v4064_v62 = vpop.f32.mrf.mxu0  ;;  %v4201_v6 = vpop.f32.mrf.mxu1 }
 0x339   :  { %16814 = vst [vmem:[#allocation75_spill] sm:$0xff] %v13985_v16  ;;  %v13989_v2 = vadd.f32 %v4064_v62, %v3925_v22  ;;  %v13992_v44 = vadd.f32 %v4201_v6, %v13825_v23  ;;  %v16819_v22 = vld [vmem:[#allocation127_spill] sm:$0xff]  ;;  %v16822_v16 = vld [vmem:[#allocation88_spill] sm:$0xff] }
 0x33a   :  { %v13994_v56 = vpop.f32.mrf.mxu0  ;;  %v4482_v21 = vpop.f32.mrf.mxu1  ;;  %v3391_v62 = vadd.f32 %v16819_v22, %v16818_v29  ;;  %v3397_v15 = vadd.f32 %v16823_v25, %v16822_v16  ;;  %v3403_v25 = vadd.f32 %v16827_v30, %v16826_v38  ;;  %v3409_v30 = vadd.f32 %v16831_v12, %v16830_v27 }
 0x33b   :  { %16816 = vst [vmem:[#allocation120_spill] sm:$0xff] %v13992_v44  ;;  %v13998_v18 = vadd.f32 %v4482_v21, %v13830_v35  ;;  %v16820_v35 = vld [vmem:[#allocation108_spill] sm:$0xff]  ;;  %v16821_v21 = vld [vmem:[#allocation85_spill] sm:$0xff]  ;;  %v3415_v12 = vadd.f32 %v16837_v19, %v16836_v54 }
 0x33c   :  { %v4272_v33 = vpop.f32.mrf.mxu0  ;;  %v14000_v42 = vpop.f32.mrf.mxu1  ;;  %v3875_v51 = vadd.f32 %v16820_v35, %v3391_v62  ;;  %v3881_v62 = vadd.f32 %v16824_v55, %v3397_v15  ;;  %v16825_v35 = vld [vmem:[#allocation87_spill] sm:$0xff]  ;;  %v16829_v15 = vld [vmem:[#allocation89_spill] sm:$0xff] }
 0x33d   :  { %v14002_v10 = vadd.f32 %v4272_v33, %v3863_v48 }
 0x33e   :  { %v14004_v58 = vpop.f32.mrf.mxu0  ;;  %v14006_v24 = vpop.f32.mrf.mxu1 }
 0x340   :  { %v14008_v4 = vpop.f32.mrf.mxu0  ;;  %v14010_v23 = vpop.f32.mrf.mxu1 }
 0x342   :  { %v4282_v6 = vpop.f32.mrf.mxu0 }
 0x343   :  { %v4494_v17 = vpop.f32.mrf.mxu1  ;;  %v14016_v5 = vadd.f32 %v4282_v6, %v16821_v21 }
 0x344   :  { %v14019_v48 = vadd.f32 %v4494_v17, %v13856_v11  ;;  %v4284_v33 = vpop.f32.mrf.mxu0 }
 0x345   :  { %v4496_v44 = vpop.f32.mrf.mxu1  ;;  %v14023_v3 = vadd.f32 %v4284_v33, %v3875_v51  ;;  %v16828_v33 = vld [vmem:[#allocation139_spill] sm:$0xff] }
 0x346   :  { %v14026_v50 = vadd.f32 %v4496_v44, %v13862_v28  ;;  %v4288_v29 = vpop.f32.mrf.mxu0  ;;  %v3887_v55 = vadd.f32 %v16828_v33, %v3403_v25  ;;  %v16833_v33 = vld [vmem:[#allocation91_spill] sm:$0xff] }
 0x347   :  { %v4500_v22 = vpop.f32.mrf.mxu1  ;;  %v14030_v6 = vadd.f32 %v4288_v29, %v16825_v35 }
 0x348   :  { %v14033_v11 = vadd.f32 %v4500_v22, %v13869_v13  ;;  %v4290_v17 = vpop.f32.mrf.mxu0 }
 0x349   :  { %v4502_v21 = vpop.f32.mrf.mxu1  ;;  %v14037_v16 = vadd.f32 %v4290_v17, %v3881_v62 }
 0x34a   :  { %v14040_v28 = vadd.f32 %v4502_v21, %v13877_v46  ;;  %v4294_v44 = vpop.f32.mrf.mxu0  ;;  %v16832_v21 = vld [vmem:[#allocation140_spill] sm:$0xff] }
 0x34b   :  { %v4506_v51 = vpop.f32.mrf.mxu1  ;;  %v14044_v29 = vadd.f32 %v4294_v44, %v16829_v15  ;;  %v3893_v25 = vadd.f32 %v16832_v21, %v3409_v30  ;;  %v16839_v21 = vld [vmem:[#allocation93_spill] sm:$0xff] }
 0x34c   :  { %v14047_v13 = vadd.f32 %v4506_v51, %v13885_v7  ;;  %v4296_v22 = vpop.f32.mrf.mxu0 }
 0x34d   :  { %v4508_v35 = vpop.f32.mrf.mxu1  ;;  %v14051_v38 = vadd.f32 %v4296_v22, %v3887_v55 }
 0x34e   :  { %v14054_v46 = vadd.f32 %v4508_v35, %v13892_v20  ;;  %v4300_v62 = vpop.f32.mrf.mxu0  ;;  %v16838_v35 = vld [vmem:[#allocation115_spill] sm:$0xff] }
 0x34f   :  { %v4512_v17 = vpop.f32.mrf.mxu1  ;;  %v14058_v44 = vadd.f32 %v4300_v62, %v16833_v33  ;;  %v3899_v30 = vadd.f32 %v16838_v35, %v3415_v12  ;;  %v16845_v35 = vld [vmem:[#allocation95_spill] sm:$0xff] }
 0x350   :  { %v14061_v7 = vadd.f32 %v4512_v17, %v13898_v31  ;;  %v4302_v51 = vpop.f32.mrf.mxu0 }
 0x351   :  { %16834 = vst [vmem:[#allocation76_spill] sm:$0xff] %v14058_v44  ;;  %v4514_v15 = vpop.f32.mrf.mxu1  ;;  %v14065_v27 = vadd.f32 %v4302_v51, %v3893_v25  ;;  %v16843_v44 = vld [vmem:[#allocation132_spill] sm:$0xff] }
 0x352   :  { %16835 = vst [vmem:[#allocation122_spill] sm:$0xff] %v14061_v7  ;;  %v14068_v20 = vadd.f32 %v4514_v15, %v13905_v63  ;;  %v4306_v55 = vpop.f32.mrf.mxu0  ;;  %v16842_v7 = vld [vmem:[#allocation96_spill] sm:$0xff]  ;;  %v16844_v15 = vld [vmem:[#allocation117_spill] sm:$0xff] }
 0x353   :  { %v4518_v22 = vpop.f32.mrf.mxu1  ;;  %v14072_v62 = vadd.f32 %v4306_v55, %v16839_v21  ;;  %v3421_v19 = vadd.f32 %v16843_v44, %v16842_v7 }
 0x354   :  { %v14075_v31 = vadd.f32 %v4518_v22, %v13912_v34  ;;  %v4308_v17 = vpop.f32.mrf.mxu0 }
 0x355   :  { %16840 = vst [vmem:[#allocation78_spill] sm:$0xff] %v14072_v62  ;;  %v4520_v33 = vpop.f32.mrf.mxu1  ;;  %v14079_v54 = vadd.f32 %v4308_v17, %v3899_v30  ;;  %v3905_v12 = vadd.f32 %v16844_v15, %v3421_v19  ;;  %v16849_v62 = vld [vmem:[#allocation133_spill] sm:$0xff] }
 0x356   :  { %16841 = vst [vmem:[#allocation123_spill] sm:$0xff] %v14075_v31  ;;  %v14082_v63 = vadd.f32 %v4520_v33, %v13919_v45  ;;  %v4312_v25 = vpop.f32.mrf.mxu0  ;;  %v16848_v31 = vld [vmem:[#allocation98_spill] sm:$0xff]  ;;  %v16850_v33 = vld [vmem:[#allocation119_spill] sm:$0xff]  ;;  %v16851_v15 = vld [vmem:[#allocation97_spill] sm:$0xff] }
 0x357   :  { %v4524_v51 = vpop.f32.mrf.mxu1  ;;  %v14086_v55 = vadd.f32 %v4312_v25, %v16845_v35  ;;  %v3427_v44 = vadd.f32 %v16849_v62, %v16848_v31 }
 0x358   :  { %v14089_v34 = vadd.f32 %v4524_v51, %v13926_v8  ;;  %v4314_v22 = vpop.f32.mrf.mxu0 }
 0x359   :  { %16846 = vst [vmem:[#allocation80_spill] sm:$0xff] %v14086_v55  ;;  %v4526_v21 = vpop.f32.mrf.mxu1  ;;  %v14093_v7 = vadd.f32 %v4314_v22, %v3905_v12  ;;  %v3911_v19 = vadd.f32 %v16850_v33, %v3427_v44  ;;  %v16855_v55 = vld [vmem:[#allocation134_spill] sm:$0xff]  ;;  %v16857_v33 = vld [vmem:[#allocation99_spill] sm:$0xff] }
 0x35a   :  { %16847 = vst [vmem:[#allocation125_spill] sm:$0xff] %v14089_v34  ;;  %v14096_v45 = vadd.f32 %v4526_v21, %v13933_v32  ;;  %v4318_v30 = vpop.f32.mrf.mxu0  ;;  %v16854_v34 = vld [vmem:[#allocation100_spill] sm:$0xff]  ;;  %v16856_v21 = vld [vmem:[#allocation121_spill] sm:$0xff] }
 0x35b   :  { %v4530_v17 = vpop.f32.mrf.mxu1  ;;  %v14100_v25 = vadd.f32 %v4318_v30, %v16851_v15  ;;  %v3433_v62 = vadd.f32 %v16855_v55, %v16854_v34 }
 0x35c   :  { %v14103_v8 = vadd.f32 %v4530_v17, %v13940_v37  ;;  %v4320_v51 = vpop.f32.mrf.mxu0 }
 0x35d   :  { %16852 = vst [vmem:[#allocation82_spill] sm:$0xff] %v14100_v25  ;;  %v4532_v35 = vpop.f32.mrf.mxu1  ;;  %v14107_v31 = vadd.f32 %v4320_v51, %v3911_v19  ;;  %v3917_v44 = vadd.f32 %v16856_v21, %v3433_v62  ;;  %v16861_v25 = vld [vmem:[#allocation135_spill] sm:$0xff]  ;;  %v16863_v21 = vld [vmem:[#allocation101_spill] sm:$0xff] }
 0x35e   :  { %16853 = vst [vmem:[#allocation138_spill] sm:$0xff] %v14103_v8  ;;  %v14110_v32 = vadd.f32 %v4532_v35, %v13947_v60  ;;  %v4324_v12 = vpop.f32.mrf.mxu0  ;;  %v16860_v8 = vld [vmem:[#allocation102_spill] sm:$0xff]  ;;  %v16862_v35 = vld [vmem:[#allocation141_spill] sm:$0xff] }
 0x35f   :  { %v4536_v22 = vpop.f32.mrf.mxu1  ;;  %v14114_v30 = vadd.f32 %v4324_v12, %v16857_v33  ;;  %v3439_v55 = vadd.f32 %v16861_v25, %v16860_v8 }
 0x360   :  { %v14117_v37 = vadd.f32 %v4536_v22, %v13954_v39  ;;  %v4326_v17 = vpop.f32.mrf.mxu0 }
 0x361   :  { %16858 = vst [vmem:[#allocation86_spill] sm:$0xff] %v14114_v30  ;;  %v4538_v15 = vpop.f32.mrf.mxu1  ;;  %v14121_v34 = vadd.f32 %v4326_v17, %v3917_v44  ;;  %v3923_v62 = vadd.f32 %v16862_v35, %v3439_v55  ;;  %v16866_v30 = vld [vmem:[#allocation136_spill] sm:$0xff] }
 0x362   :  { %16859 = vst [vmem:[#allocation127_spill] sm:$0xff] %v14117_v37  ;;  %v14124_v60 = vadd.f32 %v4538_v15, %v13961_v36  ;;  %v4330_v19 = vpop.f32.mrf.mxu0  ;;  %v16865_v37 = vld [vmem:[#allocation104_spill] sm:$0xff]  ;;  %v5009_v15 = vlaneseq }
 0x363   :  { %v4542_v51 = vpop.f32.mrf.mxu1  ;;  %v14128_v12 = vadd.f32 %v4330_v19, %v16863_v21  ;;  %v3445_v25 = vadd.f32 %v16866_v30, %v16865_v37  ;;  %v16868_v19 = vld [vmem:[#allocation103_spill] sm:$0xff] }
 0x364   :  { %v14131_v39 = vadd.f32 %v4542_v51, %v13968_v9  ;;  %v4332_v22 = vpop.f32.mrf.mxu0 }
 0x365   :  { %v4544_v33 = vpop.f32.mrf.mxu1  ;;  %v14135_v8 = vadd.f32 %v4332_v22, %v3923_v62  ;;  %v3929_v55 = vadd.f32 %v13822_v14, %v3445_v25  ;;  %v16873_v62 = vld [vmem:[#allocation84_spill] sm:$0xff]  ;;  %v16874_v22 = vld [vmem:[#allocation126_spill] sm:$0xff] }
 0x366   :  { %16864 = vst [vmem:[#allocation108_spill] sm:$0xff] %v14131_v39  ;;  %v14138_v36 = vadd.f32 %v4544_v33, %v13975_v47  ;;  %v4336_v44 = vpop.f32.mrf.mxu0  ;;  %v16871_v39 = vld [vmem:[#allocation137_spill] sm:$0xff]  ;;  %v3385_v33 = vadd.f32 %v16874_v22, %v16873_v62 }
 0x367   :  { %16867 = vst [vmem:[#allocation85_spill] sm:$0xff] %v14135_v8  ;;  %v4548_v17 = vpop.f32.mrf.mxu1  ;;  %v14142_v35 = vadd.f32 %v4336_v44, %v16868_v19  ;;  %v4345_v30 = vadd.f32 %v13994_v56, %v16871_v39  ;;  %v5010_v44 = vshrl.u32 %v5009_v15, 7  ;;  %v16875_v19 = vld [vmem:[#allocation106_spill] sm:$0xff] }
 0x368   :  { %v14145_v9 = vadd.f32 %v4548_v17, %v13982_v43  ;;  %v4338_v51 = vpop.f32.mrf.mxu0  ;;  %v4828_v43 = vadd.f32 %v14000_v42, %v13836_v57 }
 0x369   :  { %16869 = vst [vmem:[#allocation88_spill] sm:$0xff] %v14142_v35  ;;  %v4550_v21 = vpop.f32.mrf.mxu1  ;;  %v14149_v37 = vadd.f32 %v4338_v51, %v3929_v55  ;;  %v16876_v51 = vld [vmem:[#allocation83_spill] sm:$0xff]  ;;  %v5011_v62 = vsub.s32 0, %v5010_v44  ;;  %v5019_v15 = vsub.s32 2, %v5010_v44  ;;  %v5015_v57 = vsub.s32 1, %v5010_v44  ;;  %v16880_v44 = vld [vmem:[#allocation38_spill] sm:$0xff] }
 0x36a   :  { %16870 = vst [vmem:[#allocation128_spill] sm:$0xff] %v14145_v9  ;;  %v14152_v47 = vadd.f32 %v4550_v21, %v13989_v2  ;;  %v4619_v14 = vpop.f32.mrf.mxu0  ;;  %v3869_v9 = vadd.f32 %v16875_v19, %v3385_v33  ;;  %v4351_v21 = vadd.f32 %v14004_v58, %v16876_v51  ;;  %v16878_v33 = vld [vmem:[#allocation10_spill] sm:$0xff] }
 0x36b   :  { %16872 = vst [vmem:[#allocation110_spill] sm:$0xff] %v14149_v37  ;;  %v4756_v25 = vpop.f32.mrf.mxu1  ;;  %v4829_v56 = vadd.f32 %v4619_v14, %v13833_v61  ;;  %v5007_v58 = vld [vmem:[%s16329_s3] sm:$0x7] }
 0x36c   :  { %v4831_v17 = vadd.f32 %v4756_v25, %v4345_v30  ;;  %v4621_v35 = vpop.f32.mrf.mxu0  ;;  %v4352_v42 = vadd.f32 %v14008_v4, %v3869_v9  ;;  %v16877_v30 = vld [vmem:[#allocation41_spill] sm:$0xff] }
 0x36d   :  { %v4758_v8 = vpop.f32.mrf.mxu1  ;;  %v4830_v2 = vadd.f32 %v4621_v35, %v13838_v1  ;;  %v16879_v25 = vmax.f32 %v16877_v30, %v16878_v33  ;;  %v4833_v1 = vadd.f32 %v14006_v24, %v13843_v52  ;;  %v16886_v30 = vld [vmem:[#allocation47_spill] sm:$0xff] }
 0x36e   :  { %v4936_v39 = vmax.f32 %v4828_v43, %v4831_v17  ;;  %v4832_v55 = vadd.f32 %v4758_v8, %v14002_v10  ;;  %v4625_v22 = vpop.f32.mrf.mxu0  ;;  %v4834_v10 = vadd.f32 %v14010_v23, %v13849_v40  ;;  %v16881_v43 = vld [vmem:[#allocation43_spill] sm:$0xff] }
 0x36f   :  { %v4762_v37 = vpop.f32.mrf.mxu1  ;;  %v4935_v61 = vmax.f32 %v13998_v18, %v4830_v2  ;;  %v4835_v8 = vadd.f32 %v4625_v22, %v13846_v41  ;;  %v16882_v17 = vmax.f32 %v16880_v44, %v16881_v43  ;;  %v14190_v22 = vrot.slane %v5007_v58, %v5011_v62  ;;  %v16887_v33 = vld [vmem:[#allocation11_spill] sm:$0xff]  ;;  %v16895_v62 = vld [vmem:[#allocation124_spill] sm:$0xff] }
 0x370   :  { %v4972_v19 = vmax.f32 %v16879_v25, %v4936_v39  ;;  %v4937_v14 = vmax.f32 %v4829_v56, %v4832_v55  ;;  %v4837_v4 = vadd.f32 %v4762_v37, %v4351_v21  ;;  %v4627_v35 = vpop.f32.mrf.mxu0  ;;  %v16883_v56 = vld [vmem:[#allocation40_spill] sm:$0xff]  ;;  %v16884_v39 = vld [vmem:[#allocation22_spill] sm:$0xff]  ;;  %v14188_v21 = vrot.slane %v5007_v58, %v5015_v57 }
 0x371   :  { %v4764_v9 = vpop.f32.mrf.mxu1  ;;  %v14180_v18 = vmax.f32 %v16882_v17, %v4935_v61  ;;  %v16885_v52 = vmax.f32 %v16883_v56, %v16884_v39  ;;  %v4836_v40 = vadd.f32 %v4627_v35, %v13851_v59  ;;  %v16888_v25 = vmax.f32 %v16886_v30, %v16887_v33  ;;  %v16889_v59 = vld [vmem:[#allocation44_spill] sm:$0xff] }
 0x372   :  { %v4838_v23 = vadd.f32 %v4764_v9, %v4352_v42  ;;  %v4939_v2 = vmax.f32 %v4834_v10, %v4837_v4  ;;  %v4631_v55 = vpop.f32.mrf.mxu0  ;;  %v14196_v17 = vrot.slane %v5007_v58, %v5019_v15  ;;  %v16890_v42 = vld [vmem:[#allocation48_spill] sm:$0xff] }
 0x373   :  { %v14185_v24 = vmax.f32 %v16885_v52, %v4937_v14  ;;  %v4768_v51 = vpop.f32.mrf.mxu1  ;;  %v4938_v41 = vmax.f32 %v4833_v1, %v4836_v40  ;;  %v16891_v10 = vmax.f32 %v16889_v59, %v16890_v42  ;;  %v16892_v1 = vld [vmem:[#allocation46_spill] sm:$0xff]  ;;  %v4841_v9 = vadd.f32 %v4631_v55, %v16895_v62  ;;  %v16897_v55 = vld [vmem:[#allocation12_spill] sm:$0xff]  ;;  %v16900_v59 = vld [vmem:[#allocation53_spill] sm:$0xff] }
 0x374   :  { %v4940_v37 = vmax.f32 %v4835_v8, %v4838_v23  ;;  %v4975_v61 = vmax.f32 %v16888_v25, %v4939_v2  ;;  %v4843_v44 = vadd.f32 %v4768_v51, %v14016_v5  ;;  %v4633_v14 = vpop.f32.mrf.mxu0  ;;  %v16893_v8 = vld [vmem:[#allocation23_spill] sm:$0xff]  ;;  %v5025_v51 = vadd.f32 %v14188_v21, %v4972_v19  ;;  %v16899_v19 = vld [vmem:[#allocation49_spill] sm:$0xff] }
 0x375   :  { %v4770_v43 = vpop.f32.mrf.mxu1  ;;  %v4974_v4 = vmax.f32 %v16891_v10, %v4938_v41  ;;  %v16894_v57 = vmax.f32 %v16892_v1, %v16893_v8  ;;  %v4842_v39 = vadd.f32 %v4633_v14, %v13864_v0  ;;  %v16896_v41 = vld [vmem:[#allocation51_spill] sm:$0xff]  ;;  %v16901_v42 = vmax.f32 %v16899_v19, %v16900_v59 }
 0x376   :  { %v4942_v56 = vmax.f32 %v14026_v50, %v4843_v44  ;;  %v4844_v5 = vadd.f32 %v4770_v43, %v14023_v3  ;;  %v4637_v52 = vpop.f32.mrf.mxu0  ;;  %v5028_v15 = vadd.f32 %v14188_v21, %v4975_v61 }
 0x377   :  { %v4976_v35 = vmax.f32 %v16894_v57, %v4940_v37  ;;  %v4774_v40 = vpop.f32.mrf.mxu1  ;;  %v5027_v58 = vadd.f32 %v14190_v22, %v4974_v4  ;;  %v16898_v37 = vmax.f32 %v16896_v41, %v16897_v55  ;;  %v4941_v0 = vmax.f32 %v14019_v48, %v4842_v39  ;;  %v16902_v4 = vld [vmem:[#allocation50_spill] sm:$0xff]  ;;  %v16903_v48 = vld [vmem:[#allocation52_spill] sm:$0xff]  ;;  %v16905_v57 = vld [vmem:[#allocation105_spill] sm:$0xff] }
 0x378   :  { %v4849_v2 = vadd.f32 %v4774_v40, %v14030_v6  ;;  %v4943_v3 = vmax.f32 %v4841_v9, %v4844_v5  ;;  %v4639_v30 = vpop.f32.mrf.mxu0  ;;  %v5064_v25 = vmax.f32 %v5028_v15, 0.0  ;;  %v5111_v6 = vld [vmem:[%s16328_s4 + $0x78] sm:$0xff]  ;;  %v16904_v1 = vmax.f32 %v16902_v4, %v16903_v48  ;;  %v16907_v39 = vld [vmem:[#allocation24_spill] sm:$0xff] }
 0x379   :  { %v5029_v23 = vadd.f32 %v14196_v17, %v4976_v35  ;;  %v14216_v50 = vmax.f32 %v16898_v37, %v4942_v56  ;;  %v4776_v33 = vpop.f32.mrf.mxu1  ;;  %v5063_v61 = vmax.f32 %v5027_v58, 0.0  ;;  %v4848_v43 = vadd.f32 %v4639_v30, %v13879_v49  ;;  %v5143_v49 = vld [vmem:[%s16328_s4 + $0x178] sm:$0xff]  ;;  %v16906_v56 = vld [vmem:[#allocation14_spill] sm:$0xff]  ;;  %v16909_v58 = vld [vmem:[#allocation107_spill] sm:$0xff] }
 0x37a   :  { %v4945_v14 = vmax.f32 %v14040_v28, %v4849_v2  ;;  %v4977_v10 = vmax.f32 %v16901_v42, %v4941_v0  ;;  %v4979_v8 = vmax.f32 %v16904_v1, %v4943_v3  ;;  %v4847_v35 = vadd.f32 %v4637_v52, %v16905_v57  ;;  %5257 = vmatprep.mubr.f32.mxu0 %v5064_v25  ;;  %v4643_v28 = vpop.f32.mrf.mxu0  ;;  %v16910_v3 = vld [vmem:[#allocation54_spill] sm:$0xff]  ;;  %v16911_v30 = vld [vmem:[#allocation39_spill] sm:$0xff]  ;;  %v16916_v4 = vld [vmem:[#allocation4_spill] sm:$0xff] }
 0x37b   :  { %v5065_v44 = vmax.f32 %v5029_v23, 0.0  ;;  %v4850_v62 = vadd.f32 %v4776_v33, %v14037_v16  ;;  %v4780_v9 = vpop.f32.mrf.mxu1  ;;  %v16908_v5 = vmax.f32 %v16906_v56, %v16907_v39  ;;  %v4944_v15 = vmax.f32 %v14033_v11, %v4848_v43  ;;  %5258 = vmatmul.mubr.f32.vlgmr.msra.gmra.mxu0 %v5063_v61  ;;  %v5126_v16 = vld [vmem:[%s16328_s4 + $0xf0] sm:$0xff]  ;;  %v16917_v48 = vld [vmem:[#allocation25_spill] sm:$0xff] }
 0x37c   :  { %v4853_v23 = vadd.f32 %v4643_v28, %v16909_v58  ;;  %v4855_v2 = vadd.f32 %v4780_v9, %v14044_v29  ;;  %v14245_v52 = vadd.f32 %v14190_v22, %v4977_v10  ;;  %v14248_v41 = vadd.f32 %v14196_v17, %v4979_v8  ;;  %8579 = vmatpush3.msra.mxu0 %v5111_v6  ;;  %v4645_v37 = vpop.f32.mrf.mxu0  ;;  %v5110_v43 = vld [vmem:[%s16328_s4 + $0x70] sm:$0xff]  ;;  %v16914_v6 = vld [vmem:[#allocation13_spill] sm:$0xff]  ;;  %v5109_v28 = vld [vmem:[%s16328_s4 + $0x68] sm:$0xff] }
 0x37d   :  { %v4981_v40 = vmax.f32 %v16908_v5, %v4945_v14  ;;  %v4946_v55 = vmax.f32 %v4847_v35, %v4850_v62  ;;  %9188 = vmatmul.mubr.f32.vlgmr.msra.gmra.mxu1 %v5065_v44  ;;  %v4782_v11 = vpop.f32.mrf.mxu1  ;;  %v5061_v0 = vmax.f32 %v5025_v51, 0.0  ;;  %v16912_v29 = vmax.f32 %v16910_v3, %v16911_v30  ;;  %v5142_v44 = vld [vmem:[%s16328_s4 + $0x170] sm:$0xff]  ;;  %v16913_v51 = vld [vmem:[#allocation2_spill] sm:$0xff]  ;;  %8580 = vmatprep.subr.mxu0 %v5126_v16  ;;  %v5141_v9 = vld [vmem:[%s16328_s4 + $0x168] sm:$0xff] }
 0x37e   :  { %v4948_v25 = vmax.f32 %v14054_v46, %v4855_v2  ;;  %9191 = vmatpush3.msra.mxu1 %v5143_v49  ;;  %v4854_v61 = vadd.f32 %v4645_v37, %v13894_v53  ;;  %v4856_v14 = vadd.f32 %v4782_v11, %v14051_v38  ;;  %v16915_v19 = vmax.f32 %v16913_v51, %v16914_v6  ;;  %v4649_v46 = vpop.f32.mrf.mxu0  ;;  %v5125_v53 = vld [vmem:[%s16328_s4 + $0xe8] sm:$0xff]  ;;  %v16920_v39 = vld [vmem:[#allocation76_spill] sm:$0xff]  ;;  %v16925_v37 = vld [vmem:[#allocation26_spill] sm:$0xff] }
 0x37f   :  { %v4980_v33 = vmax.f32 %v16912_v29, %v4944_v15  ;;  %5397 = vmatprep.mubr.f32.mxu0 %v5061_v0  ;;  %v4786_v42 = vpop.f32.mrf.mxu1  ;;  %v14269_v38 = vadd.f32 %v14188_v21, %v4981_v40  ;;  %v16918_v1 = vmax.f32 %v16916_v4, %v16917_v48  ;;  %v16919_v62 = vmov 0.0   ;;  %8581 = vmatpush3.msra.mxu0 %v5110_v43  ;;  %v5124_v15 = vld [vmem:[%s16328_s4 + $0xe0] sm:$0xff]  ;;  %v16921_v58 = vld [vmem:[#allocation3_spill] sm:$0xff]  ;;  %v5123_v43 = vld [vmem:[%s16328_s4 + $0xd8] sm:$0xff] }
 0x380   :  { %v4982_v59 = vmax.f32 %v16915_v19, %v4946_v55  ;;  %v4947_v57 = vmax.f32 %v14047_v13, %v4854_v61  ;;  %v4949_v35 = vmax.f32 %v4853_v23, %v4856_v14  ;;  %9192 = vmatprep.subr.mxu1 %v16919_v62  ;;  %v4859_v56 = vadd.f32 %v4649_v46, %v13901_v26  ;;  %v4651_v5 = vpop.f32.mrf.mxu0  ;;  %v16922_v23 = vld [vmem:[#allocation16_spill] sm:$0xff]  ;;  %v16924_v55 = vld [vmem:[#allocation15_spill] sm:$0xff]  ;;  %v16927_v26 = vld [vmem:[#allocation109_spill] sm:$0xff] }
 0x381   :  { %v14272_v10 = vadd.f32 %v14190_v22, %v4980_v33  ;;  %v4984_v8 = vmax.f32 %v16918_v1, %v4948_v25  ;;  %9193 = vmatpush3.msra.mxu1 %v5142_v44  ;;  %v4861_v13 = vadd.f32 %v4786_v42, %v16920_v39  ;;  %v4788_v40 = vpop.f32.mrf.mxu1  ;;  %v16923_v2 = vmax.f32 %v16921_v58, %v16922_v23  ;;  %v5108_v30 = vld [vmem:[%s16328_s4 + $0x60] sm:$0xff]  ;;  %v16929_v42 = vld [vmem:[#allocation17_spill] sm:$0xff]  ;;  %v5138_v58 = vld [vmem:[%s16328_s4 + $0x150] sm:$0xff] }
 0x382   :  { %v14286_v49 = vadd.f32 %v14196_v17, %v4982_v59  ;;  %v16926_v11 = vmax.f32 %v16924_v55, %v16925_v37  ;;  %8582 = vmatprep.subr.mxu0 %v5125_v53  ;;  %9194 = vmatprep.subr.mxu1 %v16919_v62  ;;  %v4860_v3 = vadd.f32 %v4651_v5, %v16927_v26  ;;  %v5140_v29 = vld [vmem:[%s16328_s4 + $0x160] sm:$0xff]  ;;  %v4655_v61 = vpop.f32.mrf.mxu0  ;;  %v5139_v59 = vld [vmem:[%s16328_s4 + $0x158] sm:$0xff]  ;;  %v16930_v53 = vld [vmem:[#allocation27_spill] sm:$0xff] }
 0x383   :  { %v4983_v16 = vmax.f32 %v16923_v2, %v4947_v57  ;;  %v4951_v33 = vmax.f32 %v14068_v20, %v4861_v13  ;;  %8583 = vmatpush3.msra.mxu0 %v5109_v28  ;;  %9195 = vmatpush3.msra.mxu1 %v5141_v9  ;;  %v4862_v25 = vadd.f32 %v4788_v40, %v14065_v27  ;;  %v4792_v14 = vpop.f32.mrf.mxu1  ;;  %v16928_v20 = vld [vmem:[#allocation122_spill] sm:$0xff]  ;;  %v5107_v27 = vld [vmem:[%s16328_s4 + $0x58] sm:$0xff]  ;;  %v16938_v2 = vld [vmem:[#allocation28_spill] sm:$0xff] }
 0x384   :  { %v4985_v0 = vmax.f32 %v16926_v11, %v4949_v35  ;;  %v14313_v44 = vadd.f32 %v14188_v21, %v4984_v8  ;;  %v4950_v19 = vmax.f32 %v16928_v20, %v4860_v3  ;;  %8584 = vmatprep.subr.mxu0 %v5124_v15  ;;  %9196 = vmatprep.subr.mxu1 %v16919_v62  ;;  %v4657_v8 = vpop.f32.mrf.mxu0  ;;  %v5122_v35 = vld [vmem:[%s16328_s4 + $0xd0] sm:$0xff]  ;;  %v16932_v28 = vld [vmem:[#allocation42_spill] sm:$0xff]  ;;  %v16937_v23 = vld [vmem:[#allocation5_spill] sm:$0xff] }
 0x385   :  { %v14316_v51 = vadd.f32 %v14190_v22, %v4983_v16  ;;  %v14331_v46 = vadd.f32 %v14190_v22, %v14180_v18  ;;  %v16931_v4 = vmax.f32 %v16929_v42, %v16930_v53  ;;  %v4952_v1 = vmax.f32 %v4859_v56, %v4862_v25  ;;  %8585 = vmatpush3.msra.mxu0 %v5108_v30  ;;  %v4794_v57 = vpop.f32.mrf.mxu1  ;;  %v16933_v9 = vld [vmem:[#allocation6_spill] sm:$0xff]  ;;  %v16935_v18 = vld [vmem:[#allocation111_spill] sm:$0xff]  ;;  %v5106_v56 = vld [vmem:[%s16328_s4 + $0x50] sm:$0xff] }
 0x386   :  { %v14319_v6 = vadd.f32 %v14196_v17, %v4985_v0  ;;  %9197 = vmatpush3.msra.mxu1 %v5140_v29  ;;  %v16934_v39 = vmax.f32 %v16932_v28, %v16933_v9  ;;  %v4865_v5 = vadd.f32 %v4655_v61, %v16935_v18  ;;  %v16936_v40 = vld [vmem:[#allocation78_spill] sm:$0xff]  ;;  %8586 = vmatprep.subr.mxu0 %v5123_v43  ;;  %v16940_v37 = vld [vmem:[#allocation71_spill] sm:$0xff]  ;;  %v4661_v26 = vpop.f32.mrf.mxu0  ;;  %v16941_v25 = vld [vmem:[#allocation112_spill] sm:$0xff] }
 0x387   :  { %v14336_v48 = vmax.f32 %v16931_v4, %v4951_v33  ;;  %v4867_v15 = vadd.f32 %v4792_v14, %v16936_v40  ;;  %9198 = vmatprep.subr.mxu1 %v16919_v62  ;;  %v16939_v16 = vmax.f32 %v16937_v23, %v16938_v2  ;;  %8587 = vmatpush3.msra.mxu0 %v5107_v27  ;;  %v4798_v3 = vpop.f32.mrf.mxu1  ;;  %v5121_v30 = vld [vmem:[%s16328_s4 + $0xc8] sm:$0xff]  ;;  %v5120_v42 = vld [vmem:[%s16328_s4 + $0xc0] sm:$0xff]  ;;  %v16944_v4 = vld [vmem:[#allocation29_spill] sm:$0xff] }
 0x388   :  { %v4986_v13 = vmax.f32 %v16934_v39, %v4950_v19  ;;  %9199 = vmatpush3.msra.mxu1 %v5139_v59  ;;  %v4866_v11 = vadd.f32 %v4657_v8, %v16940_v37  ;;  %v4868_v0 = vadd.f32 %v4794_v57, %v14079_v54  ;;  %8588 = vmatprep.subr.mxu0 %v5122_v35  ;;  %v5105_v54 = vld [vmem:[%s16328_s4 + $0x48] sm:$0xff]  ;;  %v16946_v57 = vld [vmem:[#allocation80_spill] sm:$0xff]  ;;  %v16947_v28 = vld [vmem:[#allocation113_spill] sm:$0xff] }
 0x389   :  { %v4988_v55 = vmax.f32 %v16939_v16, %v4952_v1  ;;  %v4954_v33 = vmax.f32 %v14082_v63, %v4867_v15  ;;  %9200 = vmatprep.subr.mxu1 %v16919_v62  ;;  %v4871_v61 = vadd.f32 %v4661_v26, %v16941_v25  ;;  %v5137_v14 = vld [vmem:[%s16328_s4 + $0x148] sm:$0xff]  ;;  %8589 = vmatpush3.msra.mxu0 %v5106_v56  ;;  %v4663_v63 = vpop.f32.mrf.mxu0  ;;  %v4800_v59 = vpop.f32.mrf.mxu1  ;;  %v5104_v39 = vld [vmem:[%s16328_s4 + $0x40] sm:$0xff]  ;;  %v16951_v56 = vld [vmem:[#allocation45_spill] sm:$0xff] }
 0x38a   :  { %v14362_v29 = vadd.f32 %v14190_v22, %v4986_v13  ;;  %v16942_v20 = vld [vmem:[#allocation123_spill] sm:$0xff]  ;;  %v4955_v27 = vmax.f32 %v4865_v5, %v4868_v0  ;;  %9201 = vmatpush3.msra.mxu1 %v5138_v58  ;;  %v4873_v35 = vadd.f32 %v4798_v3, %v16946_v57  ;;  %8590 = vmatprep.subr.mxu0 %v5121_v30  ;;  %v5136_v13 = vld [vmem:[%s16328_s4 + $0x140] sm:$0xff]  ;;  %v16954_v3 = vld [vmem:[#allocation125_spill] sm:$0xff] }
 0x38b   :  { %v14374_v43 = vadd.f32 %v14196_v17, %v4988_v55  ;;  %v4953_v19 = vmax.f32 %v16942_v20, %v4866_v11  ;;  %v16943_v53 = vld [vmem:[#allocation7_spill] sm:$0xff]  ;;  %9202 = vmatprep.subr.mxu1 %v16919_v62  ;;  %v4872_v9 = vadd.f32 %v4663_v63, %v16947_v28  ;;  %v16948_v18 = vld [vmem:[#allocation18_spill] sm:$0xff]  ;;  %8591 = vmatpush3.msra.mxu0 %v5105_v54  ;;  %v4667_v55 = vpop.f32.mrf.mxu0  ;;  %v4804_v37 = vpop.f32.mrf.mxu1  ;;  %v5119_v11 = vld [vmem:[%s16328_s4 + $0xb8] sm:$0xff] }
 0x38c   :  { %v16945_v1 = vmax.f32 %v16943_v53, %v16944_v4  ;;  %v16949_v5 = vld [vmem:[#allocation19_spill] sm:$0xff]  ;;  %v16952_v58 = vld [vmem:[#allocation30_spill] sm:$0xff]  ;;  %9203 = vmatpush3.msra.mxu1 %v5137_v14  ;;  %v4874_v16 = vadd.f32 %v4800_v59, %v14093_v7  ;;  %v14406_v0 = vadd.f32 %v14196_v17, %v14185_v24  ;;  %v4957_v26 = vmax.f32 %v14096_v45, %v4873_v35  ;;  %v5103_v7 = vld [vmem:[%s16328_s4 + $0x38] sm:$0xff] }
 0x38d   :  { %v16950_v40 = vmax.f32 %v16948_v18, %v16949_v5  ;;  %v16953_v23 = vmax.f32 %v16951_v56, %v16952_v58  ;;  %v4956_v30 = vmax.f32 %v16954_v3, %v4872_v9  ;;  %8592 = vmatprep.subr.mxu0 %v5120_v42  ;;  %9204 = vmatprep.subr.mxu1 %v16919_v62  ;;  %v4669_v54 = vpop.f32.mrf.mxu0  ;;  %v4806_v14 = vpop.f32.mrf.mxu1  ;;  %v5118_v20 = vld [vmem:[%s16328_s4 + $0xb0] sm:$0xff]  ;;  %v16958_v42 = vld [vmem:[#allocation55_spill] sm:$0xff]  ;;  %v16959_v53 = vld [vmem:[#allocation57_spill] sm:$0xff] }
 0x38e   :  { %v14383_v8 = vmax.f32 %v16945_v1, %v4954_v33  ;;  %v5135_v33 = vld [vmem:[%s16328_s4 + $0x138] sm:$0xff]  ;;  %v4958_v45 = vmax.f32 %v4871_v61, %v4874_v16  ;;  %8593 = vmatpush3.msra.mxu0 %v5104_v39  ;;  %9205 = vmatpush3.msra.mxu1 %v5136_v13  ;;  %v16960_v4 = vmax.f32 %v16958_v42, %v16959_v53  ;;  %v16961_v57 = vld [vmem:[#allocation82_spill] sm:$0xff]  ;;  %v5102_v61 = vld [vmem:[%s16328_s4 + $0x30] sm:$0xff] }
 0x38f   :  { %v4989_v15 = vmax.f32 %v16950_v40, %v4953_v19  ;;  %v4991_v2 = vmax.f32 %v16953_v23, %v4955_v27  ;;  %v16955_v19 = vld [vmem:[#allocation8_spill] sm:$0xff]  ;;  %v16956_v27 = vld [vmem:[#allocation31_spill] sm:$0xff]  ;;  %v4879_v35 = vadd.f32 %v4804_v37, %v16961_v57  ;;  %8594 = vmatprep.subr.mxu0 %v5119_v11  ;;  %9206 = vmatprep.subr.mxu1 %v16919_v62  ;;  %v4673_v58 = vpop.f32.mrf.mxu0  ;;  %v4810_v23 = vpop.f32.mrf.mxu1  ;;  %v16972_v42 = vld [vmem:[#allocation86_spill] sm:$0xff] }
 0x390   :  { %v16957_v63 = vmax.f32 %v16955_v19, %v16956_v27  ;;  %v4992_v1 = vmax.f32 %v16960_v4, %v4956_v30  ;;  %v5134_v28 = vld [vmem:[%s16328_s4 + $0x130] sm:$0xff]  ;;  %8595 = vmatpush3.msra.mxu0 %v5103_v7  ;;  %9207 = vmatpush3.msra.mxu1 %v5135_v33  ;;  %v4880_v11 = vadd.f32 %v4806_v14, %v14107_v31  ;;  %v16967_v30 = vld [vmem:[#allocation138_spill] sm:$0xff] }
 0x391   :  { %v14418_v25 = vadd.f32 %v14190_v22, %v4989_v15  ;;  %v14421_v24 = vadd.f32 %v14196_v17, %v4991_v2  ;;  %v16962_v9 = vld [vmem:[#allocation56_spill] sm:$0xff]  ;;  %v16966_v15 = vld [vmem:[#allocation114_spill] sm:$0xff]  ;;  %v5117_v2 = vld [vmem:[%s16328_s4 + $0xa8] sm:$0xff]  ;;  %v4960_v37 = vmax.f32 %v14110_v32, %v4879_v35  ;;  %8596 = vmatprep.subr.mxu0 %v5118_v20  ;;  %9208 = vmatprep.subr.mxu1 %v16919_v62  ;;  %v4675_v33 = vpop.f32.mrf.mxu0 }
 0x392   :  { %v14429_v59 = vmax.f32 %v16957_v63, %v4957_v26  ;;  %v16963_v39 = vld [vmem:[#allocation32_spill] sm:$0xff]  ;;  %v4878_v56 = vadd.f32 %v4669_v54, %v16966_v15  ;;  %v14451_v16 = vadd.f32 %v14190_v22, %v4992_v1  ;;  %v5133_v26 = vld [vmem:[%s16328_s4 + $0x128] sm:$0xff]  ;;  %8597 = vmatpush3.msra.mxu0 %v5102_v61  ;;  %9209 = vmatpush3.msra.mxu1 %v5134_v28  ;;  %v16968_v32 = vld [vmem:[#allocation73_spill] sm:$0xff] }
 0x393   :  { %v16964_v13 = vmax.f32 %v16962_v9, %v16963_v39  ;;  %v16965_v5 = vld [vmem:[#allocation72_spill] sm:$0xff]  ;;  %v4883_v31 = vadd.f32 %v4673_v58, %v16968_v32  ;;  %v5116_v54 = vld [vmem:[%s16328_s4 + $0xa0] sm:$0xff]  ;;  %v16970_v20 = vld [vmem:[#allocation33_spill] sm:$0xff]  ;;  %v4885_v53 = vadd.f32 %v4810_v23, %v16972_v42  ;;  %8598 = vmatprep.subr.mxu0 %v5117_v2  ;;  %9210 = vmatprep.subr.mxu1 %v16919_v62 }
 0x394   :  { %v4877_v40 = vadd.f32 %v4667_v55, %v16965_v5  ;;  %v5101_v55 = vld [vmem:[%s16328_s4 + $0x28] sm:$0xff]  ;;  %v4959_v7 = vmax.f32 %v16967_v30, %v4878_v56  ;;  %v16969_v14 = vld [vmem:[#allocation20_spill] sm:$0xff]  ;;  %v5100_v4 = vld [vmem:[%s16328_s4 + $0x20] sm:$0xff]  ;;  %9211 = vmatpush3.msra.mxu1 %v5133_v26  ;;  %9222 = vmatprep.mubr.msk.f32.mxu1 %vm9764_vm2, %v16919_v62 }
 0x395   :  { %v4994_v18 = vmax.f32 %v16964_v13, %v4958_v45  ;;  %v4812_v45 = vpop.f32.mrf.mxu1  ;;  %v16971_v19 = vmax.f32 %v16969_v14, %v16970_v20  ;;  %v5132_v1 = vld [vmem:[%s16328_s4 + $0x120] sm:$0xff]  ;;  %v16974_v35 = vld [vmem:[#allocation60_spill] sm:$0xff]  ;;  %8599 = vmatpush3.msra.mxu0 %v5101_v55  ;;  %v16977_v15 = vld [vmem:[#allocation59_spill] sm:$0xff]  ;;  %v4963_v2 = vmax.f32 %v14124_v60, %v4885_v53  ;;  %9212 = vmatprep.subr.mxu1 %v16919_v62 }
 0x396   :  { %v4961_v63 = vmax.f32 %v4877_v40, %v4880_v11  ;;  %v16973_v57 = vld [vmem:[#allocation58_spill] sm:$0xff]  ;;  %v16976_v9 = vld [vmem:[#allocation116_spill] sm:$0xff]  ;;  %v4886_v13 = vadd.f32 %v4812_v45, %v14121_v34  ;;  %v5115_v40 = vld [vmem:[%s16328_s4 + $0x98] sm:$0xff]  ;;  %8600 = vmatprep.subr.mxu0 %v5116_v54  ;;  %v14504_v11 = vadd.f32 %v14188_v21, %v14216_v50  ;;  %9213 = vmatpush3.msra.mxu1 %v5132_v1 }
 0x397   :  { %v14463_v3 = vadd.f32 %v14196_v17, %v4994_v18  ;;  %v14473_v27 = vmax.f32 %v16971_v19, %v4960_v37  ;;  %v16975_v61 = vmax.f32 %v16973_v57, %v16974_v35  ;;  %v4884_v39 = vadd.f32 %v4675_v33, %v16976_v9  ;;  %v4679_v18 = vpop.f32.mrf.mxu0  ;;  %v4816_v5 = vpop.f32.mrf.mxu1  ;;  %v16978_v56 = vld [vmem:[#allocation34_spill] sm:$0xff]  ;;  %v5099_v37 = vld [vmem:[%s16328_s4 + $0x18] sm:$0xff]  ;;  %v16980_v26 = vld [vmem:[#allocation127_spill] sm:$0xff]  ;;  %8601 = vmatpush3.msra.mxu0 %v5100_v4 }
 0x398   :  { %v16979_v58 = vmax.f32 %v16977_v15, %v16978_v56  ;;  %v5131_v34 = vld [vmem:[%s16328_s4 + $0x118] sm:$0xff]  ;;  %v4964_v30 = vmax.f32 %v4883_v31, %v4886_v13  ;;  %v5114_v33 = vld [vmem:[%s16328_s4 + $0x90] sm:$0xff]  ;;  %v16982_v50 = vld [vmem:[#allocation35_spill] sm:$0xff]  ;;  %v4891_v19 = vadd.f32 %v4816_v5, %v14128_v12  ;;  %8602 = vmatprep.subr.mxu0 %v5115_v40  ;;  %9214 = vmatprep.subr.mxu1 %v16919_v62 }
 0x399   :  { %v4995_v28 = vmax.f32 %v16975_v61, %v4959_v7  ;;  %v4962_v60 = vmax.f32 %v16980_v26, %v4884_v39  ;;  %v4681_v7 = vpop.f32.mrf.mxu0  ;;  %v4818_v32 = vpop.f32.mrf.mxu1  ;;  %v16981_v54 = vld [vmem:[#allocation9_spill] sm:$0xff]  ;;  %v5098_v31 = vld [vmem:[%s16328_s4 + $0x10] sm:$0xff]  ;;  %v16985_v53 = vld [vmem:[#allocation63_spill] sm:$0xff]  ;;  %8603 = vmatpush3.msra.mxu0 %v5099_v37  ;;  %9215 = vmatpush3.msra.mxu1 %v5131_v34 }
 0x39a   :  { %v4997_v23 = vmax.f32 %v16979_v58, %v4961_v63  ;;  %v16983_v14 = vmax.f32 %v16981_v54, %v16982_v50  ;;  %v5130_v63 = vld [vmem:[%s16328_s4 + $0x110] sm:$0xff]  ;;  %v16984_v42 = vld [vmem:[#allocation61_spill] sm:$0xff]  ;;  %v16987_v57 = vld [vmem:[#allocation62_spill] sm:$0xff]  ;;  %v4966_v56 = vmax.f32 %v14138_v36, %v4891_v19  ;;  %8604 = vmatprep.subr.mxu0 %v5114_v33  ;;  %9216 = vmatprep.subr.mxu1 %v16919_v62 }
 0x39b   :  { %v14507_v55 = vadd.f32 %v14190_v22, %v4995_v28  ;;  %v16986_v4 = vmax.f32 %v16984_v42, %v16985_v53  ;;  %v16988_v35 = vld [vmem:[#allocation36_spill] sm:$0xff]  ;;  %v16990_v12 = vld [vmem:[#allocation118_spill] sm:$0xff]  ;;  %v4685_v39 = vpop.f32.mrf.mxu0  ;;  %v4822_v13 = vpop.f32.mrf.mxu1  ;;  %v5113_v5 = vld [vmem:[%s16328_s4 + $0x88] sm:$0xff]  ;;  %8605 = vmatpush3.msra.mxu0 %v5098_v31  ;;  %9217 = vmatpush3.msra.mxu1 %v5130_v63 }
 0x39c   :  { %v14514_v45 = vadd.f32 %v14196_v17, %v4997_v23  ;;  %v14519_v20 = vmax.f32 %v16983_v14, %v4963_v2  ;;  %v16989_v61 = vmax.f32 %v16987_v57, %v16988_v35  ;;  %v4890_v9 = vadd.f32 %v4681_v7, %v16990_v12  ;;  %v16991_v40 = vld [vmem:[#allocation74_spill] sm:$0xff]  ;;  %v16992_v58 = vld [vmem:[#allocation85_spill] sm:$0xff]  ;;  %v5097_v2 = vld [vmem:[%s16328_s4 + $0x8] sm:$0xff]  ;;  %8606 = vmatprep.subr.mxu0 %v5113_v5 }
 0x39d   :  { %v4998_v1 = vmax.f32 %v16986_v4, %v4962_v60  ;;  %v4889_v15 = vadd.f32 %v4679_v18, %v16991_v40  ;;  %v4892_v23 = vadd.f32 %v4818_v32, %v16992_v58  ;;  %v5129_v37 = vld [vmem:[%s16328_s4 + $0x108] sm:$0xff]  ;;  %v16993_v36 = vld [vmem:[#allocation108_spill] sm:$0xff]  ;;  %v4687_v60 = vpop.f32.mrf.mxu0  ;;  %v5112_v7 = vld [vmem:[%s16328_s4 + $0x80] sm:$0xff]  ;;  %9218 = vmatprep.subr.mxu1 %v16919_v62  ;;  %8607 = vmatpush3.msra.mxu0 %v5097_v2  ;;  %v5062_v2 = vmax.f32 %v14406_v0, 0.0 }
 0x39e   :  { %v5000_v28 = vmax.f32 %v16989_v61, %v4964_v30  ;;  %v4965_v26 = vmax.f32 %v16993_v36, %v4890_v9  ;;  %v4824_v30 = vpop.f32.mrf.mxu1  ;;  %v16994_v32 = vld [vmem:[#allocation21_spill] sm:$0xff]  ;;  %v16997_v19 = vld [vmem:[#allocation88_spill] sm:$0xff]  ;;  %v5096_v31 = vld [vmem:[%s16328_s4] sm:$0xff]  ;;  %9219 = vmatpush3.msra.mxu1 %v5129_v37  ;;  %v5060_v9 = vmax.f32 %v14331_v46, 0.0  ;;  %8608 = vmatprep.subr.mxu0 %v5112_v7 }
 0x39f   :  { %v14550_v34 = vadd.f32 %v14190_v22, %v4998_v1  ;;  %v16995_v33 = vld [vmem:[#allocation77_spill] sm:$0xff]  ;;  %v4967_v14 = vmax.f32 %v4889_v15, %v4892_v23  ;;  %v4897_v42 = vadd.f32 %v4822_v13, %v16997_v19  ;;  %v5128_v63 = vld [vmem:[%s16328_s4 + $0x100] sm:$0xff]  ;;  %v16998_v53 = vld [vmem:[#allocation64_spill] sm:$0xff]  ;;  %9220 = vmatprep.subr.mxu1 %v16919_v62  ;;  %8609 = vmatpush3.msra.mxu0 %v5096_v31  ;;  %v5067_v31 = vmax.f32 %v14504_v11, 0.0 }
 0x3a0   :  { %v14553_v18 = vadd.f32 %v14196_v17, %v5000_v28  ;;  %v16996_v54 = vmax.f32 %v16994_v32, %v16995_v33  ;;  %v16999_v4 = vld [vmem:[#allocation66_spill] sm:$0xff]  ;;  %v17001_v35 = vld [vmem:[#allocation75_spill] sm:$0xff]  ;;  %v17002_v28 = vld [vmem:[#allocation120_spill] sm:$0xff]  ;;  %9221 = vmatpush3.msra.mxu1 %v5128_v63  ;;  %5398 = vmatmul.mubr.f32.vlgmr.msra.gmra.mxu0 %v5060_v9 }
 0x3a1   :  { %v17000_v1 = vmax.f32 %v16998_v53, %v16999_v4  ;;  %v4895_v61 = vadd.f32 %v4685_v39, %v17001_v35  ;;  %v4896_v12 = vadd.f32 %v4687_v60, %v17002_v28  ;;  %v17003_v13 = vld [vmem:[#allocation65_spill] sm:$0xff]  ;;  %v17006_v58 = vld [vmem:[#allocation110_spill] sm:$0xff]  ;;  %v17007_v46 = vld [vmem:[#allocation128_spill] sm:$0xff]  ;;  %9223 = vmatmul.mubr.f32.vlgmr.msra.gmra.mxu1 %v5062_v2  ;;  %v14617_v53 = vadd.f32 %v14188_v21, %v14383_v8 }
 0x3a2   :  { %v5002_v50 = vmax.f32 %v16996_v54, %v4966_v56  ;;  %v17004_v5 = vld [vmem:[#allocation37_spill] sm:$0xff]  ;;  %v4969_v56 = vmax.f32 %v14152_v47, %v4897_v42  ;;  %v4898_v23 = vadd.f32 %v4824_v30, %v17006_v58  ;;  %v17009_v0 = vld [vmem:[#allocation79_spill] sm:$0xff]  ;;  %v17012_v19 = vld [vmem:[#allocation70_spill] sm:$0xff]  ;;  %9225 = vmatprep.subr.mxu1 %v16919_v62  ;;  %v14631_v28 = vadd.f32 %v14188_v21, %v14429_v59 }
 0x3a3   :  { %v5001_v57 = vmax.f32 %v17000_v1, %v4965_v26  ;;  %v17005_v40 = vmax.f32 %v17003_v13, %v17004_v5  ;;  %v8073_v39 = vld [vmem:[%s16328_s4 + $0x3f8] sm:$0xff]  ;;  %v4968_v36 = vmax.f32 %v17007_v46, %v4896_v12  ;;  %v14595_v26 = vadd.f32 %v14188_v21, %v14336_v48  ;;  %v8072_v63 = vld [vmem:[%s16328_s4 + $0x3f0] sm:$0xff]  ;;  %5586 = vmatprep.mubr.f32.mxu0 %v5067_v31  ;;  %v8071_v9 = vld [vmem:[%s16328_s4 + $0x3e8] sm:$0xff] }
 0x3a4   :  { %v8057_v47 = vld [vmem:[%s16328_s4 + $0x378] sm:$0xff]  ;;  %v4970_v33 = vmax.f32 %v4895_v61, %v4898_v23  ;;  %8630 = vmatprep.subr.mxu0 %v8073_v39  ;;  %v17014_v4 = vld [vmem:[#allocation68_spill] sm:$0xff]  ;;  %v14635_v8 = vadd.f32 %v14188_v21, %v14473_v27  ;;  %v14645_v13 = vadd.f32 %v14188_v21, %v14519_v20  ;;  %v14648_v59 = vadd.f32 %v14188_v21, %v5002_v50  ;;  %v8087_v27 = vld [vmem:[%s16328_s4 + $0x468] sm:$0xff] }
 0x3a5   :  { %v5003_v15 = vmax.f32 %v17005_v40, %v4967_v14  ;;  %v14587_v37 = vadd.f32 %v14190_v22, %v5001_v57  ;;  %v17008_v30 = vld [vmem:[#allocation69_spill] sm:$0xff]  ;;  %v17011_v14 = vld [vmem:[#allocation67_spill] sm:$0xff]  ;;  %8631 = vmatpush3.msra.mxu0 %v8057_v47  ;;  %v8056_v61 = vld [vmem:[%s16328_s4 + $0x370] sm:$0xff]  ;;  %9257 = vmatprep.mubr.msk.f32.mxu1 %vm9764_vm2, %v16919_v62 }
 0x3a6   :  { %v17010_v7 = vmax.f32 %v17008_v30, %v17009_v0  ;;  %v8089_v54 = vld [vmem:[%s16328_s4 + $0x478] sm:$0xff]  ;;  %v17013_v48 = vmax.f32 %v17011_v14, %v17012_v19  ;;  %v8088_v11 = vld [vmem:[%s16328_s4 + $0x470] sm:$0xff]  ;;  %8632 = vmatprep.subr.mxu0 %v8072_v63  ;;  %v8054_v50 = vld [vmem:[%s16328_s4 + $0x360] sm:$0xff] }
 0x3a7   :  { %v14598_v60 = vadd.f32 %v14196_v17, %v5003_v15  ;;  %v17015_v1 = vld [vmem:[#allocation81_spill] sm:$0xff]  ;;  %9226 = vmatpush3.msra.mxu1 %v8089_v54  ;;  %8633 = vmatpush3.msra.mxu0 %v8056_v61  ;;  %v8086_v40 = vld [vmem:[%s16328_s4 + $0x460] sm:$0xff]  ;;  %v8068_v58 = vld [vmem:[%s16328_s4 + $0x3d0] sm:$0xff] }
 0x3a8   :  { %v5005_v32 = vmax.f32 %v17010_v7, %v4969_v56  ;;  %v5004_v42 = vmax.f32 %v17013_v48, %v4968_v36  ;;  %v17016_v57 = vmax.f32 %v17014_v4, %v17015_v1  ;;  %9227 = vmatprep.subr.mxu1 %v16919_v62  ;;  %8634 = vmatprep.subr.mxu0 %v8071_v9  ;;  %v8053_v15 = vld [vmem:[%s16328_s4 + $0x358] sm:$0xff]  ;;  %v8052_v23 = vld [vmem:[%s16328_s4 + $0x350] sm:$0xff]  ;;  %v8067_v2 = vld [vmem:[%s16328_s4 + $0x3c8] sm:$0xff] }
 0x3a9   :  { %9228 = vmatpush3.msra.mxu1 %v8088_v11  ;;  %v8085_v56 = vld [vmem:[%s16328_s4 + $0x458] sm:$0xff]  ;;  %v8084_v39 = vld [vmem:[%s16328_s4 + $0x450] sm:$0xff]  ;;  %v8051_v46 = vld [vmem:[%s16328_s4 + $0x348] sm:$0xff] }
 0x3aa   :  { %v5006_v35 = vmax.f32 %v17016_v57, %v4970_v33  ;;  %v14638_v12 = vadd.f32 %v14190_v22, %v5004_v42  ;;  %v8055_v22 = vld [vmem:[%s16328_s4 + $0x368] sm:$0xff]  ;;  %v14661_v20 = vadd.f32 %v14188_v21, %v5005_v32  ;;  %9229 = vmatprep.subr.mxu1 %v16919_v62  ;;  %v8069_v21 = vld [vmem:[%s16328_s4 + $0x3d8] sm:$0xff]  ;;  %v8066_v47 = vld [vmem:[%s16328_s4 + $0x3c0] sm:$0xff] }
 0x3ab   :  { %8635 = vmatpush3.msra.mxu0 %v8055_v22  ;;  %9230 = vmatpush3.msra.mxu1 %v8087_v27  ;;  %v8083_v36 = vld [vmem:[%s16328_s4 + $0x448] sm:$0xff]  ;;  %v8050_v30 = vld [vmem:[%s16328_s4 + $0x340] sm:$0xff]  ;;  %v8065_v7 = vld [vmem:[%s16328_s4 + $0x3b8] sm:$0xff] }
 0x3ac   :  { %v14651_v5 = vadd.f32 %v14196_v17, %v5006_v35  ;;  %v8070_v17 = vld [vmem:[%s16328_s4 + $0x3e0] sm:$0xff]  ;;  %9231 = vmatprep.subr.mxu1 %v16919_v62  ;;  %v8049_v32 = vld [vmem:[%s16328_s4 + $0x338] sm:$0xff]  ;;  %v8064_v54 = vld [vmem:[%s16328_s4 + $0x3b0] sm:$0xff] }
 0x3ad   :  { %8636 = vmatprep.subr.mxu0 %v8070_v17  ;;  %9232 = vmatpush3.msra.mxu1 %v8086_v40  ;;  %v8082_v0 = vld [vmem:[%s16328_s4 + $0x440] sm:$0xff]  ;;  %v8081_v33 = vld [vmem:[%s16328_s4 + $0x438] sm:$0xff]  ;;  %v8048_v14 = vld [vmem:[%s16328_s4 + $0x330] sm:$0xff] }
 0x3ae   :  { %8637 = vmatpush3.msra.mxu0 %v8054_v50  ;;  %9233 = vmatprep.subr.mxu1 %v16919_v62  ;;  %v8080_v19 = vld [vmem:[%s16328_s4 + $0x430] sm:$0xff]  ;;  %v8063_v48 = vld [vmem:[%s16328_s4 + $0x3a8] sm:$0xff]  ;;  %v8062_v63 = vld [vmem:[%s16328_s4 + $0x3a0] sm:$0xff] }
 0x3af   :  { %8638 = vmatprep.subr.mxu0 %v8069_v21  ;;  %9234 = vmatpush3.msra.mxu1 %v8085_v56  ;;  %v8047_v42 = vld [vmem:[%s16328_s4 + $0x328] sm:$0xff]  ;;  %v8046_v4 = vld [vmem:[%s16328_s4 + $0x320] sm:$0xff]  ;;  %v8061_v57 = vld [vmem:[%s16328_s4 + $0x398] sm:$0xff]  ;;  %v5066_v56 = vmax.f32 %v14245_v52, 0.0 }
 0x3b0   :  { %8639 = vmatpush3.msra.mxu0 %v8053_v15  ;;  %9235 = vmatprep.subr.mxu1 %v16919_v62  ;;  %v8079_v31 = vld [vmem:[%s16328_s4 + $0x428] sm:$0xff]  ;;  %v8078_v1 = vld [vmem:[%s16328_s4 + $0x420] sm:$0xff]  ;;  %v8045_v35 = vld [vmem:[%s16328_s4 + $0x318] sm:$0xff] }
 0x3b1   :  { %8640 = vmatprep.subr.mxu0 %v8068_v58  ;;  %9236 = vmatpush3.msra.mxu1 %v8084_v39  ;;  %v8077_v61 = vld [vmem:[%s16328_s4 + $0x418] sm:$0xff]  ;;  %v8060_v11 = vld [vmem:[%s16328_s4 + $0x390] sm:$0xff]  ;;  %v8059_v27 = vld [vmem:[%s16328_s4 + $0x388] sm:$0xff] }
 0x3b2   :  { %8641 = vmatpush3.msra.mxu0 %v8052_v23  ;;  %9237 = vmatprep.subr.mxu1 %v16919_v62  ;;  %v8044_v9 = vld [vmem:[%s16328_s4 + $0x310] sm:$0xff]  ;;  %v8043_v17 = vld [vmem:[%s16328_s4 + $0x308] sm:$0xff]  ;;  %v8058_v40 = vld [vmem:[%s16328_s4 + $0x380] sm:$0xff]  ;;  %v5068_v23 = vmax.f32 %v14248_v41, 0.0 }
 0x3b3   :  { %8642 = vmatprep.subr.mxu0 %v8067_v2  ;;  %9238 = vmatpush3.msra.mxu1 %v8083_v36  ;;  %v8076_v22 = vld [vmem:[%s16328_s4 + $0x410] sm:$0xff]  ;;  %v8075_v50 = vld [vmem:[%s16328_s4 + $0x408] sm:$0xff]  ;;  %v8042_v21 = vld [vmem:[%s16328_s4 + $0x300] sm:$0xff]  ;;  %v5070_v2 = vmax.f32 %v14269_v38, 0.0 }
 0x3b4   :  { %8643 = vmatpush3.msra.mxu0 %v8051_v46  ;;  %9239 = vmatprep.subr.mxu1 %v16919_v62  ;;  %v8074_v15 = vld [vmem:[%s16328_s4 + $0x400] sm:$0xff]  ;;  %v8121_v58 = vld [vmem:[%s16328_s4 + $0x578] sm:$0xff]  ;;  %v8120_v41 = vld [vmem:[%s16328_s4 + $0x570] sm:$0xff] }
 0x3b5   :  { %8644 = vmatprep.subr.mxu0 %v8066_v47  ;;  %9240 = vmatpush3.msra.mxu1 %v8082_v0  ;;  %v8105_v39 = vld [vmem:[%s16328_s4 + $0x4f8] sm:$0xff]  ;;  %v8104_v46 = vld [vmem:[%s16328_s4 + $0x4f0] sm:$0xff]  ;;  %v8119_v38 = vld [vmem:[%s16328_s4 + $0x568] sm:$0xff] }
 0x3b6   :  { %8645 = vmatpush3.msra.mxu0 %v8050_v30  ;;  %9241 = vmatprep.subr.mxu1 %v16919_v62  ;;  %v8137_v52 = vld [vmem:[%s16328_s4 + $0x5f8] sm:$0xff]  ;;  %v8136_v36 = vld [vmem:[%s16328_s4 + $0x5f0] sm:$0xff]  ;;  %v8103_v47 = vld [vmem:[%s16328_s4 + $0x4e8] sm:$0xff] }
 0x3b7   :  { %8646 = vmatprep.subr.mxu0 %v8065_v7  ;;  %9242 = vmatpush3.msra.mxu1 %v8081_v33  ;;  %v8135_v30 = vld [vmem:[%s16328_s4 + $0x5e8] sm:$0xff]  ;;  %v8118_v0 = vld [vmem:[%s16328_s4 + $0x560] sm:$0xff]  ;;  %v8117_v33 = vld [vmem:[%s16328_s4 + $0x558] sm:$0xff] }
 0x3b8   :  { %8647 = vmatpush3.msra.mxu0 %v8049_v32  ;;  %9243 = vmatprep.subr.mxu1 %v16919_v62  ;;  %v8102_v7 = vld [vmem:[%s16328_s4 + $0x4e0] sm:$0xff] }
 0x3b9   :  { %8648 = vmatprep.subr.mxu0 %v8064_v54  ;;  %9244 = vmatpush3.msra.mxu1 %v8080_v19  ;;  %v8134_v32 = vld [vmem:[%s16328_s4 + $0x5e0] sm:$0xff]  ;;  %v8101_v54 = vld [vmem:[%s16328_s4 + $0x4d8] sm:$0xff]  ;;  %v8116_v19 = vld [vmem:[%s16328_s4 + $0x550] sm:$0xff] }
 0x3ba   :  { %8649 = vmatpush3.msra.mxu0 %v8048_v14  ;;  %9245 = vmatprep.subr.mxu1 %v16919_v62  ;;  %v8133_v14 = vld [vmem:[%s16328_s4 + $0x5d8] sm:$0xff] }
 0x3bb   :  { %8650 = vmatprep.subr.mxu0 %v8063_v48  ;;  %9246 = vmatpush3.msra.mxu1 %v8079_v31  ;;  %v8100_v48 = vld [vmem:[%s16328_s4 + $0x4d0] sm:$0xff]  ;;  %v8115_v31 = vld [vmem:[%s16328_s4 + $0x548] sm:$0xff] }
 0x3bc   :  { %8651 = vmatpush3.msra.mxu0 %v8047_v42  ;;  %9247 = vmatprep.subr.mxu1 %v16919_v62  ;;  %v8132_v42 = vld [vmem:[%s16328_s4 + $0x5d0] sm:$0xff] }
 0x3bd   :  { %8652 = vmatprep.subr.mxu0 %v8062_v63  ;;  %9248 = vmatpush3.msra.mxu1 %v8078_v1  ;;  %v8099_v63 = vld [vmem:[%s16328_s4 + $0x4c8] sm:$0xff]  ;;  %v8114_v1 = vld [vmem:[%s16328_s4 + $0x540] sm:$0xff] }
 0x3be   :  { %8653 = vmatpush3.msra.mxu0 %v8046_v4  ;;  %9249 = vmatprep.subr.mxu1 %v16919_v62  ;;  %v8131_v4 = vld [vmem:[%s16328_s4 + $0x5c8] sm:$0xff] }
 0x3bf   :  { %8654 = vmatprep.subr.mxu0 %v8061_v57  ;;  %9250 = vmatpush3.msra.mxu1 %v8077_v61  ;;  %v8098_v57 = vld [vmem:[%s16328_s4 + $0x4c0] sm:$0xff]  ;;  %v8113_v61 = vld [vmem:[%s16328_s4 + $0x538] sm:$0xff] }
 0x3c0   :  { %8655 = vmatpush3.msra.mxu0 %v8045_v35  ;;  %9251 = vmatprep.subr.mxu1 %v16919_v62  ;;  %v8130_v35 = vld [vmem:[%s16328_s4 + $0x5c0] sm:$0xff] }
 0x3c1   :  { %8656 = vmatprep.subr.mxu0 %v8060_v11  ;;  %9252 = vmatpush3.msra.mxu1 %v8076_v22  ;;  %v8097_v11 = vld [vmem:[%s16328_s4 + $0x4b8] sm:$0xff]  ;;  %v8112_v22 = vld [vmem:[%s16328_s4 + $0x530] sm:$0xff] }
 0x3c2   :  { %8657 = vmatpush3.msra.mxu0 %v8044_v9  ;;  %9253 = vmatprep.subr.mxu1 %v16919_v62  ;;  %v8129_v9 = vld [vmem:[%s16328_s4 + $0x5b8] sm:$0xff] }
 0x3c3   :  { %8658 = vmatprep.subr.mxu0 %v8059_v27  ;;  %9254 = vmatpush3.msra.mxu1 %v8075_v50  ;;  %v8096_v27 = vld [vmem:[%s16328_s4 + $0x4b0] sm:$0xff]  ;;  %v8111_v50 = vld [vmem:[%s16328_s4 + $0x528] sm:$0xff] }
 0x3c4   :  { %8659 = vmatpush3.msra.mxu0 %v8043_v17  ;;  %9255 = vmatprep.subr.mxu1 %v16919_v62  ;;  %v8128_v17 = vld [vmem:[%s16328_s4 + $0x5b0] sm:$0xff] }
 0x3c5   :  { %8660 = vmatprep.subr.mxu0 %v8058_v40  ;;  %9256 = vmatpush3.msra.mxu1 %v8074_v15  ;;  %v8095_v40 = vld [vmem:[%s16328_s4 + $0x4a8] sm:$0xff]  ;;  %v8110_v15 = vld [vmem:[%s16328_s4 + $0x520] sm:$0xff] }
 0x3c6   :  { %8661 = vmatpush3.msra.mxu0 %v8042_v21  ;;  %9258 = vmatmul.mubr.f32.vlgmr.msra.gmra.mxu1 %v5068_v23  ;;  %v8127_v21 = vld [vmem:[%s16328_s4 + $0x5a8] sm:$0xff]  ;;  %v8109_v23 = vld [vmem:[%s16328_s4 + $0x518] sm:$0xff] }
 0x3c7   :  { %5587 = vmatmul.mubr.f32.vlgmr.msra.gmra.mxu0 %v5066_v56  ;;  %8682 = vmatprep.subr.mxu0 %v8121_v58  ;;  %v8094_v56 = vld [vmem:[%s16328_s4 + $0x4a0] sm:$0xff] }
 0x3c8   :  { %9260 = vmatprep.subr.mxu1 %v16919_v62  ;;  %8683 = vmatpush3.msra.mxu0 %v8105_v39  ;;  %v8126_v58 = vld [vmem:[%s16328_s4 + $0x5a0] sm:$0xff]  ;;  %v8093_v39 = vld [vmem:[%s16328_s4 + $0x498] sm:$0xff] }
 0x3c9   :  { %5776 = vmatprep.mubr.f32.mxu0 %v5070_v2  ;;  %9261 = vmatpush3.msra.mxu1 %v8137_v52  ;;  %v8125_v52 = vld [vmem:[%s16328_s4 + $0x598] sm:$0xff]  ;;  %v8108_v2 = vld [vmem:[%s16328_s4 + $0x510] sm:$0xff] }
 0x3ca   :  { %8684 = vmatprep.subr.mxu0 %v8120_v41  ;;  %9262 = vmatprep.subr.mxu1 %v16919_v62  ;;  %v8092_v41 = vld [vmem:[%s16328_s4 + $0x490] sm:$0xff] }
 0x3cb   :  { %8685 = vmatpush3.msra.mxu0 %v8104_v46  ;;  %9263 = vmatpush3.msra.mxu1 %v8136_v36  ;;  %v8124_v46 = vld [vmem:[%s16328_s4 + $0x590] sm:$0xff]  ;;  %v8107_v36 = vld [vmem:[%s16328_s4 + $0x508] sm:$0xff] }
 0x3cc   :  { %8686 = vmatprep.subr.mxu0 %v8119_v38  ;;  %9264 = vmatprep.subr.mxu1 %v16919_v62  ;;  %v8091_v38 = vld [vmem:[%s16328_s4 + $0x488] sm:$0xff] }
 0x3cd   :  { %8687 = vmatpush3.msra.mxu0 %v8103_v47  ;;  %9265 = vmatpush3.msra.mxu1 %v8135_v30  ;;  %v8123_v47 = vld [vmem:[%s16328_s4 + $0x588] sm:$0xff]  ;;  %v8106_v30 = vld [vmem:[%s16328_s4 + $0x500] sm:$0xff] }
 0x3ce   :  { %8688 = vmatprep.subr.mxu0 %v8118_v0  ;;  %9266 = vmatprep.subr.mxu1 %v16919_v62  ;;  %v8090_v0 = vld [vmem:[%s16328_s4 + $0x480] sm:$0xff] }
 0x3cf   :  { %8689 = vmatpush3.msra.mxu0 %v8102_v7  ;;  %9267 = vmatpush3.msra.mxu1 %v8134_v32  ;;  %v8122_v7 = vld [vmem:[%s16328_s4 + $0x580] sm:$0xff]  ;;  %v5069_v32 = vmax.f32 %v14272_v10, 0.0  ;;  %v8185_v10 = vld [vmem:[%s16328_s4 + $0x778] sm:$0xff] }
 0x3d0   :  { %8690 = vmatprep.subr.mxu0 %v8117_v33  ;;  %9268 = vmatprep.subr.mxu1 %v16919_v62  ;;  %v8169_v33 = vld [vmem:[%s16328_s4 + $0x6f8] sm:$0xff] }
 0x3d1   :  { %8691 = vmatpush3.msra.mxu0 %v8101_v54  ;;  %9269 = vmatpush3.msra.mxu1 %v8133_v14  ;;  %v5071_v54 = vmax.f32 %v14286_v49, 0.0  ;;  %v8153_v14 = vld [vmem:[%s16328_s4 + $0x678] sm:$0xff]  ;;  %v8168_v49 = vld [vmem:[%s16328_s4 + $0x6f0] sm:$0xff] }
 0x3d2   :  { %8692 = vmatprep.subr.mxu0 %v8116_v19  ;;  %9270 = vmatprep.subr.mxu1 %v16919_v62  ;;  %v5073_v19 = vmax.f32 %v14313_v44, 0.0  ;;  %v8167_v44 = vld [vmem:[%s16328_s4 + $0x6e8] sm:$0xff] }
 0x3d3   :  { %8693 = vmatpush3.msra.mxu0 %v8100_v48  ;;  %9271 = vmatpush3.msra.mxu1 %v8132_v42  ;;  %v8152_v48 = vld [vmem:[%s16328_s4 + $0x670] sm:$0xff] }
 0x3d4   :  { %8694 = vmatprep.subr.mxu0 %v8115_v31  ;;  %9272 = vmatprep.subr.mxu1 %v16919_v62  ;;  %v8184_v42 = vld [vmem:[%s16328_s4 + $0x770] sm:$0xff]  ;;  %v8151_v31 = vld [vmem:[%s16328_s4 + $0x668] sm:$0xff] }
 0x3d5   :  { %8695 = vmatpush3.msra.mxu0 %v8099_v63  ;;  %9273 = vmatpush3.msra.mxu1 %v8131_v4  ;;  %v8183_v63 = vld [vmem:[%s16328_s4 + $0x768] sm:$0xff]  ;;  %v8166_v4 = vld [vmem:[%s16328_s4 + $0x6e0] sm:$0xff] }
 0x3d6   :  { %8696 = vmatprep.subr.mxu0 %v8114_v1  ;;  %9274 = vmatprep.subr.mxu1 %v16919_v62  ;;  %v8150_v1 = vld [vmem:[%s16328_s4 + $0x660] sm:$0xff] }
 0x3d7   :  { %8697 = vmatpush3.msra.mxu0 %v8098_v57  ;;  %9275 = vmatpush3.msra.mxu1 %v8130_v35  ;;  %v8182_v57 = vld [vmem:[%s16328_s4 + $0x760] sm:$0xff]  ;;  %v8165_v35 = vld [vmem:[%s16328_s4 + $0x6d8] sm:$0xff] }
 0x3d8   :  { %8698 = vmatprep.subr.mxu0 %v8113_v61  ;;  %9276 = vmatprep.subr.mxu1 %v16919_v62  ;;  %v8149_v61 = vld [vmem:[%s16328_s4 + $0x658] sm:$0xff] }
 0x3d9   :  { %8699 = vmatpush3.msra.mxu0 %v8097_v11  ;;  %9277 = vmatpush3.msra.mxu1 %v8129_v9  ;;  %v8181_v11 = vld [vmem:[%s16328_s4 + $0x758] sm:$0xff]  ;;  %v8164_v9 = vld [vmem:[%s16328_s4 + $0x6d0] sm:$0xff] }
 0x3da   :  { %8700 = vmatprep.subr.mxu0 %v8112_v22  ;;  %9278 = vmatprep.subr.mxu1 %v16919_v62  ;;  %v8148_v22 = vld [vmem:[%s16328_s4 + $0x650] sm:$0xff] }
 0x3db   :  { %8701 = vmatpush3.msra.mxu0 %v8096_v27  ;;  %9279 = vmatpush3.msra.mxu1 %v8128_v17  ;;  %v8180_v27 = vld [vmem:[%s16328_s4 + $0x750] sm:$0xff]  ;;  %v8163_v17 = vld [vmem:[%s16328_s4 + $0x6c8] sm:$0xff] }
 0x3dc   :  { %8702 = vmatprep.subr.mxu0 %v8111_v50  ;;  %9280 = vmatprep.subr.mxu1 %v16919_v62  ;;  %v8147_v50 = vld [vmem:[%s16328_s4 + $0x648] sm:$0xff] }
 0x3dd   :  { %8703 = vmatpush3.msra.mxu0 %v8095_v40  ;;  %9281 = vmatpush3.msra.mxu1 %v8127_v21  ;;  %v8179_v40 = vld [vmem:[%s16328_s4 + $0x748] sm:$0xff]  ;;  %v8162_v21 = vld [vmem:[%s16328_s4 + $0x6c0] sm:$0xff] }
 0x3de   :  { %8704 = vmatprep.subr.mxu0 %v8110_v15  ;;  %9282 = vmatprep.subr.mxu1 %v16919_v62  ;;  %v8146_v15 = vld [vmem:[%s16328_s4 + $0x640] sm:$0xff] }
 0x3df   :  { %8705 = vmatpush3.msra.mxu0 %v8094_v56  ;;  %9283 = vmatpush3.msra.mxu1 %v8126_v58  ;;  %v8178_v56 = vld [vmem:[%s16328_s4 + $0x740] sm:$0xff]  ;;  %v8161_v58 = vld [vmem:[%s16328_s4 + $0x6b8] sm:$0xff] }
 0x3e0   :  { %8706 = vmatprep.subr.mxu0 %v8109_v23  ;;  %9284 = vmatprep.subr.mxu1 %v16919_v62  ;;  %v8145_v23 = vld [vmem:[%s16328_s4 + $0x638] sm:$0xff] }
 0x3e1   :  { %8707 = vmatpush3.msra.mxu0 %v8093_v39  ;;  %9285 = vmatpush3.msra.mxu1 %v8125_v52  ;;  %v8177_v39 = vld [vmem:[%s16328_s4 + $0x738] sm:$0xff]  ;;  %v8160_v52 = vld [vmem:[%s16328_s4 + $0x6b0] sm:$0xff] }
 0x3e2   :  { %8708 = vmatprep.subr.mxu0 %v8108_v2  ;;  %9286 = vmatprep.subr.mxu1 %v16919_v62  ;;  %v8144_v2 = vld [vmem:[%s16328_s4 + $0x630] sm:$0xff] }
 0x3e3   :  { %8709 = vmatpush3.msra.mxu0 %v8092_v41  ;;  %9287 = vmatpush3.msra.mxu1 %v8124_v46  ;;  %v8176_v41 = vld [vmem:[%s16328_s4 + $0x730] sm:$0xff]  ;;  %v8159_v46 = vld [vmem:[%s16328_s4 + $0x6a8] sm:$0xff] }
 0x3e4   :  { %8710 = vmatprep.subr.mxu0 %v8107_v36  ;;  %9288 = vmatprep.subr.mxu1 %v16919_v62  ;;  %v8143_v36 = vld [vmem:[%s16328_s4 + $0x628] sm:$0xff] }
 0x3e5   :  { %8711 = vmatpush3.msra.mxu0 %v8091_v38  ;;  %9289 = vmatpush3.msra.mxu1 %v8123_v47  ;;  %v8175_v38 = vld [vmem:[%s16328_s4 + $0x728] sm:$0xff]  ;;  %v8158_v47 = vld [vmem:[%s16328_s4 + $0x6a0] sm:$0xff] }
 0x3e6   :  { %8712 = vmatprep.subr.mxu0 %v8106_v30  ;;  %9290 = vmatprep.subr.mxu1 %v16919_v62  ;;  %v8142_v30 = vld [vmem:[%s16328_s4 + $0x620] sm:$0xff] }
 0x3e7   :  { %8713 = vmatpush3.msra.mxu0 %v8090_v0  ;;  %9291 = vmatpush3.msra.mxu1 %v8122_v7  ;;  %v8174_v0 = vld [vmem:[%s16328_s4 + $0x720] sm:$0xff]  ;;  %v8157_v7 = vld [vmem:[%s16328_s4 + $0x698] sm:$0xff] }
 0x3e8   :  { %9292 = vmatprep.mubr.msk.f32.mxu1 %vm9764_vm2, %v16919_v62  ;;  %5777 = vmatmul.mubr.f32.vlgmr.msra.gmra.mxu0 %v5069_v32  ;;  %v8141_v32 = vld [vmem:[%s16328_s4 + $0x618] sm:$0xff] }
 0x3e9   :  { %9293 = vmatmul.mubr.f32.vlgmr.msra.gmra.mxu1 %v5071_v54  ;;  %8734 = vmatprep.subr.mxu0 %v8169_v33  ;;  %v8173_v33 = vld [vmem:[%s16328_s4 + $0x718] sm:$0xff]  ;;  %v8156_v54 = vld [vmem:[%s16328_s4 + $0x690] sm:$0xff] }
 0x3ea   :  { %9295 = vmatprep.subr.mxu1 %v16919_v62  ;;  %8735 = vmatpush3.msra.mxu0 %v8153_v14  ;;  %v8140_v14 = vld [vmem:[%s16328_s4 + $0x610] sm:$0xff] }
 0x3eb   :  { %5966 = vmatprep.mubr.f32.mxu0 %v5073_v19  ;;  %9296 = vmatpush3.msra.mxu1 %v8185_v10  ;;  %v8172_v10 = vld [vmem:[%s16328_s4 + $0x710] sm:$0xff]  ;;  %v8155_v19 = vld [vmem:[%s16328_s4 + $0x688] sm:$0xff] }
 0x3ec   :  { %8736 = vmatprep.subr.mxu0 %v8168_v49  ;;  %9297 = vmatprep.subr.mxu1 %v16919_v62  ;;  %v8139_v49 = vld [vmem:[%s16328_s4 + $0x608] sm:$0xff] }
 0x3ed   :  { %8737 = vmatpush3.msra.mxu0 %v8152_v48  ;;  %9298 = vmatpush3.msra.mxu1 %v8184_v42  ;;  %v8171_v48 = vld [vmem:[%s16328_s4 + $0x708] sm:$0xff]  ;;  %v8154_v42 = vld [vmem:[%s16328_s4 + $0x680] sm:$0xff] }
 0x3ee   :  { %8738 = vmatprep.subr.mxu0 %v8167_v44  ;;  %9299 = vmatprep.subr.mxu1 %v16919_v62  ;;  %v8138_v44 = vld [vmem:[%s16328_s4 + $0x600] sm:$0xff] }
 0x3ef   :  { %8739 = vmatpush3.msra.mxu0 %v8151_v31  ;;  %9300 = vmatpush3.msra.mxu1 %v8183_v63  ;;  %v8170_v31 = vld [vmem:[%s16328_s4 + $0x700] sm:$0xff]  ;;  %v5072_v63 = vmax.f32 %v14316_v51, 0.0  ;;  %v8233_v51 = vld [vmem:[%s16328_s4 + $0x8f8] sm:$0xff] }
 0x3f0   :  { %8740 = vmatprep.subr.mxu0 %v8166_v4  ;;  %9301 = vmatprep.subr.mxu1 %v16919_v62  ;;  %v8217_v4 = vld [vmem:[%s16328_s4 + $0x878] sm:$0xff] }
 0x3f1   :  { %8741 = vmatpush3.msra.mxu0 %v8150_v1  ;;  %9302 = vmatpush3.msra.mxu1 %v8182_v57  ;;  %v5074_v1 = vmax.f32 %v14319_v6, 0.0  ;;  %v8201_v57 = vld [vmem:[%s16328_s4 + $0x7f8] sm:$0xff]  ;;  %v8216_v6 = vld [vmem:[%s16328_s4 + $0x870] sm:$0xff] }
 0x3f2   :  { %8742 = vmatprep.subr.mxu0 %v8165_v35  ;;  %9303 = vmatprep.subr.mxu1 %v16919_v62  ;;  %v5076_v35 = vmax.f32 %v14595_v26, 0.0  ;;  %v8215_v26 = vld [vmem:[%s16328_s4 + $0x868] sm:$0xff] }
 0x3f3   :  { %8743 = vmatpush3.msra.mxu0 %v8149_v61  ;;  %9304 = vmatpush3.msra.mxu1 %v8181_v11  ;;  %v8200_v61 = vld [vmem:[%s16328_s4 + $0x7f0] sm:$0xff] }
 0x3f4   :  { %8744 = vmatprep.subr.mxu0 %v8164_v9  ;;  %9305 = vmatprep.subr.mxu1 %v16919_v62  ;;  %v8232_v11 = vld [vmem:[%s16328_s4 + $0x8f0] sm:$0xff]  ;;  %v8199_v9 = vld [vmem:[%s16328_s4 + $0x7e8] sm:$0xff] }
 0x3f5   :  { %8745 = vmatpush3.msra.mxu0 %v8148_v22  ;;  %9306 = vmatpush3.msra.mxu1 %v8180_v27  ;;  %v8231_v22 = vld [vmem:[%s16328_s4 + $0x8e8] sm:$0xff]  ;;  %v8214_v27 = vld [vmem:[%s16328_s4 + $0x860] sm:$0xff] }
 0x3f6   :  { %8746 = vmatprep.subr.mxu0 %v8163_v17  ;;  %9307 = vmatprep.subr.mxu1 %v16919_v62  ;;  %v8198_v17 = vld [vmem:[%s16328_s4 + $0x7e0] sm:$0xff] }
 0x3f7   :  { %8747 = vmatpush3.msra.mxu0 %v8147_v50  ;;  %9308 = vmatpush3.msra.mxu1 %v8179_v40  ;;  %v8230_v50 = vld [vmem:[%s16328_s4 + $0x8e0] sm:$0xff]  ;;  %v8213_v40 = vld [vmem:[%s16328_s4 + $0x858] sm:$0xff] }
 0x3f8   :  { %8748 = vmatprep.subr.mxu0 %v8162_v21  ;;  %9309 = vmatprep.subr.mxu1 %v16919_v62  ;;  %v8197_v21 = vld [vmem:[%s16328_s4 + $0x7d8] sm:$0xff] }
 0x3f9   :  { %8749 = vmatpush3.msra.mxu0 %v8146_v15  ;;  %9310 = vmatpush3.msra.mxu1 %v8178_v56  ;;  %v8229_v15 = vld [vmem:[%s16328_s4 + $0x8d8] sm:$0xff]  ;;  %v8212_v56 = vld [vmem:[%s16328_s4 + $0x850] sm:$0xff] }
 0x3fa   :  { %8750 = vmatprep.subr.mxu0 %v8161_v58  ;;  %9311 = vmatprep.subr.mxu1 %v16919_v62  ;;  %v8196_v58 = vld [vmem:[%s16328_s4 + $0x7d0] sm:$0xff] }
 0x3fb   :  { %8751 = vmatpush3.msra.mxu0 %v8145_v23  ;;  %9312 = vmatpush3.msra.mxu1 %v8177_v39  ;;  %v8228_v23 = vld [vmem:[%s16328_s4 + $0x8d0] sm:$0xff]  ;;  %v8211_v39 = vld [vmem:[%s16328_s4 + $0x848] sm:$0xff] }
 0x3fc   :  { %8752 = vmatprep.subr.mxu0 %v8160_v52  ;;  %9313 = vmatprep.subr.mxu1 %v16919_v62  ;;  %v8195_v52 = vld [vmem:[%s16328_s4 + $0x7c8] sm:$0xff] }
 0x3fd   :  { %8753 = vmatpush3.msra.mxu0 %v8144_v2  ;;  %9314 = vmatpush3.msra.mxu1 %v8176_v41  ;;  %v8227_v2 = vld [vmem:[%s16328_s4 + $0x8c8] sm:$0xff]  ;;  %v8210_v41 = vld [vmem:[%s16328_s4 + $0x840] sm:$0xff] }
 0x3fe   :  { %8754 = vmatprep.subr.mxu0 %v8159_v46  ;;  %9315 = vmatprep.subr.mxu1 %v16919_v62  ;;  %v8194_v46 = vld [vmem:[%s16328_s4 + $0x7c0] sm:$0xff] }
 0x3ff   :  { %8755 = vmatpush3.msra.mxu0 %v8143_v36  ;;  %9316 = vmatpush3.msra.mxu1 %v8175_v38  ;;  %v8226_v36 = vld [vmem:[%s16328_s4 + $0x8c0] sm:$0xff]  ;;  %v8209_v38 = vld [vmem:[%s16328_s4 + $0x838] sm:$0xff] }
 0x400   :  { %8756 = vmatprep.subr.mxu0 %v8158_v47  ;;  %9317 = vmatprep.subr.mxu1 %v16919_v62  ;;  %v8193_v47 = vld [vmem:[%s16328_s4 + $0x7b8] sm:$0xff] }
 0x401   :  { %8757 = vmatpush3.msra.mxu0 %v8142_v30  ;;  %9318 = vmatpush3.msra.mxu1 %v8174_v0  ;;  %v8225_v30 = vld [vmem:[%s16328_s4 + $0x8b8] sm:$0xff]  ;;  %v8208_v0 = vld [vmem:[%s16328_s4 + $0x830] sm:$0xff] }
 0x402   :  { %8758 = vmatprep.subr.mxu0 %v8157_v7  ;;  %9319 = vmatprep.subr.mxu1 %v16919_v62  ;;  %v8192_v7 = vld [vmem:[%s16328_s4 + $0x7b0] sm:$0xff] }
 0x403   :  { %8759 = vmatpush3.msra.mxu0 %v8141_v32  ;;  %9320 = vmatpush3.msra.mxu1 %v8173_v33  ;;  %v8224_v32 = vld [vmem:[%s16328_s4 + $0x8b0] sm:$0xff]  ;;  %v8207_v33 = vld [vmem:[%s16328_s4 + $0x828] sm:$0xff] }
 0x404   :  { %8760 = vmatprep.subr.mxu0 %v8156_v54  ;;  %9321 = vmatprep.subr.mxu1 %v16919_v62  ;;  %v8191_v54 = vld [vmem:[%s16328_s4 + $0x7a8] sm:$0xff] }
 0x405   :  { %8761 = vmatpush3.msra.mxu0 %v8140_v14  ;;  %9322 = vmatpush3.msra.mxu1 %v8172_v10  ;;  %v8223_v14 = vld [vmem:[%s16328_s4 + $0x8a8] sm:$0xff]  ;;  %v8206_v10 = vld [vmem:[%s16328_s4 + $0x820] sm:$0xff] }
 0x406   :  { %8762 = vmatprep.subr.mxu0 %v8155_v19  ;;  %9323 = vmatprep.subr.mxu1 %v16919_v62  ;;  %v8190_v19 = vld [vmem:[%s16328_s4 + $0x7a0] sm:$0xff] }
 0x407   :  { %8763 = vmatpush3.msra.mxu0 %v8139_v49  ;;  %9324 = vmatpush3.msra.mxu1 %v8171_v48  ;;  %v8222_v49 = vld [vmem:[%s16328_s4 + $0x8a0] sm:$0xff]  ;;  %v8205_v48 = vld [vmem:[%s16328_s4 + $0x818] sm:$0xff] }
 0x408   :  { %8764 = vmatprep.subr.mxu0 %v8154_v42  ;;  %9325 = vmatprep.subr.mxu1 %v16919_v62  ;;  %v8189_v42 = vld [vmem:[%s16328_s4 + $0x798] sm:$0xff] }
 0x409   :  { %8765 = vmatpush3.msra.mxu0 %v8138_v44  ;;  %9326 = vmatpush3.msra.mxu1 %v8170_v31  ;;  %v8221_v44 = vld [vmem:[%s16328_s4 + $0x898] sm:$0xff]  ;;  %v8204_v31 = vld [vmem:[%s16328_s4 + $0x810] sm:$0xff] }
 0x40a   :  { %9327 = vmatprep.mubr.msk.f32.mxu1 %vm9764_vm2, %v16919_v62  ;;  %5967 = vmatmul.mubr.f32.vlgmr.msra.gmra.mxu0 %v5072_v63  ;;  %v8188_v63 = vld [vmem:[%s16328_s4 + $0x790] sm:$0xff] }
 0x40b   :  { %9328 = vmatmul.mubr.f32.vlgmr.msra.gmra.mxu1 %v5074_v1  ;;  %8786 = vmatprep.subr.mxu0 %v8217_v4  ;;  %v8220_v4 = vld [vmem:[%s16328_s4 + $0x890] sm:$0xff]  ;;  %v8203_v1 = vld [vmem:[%s16328_s4 + $0x808] sm:$0xff] }
 0x40c   :  { %9330 = vmatprep.subr.mxu1 %v16919_v62  ;;  %8787 = vmatpush3.msra.mxu0 %v8201_v57  ;;  %v8187_v57 = vld [vmem:[%s16328_s4 + $0x788] sm:$0xff] }
 0x40d   :  { %6156 = vmatprep.mubr.f32.mxu0 %v5076_v35  ;;  %9331 = vmatpush3.msra.mxu1 %v8233_v51  ;;  %v8219_v51 = vld [vmem:[%s16328_s4 + $0x888] sm:$0xff]  ;;  %v8202_v35 = vld [vmem:[%s16328_s4 + $0x800] sm:$0xff] }
 0x40e   :  { %8788 = vmatprep.subr.mxu0 %v8216_v6  ;;  %9332 = vmatprep.subr.mxu1 %v16919_v62  ;;  %v8186_v6 = vld [vmem:[%s16328_s4 + $0x780] sm:$0xff] }
 0x40f   :  { %8789 = vmatpush3.msra.mxu0 %v8200_v61  ;;  %9333 = vmatpush3.msra.mxu1 %v8232_v11  ;;  %v8218_v61 = vld [vmem:[%s16328_s4 + $0x880] sm:$0xff]  ;;  %v5075_v11 = vmax.f32 %v14362_v29, 0.0  ;;  %v8281_v29 = vld [vmem:[%s16328_s4 + $0xa78] sm:$0xff] }
 0x410   :  { %8790 = vmatprep.subr.mxu0 %v8215_v26  ;;  %9334 = vmatprep.subr.mxu1 %v16919_v62  ;;  %v8265_v26 = vld [vmem:[%s16328_s4 + $0x9f8] sm:$0xff] }
 0x411   :  { %8791 = vmatpush3.msra.mxu0 %v8199_v9  ;;  %9335 = vmatpush3.msra.mxu1 %v8231_v22  ;;  %v5077_v9 = vmax.f32 %v14374_v43, 0.0  ;;  %v8249_v22 = vld [vmem:[%s16328_s4 + $0x978] sm:$0xff]  ;;  %v8264_v43 = vld [vmem:[%s16328_s4 + $0x9f0] sm:$0xff] }
 0x412   :  { %8792 = vmatprep.subr.mxu0 %v8214_v27  ;;  %9336 = vmatprep.subr.mxu1 %v16919_v62  ;;  %v5079_v27 = vmax.f32 %v14617_v53, 0.0  ;;  %v8263_v53 = vld [vmem:[%s16328_s4 + $0x9e8] sm:$0xff] }
 0x413   :  { %8793 = vmatpush3.msra.mxu0 %v8198_v17  ;;  %9337 = vmatpush3.msra.mxu1 %v8230_v50  ;;  %v8248_v17 = vld [vmem:[%s16328_s4 + $0x970] sm:$0xff] }
 0x414   :  { %8794 = vmatprep.subr.mxu0 %v8213_v40  ;;  %9338 = vmatprep.subr.mxu1 %v16919_v62  ;;  %v8280_v50 = vld [vmem:[%s16328_s4 + $0xa70] sm:$0xff]  ;;  %v8247_v40 = vld [vmem:[%s16328_s4 + $0x968] sm:$0xff] }
 0x415   :  { %8795 = vmatpush3.msra.mxu0 %v8197_v21  ;;  %9339 = vmatpush3.msra.mxu1 %v8229_v15  ;;  %v8279_v21 = vld [vmem:[%s16328_s4 + $0xa68] sm:$0xff]  ;;  %v8262_v15 = vld [vmem:[%s16328_s4 + $0x9e0] sm:$0xff] }
 0x416   :  { %8796 = vmatprep.subr.mxu0 %v8212_v56  ;;  %9340 = vmatprep.subr.mxu1 %v16919_v62  ;;  %v8246_v56 = vld [vmem:[%s16328_s4 + $0x960] sm:$0xff] }
 0x417   :  { %8797 = vmatpush3.msra.mxu0 %v8196_v58  ;;  %9341 = vmatpush3.msra.mxu1 %v8228_v23  ;;  %v8278_v58 = vld [vmem:[%s16328_s4 + $0xa60] sm:$0xff]  ;;  %v8261_v23 = vld [vmem:[%s16328_s4 + $0x9d8] sm:$0xff] }
 0x418   :  { %8798 = vmatprep.subr.mxu0 %v8211_v39  ;;  %9342 = vmatprep.subr.mxu1 %v16919_v62  ;;  %v8245_v39 = vld [vmem:[%s16328_s4 + $0x958] sm:$0xff] }
 0x419   :  { %8799 = vmatpush3.msra.mxu0 %v8195_v52  ;;  %9343 = vmatpush3.msra.mxu1 %v8227_v2  ;;  %v8277_v52 = vld [vmem:[%s16328_s4 + $0xa58] sm:$0xff]  ;;  %v8260_v2 = vld [vmem:[%s16328_s4 + $0x9d0] sm:$0xff] }
 0x41a   :  { %8800 = vmatprep.subr.mxu0 %v8210_v41  ;;  %9344 = vmatprep.subr.mxu1 %v16919_v62  ;;  %v8244_v41 = vld [vmem:[%s16328_s4 + $0x950] sm:$0xff] }
 0x41b   :  { %8801 = vmatpush3.msra.mxu0 %v8194_v46  ;;  %9345 = vmatpush3.msra.mxu1 %v8226_v36  ;;  %v8276_v46 = vld [vmem:[%s16328_s4 + $0xa50] sm:$0xff]  ;;  %v8259_v36 = vld [vmem:[%s16328_s4 + $0x9c8] sm:$0xff] }
 0x41c   :  { %8802 = vmatprep.subr.mxu0 %v8209_v38  ;;  %9346 = vmatprep.subr.mxu1 %v16919_v62  ;;  %v8243_v38 = vld [vmem:[%s16328_s4 + $0x948] sm:$0xff] }
 0x41d   :  { %8803 = vmatpush3.msra.mxu0 %v8193_v47  ;;  %9347 = vmatpush3.msra.mxu1 %v8225_v30  ;;  %v8275_v47 = vld [vmem:[%s16328_s4 + $0xa48] sm:$0xff]  ;;  %v8258_v30 = vld [vmem:[%s16328_s4 + $0x9c0] sm:$0xff] }
 0x41e   :  { %8804 = vmatprep.subr.mxu0 %v8208_v0  ;;  %9348 = vmatprep.subr.mxu1 %v16919_v62  ;;  %v8242_v0 = vld [vmem:[%s16328_s4 + $0x940] sm:$0xff] }
 0x41f   :  { %8805 = vmatpush3.msra.mxu0 %v8192_v7  ;;  %9349 = vmatpush3.msra.mxu1 %v8224_v32  ;;  %v8274_v7 = vld [vmem:[%s16328_s4 + $0xa40] sm:$0xff]  ;;  %v8257_v32 = vld [vmem:[%s16328_s4 + $0x9b8] sm:$0xff] }
 0x420   :  { %8806 = vmatprep.subr.mxu0 %v8207_v33  ;;  %9350 = vmatprep.subr.mxu1 %v16919_v62  ;;  %v8241_v33 = vld [vmem:[%s16328_s4 + $0x938] sm:$0xff] }
 0x421   :  { %8807 = vmatpush3.msra.mxu0 %v8191_v54  ;;  %9351 = vmatpush3.msra.mxu1 %v8223_v14  ;;  %v8273_v54 = vld [vmem:[%s16328_s4 + $0xa38] sm:$0xff]  ;;  %v8256_v14 = vld [vmem:[%s16328_s4 + $0x9b0] sm:$0xff] }
 0x422   :  { %8808 = vmatprep.subr.mxu0 %v8206_v10  ;;  %9352 = vmatprep.subr.mxu1 %v16919_v62  ;;  %v8240_v10 = vld [vmem:[%s16328_s4 + $0x930] sm:$0xff] }
 0x423   :  { %8809 = vmatpush3.msra.mxu0 %v8190_v19  ;;  %9353 = vmatpush3.msra.mxu1 %v8222_v49  ;;  %v8272_v19 = vld [vmem:[%s16328_s4 + $0xa30] sm:$0xff]  ;;  %v8255_v49 = vld [vmem:[%s16328_s4 + $0x9a8] sm:$0xff] }
 0x424   :  { %8810 = vmatprep.subr.mxu0 %v8205_v48  ;;  %9354 = vmatprep.subr.mxu1 %v16919_v62  ;;  %v8239_v48 = vld [vmem:[%s16328_s4 + $0x928] sm:$0xff] }
 0x425   :  { %8811 = vmatpush3.msra.mxu0 %v8189_v42  ;;  %9355 = vmatpush3.msra.mxu1 %v8221_v44  ;;  %v8271_v42 = vld [vmem:[%s16328_s4 + $0xa28] sm:$0xff]  ;;  %v8254_v44 = vld [vmem:[%s16328_s4 + $0x9a0] sm:$0xff] }
 0x426   :  { %8812 = vmatprep.subr.mxu0 %v8204_v31  ;;  %9356 = vmatprep.subr.mxu1 %v16919_v62  ;;  %v8238_v31 = vld [vmem:[%s16328_s4 + $0x920] sm:$0xff] }
 0x427   :  { %8813 = vmatpush3.msra.mxu0 %v8188_v63  ;;  %9357 = vmatpush3.msra.mxu1 %v8220_v4  ;;  %v8270_v63 = vld [vmem:[%s16328_s4 + $0xa20] sm:$0xff]  ;;  %v8253_v4 = vld [vmem:[%s16328_s4 + $0x998] sm:$0xff] }
 0x428   :  { %8814 = vmatprep.subr.mxu0 %v8203_v1  ;;  %9358 = vmatprep.subr.mxu1 %v16919_v62 }
 0x429   :  { %8815 = vmatpush3.msra.mxu0 %v8187_v57  ;;  %9359 = vmatpush3.msra.mxu1 %v8219_v51  ;;  %v8237_v57 = vld [vmem:[%s16328_s4 + $0x918] sm:$0xff] }
 0x42a   :  { %8816 = vmatprep.subr.mxu0 %v8202_v35  ;;  %9360 = vmatprep.subr.mxu1 %v16919_v62  ;;  %v8269_v51 = vld [vmem:[%s16328_s4 + $0xa18] sm:$0xff]  ;;  %v8252_v35 = vld [vmem:[%s16328_s4 + $0x990] sm:$0xff] }
 0x42b   :  { %8817 = vmatpush3.msra.mxu0 %v8186_v6  ;;  %9361 = vmatpush3.msra.mxu1 %v8218_v61  ;;  %v8236_v61 = vld [vmem:[%s16328_s4 + $0x910] sm:$0xff] }
 0x42c   :  { %9362 = vmatprep.mubr.msk.f32.mxu1 %vm9764_vm2, %v16919_v62  ;;  %6157 = vmatmul.mubr.f32.vlgmr.msra.gmra.mxu0 %v5075_v11  ;;  %v8268_v11 = vld [vmem:[%s16328_s4 + $0xa10] sm:$0xff] }
 0x42d   :  { %9363 = vmatmul.mubr.f32.vlgmr.msra.gmra.mxu1 %v5077_v9  ;;  %8838 = vmatprep.subr.mxu0 %v8265_v26  ;;  %v8251_v26 = vld [vmem:[%s16328_s4 + $0x988] sm:$0xff] }
 0x42e   :  { %9365 = vmatprep.subr.mxu1 %v16919_v62  ;;  %8839 = vmatpush3.msra.mxu0 %v8249_v22  ;;  %v8235_v9 = vld [vmem:[%s16328_s4 + $0x908] sm:$0xff] }
 0x42f   :  { %6346 = vmatprep.mubr.f32.mxu0 %v5079_v27  ;;  %9366 = vmatpush3.msra.mxu1 %v8281_v29  ;;  %v8267_v22 = vld [vmem:[%s16328_s4 + $0xa08] sm:$0xff]  ;;  %v8250_v29 = vld [vmem:[%s16328_s4 + $0x980] sm:$0xff] }
 0x430   :  { %8840 = vmatprep.subr.mxu0 %v8264_v43  ;;  %9367 = vmatprep.subr.mxu1 %v16919_v62  ;;  %v8234_v27 = vld [vmem:[%s16328_s4 + $0x900] sm:$0xff] }
 0x431   :  { %8841 = vmatpush3.msra.mxu0 %v8248_v17  ;;  %9368 = vmatpush3.msra.mxu1 %v8280_v50  ;;  %v8266_v43 = vld [vmem:[%s16328_s4 + $0xa00] sm:$0xff]  ;;  %v5078_v17 = vmax.f32 %v14418_v25, 0.0  ;;  %v8313_v50 = vld [vmem:[%s16328_s4 + $0xb78] sm:$0xff] }
 0x432   :  { %8842 = vmatprep.subr.mxu0 %v8263_v53  ;;  %9369 = vmatprep.subr.mxu1 %v16919_v62  ;;  %v5080_v53 = vmax.f32 %v14421_v24, 0.0  ;;  %v8329_v25 = vld [vmem:[%s16328_s4 + $0xbf8] sm:$0xff]  ;;  %v8312_v24 = vld [vmem:[%s16328_s4 + $0xb70] sm:$0xff] }
 0x433   :  { %8843 = vmatpush3.msra.mxu0 %v8247_v40  ;;  %9370 = vmatpush3.msra.mxu1 %v8279_v21  ;;  %v8297_v40 = vld [vmem:[%s16328_s4 + $0xaf8] sm:$0xff]  ;;  %v5082_v21 = vmax.f32 %v14631_v28, 0.0  ;;  %v8311_v28 = vld [vmem:[%s16328_s4 + $0xb68] sm:$0xff] }
 0x434   :  { %8844 = vmatprep.subr.mxu0 %v8262_v15  ;;  %9371 = vmatprep.subr.mxu1 %v16919_v62  ;;  %v8296_v15 = vld [vmem:[%s16328_s4 + $0xaf0] sm:$0xff] }
 0x435   :  { %8845 = vmatpush3.msra.mxu0 %v8246_v56  ;;  %9372 = vmatpush3.msra.mxu1 %v8278_v58  ;;  %v8328_v56 = vld [vmem:[%s16328_s4 + $0xbf0] sm:$0xff]  ;;  %v8295_v58 = vld [vmem:[%s16328_s4 + $0xae8] sm:$0xff] }
 0x436   :  { %8846 = vmatprep.subr.mxu0 %v8261_v23  ;;  %9373 = vmatprep.subr.mxu1 %v16919_v62  ;;  %v8327_v23 = vld [vmem:[%s16328_s4 + $0xbe8] sm:$0xff] }
 0x437   :  { %8847 = vmatpush3.msra.mxu0 %v8245_v39  ;;  %9374 = vmatpush3.msra.mxu1 %v8277_v52  ;;  %v8310_v39 = vld [vmem:[%s16328_s4 + $0xb60] sm:$0xff] }
 0x438   :  { %8848 = vmatprep.subr.mxu0 %v8260_v2  ;;  %9375 = vmatprep.subr.mxu1 %v16919_v62  ;;  %v8294_v52 = vld [vmem:[%s16328_s4 + $0xae0] sm:$0xff] }
 0x439   :  { %8849 = vmatpush3.msra.mxu0 %v8244_v41  ;;  %9376 = vmatpush3.msra.mxu1 %v8276_v46  ;;  %v8326_v2 = vld [vmem:[%s16328_s4 + $0xbe0] sm:$0xff]  ;;  %v8309_v41 = vld [vmem:[%s16328_s4 + $0xb58] sm:$0xff] }
 0x43a   :  { %8850 = vmatprep.subr.mxu0 %v8259_v36  ;;  %9377 = vmatprep.subr.mxu1 %v16919_v62  ;;  %v8293_v46 = vld [vmem:[%s16328_s4 + $0xad8] sm:$0xff] }
 0x43b   :  { %8851 = vmatpush3.msra.mxu0 %v8243_v38  ;;  %9378 = vmatpush3.msra.mxu1 %v8275_v47  ;;  %v8325_v36 = vld [vmem:[%s16328_s4 + $0xbd8] sm:$0xff]  ;;  %v8308_v38 = vld [vmem:[%s16328_s4 + $0xb50] sm:$0xff] }
 0x43c   :  { %8852 = vmatprep.subr.mxu0 %v8258_v30  ;;  %9379 = vmatprep.subr.mxu1 %v16919_v62  ;;  %v8292_v47 = vld [vmem:[%s16328_s4 + $0xad0] sm:$0xff] }
 0x43d   :  { %8853 = vmatpush3.msra.mxu0 %v8242_v0  ;;  %9380 = vmatpush3.msra.mxu1 %v8274_v7  ;;  %v15416_v1 = vpop.f32.mrf.mxu1  ;;  %v8324_v30 = vld [vmem:[%s16328_s4 + $0xbd0] sm:$0xff]  ;;  %v8307_v0 = vld [vmem:[%s16328_s4 + $0xb48] sm:$0xff] }
 0x43e   :  { %8854 = vmatprep.subr.mxu0 %v8257_v32  ;;  %9381 = vmatprep.subr.mxu1 %v16919_v62  ;;  %v8291_v7 = vld [vmem:[%s16328_s4 + $0xac8] sm:$0xff] }
 0x43f   :  { %8855 = vmatpush3.msra.mxu0 %v8241_v33  ;;  %9382 = vmatpush3.msra.mxu1 %v8273_v54  ;;  %v9189_v6 = vpop.f32.mrf.mxu1  ;;  %v8323_v32 = vld [vmem:[%s16328_s4 + $0xbc8] sm:$0xff]  ;;  %v8306_v33 = vld [vmem:[%s16328_s4 + $0xb40] sm:$0xff]  ;;  %v8558_v54 = vpop.f32.mrf.mxu0 }
 0x440   :  { %8856 = vmatprep.subr.mxu0 %v8256_v14  ;;  %9383 = vmatprep.subr.mxu1 %v16919_v62  ;;  %v8290_v14 = vld [vmem:[%s16328_s4 + $0xac0] sm:$0xff] }
 0x441   :  { %8857 = vmatpush3.msra.mxu0 %v8240_v10  ;;  %9384 = vmatpush3.msra.mxu1 %v8272_v19  ;;  %v8322_v10 = vld [vmem:[%s16328_s4 + $0xbc0] sm:$0xff]  ;;  %v8305_v19 = vld [vmem:[%s16328_s4 + $0xb38] sm:$0xff] }
 0x442   :  { %8858 = vmatprep.subr.mxu0 %v8255_v49  ;;  %9385 = vmatprep.subr.mxu1 %v16919_v62  ;;  %v8289_v49 = vld [vmem:[%s16328_s4 + $0xab8] sm:$0xff]  ;;  %v8302_v6 = vld [vmem:[%s16328_s4 + $0xb20] sm:$0xff] }
 0x443   :  { %8859 = vmatpush3.msra.mxu0 %v8239_v48  ;;  %9386 = vmatpush3.msra.mxu1 %v8271_v42  ;;  %v8321_v48 = vld [vmem:[%s16328_s4 + $0xbb8] sm:$0xff]  ;;  %v8304_v42 = vld [vmem:[%s16328_s4 + $0xb30] sm:$0xff] }
 0x444   :  { %8860 = vmatprep.subr.mxu0 %v8254_v44  ;;  %9387 = vmatprep.subr.mxu1 %v16919_v62  ;;  %v8559_v44 = vpop.f32.mrf.mxu0 }
 0x445   :  { %8861 = vmatpush3.msra.mxu0 %v8238_v31  ;;  %9388 = vmatpush3.msra.mxu1 %v8270_v63  ;;  %v8288_v31 = vld [vmem:[%s16328_s4 + $0xab0] sm:$0xff] }
 0x446   :  { %8862 = vmatprep.subr.mxu0 %v8253_v4  ;;  %9389 = vmatprep.subr.mxu1 %v16919_v62  ;;  %v8320_v63 = vld [vmem:[%s16328_s4 + $0xbb0] sm:$0xff]  ;;  %v8303_v4 = vld [vmem:[%s16328_s4 + $0xb28] sm:$0xff] }
 0x447   :  { %8863 = vmatpush3.msra.mxu0 %v8237_v57  ;;  %9390 = vmatpush3.msra.mxu1 %v8269_v51  ;;  %v8287_v57 = vld [vmem:[%s16328_s4 + $0xaa8] sm:$0xff] }
 0x448   :  { %8864 = vmatprep.subr.mxu0 %v8252_v35  ;;  %9391 = vmatprep.subr.mxu1 %v16919_v62  ;;  %v8319_v51 = vld [vmem:[%s16328_s4 + $0xba8] sm:$0xff]  ;;  %v8560_v35 = vadd.f32 %v8559_v44, %v8558_v54  ;;  %v8357_v54 = vld [vmem:[%s16328_s4 + $0xcd8] sm:$0xff] }
 0x449   :  { %8865 = vmatpush3.msra.mxu0 %v8236_v61  ;;  %9392 = vmatpush3.msra.mxu1 %v8268_v11  ;;  %v8286_v61 = vld [vmem:[%s16328_s4 + $0xaa0] sm:$0xff]  ;;  %v8339_v44 = vld [vmem:[%s16328_s4 + $0xc48] sm:$0xff] }
 0x44a   :  { %8866 = vmatprep.subr.mxu0 %v8251_v26  ;;  %9393 = vmatprep.subr.mxu1 %v16919_v62  ;;  %v8318_v11 = vld [vmem:[%s16328_s4 + $0xba0] sm:$0xff] }
 0x44b   :  { %8867 = vmatpush3.msra.mxu0 %v8235_v9  ;;  %9394 = vmatpush3.msra.mxu1 %v8267_v22  ;;  %v8301_v9 = vld [vmem:[%s16328_s4 + $0xb18] sm:$0xff] }
 0x44c   :  { %8868 = vmatprep.subr.mxu0 %v8250_v29  ;;  %9395 = vmatprep.subr.mxu1 %v16919_v62  ;;  %v8285_v29 = vld [vmem:[%s16328_s4 + $0xa98] sm:$0xff] }
 0x44d   :  { %8869 = vmatpush3.msra.mxu0 %v8234_v27  ;;  %9396 = vmatpush3.msra.mxu1 %v8266_v43  ;;  %v8317_v27 = vld [vmem:[%s16328_s4 + $0xb98] sm:$0xff] }
 0x44e   :  { %9397 = vmatprep.mubr.msk.f32.mxu1 %vm9764_vm2, %v16919_v62  ;;  %6347 = vmatmul.mubr.f32.vlgmr.msra.gmra.mxu0 %v5078_v17  ;;  %v5330_v17 = vadd.f32 %v8560_v35, %v15416_v1  ;;  %v8299_v1 = vld [vmem:[%s16328_s4 + $0xb08] sm:$0xff]  ;;  %v8337_v35 = vld [vmem:[%s16328_s4 + $0xc38] sm:$0xff] }
 0x44f   :  { %9398 = vmatmul.mubr.f32.vlgmr.msra.gmra.mxu1 %v5080_v53  ;;  %8890 = vmatprep.subr.mxu0 %v8313_v50  ;;  %v8300_v50 = vld [vmem:[%s16328_s4 + $0xb10] sm:$0xff] }
 0x450   :  { %9400 = vmatprep.subr.mxu1 %v16919_v62  ;;  %8891 = vmatpush3.msra.mxu0 %v8297_v40 }
 0x451   :  { %6536 = vmatprep.mubr.f32.mxu0 %v5082_v21  ;;  %9401 = vmatpush3.msra.mxu1 %v8329_v25  ;;  %v8284_v25 = vld [vmem:[%s16328_s4 + $0xa90] sm:$0xff] }
 0x452   :  { %8892 = vmatprep.subr.mxu0 %v8312_v24  ;;  %9402 = vmatprep.subr.mxu1 %v16919_v62  ;;  %v8316_v21 = vld [vmem:[%s16328_s4 + $0xb90] sm:$0xff] }
 0x453   :  { %8893 = vmatpush3.msra.mxu0 %v8296_v15  ;;  %9403 = vmatpush3.msra.mxu1 %v8328_v56  ;;  %v8283_v15 = vld [vmem:[%s16328_s4 + $0xa88] sm:$0xff] }
 0x454   :  { %8894 = vmatprep.subr.mxu0 %v8311_v28  ;;  %9404 = vmatprep.subr.mxu1 %v16919_v62  ;;  %v8315_v56 = vld [vmem:[%s16328_s4 + $0xb88] sm:$0xff]  ;;  %v8298_v28 = vld [vmem:[%s16328_s4 + $0xb00] sm:$0xff] }
 0x455   :  { %8895 = vmatpush3.msra.mxu0 %v8295_v58  ;;  %9405 = vmatpush3.msra.mxu1 %v8327_v23  ;;  %v8282_v23 = vld [vmem:[%s16328_s4 + $0xa80] sm:$0xff] }
 0x456   :  { %8896 = vmatprep.subr.mxu0 %v8310_v39  ;;  %9406 = vmatprep.subr.mxu1 %v16919_v62  ;;  %v8314_v39 = vld [vmem:[%s16328_s4 + $0xb80] sm:$0xff] }
 0x457   :  { %8897 = vmatpush3.msra.mxu0 %v8294_v52  ;;  %9407 = vmatpush3.msra.mxu1 %v8326_v2  ;;  %v5081_v52 = vmax.f32 %v14451_v16, 0.0  ;;  %v8361_v2 = vld [vmem:[%s16328_s4 + $0xcf8] sm:$0xff] }
 0x458   :  { %8898 = vmatprep.subr.mxu0 %v8309_v41  ;;  %9408 = vmatprep.subr.mxu1 %v16919_v62  ;;  %v5083_v41 = vmax.f32 %v14463_v3, 0.0  ;;  %v8377_v16 = vld [vmem:[%s16328_s4 + $0xd78] sm:$0xff]  ;;  %v8360_v3 = vld [vmem:[%s16328_s4 + $0xcf0] sm:$0xff] }
 0x459   :  { %8899 = vmatpush3.msra.mxu0 %v8293_v46  ;;  %9409 = vmatpush3.msra.mxu1 %v8325_v36  ;;  %v8345_v46 = vld [vmem:[%s16328_s4 + $0xc78] sm:$0xff]  ;;  %v5085_v36 = vmax.f32 %v14635_v8, 0.0  ;;  %v8359_v8 = vld [vmem:[%s16328_s4 + $0xce8] sm:$0xff] }
 0x45a   :  { %8900 = vmatprep.subr.mxu0 %v8308_v38  ;;  %9410 = vmatprep.subr.mxu1 %v16919_v62  ;;  %v8344_v38 = vld [vmem:[%s16328_s4 + $0xc70] sm:$0xff] }
 0x45b   :  { %8901 = vmatpush3.msra.mxu0 %v8292_v47  ;;  %9411 = vmatpush3.msra.mxu1 %v8324_v30  ;;  %v8376_v47 = vld [vmem:[%s16328_s4 + $0xd70] sm:$0xff]  ;;  %v8343_v30 = vld [vmem:[%s16328_s4 + $0xc68] sm:$0xff] }
 0x45c   :  { %8902 = vmatprep.subr.mxu0 %v8307_v0  ;;  %9412 = vmatprep.subr.mxu1 %v16919_v62  ;;  %v8375_v0 = vld [vmem:[%s16328_s4 + $0xd68] sm:$0xff] }
 0x45d   :  { %8903 = vmatpush3.msra.mxu0 %v8291_v7  ;;  %9413 = vmatpush3.msra.mxu1 %v8323_v32  ;;  %v8358_v7 = vld [vmem:[%s16328_s4 + $0xce0] sm:$0xff] }
 0x45e   :  { %8904 = vmatprep.subr.mxu0 %v8306_v33  ;;  %9414 = vmatprep.subr.mxu1 %v16919_v62  ;;  %v8342_v32 = vld [vmem:[%s16328_s4 + $0xc60] sm:$0xff] }
 0x45f   :  { %8905 = vmatpush3.msra.mxu0 %v8290_v14  ;;  %9415 = vmatpush3.msra.mxu1 %v8322_v10  ;;  %v8374_v33 = vld [vmem:[%s16328_s4 + $0xd60] sm:$0xff]  ;;  %v8341_v14 = vld [vmem:[%s16328_s4 + $0xc58] sm:$0xff] }
 0x460   :  { %8906 = vmatprep.subr.mxu0 %v8305_v19  ;;  %9416 = vmatprep.subr.mxu1 %v16919_v62  ;;  %v8610_v26 = vpop.f32.mrf.mxu0  ;;  %v8373_v10 = vld [vmem:[%s16328_s4 + $0xd58] sm:$0xff]  ;;  %v8356_v19 = vld [vmem:[%s16328_s4 + $0xcd0] sm:$0xff] }
 0x461   :  { %8907 = vmatpush3.msra.mxu0 %v8289_v49  ;;  %9417 = vmatpush3.msra.mxu1 %v8321_v48  ;;  %v5469_v22 = vpop.f32.mrf.mxu1  ;;  %v8340_v49 = vld [vmem:[%s16328_s4 + $0xc50] sm:$0xff] }
 0x462   :  { %8908 = vmatprep.subr.mxu0 %v8304_v42  ;;  %9418 = vmatprep.subr.mxu1 %v16919_v62  ;;  %v8611_v43 = vpop.f32.mrf.mxu0  ;;  %v8372_v48 = vld [vmem:[%s16328_s4 + $0xd50] sm:$0xff]  ;;  %v8355_v42 = vld [vmem:[%s16328_s4 + $0xcc8] sm:$0xff] }
 0x463   :  { %8909 = vmatpush3.msra.mxu0 %v8288_v31  ;;  %9419 = vmatpush3.msra.mxu1 %v8320_v63  ;;  %v8612_v53 = vadd.f32 %v8611_v43, %v8610_v26  ;;  %v9224_v40 = vpop.f32.mrf.mxu1  ;;  %v8371_v31 = vld [vmem:[%s16328_s4 + $0xd48] sm:$0xff]  ;;  %v8354_v63 = vld [vmem:[%s16328_s4 + $0xcc0] sm:$0xff]  ;;  %v8368_v26 = vld [vmem:[%s16328_s4 + $0xd30] sm:$0xff] }
 0x464   :  { %8910 = vmatprep.subr.mxu0 %v8303_v4  ;;  %9420 = vmatprep.subr.mxu1 %v16919_v62  ;;  %v8338_v4 = vld [vmem:[%s16328_s4 + $0xc40] sm:$0xff] }
 0x465   :  { %8911 = vmatpush3.msra.mxu0 %v8287_v57  ;;  %9421 = vmatpush3.msra.mxu1 %v8319_v51  ;;  %v5400_v24 = vadd.f32 %v8612_v53, %v5330_v17  ;;  %v8370_v57 = vld [vmem:[%s16328_s4 + $0xd40] sm:$0xff]  ;;  %v8353_v51 = vld [vmem:[%s16328_s4 + $0xcb8] sm:$0xff] }
 0x466   :  { %8912 = vmatprep.subr.mxu0 %v8302_v6  ;;  %9422 = vmatprep.subr.mxu1 %v16919_v62  ;;  %v8369_v6 = vld [vmem:[%s16328_s4 + $0xd38] sm:$0xff]  ;;  %v8334_v43 = vld [vmem:[%s16328_s4 + $0xc20] sm:$0xff] }
 0x467   :  { %8913 = vmatpush3.msra.mxu0 %v8286_v61  ;;  %9423 = vmatpush3.msra.mxu1 %v8318_v11  ;;  %v15614_v58 = vadd.f32 %v5469_v22, %v5400_v24  ;;  %v8352_v61 = vld [vmem:[%s16328_s4 + $0xcb0] sm:$0xff]  ;;  %v8335_v22 = vld [vmem:[%s16328_s4 + $0xc28] sm:$0xff]  ;;  %v8366_v17 = vld [vmem:[%s16328_s4 + $0xd20] sm:$0xff] }
 0x468   :  { %8914 = vmatprep.subr.mxu0 %v8301_v9  ;;  %9424 = vmatprep.subr.mxu1 %v16919_v62  ;;  %v8336_v11 = vld [vmem:[%s16328_s4 + $0xc30] sm:$0xff]  ;;  %v8351_v9 = vld [vmem:[%s16328_s4 + $0xca8] sm:$0xff]  ;;  %v8349_v53 = vld [vmem:[%s16328_s4 + $0xc98] sm:$0xff] }
 0x469   :  { %8915 = vmatpush3.msra.mxu0 %v8285_v29  ;;  %9425 = vmatpush3.msra.mxu1 %v8317_v27  ;;  %v8367_v29 = vld [vmem:[%s16328_s4 + $0xd28] sm:$0xff]  ;;  %v8350_v27 = vld [vmem:[%s16328_s4 + $0xca0] sm:$0xff]  ;;  %v8348_v24 = vld [vmem:[%s16328_s4 + $0xc90] sm:$0xff] }
 0x46a   :  { %8916 = vmatprep.subr.mxu0 %v8300_v50  ;;  %9426 = vmatprep.subr.mxu1 %v16919_v62 }
 0x46b   :  { %8917 = vmatpush3.msra.mxu0 %v8284_v25  ;;  %9427 = vmatpush3.msra.mxu1 %v8316_v21  ;;  %v8333_v25 = vld [vmem:[%s16328_s4 + $0xc18] sm:$0xff] }
 0x46c   :  { %8918 = vmatprep.subr.mxu0 %v8299_v1  ;;  %9428 = vmatprep.subr.mxu1 %v16919_v62  ;;  %v8365_v21 = vld [vmem:[%s16328_s4 + $0xd18] sm:$0xff] }
 0x46d   :  { %8919 = vmatpush3.msra.mxu0 %v8283_v15  ;;  %9429 = vmatpush3.msra.mxu1 %v8315_v56 }
 0x46e   :  { %8920 = vmatprep.subr.mxu0 %v8298_v28  ;;  %9430 = vmatprep.subr.mxu1 %v16919_v62  ;;  %v8332_v28 = vld [vmem:[%s16328_s4 + $0xc10] sm:$0xff] }
 0x46f   :  { %8921 = vmatpush3.msra.mxu0 %v8282_v23  ;;  %9431 = vmatpush3.msra.mxu1 %v8314_v39  ;;  %v8364_v23 = vld [vmem:[%s16328_s4 + $0xd10] sm:$0xff]  ;;  %v8347_v39 = vld [vmem:[%s16328_s4 + $0xc88] sm:$0xff] }
 0x470   :  { %9432 = vmatprep.mubr.msk.f32.mxu1 %vm9764_vm2, %v16919_v62  ;;  %6537 = vmatmul.mubr.f32.vlgmr.msra.gmra.mxu0 %v5081_v52 }
 0x471   :  { %9433 = vmatmul.mubr.f32.vlgmr.msra.gmra.mxu1 %v5083_v41  ;;  %8942 = vmatprep.subr.mxu0 %v8361_v2  ;;  %v8331_v2 = vld [vmem:[%s16328_s4 + $0xc08] sm:$0xff] }
 0x472   :  { %9435 = vmatprep.subr.mxu1 %v16919_v62  ;;  %8943 = vmatpush3.msra.mxu0 %v8345_v46  ;;  %v8363_v41 = vld [vmem:[%s16328_s4 + $0xd08] sm:$0xff]  ;;  %v8346_v46 = vld [vmem:[%s16328_s4 + $0xc80] sm:$0xff] }
 0x473   :  { %6726 = vmatprep.mubr.f32.mxu0 %v5085_v36  ;;  %9436 = vmatpush3.msra.mxu1 %v8377_v16  ;;  %v8330_v36 = vld [vmem:[%s16328_s4 + $0xc00] sm:$0xff] }
 0x474   :  { %8944 = vmatprep.subr.mxu0 %v8360_v3  ;;  %9437 = vmatprep.subr.mxu1 %v16919_v62  ;;  %v8362_v3 = vld [vmem:[%s16328_s4 + $0xd00] sm:$0xff] }
 0x475   :  { %8945 = vmatpush3.msra.mxu0 %v8344_v38  ;;  %9438 = vmatpush3.msra.mxu1 %v8376_v47  ;;  %v5084_v38 = vmax.f32 %v14507_v55, 0.0  ;;  %v5086_v47 = vmax.f32 %v14514_v45, 0.0  ;;  %v8425_v55 = vld [vmem:[%s16328_s4 + $0xef8] sm:$0xff]  ;;  %v8408_v45 = vld [vmem:[%s16328_s4 + $0xe70] sm:$0xff] }
 0x476   :  { %8946 = vmatprep.subr.mxu0 %v8359_v8  ;;  %9439 = vmatprep.subr.mxu1 %v16919_v62  ;;  %v8393_v8 = vld [vmem:[%s16328_s4 + $0xdf8] sm:$0xff] }
 0x477   :  { %8947 = vmatpush3.msra.mxu0 %v8343_v30  ;;  %9440 = vmatpush3.msra.mxu1 %v8375_v0  ;;  %v5088_v30 = vmax.f32 %v14645_v13, 0.0  ;;  %v8392_v0 = vld [vmem:[%s16328_s4 + $0xdf0] sm:$0xff]  ;;  %v8407_v13 = vld [vmem:[%s16328_s4 + $0xe68] sm:$0xff] }
 0x478   :  { %8948 = vmatprep.subr.mxu0 %v8358_v7  ;;  %9441 = vmatprep.subr.mxu1 %v16919_v62  ;;  %v8424_v7 = vld [vmem:[%s16328_s4 + $0xef0] sm:$0xff] }
 0x479   :  { %8949 = vmatpush3.msra.mxu0 %v8342_v32  ;;  %9442 = vmatpush3.msra.mxu1 %v8374_v33  ;;  %v8391_v32 = vld [vmem:[%s16328_s4 + $0xde8] sm:$0xff] }
 0x47a   :  { %8950 = vmatprep.subr.mxu0 %v8357_v54  ;;  %9443 = vmatprep.subr.mxu1 %v16919_v62  ;;  %v8423_v33 = vld [vmem:[%s16328_s4 + $0xee8] sm:$0xff]  ;;  %v8406_v54 = vld [vmem:[%s16328_s4 + $0xe60] sm:$0xff] }
 0x47b   :  { %8951 = vmatpush3.msra.mxu0 %v8341_v14  ;;  %9444 = vmatpush3.msra.mxu1 %v8373_v10  ;;  %v8390_v14 = vld [vmem:[%s16328_s4 + $0xde0] sm:$0xff] }
 0x47c   :  { %8952 = vmatprep.subr.mxu0 %v8356_v19  ;;  %9445 = vmatprep.subr.mxu1 %v16919_v62  ;;  %v8422_v10 = vld [vmem:[%s16328_s4 + $0xee0] sm:$0xff]  ;;  %v8405_v19 = vld [vmem:[%s16328_s4 + $0xe58] sm:$0xff] }
 0x47d   :  { %8953 = vmatpush3.msra.mxu0 %v8340_v49  ;;  %9446 = vmatpush3.msra.mxu1 %v8372_v48  ;;  %v8389_v49 = vld [vmem:[%s16328_s4 + $0xdd8] sm:$0xff] }
 0x47e   :  { %8954 = vmatprep.subr.mxu0 %v8355_v42  ;;  %9447 = vmatprep.subr.mxu1 %v16919_v62  ;;  %v8421_v48 = vld [vmem:[%s16328_s4 + $0xed8] sm:$0xff]  ;;  %v8404_v42 = vld [vmem:[%s16328_s4 + $0xe50] sm:$0xff] }
 0x47f   :  { %8955 = vmatpush3.msra.mxu0 %v8339_v44  ;;  %9448 = vmatpush3.msra.mxu1 %v8371_v31  ;;  %v8388_v44 = vld [vmem:[%s16328_s4 + $0xdd0] sm:$0xff] }
 0x480   :  { %8956 = vmatprep.subr.mxu0 %v8354_v63  ;;  %9449 = vmatprep.subr.mxu1 %v16919_v62  ;;  %v8420_v31 = vld [vmem:[%s16328_s4 + $0xed0] sm:$0xff]  ;;  %v8403_v63 = vld [vmem:[%s16328_s4 + $0xe48] sm:$0xff] }
 0x481   :  { %8957 = vmatpush3.msra.mxu0 %v8338_v4  ;;  %9450 = vmatpush3.msra.mxu1 %v8370_v57  ;;  %v8387_v4 = vld [vmem:[%s16328_s4 + $0xdc8] sm:$0xff] }
 0x482   :  { %8958 = vmatprep.subr.mxu0 %v8353_v51  ;;  %9451 = vmatprep.subr.mxu1 %v16919_v62  ;;  %v8419_v57 = vld [vmem:[%s16328_s4 + $0xec8] sm:$0xff]  ;;  %v8402_v51 = vld [vmem:[%s16328_s4 + $0xe40] sm:$0xff] }
 0x483   :  { %8959 = vmatpush3.msra.mxu0 %v8337_v35  ;;  %9452 = vmatpush3.msra.mxu1 %v8369_v6  ;;  %v8386_v35 = vld [vmem:[%s16328_s4 + $0xdc0] sm:$0xff] }
 0x484   :  { %8960 = vmatprep.subr.mxu0 %v8352_v61  ;;  %9453 = vmatprep.subr.mxu1 %v16919_v62  ;;  %v8418_v6 = vld [vmem:[%s16328_s4 + $0xec0] sm:$0xff]  ;;  %v8401_v61 = vld [vmem:[%s16328_s4 + $0xe38] sm:$0xff] }
 0x485   :  { %8961 = vmatpush3.msra.mxu0 %v8336_v11  ;;  %9454 = vmatpush3.msra.mxu1 %v8368_v26  ;;  %v8385_v11 = vld [vmem:[%s16328_s4 + $0xdb8] sm:$0xff] }
 0x486   :  { %8962 = vmatprep.subr.mxu0 %v8351_v9  ;;  %9455 = vmatprep.subr.mxu1 %v16919_v62  ;;  %v5658_v40 = vpop.f32.mrf.mxu1  ;;  %v8417_v26 = vld [vmem:[%s16328_s4 + $0xeb8] sm:$0xff]  ;;  %v8400_v9 = vld [vmem:[%s16328_s4 + $0xe30] sm:$0xff] }
 0x487   :  { %v8662_v50 = vpop.f32.mrf.mxu0  ;;  %8963 = vmatpush3.msra.mxu0 %v8335_v22  ;;  %9456 = vmatpush3.msra.mxu1 %v8367_v29  ;;  %v8384_v22 = vld [vmem:[%s16328_s4 + $0xdb0] sm:$0xff] }
 0x488   :  { %8964 = vmatprep.subr.mxu0 %v8350_v27  ;;  %9457 = vmatprep.subr.mxu1 %v16919_v62  ;;  %v9259_v56 = vpop.f32.mrf.mxu1  ;;  %v8416_v29 = vld [vmem:[%s16328_s4 + $0xeb0] sm:$0xff]  ;;  %v8399_v27 = vld [vmem:[%s16328_s4 + $0xe28] sm:$0xff] }
 0x489   :  { %v8663_v1 = vpop.f32.mrf.mxu0  ;;  %8965 = vmatpush3.msra.mxu0 %v8334_v43  ;;  %9458 = vmatpush3.msra.mxu1 %v8366_v17  ;;  %v8383_v43 = vld [vmem:[%s16328_s4 + $0xda8] sm:$0xff] }
 0x48a   :  { %v8664_v15 = vadd.f32 %v8663_v1, %v8662_v50  ;;  %8966 = vmatprep.subr.mxu0 %v8349_v53  ;;  %9459 = vmatprep.subr.mxu1 %v16919_v62  ;;  %v8415_v17 = vld [vmem:[%s16328_s4 + $0xea8] sm:$0xff]  ;;  %v8398_v50 = vld [vmem:[%s16328_s4 + $0xe20] sm:$0xff] }
 0x48b   :  { %8967 = vmatpush3.msra.mxu0 %v8333_v25  ;;  %9460 = vmatpush3.msra.mxu1 %v8365_v21  ;;  %v8382_v53 = vld [vmem:[%s16328_s4 + $0xda0] sm:$0xff]  ;;  %v8397_v21 = vld [vmem:[%s16328_s4 + $0xe18] sm:$0xff] }
 0x48c   :  { %v5659_v52 = vadd.f32 %v8664_v15, %v5658_v40  ;;  %8968 = vmatprep.subr.mxu0 %v8348_v24  ;;  %9461 = vmatprep.subr.mxu1 %v16919_v62  ;;  %v8414_v40 = vld [vmem:[%s16328_s4 + $0xea0] sm:$0xff]  ;;  %v8381_v24 = vld [vmem:[%s16328_s4 + $0xd98] sm:$0xff] }
 0x48d   :  { %8969 = vmatpush3.msra.mxu0 %v8332_v28  ;;  %9462 = vmatpush3.msra.mxu1 %v8364_v23  ;;  %v8413_v15 = vld [vmem:[%s16328_s4 + $0xe98] sm:$0xff]  ;;  %v8396_v28 = vld [vmem:[%s16328_s4 + $0xe10] sm:$0xff] }
 0x48e   :  { %v15782_v16 = vadd.f32 %v5659_v52, %v15614_v58  ;;  %8970 = vmatprep.subr.mxu0 %v8347_v39  ;;  %9463 = vmatprep.subr.mxu1 %v16919_v62  ;;  %v8409_v58 = vld [vmem:[%s16328_s4 + $0xe78] sm:$0xff]  ;;  %v8380_v52 = vld [vmem:[%s16328_s4 + $0xd90] sm:$0xff] }
 0x48f   :  { %8971 = vmatpush3.msra.mxu0 %v8331_v2  ;;  %9464 = vmatpush3.msra.mxu1 %v8363_v41  ;;  %v8412_v2 = vld [vmem:[%s16328_s4 + $0xe90] sm:$0xff]  ;;  %v8395_v41 = vld [vmem:[%s16328_s4 + $0xe08] sm:$0xff] }
 0x490   :  { %8972 = vmatprep.subr.mxu0 %v8346_v46  ;;  %9465 = vmatprep.subr.mxu1 %v16919_v62 }
 0x491   :  { %8973 = vmatpush3.msra.mxu0 %v8330_v36  ;;  %9466 = vmatpush3.msra.mxu1 %v8362_v3  ;;  %v8379_v36 = vld [vmem:[%s16328_s4 + $0xd88] sm:$0xff] }
 0x492   :  { %9467 = vmatprep.mubr.msk.f32.mxu1 %vm9764_vm2, %v16919_v62  ;;  %6727 = vmatmul.mubr.f32.vlgmr.msra.gmra.mxu0 %v5084_v38  ;;  %v8411_v3 = vld [vmem:[%s16328_s4 + $0xe88] sm:$0xff]  ;;  %v8394_v38 = vld [vmem:[%s16328_s4 + $0xe00] sm:$0xff] }
 0x493   :  { %9468 = vmatmul.mubr.f32.vlgmr.msra.gmra.mxu1 %v5086_v47  ;;  %8994 = vmatprep.subr.mxu0 %v8409_v58  ;;  %v8378_v47 = vld [vmem:[%s16328_s4 + $0xd80] sm:$0xff] }
 0x494   :  { %9470 = vmatprep.subr.mxu1 %v16919_v62  ;;  %8995 = vmatpush3.msra.mxu0 %v8393_v8  ;;  %v8410_v8 = vld [vmem:[%s16328_s4 + $0xe80] sm:$0xff] }
 0x495   :  { %6916 = vmatprep.mubr.f32.mxu0 %v5088_v30  ;;  %9471 = vmatpush3.msra.mxu1 %v8425_v55  ;;  %v5087_v55 = vmax.f32 %v14550_v34, 0.0  ;;  %v5089_v30 = vmax.f32 %v14553_v18, 0.0  ;;  %v8473_v34 = vld [vmem:[%s16328_s4 + $0x1078] sm:$0xff]  ;;  %v8456_v18 = vld [vmem:[%s16328_s4 + $0xff0] sm:$0xff] }
 0x496   :  { %8996 = vmatprep.subr.mxu0 %v8408_v45  ;;  %9472 = vmatprep.subr.mxu1 %v16919_v62  ;;  %v8441_v45 = vld [vmem:[%s16328_s4 + $0xf78] sm:$0xff] }
 0x497   :  { %8997 = vmatpush3.msra.mxu0 %v8392_v0  ;;  %9473 = vmatpush3.msra.mxu1 %v8424_v7  ;;  %v5091_v0 = vmax.f32 %v14648_v59, 0.0  ;;  %v8440_v7 = vld [vmem:[%s16328_s4 + $0xf70] sm:$0xff]  ;;  %v8455_v59 = vld [vmem:[%s16328_s4 + $0xfe8] sm:$0xff] }
 0x498   :  { %8998 = vmatprep.subr.mxu0 %v8407_v13  ;;  %9474 = vmatprep.subr.mxu1 %v16919_v62  ;;  %v8472_v13 = vld [vmem:[%s16328_s4 + $0x1070] sm:$0xff] }
 0x499   :  { %8999 = vmatpush3.msra.mxu0 %v8391_v32  ;;  %9475 = vmatpush3.msra.mxu1 %v8423_v33  ;;  %v8439_v32 = vld [vmem:[%s16328_s4 + $0xf68] sm:$0xff] }
 0x49a   :  { %9000 = vmatprep.subr.mxu0 %v8406_v54  ;;  %9476 = vmatprep.subr.mxu1 %v16919_v62  ;;  %v8471_v33 = vld [vmem:[%s16328_s4 + $0x1068] sm:$0xff]  ;;  %v8454_v54 = vld [vmem:[%s16328_s4 + $0xfe0] sm:$0xff] }
 0x49b   :  { %9001 = vmatpush3.msra.mxu0 %v8390_v14  ;;  %9477 = vmatpush3.msra.mxu1 %v8422_v10  ;;  %v8438_v14 = vld [vmem:[%s16328_s4 + $0xf60] sm:$0xff] }
 0x49c   :  { %9002 = vmatprep.subr.mxu0 %v8405_v19  ;;  %9478 = vmatprep.subr.mxu1 %v16919_v62  ;;  %v8470_v10 = vld [vmem:[%s16328_s4 + $0x1060] sm:$0xff]  ;;  %v8453_v19 = vld [vmem:[%s16328_s4 + $0xfd8] sm:$0xff] }
 0x49d   :  { %9003 = vmatpush3.msra.mxu0 %v8389_v49  ;;  %9479 = vmatpush3.msra.mxu1 %v8421_v48  ;;  %v8437_v49 = vld [vmem:[%s16328_s4 + $0xf58] sm:$0xff] }
 0x49e   :  { %9004 = vmatprep.subr.mxu0 %v8404_v42  ;;  %9480 = vmatprep.subr.mxu1 %v16919_v62  ;;  %v8469_v48 = vld [vmem:[%s16328_s4 + $0x1058] sm:$0xff]  ;;  %v8452_v42 = vld [vmem:[%s16328_s4 + $0xfd0] sm:$0xff] }
 0x49f   :  { %9005 = vmatpush3.msra.mxu0 %v8388_v44  ;;  %9481 = vmatpush3.msra.mxu1 %v8420_v31  ;;  %v8436_v44 = vld [vmem:[%s16328_s4 + $0xf50] sm:$0xff] }
 0x4a0   :  { %9006 = vmatprep.subr.mxu0 %v8403_v63  ;;  %9482 = vmatprep.subr.mxu1 %v16919_v62  ;;  %v8468_v31 = vld [vmem:[%s16328_s4 + $0x1050] sm:$0xff]  ;;  %v8451_v63 = vld [vmem:[%s16328_s4 + $0xfc8] sm:$0xff] }
 0x4a1   :  { %9007 = vmatpush3.msra.mxu0 %v8387_v4  ;;  %9483 = vmatpush3.msra.mxu1 %v8419_v57  ;;  %v8435_v4 = vld [vmem:[%s16328_s4 + $0xf48] sm:$0xff] }
 0x4a2   :  { %9008 = vmatprep.subr.mxu0 %v8402_v51  ;;  %9484 = vmatprep.subr.mxu1 %v16919_v62  ;;  %v8467_v57 = vld [vmem:[%s16328_s4 + $0x1048] sm:$0xff]  ;;  %v8450_v51 = vld [vmem:[%s16328_s4 + $0xfc0] sm:$0xff] }
 0x4a3   :  { %9009 = vmatpush3.msra.mxu0 %v8386_v35  ;;  %9485 = vmatpush3.msra.mxu1 %v8418_v6  ;;  %v8434_v35 = vld [vmem:[%s16328_s4 + $0xf40] sm:$0xff] }
 0x4a4   :  { %9010 = vmatprep.subr.mxu0 %v8401_v61  ;;  %9486 = vmatprep.subr.mxu1 %v16919_v62  ;;  %v8466_v6 = vld [vmem:[%s16328_s4 + $0x1040] sm:$0xff]  ;;  %v8449_v61 = vld [vmem:[%s16328_s4 + $0xfb8] sm:$0xff] }
 0x4a5   :  { %9011 = vmatpush3.msra.mxu0 %v8385_v11  ;;  %9487 = vmatpush3.msra.mxu1 %v8417_v26  ;;  %v8433_v11 = vld [vmem:[%s16328_s4 + $0xf38] sm:$0xff] }
 0x4a6   :  { %9012 = vmatprep.subr.mxu0 %v8400_v9  ;;  %9488 = vmatprep.subr.mxu1 %v16919_v62  ;;  %v8465_v26 = vld [vmem:[%s16328_s4 + $0x1038] sm:$0xff]  ;;  %v8448_v9 = vld [vmem:[%s16328_s4 + $0xfb0] sm:$0xff] }
 0x4a7   :  { %9013 = vmatpush3.msra.mxu0 %v8384_v22  ;;  %9489 = vmatpush3.msra.mxu1 %v8416_v29  ;;  %v8432_v22 = vld [vmem:[%s16328_s4 + $0xf30] sm:$0xff] }
 0x4a8   :  { %9014 = vmatprep.subr.mxu0 %v8399_v27  ;;  %9490 = vmatprep.subr.mxu1 %v16919_v62  ;;  %v8714_v25 = vpop.f32.mrf.mxu0  ;;  %v8464_v29 = vld [vmem:[%s16328_s4 + $0x1030] sm:$0xff]  ;;  %v8447_v27 = vld [vmem:[%s16328_s4 + $0xfa8] sm:$0xff] }
 0x4a9   :  { %9015 = vmatpush3.msra.mxu0 %v8383_v43  ;;  %9491 = vmatpush3.msra.mxu1 %v8415_v17  ;;  %v5848_v1 = vpop.f32.mrf.mxu1  ;;  %v8431_v43 = vld [vmem:[%s16328_s4 + $0xf28] sm:$0xff] }
 0x4aa   :  { %9016 = vmatprep.subr.mxu0 %v8398_v50  ;;  %9492 = vmatprep.subr.mxu1 %v16919_v62  ;;  %v8715_v56 = vpop.f32.mrf.mxu0  ;;  %v8463_v17 = vld [vmem:[%s16328_s4 + $0x1028] sm:$0xff]  ;;  %v8446_v50 = vld [vmem:[%s16328_s4 + $0xfa0] sm:$0xff] }
 0x4ab   :  { %9017 = vmatpush3.msra.mxu0 %v8382_v53  ;;  %9493 = vmatpush3.msra.mxu1 %v8414_v40  ;;  %v8716_v23 = vadd.f32 %v8715_v56, %v8714_v25  ;;  %v9294_v39 = vpop.f32.mrf.mxu1  ;;  %v8430_v53 = vld [vmem:[%s16328_s4 + $0xf20] sm:$0xff] }
 0x4ac   :  { %9018 = vmatprep.subr.mxu0 %v8397_v21  ;;  %9494 = vmatprep.subr.mxu1 %v16919_v62  ;;  %v8462_v40 = vld [vmem:[%s16328_s4 + $0x1020] sm:$0xff]  ;;  %v8445_v21 = vld [vmem:[%s16328_s4 + $0xf98] sm:$0xff] }
 0x4ad   :  { %9019 = vmatpush3.msra.mxu0 %v8381_v24  ;;  %9495 = vmatpush3.msra.mxu1 %v8413_v15  ;;  %v5849_v46 = vadd.f32 %v8716_v23, %v5848_v1  ;;  %v8429_v24 = vld [vmem:[%s16328_s4 + $0xf18] sm:$0xff] }
 0x4ae   :  { %9020 = vmatprep.subr.mxu0 %v8396_v28  ;;  %9496 = vmatprep.subr.mxu1 %v16919_v62  ;;  %v8461_v15 = vld [vmem:[%s16328_s4 + $0x1018] sm:$0xff]  ;;  %v8444_v28 = vld [vmem:[%s16328_s4 + $0xf90] sm:$0xff] }
 0x4af   :  { %9021 = vmatpush3.msra.mxu0 %v8380_v52  ;;  %9497 = vmatpush3.msra.mxu1 %v8412_v2  ;;  %v15950_v58 = vadd.f32 %v5849_v46, %v15782_v16  ;;  %v8457_v16 = vld [vmem:[%s16328_s4 + $0xff8] sm:$0xff]  ;;  %v8428_v52 = vld [vmem:[%s16328_s4 + $0xf10] sm:$0xff] }
 0x4b0   :  { %9022 = vmatprep.subr.mxu0 %v8395_v41  ;;  %9498 = vmatprep.subr.mxu1 %v16919_v62  ;;  %v8460_v2 = vld [vmem:[%s16328_s4 + $0x1010] sm:$0xff]  ;;  %v8443_v41 = vld [vmem:[%s16328_s4 + $0xf88] sm:$0xff] }
 0x4b1   :  { %9023 = vmatpush3.msra.mxu0 %v8379_v36  ;;  %9499 = vmatpush3.msra.mxu1 %v8411_v3  ;;  %v8427_v36 = vld [vmem:[%s16328_s4 + $0xf08] sm:$0xff] }
 0x4b2   :  { %9024 = vmatprep.subr.mxu0 %v8394_v38  ;;  %9500 = vmatprep.subr.mxu1 %v16919_v62  ;;  %v8459_v3 = vld [vmem:[%s16328_s4 + $0x1008] sm:$0xff]  ;;  %v8442_v38 = vld [vmem:[%s16328_s4 + $0xf80] sm:$0xff] }
 0x4b3   :  { %9025 = vmatpush3.msra.mxu0 %v8378_v47  ;;  %9501 = vmatpush3.msra.mxu1 %v8410_v8  ;;  %v8426_v8 = vld [vmem:[%s16328_s4 + $0xf00] sm:$0xff] }
 0x4b4   :  { %9502 = vmatprep.mubr.msk.f32.mxu1 %vm9764_vm2, %v16919_v62  ;;  %6917 = vmatmul.mubr.f32.vlgmr.msra.gmra.mxu0 %v5087_v55  ;;  %v8458_v55 = vld [vmem:[%s16328_s4 + $0x1000] sm:$0xff] }
 0x4b5   :  { %9503 = vmatmul.mubr.f32.vlgmr.msra.gmra.mxu1 %v5089_v30  ;;  %9046 = vmatprep.subr.mxu0 %v8457_v16  ;;  %v5090_v16 = vmax.f32 %v14587_v37, 0.0  ;;  %v5092_v30 = vmax.f32 %v14598_v60, 0.0  ;;  %v8521_v37 = vld [vmem:[%s16328_s4 + $0x11f8] sm:$0xff]  ;;  %v8504_v60 = vld [vmem:[%s16328_s4 + $0x1170] sm:$0xff] }
 0x4b6   :  { %9505 = vmatprep.subr.mxu1 %v16919_v62  ;;  %9047 = vmatpush3.msra.mxu0 %v8441_v45  ;;  %v8489_v45 = vld [vmem:[%s16328_s4 + $0x10f8] sm:$0xff] }
 0x4b7   :  { %7106 = vmatprep.mubr.f32.mxu0 %v5091_v0  ;;  %9506 = vmatpush3.msra.mxu1 %v8473_v34  ;;  %v5094_v34 = vmax.f32 %v14661_v20, 0.0  ;;  %v8488_v0 = vld [vmem:[%s16328_s4 + $0x10f0] sm:$0xff]  ;;  %v8503_v20 = vld [vmem:[%s16328_s4 + $0x1168] sm:$0xff] }
 0x4b8   :  { %9048 = vmatprep.subr.mxu0 %v8456_v18  ;;  %9507 = vmatprep.subr.mxu1 %v16919_v62  ;;  %v8520_v18 = vld [vmem:[%s16328_s4 + $0x11f0] sm:$0xff] }
 0x4b9   :  { %9049 = vmatpush3.msra.mxu0 %v8440_v7  ;;  %9508 = vmatpush3.msra.mxu1 %v8472_v13  ;;  %v8487_v7 = vld [vmem:[%s16328_s4 + $0x10e8] sm:$0xff] }
 0x4ba   :  { %9050 = vmatprep.subr.mxu0 %v8455_v59  ;;  %9509 = vmatprep.subr.mxu1 %v16919_v62  ;;  %v8519_v13 = vld [vmem:[%s16328_s4 + $0x11e8] sm:$0xff]  ;;  %v8502_v59 = vld [vmem:[%s16328_s4 + $0x1160] sm:$0xff] }
 0x4bb   :  { %9051 = vmatpush3.msra.mxu0 %v8439_v32  ;;  %9510 = vmatpush3.msra.mxu1 %v8471_v33  ;;  %v8486_v32 = vld [vmem:[%s16328_s4 + $0x10e0] sm:$0xff] }
 0x4bc   :  { %9052 = vmatprep.subr.mxu0 %v8454_v54  ;;  %9511 = vmatprep.subr.mxu1 %v16919_v62  ;;  %v8518_v33 = vld [vmem:[%s16328_s4 + $0x11e0] sm:$0xff]  ;;  %v8501_v54 = vld [vmem:[%s16328_s4 + $0x1158] sm:$0xff] }
 0x4bd   :  { %9053 = vmatpush3.msra.mxu0 %v8438_v14  ;;  %9512 = vmatpush3.msra.mxu1 %v8470_v10  ;;  %v8485_v14 = vld [vmem:[%s16328_s4 + $0x10d8] sm:$0xff] }
 0x4be   :  { %9054 = vmatprep.subr.mxu0 %v8453_v19  ;;  %9513 = vmatprep.subr.mxu1 %v16919_v62  ;;  %v8517_v10 = vld [vmem:[%s16328_s4 + $0x11d8] sm:$0xff]  ;;  %v8500_v19 = vld [vmem:[%s16328_s4 + $0x1150] sm:$0xff] }
 0x4bf   :  { %9055 = vmatpush3.msra.mxu0 %v8437_v49  ;;  %9514 = vmatpush3.msra.mxu1 %v8469_v48  ;;  %v8484_v49 = vld [vmem:[%s16328_s4 + $0x10d0] sm:$0xff] }
 0x4c0   :  { %9056 = vmatprep.subr.mxu0 %v8452_v42  ;;  %9515 = vmatprep.subr.mxu1 %v16919_v62  ;;  %v8516_v48 = vld [vmem:[%s16328_s4 + $0x11d0] sm:$0xff]  ;;  %v8499_v42 = vld [vmem:[%s16328_s4 + $0x1148] sm:$0xff] }
 0x4c1   :  { %9057 = vmatpush3.msra.mxu0 %v8436_v44  ;;  %9516 = vmatpush3.msra.mxu1 %v8468_v31  ;;  %v8483_v44 = vld [vmem:[%s16328_s4 + $0x10c8] sm:$0xff] }
 0x4c2   :  { %9058 = vmatprep.subr.mxu0 %v8451_v63  ;;  %9517 = vmatprep.subr.mxu1 %v16919_v62  ;;  %v8515_v31 = vld [vmem:[%s16328_s4 + $0x11c8] sm:$0xff]  ;;  %v8498_v63 = vld [vmem:[%s16328_s4 + $0x1140] sm:$0xff] }
 0x4c3   :  { %9059 = vmatpush3.msra.mxu0 %v8435_v4  ;;  %9518 = vmatpush3.msra.mxu1 %v8467_v57  ;;  %v8482_v4 = vld [vmem:[%s16328_s4 + $0x10c0] sm:$0xff] }
 0x4c4   :  { %9060 = vmatprep.subr.mxu0 %v8450_v51  ;;  %9519 = vmatprep.subr.mxu1 %v16919_v62  ;;  %v8514_v57 = vld [vmem:[%s16328_s4 + $0x11c0] sm:$0xff]  ;;  %v8497_v51 = vld [vmem:[%s16328_s4 + $0x1138] sm:$0xff] }
 0x4c5   :  { %9061 = vmatpush3.msra.mxu0 %v8434_v35  ;;  %9520 = vmatpush3.msra.mxu1 %v8466_v6  ;;  %v8481_v35 = vld [vmem:[%s16328_s4 + $0x10b8] sm:$0xff] }
 0x4c6   :  { %9062 = vmatprep.subr.mxu0 %v8449_v61  ;;  %9521 = vmatprep.subr.mxu1 %v16919_v62  ;;  %v8513_v6 = vld [vmem:[%s16328_s4 + $0x11b8] sm:$0xff]  ;;  %v8496_v61 = vld [vmem:[%s16328_s4 + $0x1130] sm:$0xff] }
 0x4c7   :  { %9063 = vmatpush3.msra.mxu0 %v8433_v11  ;;  %9522 = vmatpush3.msra.mxu1 %v8465_v26  ;;  %v8480_v11 = vld [vmem:[%s16328_s4 + $0x10b0] sm:$0xff] }
 0x4c8   :  { %9064 = vmatprep.subr.mxu0 %v8448_v9  ;;  %9523 = vmatprep.subr.mxu1 %v16919_v62  ;;  %v8512_v26 = vld [vmem:[%s16328_s4 + $0x11b0] sm:$0xff]  ;;  %v8495_v9 = vld [vmem:[%s16328_s4 + $0x1128] sm:$0xff] }
 0x4c9   :  { %9065 = vmatpush3.msra.mxu0 %v8432_v22  ;;  %9524 = vmatpush3.msra.mxu1 %v8464_v29  ;;  %v8479_v22 = vld [vmem:[%s16328_s4 + $0x10a8] sm:$0xff] }
 0x4ca   :  { %9066 = vmatprep.subr.mxu0 %v8447_v27  ;;  %9525 = vmatprep.subr.mxu1 %v16919_v62  ;;  %v8766_v25 = vpop.f32.mrf.mxu0  ;;  %v8511_v29 = vld [vmem:[%s16328_s4 + $0x11a8] sm:$0xff]  ;;  %v8494_v27 = vld [vmem:[%s16328_s4 + $0x1120] sm:$0xff] }
 0x4cb   :  { %9067 = vmatpush3.msra.mxu0 %v8431_v43  ;;  %9526 = vmatpush3.msra.mxu1 %v8463_v17  ;;  %v6038_v1 = vpop.f32.mrf.mxu1  ;;  %v8478_v43 = vld [vmem:[%s16328_s4 + $0x10a0] sm:$0xff] }
 0x4cc   :  { %9068 = vmatprep.subr.mxu0 %v8446_v50  ;;  %9527 = vmatprep.subr.mxu1 %v16919_v62  ;;  %v8767_v56 = vpop.f32.mrf.mxu0  ;;  %v8510_v17 = vld [vmem:[%s16328_s4 + $0x11a0] sm:$0xff] }
 0x4cd   :  { %9069 = vmatpush3.msra.mxu0 %v8430_v53  ;;  %9528 = vmatpush3.msra.mxu1 %v8462_v40  ;;  %v8768_v23 = vadd.f32 %v8767_v56, %v8766_v25  ;;  %v9329_v39 = vpop.f32.mrf.mxu1  ;;  %v8493_v53 = vld [vmem:[%s16328_s4 + $0x1118] sm:$0xff] }
 0x4ce   :  { %9070 = vmatprep.subr.mxu0 %v8445_v21  ;;  %9529 = vmatprep.subr.mxu1 %v16919_v62  ;;  %v8477_v25 = vld [vmem:[%s16328_s4 + $0x1098] sm:$0xff]  ;;  %v8491_v39 = vld [vmem:[%s16328_s4 + $0x1108] sm:$0xff] }
 0x4cf   :  { %9071 = vmatpush3.msra.mxu0 %v8429_v24  ;;  %9530 = vmatpush3.msra.mxu1 %v8461_v15  ;;  %v6039_v46 = vadd.f32 %v8768_v23, %v6038_v1  ;;  %v8509_v21 = vld [vmem:[%s16328_s4 + $0x1198] sm:$0xff]  ;;  %v8492_v24 = vld [vmem:[%s16328_s4 + $0x1110] sm:$0xff] }
 0x4d0   :  { %9072 = vmatprep.subr.mxu0 %v8444_v28  ;;  %9531 = vmatprep.subr.mxu1 %v16919_v62  ;;  %v8476_v28 = vld [vmem:[%s16328_s4 + $0x1090] sm:$0xff] }
 0x4d1   :  { %9073 = vmatpush3.msra.mxu0 %v8428_v52  ;;  %9532 = vmatpush3.msra.mxu1 %v8460_v2  ;;  %v16118_v47 = vadd.f32 %v6039_v46, %v15950_v58  ;;  %v8505_v58 = vld [vmem:[%s16328_s4 + $0x1178] sm:$0xff]  ;;  %v8508_v23 = vld [vmem:[%s16328_s4 + $0x1190] sm:$0xff]  ;;  %v8475_v2 = vld [vmem:[%s16328_s4 + $0x1088] sm:$0xff] }
 0x4d2   :  { %9074 = vmatprep.subr.mxu0 %v8443_v41  ;;  %9533 = vmatprep.subr.mxu1 %v16919_v62  ;;  %v8507_v41 = vld [vmem:[%s16328_s4 + $0x1188] sm:$0xff]  ;;  %v8490_v46 = vld [vmem:[%s16328_s4 + $0x1100] sm:$0xff] }
 0x4d3   :  { %9075 = vmatpush3.msra.mxu0 %v8427_v36  ;;  %9534 = vmatpush3.msra.mxu1 %v8459_v3  ;;  %v8474_v3 = vld [vmem:[%s16328_s4 + $0x1080] sm:$0xff] }
 0x4d4   :  { %9076 = vmatprep.subr.mxu0 %v8442_v38  ;;  %9535 = vmatprep.subr.mxu1 %v16919_v62  ;;  %v8506_v38 = vld [vmem:[%s16328_s4 + $0x1180] sm:$0xff] }
 0x4d5   :  { %9077 = vmatpush3.msra.mxu0 %v8426_v8  ;;  %9536 = vmatpush3.msra.mxu1 %v8458_v55  ;;  %v5093_v8 = vmax.f32 %v14638_v12, 0.0 }
 0x4d6   :  { %9537 = vmatprep.mubr.msk.f32.mxu1 %vm9764_vm2, %v16919_v62  ;;  %7107 = vmatmul.mubr.f32.vlgmr.msra.gmra.mxu0 %v5090_v16 }
 0x4d7   :  { %9538 = vmatmul.mubr.f32.vlgmr.msra.gmra.mxu1 %v5092_v30  ;;  %9098 = vmatprep.subr.mxu0 %v8505_v58 }
 0x4d8   :  { %9540 = vmatprep.subr.mxu1 %v16919_v62  ;;  %9099 = vmatpush3.msra.mxu0 %v8489_v45 }
 0x4d9   :  { %7296 = vmatprep.mubr.f32.mxu0 %v5094_v34  ;;  %9541 = vmatpush3.msra.mxu1 %v8521_v37 }
 0x4da   :  { %9100 = vmatprep.subr.mxu0 %v8504_v60  ;;  %9542 = vmatprep.subr.mxu1 %v16919_v62 }
 0x4db   :  { %9101 = vmatpush3.msra.mxu0 %v8488_v0  ;;  %9543 = vmatpush3.msra.mxu1 %v8520_v18 }
 0x4dc   :  { %9102 = vmatprep.subr.mxu0 %v8503_v20  ;;  %9544 = vmatprep.subr.mxu1 %v16919_v62 }
 0x4dd   :  { %9103 = vmatpush3.msra.mxu0 %v8487_v7  ;;  %9545 = vmatpush3.msra.mxu1 %v8519_v13  ;;  %v7385_v13 = vld [vmem:[%s16330_s6 + $0x18] sm:$0xff] }
 0x4de   :  { %9104 = vmatprep.subr.mxu0 %v8502_v59  ;;  %9546 = vmatprep.subr.mxu1 %v16919_v62  ;;  %v7384_v59 = vld [vmem:[%s16330_s6 + $0x10] sm:$0xff] }
 0x4df   :  { %9105 = vmatpush3.msra.mxu0 %v8486_v32  ;;  %9547 = vmatpush3.msra.mxu1 %v8518_v33  ;;  %v7383_v32 = vld [vmem:[%s16330_s6 + $0x8] sm:$0xff]  ;;  %v7382_v33 = vld [vmem:[%s16330_s6] sm:$0xff] }
 0x4e0   :  { %9106 = vmatprep.subr.mxu0 %v8501_v54  ;;  %9548 = vmatprep.subr.mxu1 %v16919_v62 }
 0x4e1   :  { %9107 = vmatpush3.msra.mxu0 %v8485_v14  ;;  %9549 = vmatpush3.msra.mxu1 %v8517_v10 }
 0x4e2   :  { %9108 = vmatprep.subr.mxu0 %v8500_v19  ;;  %9550 = vmatprep.subr.mxu1 %v16919_v62 }
 0x4e3   :  { %9109 = vmatpush3.msra.mxu0 %v8484_v49  ;;  %9551 = vmatpush3.msra.mxu1 %v8516_v48 }
 0x4e4   :  { %9110 = vmatprep.subr.mxu0 %v8499_v42  ;;  %9552 = vmatprep.subr.mxu1 %v16919_v62 }
 0x4e5   :  { %9111 = vmatpush3.msra.mxu0 %v8483_v44  ;;  %9553 = vmatpush3.msra.mxu1 %v8515_v31 }
 0x4e6   :  { %9112 = vmatprep.subr.mxu0 %v8498_v63  ;;  %9554 = vmatprep.subr.mxu1 %v16919_v62 }
 0x4e7   :  { %9113 = vmatpush3.msra.mxu0 %v8482_v4  ;;  %9555 = vmatpush3.msra.mxu1 %v8514_v57 }
 0x4e8   :  { %9114 = vmatprep.subr.mxu0 %v8497_v51  ;;  %9556 = vmatprep.subr.mxu1 %v16919_v62 }
 0x4e9   :  { %9115 = vmatpush3.msra.mxu0 %v8481_v35  ;;  %9557 = vmatpush3.msra.mxu1 %v8513_v6 }
 0x4ea   :  { %9116 = vmatprep.subr.mxu0 %v8496_v61  ;;  %9558 = vmatprep.subr.mxu1 %v16919_v62 }
 0x4eb   :  { %9117 = vmatpush3.msra.mxu0 %v8480_v11  ;;  %9559 = vmatpush3.msra.mxu1 %v8512_v26 }
 0x4ec   :  { %9118 = vmatprep.subr.mxu0 %v8495_v9  ;;  %9560 = vmatprep.subr.mxu1 %v16919_v62  ;;  %v8818_v50 = vpop.f32.mrf.mxu0 }
 0x4ed   :  { %9119 = vmatpush3.msra.mxu0 %v8479_v22  ;;  %9561 = vmatpush3.msra.mxu1 %v8511_v29  ;;  %v6228_v40 = vpop.f32.mrf.mxu1 }
 0x4ee   :  { %9120 = vmatprep.subr.mxu0 %v8494_v27  ;;  %9562 = vmatprep.subr.mxu1 %v16919_v62  ;;  %v8819_v1 = vpop.f32.mrf.mxu0 }
 0x4ef   :  { %9121 = vmatpush3.msra.mxu0 %v8478_v43  ;;  %9563 = vmatpush3.msra.mxu1 %v8510_v17  ;;  %v8820_v15 = vadd.f32 %v8819_v1, %v8818_v50  ;;  %v9364_v56 = vpop.f32.mrf.mxu1 }
 0x4f0   :  { %9122 = vmatprep.subr.mxu0 %v8493_v53  ;;  %9564 = vmatprep.subr.mxu1 %v16919_v62 }
 0x4f1   :  { %9123 = vmatpush3.msra.mxu0 %v8477_v25  ;;  %9565 = vmatpush3.msra.mxu1 %v8509_v21  ;;  %v6229_v52 = vadd.f32 %v8820_v15, %v6228_v40  ;;  %v8522_v40 = vld [vmem:[%s16331_s5] ss:$0 sm:$0xff] }
 0x4f2   :  { %9124 = vmatprep.subr.mxu0 %v8492_v24  ;;  %9566 = vmatprep.subr.mxu1 %v16919_v62  ;;  %v8523_v24 = vld [vmem:[%s16332_s7] ss:$0 sm:$0xff] }
 0x4f3   :  { %9125 = vmatpush3.msra.mxu0 %v8476_v28  ;;  %9567 = vmatpush3.msra.mxu1 %v8508_v23  ;;  %v6232_v36 = vadd.f32 %v6229_v52, %v16118_v47  ;;  %v5095_v47 = vmax.f32 %v14651_v5, 0.0 }
 0x4f4   :  { %9126 = vmatprep.subr.mxu0 %v8491_v39  ;;  %9568 = vmatprep.subr.mxu1 %v16919_v62 }
 0x4f5   :  { %9127 = vmatpush3.msra.mxu0 %v8475_v2  ;;  %9569 = vmatpush3.msra.mxu1 %v8507_v41 }
 0x4f6   :  { %9128 = vmatprep.subr.mxu0 %v8490_v46  ;;  %9570 = vmatprep.subr.mxu1 %v16919_v62 }
 0x4f7   :  { %9129 = vmatpush3.msra.mxu0 %v8474_v3  ;;  %9571 = vmatpush3.msra.mxu1 %v8506_v38 }
 0x4f8   :  { %9572 = vmatprep.mubr.msk.f32.mxu1 %vm9764_vm2, %v16919_v62  ;;  %7297 = vmatmul.mubr.f32.vlgmr.msra.gmra.mxu0 %v5093_v8 }
 0x4f9   :  { %9573 = vmatmul.mubr.f32.vlgmr.msra.gmra.mxu1 %v5095_v47  ;;  %9575 = vmatprep.subr.mxu0 %v16919_v62 }
 0x4fa   :  { %9583 = vmatprep.mubr.msk.f32.mxu0 %vm9764_vm2, %v16919_v62  ;;  %9576 = vmatpush3.msra.mxu0 %v7385_v13 }
 0x4fb   :  { %9577 = vmatprep.subr.mxu0 %v16919_v62 }
 0x4fc   :  { %9578 = vmatpush3.msra.mxu0 %v7384_v59 }
 0x4fd   :  { %9579 = vmatprep.subr.mxu0 %v16919_v62 }
 0x4fe   :  { %9580 = vmatpush3.msra.mxu0 %v7383_v32 }
 0x4ff   :  { %9581 = vmatprep.subr.mxu0 %v16919_v62 }
 0x500   :  { %9582 = vmatpush3.msra.mxu0 %v7382_v33 }
 0x50e   :  { %v8870_v55 = vpop.f32.mrf.mxu0 }
 0x50f   :  { %v6418_v16 = vpop.f32.mrf.mxu1 }
 0x510   :  { %v8871_v12 = vpop.f32.mrf.mxu0 }
 0x511   :  { %v8872_v58 = vadd.f32 %v8871_v12, %v8870_v55  ;;  %v9399_v30 = vpop.f32.mrf.mxu1 }
 0x513   :  { %v6419_v45 = vadd.f32 %v8872_v58, %v6418_v16 }
 0x515   :  { %v6422_v37 = vadd.f32 %v6419_v45, %v6232_v36 }
 0x530   :  { %v8922_v5 = vpop.f32.mrf.mxu0 }
 0x531   :  { %v6608_v34 = vpop.f32.mrf.mxu1 }
 0x532   :  { %v8923_v60 = vpop.f32.mrf.mxu0 }
 0x533   :  { %v8924_v0 = vadd.f32 %v8923_v60, %v8922_v5  ;;  %v9434_v18 = vpop.f32.mrf.mxu1 }
 0x535   :  { %v6609_v20 = vadd.f32 %v8924_v0, %v6608_v34 }
 0x537   :  { %v6612_v7 = vadd.f32 %v6609_v20, %v6422_v37 }
 0x552   :  { %v8974_v54 = vpop.f32.mrf.mxu0 }
 0x553   :  { %v6798_v14 = vpop.f32.mrf.mxu1 }
 0x554   :  { %v8975_v10 = vpop.f32.mrf.mxu0 }
 0x555   :  { %v8976_v19 = vadd.f32 %v8975_v10, %v8974_v54  ;;  %v9469_v49 = vpop.f32.mrf.mxu1 }
 0x557   :  { %v6799_v48 = vadd.f32 %v8976_v19, %v6798_v14 }
 0x559   :  { %v6802_v42 = vadd.f32 %v6799_v48, %v6612_v7 }
 0x574   :  { %v9026_v44 = vpop.f32.mrf.mxu0 }
 0x575   :  { %v6988_v31 = vpop.f32.mrf.mxu1 }
 0x576   :  { %v9027_v63 = vpop.f32.mrf.mxu0 }
 0x577   :  { %v9028_v4 = vadd.f32 %v9027_v63, %v9026_v44  ;;  %v9504_v57 = vpop.f32.mrf.mxu1 }
 0x579   :  { %v6989_v51 = vadd.f32 %v9028_v4, %v6988_v31 }
 0x57b   :  { %v6992_v35 = vadd.f32 %v6989_v51, %v6802_v42 }
 0x596   :  { %v9078_v11 = vpop.f32.mrf.mxu0 }
 0x597   :  { %v7178_v6 = vpop.f32.mrf.mxu1 }
 0x598   :  { %v9079_v26 = vpop.f32.mrf.mxu0 }
 0x599   :  { %v9539_v61 = vpop.f32.mrf.mxu1  ;;  %v9080_v62 = vadd.f32 %v9079_v26, %v9078_v11 }
 0x59b   :  { %v7179_v22 = vadd.f32 %v9080_v62, %v7178_v6 }
 0x59d   :  { %v7182_v50 = vadd.f32 %v7179_v22, %v6992_v35 }
 0x5b8   :  { %v9130_v9 = vpop.f32.mrf.mxu0 }
 0x5b9   :  { %v7368_v29 = vpop.f32.mrf.mxu1 }
 0x5ba   :  { %v9131_v27 = vpop.f32.mrf.mxu0 }
 0x5bb   :  { %v9132_v43 = vadd.f32 %v9131_v27, %v9130_v9  ;;  %v9574_v17 = vpop.f32.mrf.mxu1 }
 0x5bd   :  { %v7369_v53 = vadd.f32 %v9132_v43, %v7368_v29 }
 0x5bf   :  { %v7372_v25 = vadd.f32 %v7369_v53, %v7182_v50 }
 0x5c1   :  { %v7380_v21 = vadd.f32 %v8522_v40, %v7372_v25 }
 0x5c3   :  { %v7381_v1 = vmax.f32 %v7380_v21, 0.0 }
 0x5c5   :  { %9584 = vmatmul.mubr.msk.f32.vlgmr.msra.gmra.mxu0 %vm7393_vm3, %v7381_v1 }
 0x685   :  { %v7463_v15 = vpop.f32.mrf.mxu0 }
 0x686   :  { %v7464_v56 = vadd.f32 %v8523_v24, %v7463_v15 }
 0x687   :  { %v9585_v28 = vpop.f32.mrf.mxu0 }
 0x688   :  { %v8525_v23 = vmul.f32 -1.442695, %v7464_v56 }
 0x68a   :  { %9588 = vpow2.f32 %v8525_v23 }
 0x697   :  { %v9589_v39 = vpop.eup %9588 }
 0x698   :  { %v7470_v52 = vadd.f32 1.0, %v9589_v39 }
 0x69a   :  { %9590 = vrcp.f32 %v7470_v52 }
 0x6a7   :  { %v9591_v2 = vpop.eup %9590 }
 0x6a8   :  { %7473 = vst [vmem:[%s16333_s8] sm:$0xff] %v9591_v2 }

</bundles_post_ra>
